<compile_context>
chip_gen: v7x
topology: tpu7x:2x2x1
jax: 0.10.0
libtpu: 0.0.40
codegen_flags: <defaults>
</compile_context>

<pallas_src>
import jax
import jax.numpy as jnp
from jax.experimental import pallas as pl
from jax.experimental.pallas import tpu as pltpu

# ----------------------------- model config ---------------------------------
NZ = 16     # latent dim            (PyTorch: nz)
NGF = 8     # generator base width  (PyTorch: ngf)
NC = 3      # output channels       (PyTorch: nc)
BATCH = 2
BN_EPS = 1e-5
COUT_PAD = 128          # lane width: pad every layer's Cout to this
VMEM_LIMIT = 32 << 20   # fits v5e/v6e/v7x

# (Cin, Cout, kernel, stride, padding, has_bn) -- static config
LAYER_DEFS = (
    (NZ,      NGF * 8, 4, 1, 0, True),
    (NGF * 8, NGF * 4, 4, 2, 1, True),
    (NGF * 4, NGF * 2, 4, 2, 1, True),
    (NGF * 2, NGF,     4, 2, 1, True),
    (NGF,     NC,      4, 2, 1, False),
)


# ------------------------------ Pallas kernels -------------------------------
def mm_bn_relu_kernel(p_ref, w_ref, g_ref, b_ref, o_ref):
    # y = patches @ w on the MXU (bf16 operands, f32 accumulate), then a fused
    # BatchNorm(training stats) + ReLU epilogue in f32, stored as bf16.
    y = jnp.dot(p_ref[...], w_ref[...], preferred_element_type=jnp.float32)
    inv_m = 1.0 / y.shape[0]
    s1 = jnp.sum(y, axis=0, keepdims=True)
    s2 = jnp.sum(y * y, axis=0, keepdims=True)
    mean = s1 * inv_m
    var = jnp.maximum(s2 * inv_m - mean * mean, 0.0)
    scale = g_ref[...] * jax.lax.rsqrt(var + BN_EPS)     # (1, 128)
    bias = b_ref[...] - mean * scale                      # (1, 128)
    z = jnp.maximum(y * scale + bias, 0.0)
    o_ref[...] = z.astype(o_ref.dtype)


def mm_tanh_kernel(p_ref, w_ref, o_ref):
    y = jnp.dot(p_ref[...], w_ref[...], preferred_element_type=jnp.float32)
    o_ref[...] = jnp.tanh(y)


def _vmem_spec():
    return pl.BlockSpec(memory_space=pltpu.MemorySpace.VMEM)


def pallas_mm_bn_relu(patches, wmat, gamma, beta):
    # Single-block call: BN needs global per-channel statistics over M, and
    # every BN layer here is small (patches <= 1 MiB in bf16).
    m = patches.shape[0]
    coutp = wmat.shape[1]
    return pl.pallas_call(
        mm_bn_relu_kernel,
        out_shape=jax.ShapeDtypeStruct((m, coutp), jnp.bfloat16),
        in_specs=[_vmem_spec()] * 4,
        out_specs=_vmem_spec(),
        compiler_params=pltpu.CompilerParams(vmem_limit_bytes=VMEM_LIMIT),
    )(patches, wmat, gamma, beta)


def pallas_mm_tanh(patches, wmat):
    # Rows are independent: tile over M so the patch DMA is double-buffered
    # against the matmul/tanh, and the grid can be sharded across TensorCores.
    m, kdim = patches.shape
    coutp = wmat.shape[1]
    tile_m = 1024 if (m % 1024 == 0) else m
    grid = (m // tile_m,)
    return pl.pallas_call(
        mm_tanh_kernel,
        out_shape=jax.ShapeDtypeStruct((m, coutp), jnp.float32),
        grid_spec=pltpu.PrefetchScalarGridSpec(
            num_scalar_prefetch=0,
            grid=grid,
            in_specs=[
                pl.BlockSpec((tile_m, kdim), lambda i: (i, 0)),
                pl.BlockSpec((kdim, coutp), lambda i: (0, 0)),
            ],
            out_specs=pl.BlockSpec((tile_m, coutp), lambda i: (i, 0)),
        ),
        compiler_params=pltpu.CompilerParams(
            dimension_semantics=("parallel",),
            vmem_limit_bytes=VMEM_LIMIT,
        ),
    )(patches, wmat)


# ------------------------ ConvTranspose2d -> matmul glue ----------------------
def dilate_pad_nhwc(x, k, stride, padding):
    """Zero-dilate by `stride` and pad by (k-1-padding) on H and W.  NHWC."""
    n, h, w, c = x.shape
    hup = (h - 1) * stride + 1
    wup = (w - 1) * stride + 1
    xup = jnp.zeros((n, hup, wup, c), x.dtype).at[:, ::stride, ::stride, :].set(x)
    pad = k - 1 - padding
    return jnp.pad(xup, ((0, 0), (pad, pad), (pad, pad), (0, 0)))


def extract_patches_nhwc(xp, k, hout, wout):
    """(N, Hp, Wp, Cin) -> (N*Hout*Wout, k*k*Cin), column order (a, b, ci)."""
    n, _, _, c = xp.shape
    slabs = [xp[:, a:a + hout, b:b + wout, :] for a in range(k) for b in range(k)]
    patches = jnp.concatenate(slabs, axis=-1)          # (N, Hout, Wout, k*k*Cin)
    return patches.reshape(n * hout * wout, k * k * c)


# ------------------------------ params ---------------------------------------
def init_generator_params(key):
    """PyTorch-layout parameters: ConvTranspose2d weight (Cin, Cout, k, k)."""
    params = []
    for (cin, cout, k, s, p, bn) in LAYER_DEFS:
        key, wk = jax.random.split(key)
        w = 0.02 * jax.random.normal(wk, (cin, cout, k, k), dtype=jnp.float32)
        layer = {"w": w}
        if bn:
            layer["gamma"] = jnp.ones((cout,), jnp.float32)
            layer["beta"] = jnp.zeros((cout,), jnp.float32)
        params.append(layer)
    return params


def prepare_params(params):
    """PyTorch weights -> flipped, (k*k*Cin, 128)-padded bf16 matmul matrices.

    ConvTranspose2d == regular conv over the dilated/padded input with the
    spatially flipped kernel; row index of the matrix is (a, b, ci) row-major,
    matching extract_patches_nhwc's column order.
    """
    prepped = []
    for (cin, cout, k, s, p, bn), lyr in zip(LAYER_DEFS, params):
        w = lyr["w"]                                   # (Cin, Cout, k, k)
        wflip = w[:, :, ::-1, ::-1]
        wmat = wflip.transpose(2, 3, 0, 1).reshape(k * k * cin, cout)
        wmat = jnp.pad(wmat, ((0, 0), (0, COUT_PAD - cout))).astype(jnp.bfloat16)
        entry = {"wmat": wmat}
        if bn:
            entry["gamma"] = jnp.pad(
                lyr["gamma"], (0, COUT_PAD - cout), constant_values=1.0
            ).reshape(1, COUT_PAD).astype(jnp.float32)
            entry["beta"] = jnp.pad(
                lyr["beta"], (0, COUT_PAD - cout)
            ).reshape(1, COUT_PAD).astype(jnp.float32)
        prepped.append(entry)
    return prepped


# ------------------------------ full Generator -------------------------------
@jax.jit
def generator_forward(z_nchw, prepped):
    # NCHW latent -> NHWC bf16 activations internally -> NCHW f32 image out.
    x = jnp.transpose(z_nchw, (0, 2, 3, 1)).astype(jnp.bfloat16)
    for (cin, cout, k, s, p, bn), lyr in zip(LAYER_DEFS, prepped):
        n, h, w, _ = x.shape
        hout = (h - 1) * s - 2 * p + k
        wout = (w - 1) * s - 2 * p + k
        xp = dilate_pad_nhwc(x, k, s, p)
        patches = extract_patches_nhwc(xp, k, hout, wout)     # bf16 (M, K)
        if bn:
            y = pallas_mm_bn_relu(patches, lyr["wmat"], lyr["gamma"], lyr["beta"])
        else:
            y = pallas_mm_tanh(patches, lyr["wmat"])
        # (M, 128) -> (N, Hout, Wout, Cout): drop the zero-padded channels.
        x = y.reshape(n, hout, wout, COUT_PAD)[..., :cout]
    return jnp.transpose(x, (0, 3, 1, 2)).astype(jnp.float32)   # NCHW


if __name__ == "__main__":
    key = jax.random.PRNGKey(0)
    pkey, zkey = jax.random.split(key)

    params = init_generator_params(pkey)
    prepped = prepare_params(params)

    z = jax.random.normal(zkey, (BATCH, NZ, 1, 1), dtype=jnp.float32)
    out = generator_forward(z, prepped)
    out = jax.block_until_ready(out)

    expected_shape = (BATCH, NC, 64, 64)
    assert out.shape == expected_shape, (out.shape, expected_shape)
    assert bool(jnp.all(jnp.isfinite(out)))
    assert bool(jnp.all(jnp.abs(out) <= 1.0))   # tanh range
    print("KERNEL_OK")
</pallas_src>

<mosaic_0001>
module attributes {stable_mosaic.version = 11 : i64} {
  func.func @mm_bn_relu_kernel(%arg0: memref<32x256xbf16, #tpu.memory_space<vmem>>, %arg1: memref<256x128xbf16, #tpu.memory_space<vmem>>, %arg2: memref<1x128xf32, #tpu.memory_space<vmem>>, %arg3: memref<1x128xf32, #tpu.memory_space<vmem>>, %arg4: memref<32x128xbf16, #tpu.memory_space<vmem>>) attributes {dimension_semantics = [], scalar_prefetch = 0 : i64, scratch_operands = 0 : i64, tpu.core_type = #tpu.core_type<tc>} {
    %c0 = arith.constant 0 : index
    %c0_0 = arith.constant 0 : index
    %0 = vector.load %arg0[%c0, %c0_0] : memref<32x256xbf16, #tpu.memory_space<vmem>>, vector<32x256xbf16>
    %c0_1 = arith.constant 0 : index
    %c0_2 = arith.constant 0 : index
    %1 = vector.load %arg1[%c0_1, %c0_2] : memref<256x128xbf16, #tpu.memory_space<vmem>>, vector<256x128xbf16>
    %cst = arith.constant dense<0.000000e+00> : vector<32x128xf32>
    %2 = tpu.matmul %0, %1, %cst {dimension_numbers = #tpu.dot_dimension_numbers<[1], [0], [0], [1], [0, 0, 1, 1], [], []>} : vector<32x256xbf16>, vector<256x128xbf16>, vector<32x128xf32> -> vector<32x128xf32>
    %cst_3 = arith.constant dense<0.000000e+00> : vector<128xf32>
    %3 = vector.multi_reduction <add>, %2, %cst_3 [0] : vector<32x128xf32> to vector<128xf32>
    %4 = vector.shape_cast %3 : vector<128xf32> to vector<1x128xf32>
    %5 = arith.mulf %2, %2 : vector<32x128xf32>
    %cst_4 = arith.constant dense<0.000000e+00> : vector<128xf32>
    %6 = vector.multi_reduction <add>, %5, %cst_4 [0] : vector<32x128xf32> to vector<128xf32>
    %7 = vector.shape_cast %6 : vector<128xf32> to vector<1x128xf32>
    %cst_5 = arith.constant 3.125000e-02 : f32
    %8 = vector.broadcast %cst_5 : f32 to vector<1x128xf32>
    %9 = arith.mulf %4, %8 : vector<1x128xf32>
    %cst_6 = arith.constant 3.125000e-02 : f32
    %10 = vector.broadcast %cst_6 : f32 to vector<1x128xf32>
    %11 = arith.mulf %7, %10 : vector<1x128xf32>
    %12 = arith.mulf %9, %9 : vector<1x128xf32>
    %13 = arith.subf %11, %12 : vector<1x128xf32>
    %cst_7 = arith.constant 0.000000e+00 : f32
    %14 = vector.broadcast %cst_7 : f32 to vector<1x128xf32>
    %15 = arith.maximumf %13, %14 : vector<1x128xf32>
    %c0_8 = arith.constant 0 : index
    %c0_9 = arith.constant 0 : index
    %16 = vector.load %arg2[%c0_8, %c0_9] : memref<1x128xf32, #tpu.memory_space<vmem>>, vector<1x128xf32>
    %cst_10 = arith.constant 9.99999974E-6 : f32
    %17 = vector.broadcast %cst_10 : f32 to vector<1x128xf32>
    %18 = arith.addf %15, %17 : vector<1x128xf32>
    %19 = math.rsqrt %18 : vector<1x128xf32>
    %20 = arith.mulf %16, %19 : vector<1x128xf32>
    %c0_11 = arith.constant 0 : index
    %c0_12 = arith.constant 0 : index
    %21 = vector.load %arg3[%c0_11, %c0_12] : memref<1x128xf32, #tpu.memory_space<vmem>>, vector<1x128xf32>
    %22 = arith.mulf %9, %20 : vector<1x128xf32>
    %23 = arith.subf %21, %22 : vector<1x128xf32>
    %24 = vector.broadcast %20 : vector<1x128xf32> to vector<32x128xf32>
    %25 = arith.mulf %2, %24 : vector<32x128xf32>
    %26 = vector.broadcast %23 : vector<1x128xf32> to vector<32x128xf32>
    %27 = arith.addf %25, %26 : vector<32x128xf32>
    %cst_13 = arith.constant 0.000000e+00 : f32
    %28 = vector.broadcast %cst_13 : f32 to vector<32x128xf32>
    %29 = arith.maximumf %27, %28 : vector<32x128xf32>
    %30 = arith.truncf %29 : vector<32x128xf32> to vector<32x128xbf16>
    %c0_14 = arith.constant 0 : index
    %c0_15 = arith.constant 0 : index
    %31 = vector.load %arg4[%c0_14, %c0_15] : memref<32x128xbf16, #tpu.memory_space<vmem>>, vector<32x128xbf16>
    tpu.vector_store %arg4[%c0_14, %c0_15], %30 {strides = array<i32>} : memref<32x128xbf16, #tpu.memory_space<vmem>>, vector<32x128xbf16>,
    return
  }
}

module attributes {stable_mosaic.version = 11 : i64} {
  func.func @mm_bn_relu_kernel(%arg0: memref<128x1024xbf16, #tpu.memory_space<vmem>>, %arg1: memref<1024x128xbf16, #tpu.memory_space<vmem>>, %arg2: memref<1x128xf32, #tpu.memory_space<vmem>>, %arg3: memref<1x128xf32, #tpu.memory_space<vmem>>, %arg4: memref<128x128xbf16, #tpu.memory_space<vmem>>) attributes {dimension_semantics = [], scalar_prefetch = 0 : i64, scratch_operands = 0 : i64, tpu.core_type = #tpu.core_type<tc>} {
    %c0 = arith.constant 0 : index
    %c0_0 = arith.constant 0 : index
    %0 = vector.load %arg0[%c0, %c0_0] : memref<128x1024xbf16, #tpu.memory_space<vmem>>, vector<128x1024xbf16>
    %c0_1 = arith.constant 0 : index
    %c0_2 = arith.constant 0 : index
    %1 = vector.load %arg1[%c0_1, %c0_2] : memref<1024x128xbf16, #tpu.memory_space<vmem>>, vector<1024x128xbf16>
    %cst = arith.constant dense<0.000000e+00> : vector<128x128xf32>
    %2 = tpu.matmul %0, %1, %cst {dimension_numbers = #tpu.dot_dimension_numbers<[1], [0], [0], [1], [0, 0, 1, 1], [], []>} : vector<128x1024xbf16>, vector<1024x128xbf16>, vector<128x128xf32> -> vector<128x128xf32>
    %cst_3 = arith.constant dense<0.000000e+00> : vector<128xf32>
    %3 = vector.multi_reduction <add>, %2, %cst_3 [0] : vector<128x128xf32> to vector<128xf32>
    %4 = vector.shape_cast %3 : vector<128xf32> to vector<1x128xf32>
    %5 = arith.mulf %2, %2 : vector<128x128xf32>
    %cst_4 = arith.constant dense<0.000000e+00> : vector<128xf32>
    %6 = vector.multi_reduction <add>, %5, %cst_4 [0] : vector<128x128xf32> to vector<128xf32>
    %7 = vector.shape_cast %6 : vector<128xf32> to vector<1x128xf32>
    %cst_5 = arith.constant 7.812500e-03 : f32
    %8 = vector.broadcast %cst_5 : f32 to vector<1x128xf32>
    %9 = arith.mulf %4, %8 : vector<1x128xf32>
    %cst_6 = arith.constant 7.812500e-03 : f32
    %10 = vector.broadcast %cst_6 : f32 to vector<1x128xf32>
    %11 = arith.mulf %7, %10 : vector<1x128xf32>
    %12 = arith.mulf %9, %9 : vector<1x128xf32>
    %13 = arith.subf %11, %12 : vector<1x128xf32>
    %cst_7 = arith.constant 0.000000e+00 : f32
    %14 = vector.broadcast %cst_7 : f32 to vector<1x128xf32>
    %15 = arith.maximumf %13, %14 : vector<1x128xf32>
    %c0_8 = arith.constant 0 : index
    %c0_9 = arith.constant 0 : index
    %16 = vector.load %arg2[%c0_8, %c0_9] : memref<1x128xf32, #tpu.memory_space<vmem>>, vector<1x128xf32>
    %cst_10 = arith.constant 9.99999974E-6 : f32
    %17 = vector.broadcast %cst_10 : f32 to vector<1x128xf32>
    %18 = arith.addf %15, %17 : vector<1x128xf32>
    %19 = math.rsqrt %18 : vector<1x128xf32>
    %20 = arith.mulf %16, %19 : vector<1x128xf32>
    %c0_11 = arith.constant 0 : index
    %c0_12 = arith.constant 0 : index
    %21 = vector.load %arg3[%c0_11, %c0_12] : memref<1x128xf32, #tpu.memory_space<vmem>>, vector<1x128xf32>
    %22 = arith.mulf %9, %20 : vector<1x128xf32>
    %23 = arith.subf %21, %22 : vector<1x128xf32>
    %24 = vector.broadcast %20 : vector<1x128xf32> to vector<128x128xf32>
    %25 = arith.mulf %2, %24 : vector<128x128xf32>
    %26 = vector.broadcast %23 : vector<1x128xf32> to vector<128x128xf32>
    %27 = arith.addf %25, %26 : vector<128x128xf32>
    %cst_13 = arith.constant 0.000000e+00 : f32
    %28 = vector.broadcast %cst_13 : f32 to vector<128x128xf32>
    %29 = arith.maximumf %27, %28 : vector<128x128xf32>
    %30 = arith.truncf %29 : vector<128x128xf32> to vector<128x128xbf16>
    %c0_14 = arith.constant 0 : index
    %c0_15 = arith.constant 0 : index
    %31 = vector.load %arg4[%c0_14, %c0_15] : memref<128x128xbf16, #tpu.memory_space<vmem>>, vector<128x128xbf16>
    tpu.vector_store %arg4[%c0_14, %c0_15], %30 {strides = array<i32>} : memref<128x128xbf16, #tpu.memory_space<vmem>>, vector<128x128xbf16>,
    return
  }
}

module attributes {stable_mosaic.version = 11 : i64} {
  func.func @mm_bn_relu_kernel(%arg0: memref<512x512xbf16, #tpu.memory_space<vmem>>, %arg1: memref<512x128xbf16, #tpu.memory_space<vmem>>, %arg2: memref<1x128xf32, #tpu.memory_space<vmem>>, %arg3: memref<1x128xf32, #tpu.memory_space<vmem>>, %arg4: memref<512x128xbf16, #tpu.memory_space<vmem>>) attributes {dimension_semantics = [], scalar_prefetch = 0 : i64, scratch_operands = 0 : i64, tpu.core_type = #tpu.core_type<tc>} {
    %c0 = arith.constant 0 : index
    %c0_0 = arith.constant 0 : index
    %0 = vector.load %arg0[%c0, %c0_0] : memref<512x512xbf16, #tpu.memory_space<vmem>>, vector<512x512xbf16>
    %c0_1 = arith.constant 0 : index
    %c0_2 = arith.constant 0 : index
    %1 = vector.load %arg1[%c0_1, %c0_2] : memref<512x128xbf16, #tpu.memory_space<vmem>>, vector<512x128xbf16>
    %cst = arith.constant dense<0.000000e+00> : vector<512x128xf32>
    %2 = tpu.matmul %0, %1, %cst {dimension_numbers = #tpu.dot_dimension_numbers<[1], [0], [0], [1], [0, 0, 1, 1], [], []>} : vector<512x512xbf16>, vector<512x128xbf16>, vector<512x128xf32> -> vector<512x128xf32>
    %cst_3 = arith.constant dense<0.000000e+00> : vector<128xf32>
    %3 = vector.multi_reduction <add>, %2, %cst_3 [0] : vector<512x128xf32> to vector<128xf32>
    %4 = vector.shape_cast %3 : vector<128xf32> to vector<1x128xf32>
    %5 = arith.mulf %2, %2 : vector<512x128xf32>
    %cst_4 = arith.constant dense<0.000000e+00> : vector<128xf32>
    %6 = vector.multi_reduction <add>, %5, %cst_4 [0] : vector<512x128xf32> to vector<128xf32>
    %7 = vector.shape_cast %6 : vector<128xf32> to vector<1x128xf32>
    %cst_5 = arith.constant 0.001953125 : f32
    %8 = vector.broadcast %cst_5 : f32 to vector<1x128xf32>
    %9 = arith.mulf %4, %8 : vector<1x128xf32>
    %cst_6 = arith.constant 0.001953125 : f32
    %10 = vector.broadcast %cst_6 : f32 to vector<1x128xf32>
    %11 = arith.mulf %7, %10 : vector<1x128xf32>
    %12 = arith.mulf %9, %9 : vector<1x128xf32>
    %13 = arith.subf %11, %12 : vector<1x128xf32>
    %cst_7 = arith.constant 0.000000e+00 : f32
    %14 = vector.broadcast %cst_7 : f32 to vector<1x128xf32>
    %15 = arith.maximumf %13, %14 : vector<1x128xf32>
    %c0_8 = arith.constant 0 : index
    %c0_9 = arith.constant 0 : index
    %16 = vector.load %arg2[%c0_8, %c0_9] : memref<1x128xf32, #tpu.memory_space<vmem>>, vector<1x128xf32>
    %cst_10 = arith.constant 9.99999974E-6 : f32
    %17 = vector.broadcast %cst_10 : f32 to vector<1x128xf32>
    %18 = arith.addf %15, %17 : vector<1x128xf32>
    %19 = math.rsqrt %18 : vector<1x128xf32>
    %20 = arith.mulf %16, %19 : vector<1x128xf32>
    %c0_11 = arith.constant 0 : index
    %c0_12 = arith.constant 0 : index
    %21 = vector.load %arg3[%c0_11, %c0_12] : memref<1x128xf32, #tpu.memory_space<vmem>>, vector<1x128xf32>
    %22 = arith.mulf %9, %20 : vector<1x128xf32>
    %23 = arith.subf %21, %22 : vector<1x128xf32>
    %24 = vector.broadcast %20 : vector<1x128xf32> to vector<512x128xf32>
    %25 = arith.mulf %2, %24 : vector<512x128xf32>
    %26 = vector.broadcast %23 : vector<1x128xf32> to vector<512x128xf32>
    %27 = arith.addf %25, %26 : vector<512x128xf32>
    %cst_13 = arith.constant 0.000000e+00 : f32
    %28 = vector.broadcast %cst_13 : f32 to vector<512x128xf32>
    %29 = arith.maximumf %27, %28 : vector<512x128xf32>
    %30 = arith.truncf %29 : vector<512x128xf32> to vector<512x128xbf16>
    %c0_14 = arith.constant 0 : index
    %c0_15 = arith.constant 0 : index
    %31 = vector.load %arg4[%c0_14, %c0_15] : memref<512x128xbf16, #tpu.memory_space<vmem>>, vector<512x128xbf16>
    tpu.vector_store %arg4[%c0_14, %c0_15], %30 {strides = array<i32>} : memref<512x128xbf16, #tpu.memory_space<vmem>>, vector<512x128xbf16>,
    return
  }
}

module attributes {stable_mosaic.version = 11 : i64} {
  func.func @mm_bn_relu_kernel(%arg0: memref<2048x256xbf16, #tpu.memory_space<vmem>>, %arg1: memref<256x128xbf16, #tpu.memory_space<vmem>>, %arg2: memref<1x128xf32, #tpu.memory_space<vmem>>, %arg3: memref<1x128xf32, #tpu.memory_space<vmem>>, %arg4: memref<2048x128xbf16, #tpu.memory_space<vmem>>) attributes {dimension_semantics = [], scalar_prefetch = 0 : i64, scratch_operands = 0 : i64, tpu.core_type = #tpu.core_type<tc>} {
    %c0 = arith.constant 0 : index
    %c0_0 = arith.constant 0 : index
    %0 = vector.load %arg0[%c0, %c0_0] : memref<2048x256xbf16, #tpu.memory_space<vmem>>, vector<2048x256xbf16>
    %c0_1 = arith.constant 0 : index
    %c0_2 = arith.constant 0 : index
    %1 = vector.load %arg1[%c0_1, %c0_2] : memref<256x128xbf16, #tpu.memory_space<vmem>>, vector<256x128xbf16>
    %cst = arith.constant dense<0.000000e+00> : vector<2048x128xf32>
    %2 = tpu.matmul %0, %1, %cst {dimension_numbers = #tpu.dot_dimension_numbers<[1], [0], [0], [1], [0, 0, 1, 1], [], []>} : vector<2048x256xbf16>, vector<256x128xbf16>, vector<2048x128xf32> -> vector<2048x128xf32>
    %cst_3 = arith.constant dense<0.000000e+00> : vector<128xf32>
    %3 = vector.multi_reduction <add>, %2, %cst_3 [0] : vector<2048x128xf32> to vector<128xf32>
    %4 = vector.shape_cast %3 : vector<128xf32> to vector<1x128xf32>
    %5 = arith.mulf %2, %2 : vector<2048x128xf32>
    %cst_4 = arith.constant dense<0.000000e+00> : vector<128xf32>
    %6 = vector.multi_reduction <add>, %5, %cst_4 [0] : vector<2048x128xf32> to vector<128xf32>
    %7 = vector.shape_cast %6 : vector<128xf32> to vector<1x128xf32>
    %cst_5 = arith.constant 4.8828125E-4 : f32
    %8 = vector.broadcast %cst_5 : f32 to vector<1x128xf32>
    %9 = arith.mulf %4, %8 : vector<1x128xf32>
    %cst_6 = arith.constant 4.8828125E-4 : f32
    %10 = vector.broadcast %cst_6 : f32 to vector<1x128xf32>
    %11 = arith.mulf %7, %10 : vector<1x128xf32>
    %12 = arith.mulf %9, %9 : vector<1x128xf32>
    %13 = arith.subf %11, %12 : vector<1x128xf32>
    %cst_7 = arith.constant 0.000000e+00 : f32
    %14 = vector.broadcast %cst_7 : f32 to vector<1x128xf32>
    %15 = arith.maximumf %13, %14 : vector<1x128xf32>
    %c0_8 = arith.constant 0 : index
    %c0_9 = arith.constant 0 : index
    %16 = vector.load %arg2[%c0_8, %c0_9] : memref<1x128xf32, #tpu.memory_space<vmem>>, vector<1x128xf32>
    %cst_10 = arith.constant 9.99999974E-6 : f32
    %17 = vector.broadcast %cst_10 : f32 to vector<1x128xf32>
    %18 = arith.addf %15, %17 : vector<1x128xf32>
    %19 = math.rsqrt %18 : vector<1x128xf32>
    %20 = arith.mulf %16, %19 : vector<1x128xf32>
    %c0_11 = arith.constant 0 : index
    %c0_12 = arith.constant 0 : index
    %21 = vector.load %arg3[%c0_11, %c0_12] : memref<1x128xf32, #tpu.memory_space<vmem>>, vector<1x128xf32>
    %22 = arith.mulf %9, %20 : vector<1x128xf32>
    %23 = arith.subf %21, %22 : vector<1x128xf32>
    %24 = vector.broadcast %20 : vector<1x128xf32> to vector<2048x128xf32>
    %25 = arith.mulf %2, %24 : vector<2048x128xf32>
    %26 = vector.broadcast %23 : vector<1x128xf32> to vector<2048x128xf32>
    %27 = arith.addf %25, %26 : vector<2048x128xf32>
    %cst_13 = arith.constant 0.000000e+00 : f32
    %28 = vector.broadcast %cst_13 : f32 to vector<2048x128xf32>
    %29 = arith.maximumf %27, %28 : vector<2048x128xf32>
    %30 = arith.truncf %29 : vector<2048x128xf32> to vector<2048x128xbf16>
    %c0_14 = arith.constant 0 : index
    %c0_15 = arith.constant 0 : index
    %31 = vector.load %arg4[%c0_14, %c0_15] : memref<2048x128xbf16, #tpu.memory_space<vmem>>, vector<2048x128xbf16>
    tpu.vector_store %arg4[%c0_14, %c0_15], %30 {strides = array<i32>} : memref<2048x128xbf16, #tpu.memory_space<vmem>>, vector<2048x128xbf16>,
    return
  }
}

module attributes {stable_mosaic.version = 11 : i64} {
  func.func @mm_tanh_kernel(%arg0: i32, %arg1: memref<1024x128xbf16, #tpu.memory_space<vmem>>, %arg2: memref<128x128xbf16, #tpu.memory_space<vmem>>, %arg3: memref<1024x128xf32, #tpu.memory_space<vmem>>) attributes {dimension_semantics = [#tpu.dimension_semantics<parallel>], iteration_bounds = array<i64: 8>, scalar_prefetch = 0 : i64, scratch_operands = 0 : i64, tpu.core_type = #tpu.core_type<tc>, window_params = [{transform_indices = @transform_0, window_bounds = array<i64: 1024, 128>}, {pipeline_mode = #tpu.pipeline_mode<synchronous>, transform_indices = @transform_1, window_bounds = array<i64: 128, 128>}, {transform_indices = @transform_2, window_bounds = array<i64: 1024, 128>}]} {
    %c0 = arith.constant 0 : index
    %c0_0 = arith.constant 0 : index
    %0 = vector.load %arg1[%c0, %c0_0] : memref<1024x128xbf16, #tpu.memory_space<vmem>>, vector<1024x128xbf16>
    %c0_1 = arith.constant 0 : index
    %c0_2 = arith.constant 0 : index
    %1 = vector.load %arg2[%c0_1, %c0_2] : memref<128x128xbf16, #tpu.memory_space<vmem>>, vector<128x128xbf16>
    %cst = arith.constant dense<0.000000e+00> : vector<1024x128xf32>
    %2 = tpu.matmul %0, %1, %cst {dimension_numbers = #tpu.dot_dimension_numbers<[1], [0], [0], [1], [0, 0, 1, 1], [], []>} : vector<1024x128xbf16>, vector<128x128xbf16>, vector<1024x128xf32> -> vector<1024x128xf32>
    %3 = math.tanh %2 : vector<1024x128xf32>
    %c0_3 = arith.constant 0 : index
    %c0_4 = arith.constant 0 : index
    %4 = vector.load %arg3[%c0_3, %c0_4] : memref<1024x128xf32, #tpu.memory_space<vmem>>, vector<1024x128xf32>
    tpu.vector_store %arg3[%c0_3, %c0_4], %3 {strides = array<i32>} : memref<1024x128xf32, #tpu.memory_space<vmem>>, vector<1024x128xf32>,
    return
  }
  func.func @transform_0(%arg0: i32) -> (i32, i32) {
    %c0_i32 = arith.constant 0 : i32
    %c0_i32_0 = arith.constant 0 : i32
    return %arg0, %c0_i32 : i32, i32
  }
  func.func @transform_1(%arg0: i32) -> (i32, i32) {
    %c0_i32 = arith.constant 0 : i32
    %c0_i32_0 = arith.constant 0 : i32
    %c0_i32_1 = arith.constant 0 : i32
    return %c0_i32, %c0_i32_0 : i32, i32
  }
  func.func @transform_2(%arg0: i32) -> (i32, i32) {
    %c0_i32 = arith.constant 0 : i32
    %c0_i32_0 = arith.constant 0 : i32
    return %arg0, %c0_i32 : i32, i32
  }
}

</mosaic_0001>

<bundles_post_ra>
// kernel: generator_forward.5
= control target key start
LH: loop header
LB: loop body
LE: loop exit
PB: predicated region body
PF: predicated region fallthrough
CT: control target
= control target key end

     0   :  { %9 = vsyncpa [#allocation3], 0  ;;  %s613_s0 = inlined_call_operand.vmem [shape: bf16[32,256], index: 0, kind: input, shape index: {}]   ;;  %s614_s1 = inlined_call_operand.hbm [shape: bf16[256,128], index: 1, kind: input, shape index: {}]   ;;  %s615_s2 = inlined_call_operand.hbm [shape: f32[1,128], index: 2, kind: input, shape index: {}]   ;;  %s616_s3 = inlined_call_operand.hbm [shape: f32[1,128], index: 3, kind: input, shape index: {}]   ;;  %s617_s4 = inlined_call_operand.vmem [shape: bf16[32,128], index: 4, kind: output, shape index: {}]  }
   0x1   :  { %10 = vsyncpa [#allocation5], 0  ;;  %s522_s15 = smov [#allocation4]   ;;  %s523_s17 = smov [#allocation2]  }
   0x2   :  { %s31_s16 = sshll.u32 %s522_s15, 4  ;;  %s18_s18 = sshll.u32 %s523_s17, 4  ;;  %s32_s16 = int_to_ptr.vmem [resolvable:$true] %s31_s16  ;;  %s552_s18 = int_to_ptr.vmem [resolvable:$true] %s18_s18 }
   0x3   :  { %s452_s21 = scalar_lea.hbm %s615_s2, 16 }
   0x4   :  { %p453_p0 = scmp.ne.s32.totalorder %s615_s2, %s452_s21  ;;  %p456_p1 = scmp.lt.u32.totalorder %s452_s21, %s615_s2 }
   0x6   :  { %p458_p2 = pnand %p456_p1, %p453_p0 }
   0x8   :  { %461 = shalt.err (!%p458_p2)
}
   0x9   :  { %s462_s26 = scalar_lea.vmem %s32_s16, 16  ;;  %s466_s27 = scalar_lea.vmem %s32_s16, 32 }
   0xa   :  { %p463_p3 = scmp.ne.s32.totalorder %s32_s16, %s462_s26  ;;  %p467_p4 = scmp.lt.s32.totalorder %s32_s16, %s32_s16 }
   0xb   :  { %p468_p5 = scmp.lt.s32.totalorder %s466_s27, %s462_s26 }
   0xd   :  { %p469_p6 = por %p468_p5, %p467_p4 }
   0xf   :  { %p470_p7 = pnand %p469_p6, %p463_p3 }
  0x11   :  { %473 = shalt.err (!%p470_p7)
}
  0x12   :  { %34 = dma.hbm_to_vmem [thread:$0]  %s615_s2, 16, %s32_s16, [#allocation5]  }
  0x13   :  { %s474_s6 = scalar_lea.hbm %s614_s1, 2048 }
  0x14   :  { %p475_p8 = scmp.ne.s32.totalorder %s614_s1, %s474_s6  ;;  %p478_p9 = scmp.lt.u32.totalorder %s474_s6, %s614_s1 }
  0x16   :  { %p480_p10 = pnand %p478_p9, %p475_p8 }
  0x18   :  { %483 = shalt.err (!%p480_p10)
}
  0x19   :  { %s484_s11 = scalar_lea.vmem %s552_s18, 2048  ;;  %p489_p12 = scmp.lt.s32.totalorder %s552_s18, %s552_s18 }
  0x1a   :  { %p485_p11 = scmp.ne.s32.totalorder %s552_s18, %s484_s11  ;;  %p490_p13 = scmp.lt.s32.totalorder %s484_s11, %s484_s11 }
  0x1c   :  { %p491_p0 = por %p490_p13, %p489_p12 }
  0x1e   :  { %p492_p1 = pnand %p491_p0, %p485_p11 }
  0x20   :  { %495 = shalt.err (!%p492_p1)
}
  0x21   :  { %s524_s2 = smov 64   ;;  %s525_s12 = smov 4  }
  0x22   :  { %24 = dma.hbm_to_vmem [thread:$0]  %s614_s1, 2048, %s552_s18, [#allocation3], %s524_s2, %s524_s2, %s525_s12  }
  0x23   :  { %s526_s15 = smov [#allocation6]   ;;  %s496_s20 = scalar_lea.hbm %s616_s3, 16 }
  0x24   :  { %s41_s16 = sshll.u32 %s526_s15, 4  ;;  %p497_p2 = scmp.ne.s32.totalorder %s616_s3, %s496_s20  ;;  %s42_s16 = int_to_ptr.vmem [resolvable:$true] %s41_s16 }
  0x25   :  { %p500_p3 = scmp.lt.u32.totalorder %s496_s20, %s616_s3 }
  0x27   :  { %p502_p4 = pnand %p500_p3, %p497_p2 }
  0x29   :  { %505 = shalt.err (!%p502_p4)
}
  0x2a   :  { %s506_s25 = scalar_lea.vmem %s42_s16, 16  ;;  %s510_s1 = scalar_lea.vmem %s42_s16, 32 }
  0x2b   :  { %p507_p5 = scmp.ne.s32.totalorder %s42_s16, %s506_s25  ;;  %p511_p6 = scmp.lt.s32.totalorder %s42_s16, %s42_s16 }
  0x2c   :  { %p512_p7 = scmp.lt.s32.totalorder %s510_s1, %s506_s25 }
  0x2e   :  { %p513_p8 = por %p512_p7, %p511_p6 }
  0x30   :  { %p514_p9 = pnand %p513_p8, %p507_p5 }
  0x32   :  { %517 = shalt.err (!%p514_p9)
}
  0x33   :  { %44 = dma.hbm_to_vmem [thread:$0]  %s616_s3, 16, %s42_s16, [#allocation5]  }
  0x34   :  { %518 = dma.done.wait [#allocation3], 2048  }
  0x35   :  { %519 = vsyncadd [#allocation3], 4294965248 }
  0x36   :  { %520 = dma.done.wait [#allocation5], 32  }
  0x37   :  { %521 = vsyncadd [#allocation5], 4294967264  ;;  %v428_v0 = vld [vmem:[#allocation2 + $0x40] sm:$0xff]   ;;  %v430_v2 = vld [vmem:[#allocation2 + $0x48] sm:$0xff]   ;;  %v291_v60 = vlaneseq }
  0x38   :  { %v429_v1 = vld [vmem:[#allocation2] sm:$0xff]   ;;  %379 = vmatprep.subr.bf16.mxu0 %v428_v0  ;;  %407 = vmatprep.subr.bf16.mxu1 %v428_v0  ;;  %v431_v3 = vld [vmem:[#allocation2 + $0x8] sm:$0xff]   ;;  %v432_v4 = vld [vmem:[#allocation2 + $0x50] sm:$0xff]  }
  0x39   :  { %380 = vmatpush3.bf16.msra.mxu0 %v429_v1  ;;  %415 = vmatpush3.bf16.msra.mxu1 %v429_v1  ;;  %v433_v5 = vld [vmem:[#allocation2 + $0x10] sm:$0xff]   ;;  %v434_v6 = vld [vmem:[#allocation2 + $0x58] sm:$0xff]   ;;  %v436_v8 = vld [vmem:[#allocation2 + $0x60] sm:$0xff]   ;;  %v292_v61 = vshrl.u32 %v291_v60, 7 }
  0x3a   :  { %381 = vmatprep.subr.bf16.mxu0 %v430_v2  ;;  %408 = vmatprep.subr.bf16.mxu1 %v430_v2  ;;  %v435_v7 = vld [vmem:[#allocation2 + $0x18] sm:$0xff]   ;;  %v437_v9 = vld [vmem:[#allocation2 + $0x20] sm:$0xff]   ;;  %v438_v10 = vld [vmem:[#allocation2 + $0x68] sm:$0xff]  }
  0x3b   :  { %v446_v11 = vld [vmem:[%s613_s0 + $0x4] ss:$8 sps:$4 sm:$0xff]   ;;  %v449_v12 = vld [vmem:[%s613_s0 + $0x14] ss:$8 sps:$4 sm:$0xff]   ;;  %v444_v18 = vld [vmem:[%s613_s0] ss:$8 sps:$4 sm:$0xff]  }
  0x3c   :  { %v439_v13 = vld [vmem:[#allocation2 + $0x28] sm:$0xff]   ;;  %v440_v14 = vld [vmem:[#allocation2 + $0x70] sm:$0xff]   ;;  %239 = vmatprep.mubr.bf16.mxu0 %v446_v11  ;;  %247 = vmatprep.mubr.bf16.mxu1 %v449_v12  ;;  %v442_v16 = vld [vmem:[#allocation2 + $0x78] sm:$0xff]   ;;  %v293_v63 = vsub.s32 0, %v292_v61 }
  0x3d   :  { %382 = vmatpush3.bf16.msra.mxu0 %v431_v3  ;;  %416 = vmatpush3.bf16.msra.mxu1 %v431_v3  ;;  %v441_v15 = vld [vmem:[#allocation2 + $0x30] sm:$0xff]   ;;  %v443_v17 = vld [vmem:[#allocation2 + $0x38] sm:$0xff]   ;;  %v283_v62 = vld [vmem:[#allocation4] sm:$0x1] }
  0x3e   :  { %383 = vmatprep.subr.bf16.mxu0 %v432_v4  ;;  %409 = vmatprep.subr.bf16.mxu1 %v432_v4  ;;  %v447_v19 = vld [vmem:[%s613_s0 + $0x10] ss:$8 sps:$4 sm:$0xff]   ;;  %v287_v2 = vld [vmem:[#allocation6] sm:$0x1] }
  0x41   :  { %384 = vmatpush3.bf16.msra.mxu0 %v433_v5  ;;  %417 = vmatpush3.bf16.msra.mxu1 %v433_v5 }
  0x42   :  { %385 = vmatprep.subr.bf16.mxu0 %v434_v6  ;;  %410 = vmatprep.subr.bf16.mxu1 %v434_v6 }
  0x45   :  { %386 = vmatpush3.bf16.msra.mxu0 %v435_v7  ;;  %418 = vmatpush3.bf16.msra.mxu1 %v435_v7 }
  0x46   :  { %387 = vmatprep.subr.bf16.mxu0 %v436_v8  ;;  %411 = vmatprep.subr.bf16.mxu1 %v436_v8 }
  0x49   :  { %388 = vmatpush3.bf16.msra.mxu0 %v437_v9  ;;  %419 = vmatpush3.bf16.msra.mxu1 %v437_v9 }
  0x4a   :  { %389 = vmatprep.subr.bf16.mxu0 %v438_v10  ;;  %412 = vmatprep.subr.bf16.mxu1 %v438_v10 }
  0x4d   :  { %390 = vmatpush3.bf16.msra.mxu0 %v439_v13  ;;  %420 = vmatpush3.bf16.msra.mxu1 %v439_v13 }
  0x4e   :  { %391 = vmatprep.subr.bf16.mxu0 %v440_v14  ;;  %413 = vmatprep.subr.bf16.mxu1 %v440_v14 }
  0x51   :  { %392 = vmatpush3.bf16.msra.mxu0 %v441_v15  ;;  %421 = vmatpush3.bf16.msra.mxu1 %v441_v15 }
  0x52   :  { %393 = vmatprep.subr.bf16.mxu0 %v442_v16  ;;  %414 = vmatprep.subr.bf16.mxu1 %v442_v16 }
  0x55   :  { %394 = vmatpush3.bf16.msra.mxu0 %v443_v17  ;;  %422 = vmatpush3.bf16.msra.mxu1 %v443_v17 }
  0x58   :  { %240 = vmatmul.mubr.bf16.vlgmr.msra.gmra.mrb[0].mxu0 %v444_v18  ;;  %248 = vmatmul.mubr.bf16.vlgmr.msra.gmra.mrb[0].mxu1 %v447_v19 }
 0x12b   :  { %v395_v20 = vpop.f32.mrb[0].mxu0  ;;  %v401_v21 = vpop.f32.mrb[0].mxu1 }
 0x12c   :  { %v396_v22 = vpop.f32.mrb[1].mxu0  ;;  %v402_v23 = vpop.f32.mrb[1].mxu1 }
 0x12d   :  { %v397_v24 = vadd.f32 %v396_v22, %v395_v20  ;;  %v398_v25 = vpop.f32.mrb[2].mxu0  ;;  %v403_v26 = vadd.f32 %v402_v23, %v401_v21  ;;  %v404_v27 = vpop.f32.mrb[2].mxu1 }
 0x12e   :  { %v399_v28 = vpop.f32.mrb[3].mxu0  ;;  %v405_v29 = vpop.f32.mrb[3].mxu1 }
 0x12f   :  { %v400_v30 = vadd.f32 %v399_v28, %v398_v25  ;;  %v406_v31 = vadd.f32 %v405_v29, %v404_v27  ;;  %v265_v32 = vmul.f32 %v397_v24, %v397_v24  ;;  %v267_v33 = vmul.f32 %v403_v26, %v403_v26 }
 0x131   :  { %v256_v34 = vadd.f32 %v400_v30, %v397_v24  ;;  %v266_v35 = vmul.f32 %v400_v30, %v400_v30  ;;  %v268_v39 = vmul.f32 %v406_v31, %v406_v31 }
 0x133   :  { %v269_v36 = vadd.f32 %v266_v35, %v265_v32  ;;  %v257_v37 = vadd.f32 %v403_v26, %v256_v34 }
 0x135   :  { %v258_v38 = vadd.f32 %v406_v31, %v257_v37  ;;  %v270_v40 = vadd.f32 %v269_v36, %v267_v33 }
 0x137   :  { %v259_v41 = vrot.slane %v258_v38, 4  ;;  %v271_v42 = vadd.f32 %v270_v40, %v268_v39 }
 0x139   :  { %v260_v43 = vadd.f32 %v259_v41, %v258_v38  ;;  %v272_v44 = vrot.slane %v271_v42, 4 }
 0x13b   :  { %v261_v45 = vrot.slane %v260_v43, 2  ;;  %v273_v46 = vadd.f32 %v272_v44, %v271_v42 }
 0x13d   :  { %v262_v47 = vadd.f32 %v261_v45, %v260_v43  ;;  %v274_v48 = vrot.slane %v273_v46, 2 }
 0x13f   :  { %v263_v49 = vrot.slane %v262_v47, 1  ;;  %v275_v50 = vadd.f32 %v274_v48, %v273_v46 }
 0x141   :  { %v264_v51 = vadd.f32 %v263_v49, %v262_v47  ;;  %v276_v52 = vrot.slane %v275_v50, 1 }
 0x143   :  { %v277_v53 = vadd.f32 %v276_v52, %v275_v50  ;;  %v278_v54 = vmul.f32 0.03125, %v264_v51 }
 0x145   :  { %v279_v55 = vmul.f32 0.03125, %v277_v53  ;;  %v280_v56 = vmul.f32 %v278_v54, %v278_v54 }
 0x147   :  { %v281_v57 = vsub.f32 %v279_v55, %v280_v56 }
 0x149   :  { %v282_v58 = vmax.f32 %v281_v57, 0.0 }
 0x14b   :  { %v284_v59 = vadd.f32 1e-05, %v282_v58 }
 0x14d   :  { %450 = vrsqrt.f32 %v284_v59 }
 0x157   :  { %v451_v0 = vpop.eup %450 }
 0x158   :  { %v286_v1 = vmul.f32 %v451_v0, %v283_v62 }
 0x15a   :  { %v288_v3 = vmul.f32 %v286_v1, %v278_v54  ;;  %v294_v4 = vrot.slane %v286_v1, %v293_v63 }
 0x15c   :  { %v289_v5 = vsub.f32 %v287_v2, %v288_v3  ;;  %v296_v6 = vmul.f32 %v397_v24, %v294_v4  ;;  %v297_v7 = vmul.f32 %v400_v30, %v294_v4  ;;  %v298_v8 = vmul.f32 %v403_v26, %v294_v4 }
 0x15d   :  { %v299_v9 = vmul.f32 %v406_v31, %v294_v4 }
 0x15e   :  { %v304_v10 = vrot.slane %v289_v5, %v293_v63 }
 0x160   :  { %v306_v11 = vadd.f32 %v304_v10, %v296_v6  ;;  %v307_v12 = vadd.f32 %v304_v10, %v297_v7  ;;  %v308_v13 = vadd.f32 %v304_v10, %v298_v8  ;;  %v309_v14 = vadd.f32 %v304_v10, %v299_v9 }
 0x162   :  { %v310_v15 = vmax.f32 %v306_v11, 0.0  ;;  %v311_v16 = vmax.f32 %v307_v12, 0.0  ;;  %v312_v17 = vmax.f32 %v308_v13, 0.0  ;;  %v313_v18 = vmax.f32 %v309_v14, 0.0 }
 0x164   :  { %v371_v19 = vpack.c.bf16 %v311_v16, %v310_v15  ;;  %v376_v20 = vpack.c.bf16 %v313_v18, %v312_v17 }
 0x166   :  { %372 = vst [vmem:[%s617_s4] sm:$0xff] %v371_v19   ;;  %378 = vst [vmem:[%s617_s4 + $0x8] sm:$0xff] %v376_v20  }
 0x167   :  { %338 = vsyncpa [#allocation3], 1 }
 0x168   :  { %339 = vsyncpa [#allocation5], 1 }

// kernel: generator_forward.6
= control target key start
LH: loop header
LB: loop body
LE: loop exit
PB: predicated region body
PF: predicated region fallthrough
CT: control target
= control target key end

     0   :  { %9 = vsyncpa [#allocation3], 0  ;;  %s2580_s0 = inlined_call_operand.vmem [shape: bf16[128,1024], index: 0, kind: input, shape index: {}]   ;;  %s2581_s1 = inlined_call_operand.hbm [shape: bf16[1024,128], index: 1, kind: input, shape index: {}]   ;;  %s2582_s2 = inlined_call_operand.hbm [shape: f32[1,128], index: 2, kind: input, shape index: {}]   ;;  %s2583_s3 = inlined_call_operand.hbm [shape: f32[1,128], index: 3, kind: input, shape index: {}]   ;;  %s2584_s4 = inlined_call_operand.vmem [shape: bf16[128,128], index: 4, kind: output, shape index: {}]  }
   0x1   :  { %10 = vsyncpa [#allocation5], 0  ;;  %s2159_s15 = smov [#allocation4]   ;;  %s2160_s17 = smov [#allocation2]  }
   0x2   :  { %s31_s16 = sshll.u32 %s2159_s15, 4  ;;  %s18_s18 = sshll.u32 %s2160_s17, 4  ;;  %s32_s16 = int_to_ptr.vmem [resolvable:$true] %s31_s16  ;;  %s2189_s18 = int_to_ptr.vmem [resolvable:$true] %s18_s18 }
   0x3   :  { %s2089_s21 = scalar_lea.hbm %s2582_s2, 16 }
   0x4   :  { %p2090_p0 = scmp.ne.s32.totalorder %s2582_s2, %s2089_s21  ;;  %p2093_p1 = scmp.lt.u32.totalorder %s2089_s21, %s2582_s2 }
   0x6   :  { %p2095_p2 = pnand %p2093_p1, %p2090_p0 }
   0x8   :  { %2098 = shalt.err (!%p2095_p2)
}
   0x9   :  { %s2099_s26 = scalar_lea.vmem %s32_s16, 16  ;;  %s2103_s27 = scalar_lea.vmem %s32_s16, 32 }
   0xa   :  { %p2100_p3 = scmp.ne.s32.totalorder %s32_s16, %s2099_s26  ;;  %p2104_p4 = scmp.lt.s32.totalorder %s32_s16, %s32_s16 }
   0xb   :  { %p2105_p5 = scmp.lt.s32.totalorder %s2103_s27, %s2099_s26 }
   0xd   :  { %p2106_p6 = por %p2105_p5, %p2104_p4 }
   0xf   :  { %p2107_p7 = pnand %p2106_p6, %p2100_p3 }
  0x11   :  { %2110 = shalt.err (!%p2107_p7)
}
  0x12   :  { %34 = dma.hbm_to_vmem [thread:$0]  %s2582_s2, 16, %s32_s16, [#allocation5]  }
  0x13   :  { %s2111_s6 = scalar_lea.hbm %s2581_s1, 8192 }
  0x14   :  { %p2112_p8 = scmp.ne.s32.totalorder %s2581_s1, %s2111_s6  ;;  %p2115_p9 = scmp.lt.u32.totalorder %s2111_s6, %s2581_s1 }
  0x16   :  { %p2117_p10 = pnand %p2115_p9, %p2112_p8 }
  0x18   :  { %2120 = shalt.err (!%p2117_p10)
}
  0x19   :  { %s2121_s11 = scalar_lea.vmem %s2189_s18, 8192  ;;  %p2126_p12 = scmp.lt.s32.totalorder %s2189_s18, %s2189_s18 }
  0x1a   :  { %p2122_p11 = scmp.ne.s32.totalorder %s2189_s18, %s2121_s11  ;;  %p2127_p13 = scmp.lt.s32.totalorder %s2121_s11, %s2121_s11 }
  0x1c   :  { %p2128_p0 = por %p2127_p13, %p2126_p12 }
  0x1e   :  { %p2129_p1 = pnand %p2128_p0, %p2122_p11 }
  0x20   :  { %2132 = shalt.err (!%p2129_p1)
}
  0x21   :  { %s2161_s2 = smov 64   ;;  %s2162_s12 = smov 4  }
  0x22   :  { %24 = dma.hbm_to_vmem [thread:$0]  %s2581_s1, 8192, %s2189_s18, [#allocation3], %s2161_s2, %s2161_s2, %s2162_s12  }
  0x23   :  { %s2163_s15 = smov [#allocation6]   ;;  %s2133_s20 = scalar_lea.hbm %s2583_s3, 16 }
  0x24   :  { %s41_s16 = sshll.u32 %s2163_s15, 4  ;;  %p2134_p2 = scmp.ne.s32.totalorder %s2583_s3, %s2133_s20  ;;  %s42_s16 = int_to_ptr.vmem [resolvable:$true] %s41_s16 }
  0x25   :  { %p2137_p3 = scmp.lt.u32.totalorder %s2133_s20, %s2583_s3 }
  0x27   :  { %p2139_p4 = pnand %p2137_p3, %p2134_p2 }
  0x29   :  { %2142 = shalt.err (!%p2139_p4)
}
  0x2a   :  { %s2143_s25 = scalar_lea.vmem %s42_s16, 16  ;;  %s2147_s1 = scalar_lea.vmem %s42_s16, 32 }
  0x2b   :  { %p2144_p5 = scmp.ne.s32.totalorder %s42_s16, %s2143_s25  ;;  %p2148_p6 = scmp.lt.s32.totalorder %s42_s16, %s42_s16 }
  0x2c   :  { %p2149_p7 = scmp.lt.s32.totalorder %s2147_s1, %s2143_s25 }
  0x2e   :  { %p2150_p8 = por %p2149_p7, %p2148_p6 }
  0x30   :  { %p2151_p9 = pnand %p2150_p8, %p2144_p5 }
  0x32   :  { %2154 = shalt.err (!%p2151_p9)
}
  0x33   :  { %44 = dma.hbm_to_vmem [thread:$0]  %s2583_s3, 16, %s42_s16, [#allocation5]  }
  0x34   :  { %2155 = dma.done.wait [#allocation3], 8192  }
  0x35   :  { %2156 = vsyncadd [#allocation3], 4294959104 }
  0x36   :  { %2157 = dma.done.wait [#allocation5], 32  }
  0x37   :  { %2158 = vsyncadd [#allocation5], 4294967264  ;;  %v2023_v0 = vld [vmem:[#allocation2 + $0x40] sm:$0xff]   ;;  %v2027_v4 = vld [vmem:[#allocation2 + $0x48] sm:$0xff]  }
  0x38   :  { %v2024_v1 = vld [vmem:[#allocation2 + $0xc0] sm:$0xff]   ;;  %1762 = vmatprep.subr.bf16.mxu0 %v2023_v0  ;;  %v2028_v5 = vld [vmem:[#allocation2 + $0xc8] sm:$0xff]   ;;  %v2031_v8 = vld [vmem:[#allocation2 + $0x50] sm:$0xff]  }
  0x39   :  { %v2025_v2 = vld [vmem:[#allocation2] sm:$0xff]   ;;  %1826 = vmatprep.subr.bf16.mxu1 %v2024_v1  ;;  %v2029_v6 = vld [vmem:[#allocation2 + $0x8] sm:$0xff]   ;;  %v2032_v9 = vld [vmem:[#allocation2 + $0xd0] sm:$0xff]  }
  0x3a   :  { %v2026_v3 = vld [vmem:[#allocation2 + $0x80] sm:$0xff]   ;;  %1763 = vmatpush3.bf16.msra.mxu0 %v2025_v2  ;;  %v2030_v7 = vld [vmem:[#allocation2 + $0x88] sm:$0xff]   ;;  %v2033_v10 = vld [vmem:[#allocation2 + $0x10] sm:$0xff]  }
  0x3b   :  { %1827 = vmatpush3.bf16.msra.mxu1 %v2026_v3  ;;  %1764 = vmatprep.subr.bf16.mxu0 %v2027_v4  ;;  %v2034_v11 = vld [vmem:[#allocation2 + $0x90] sm:$0xff]   ;;  %v2035_v12 = vld [vmem:[#allocation2 + $0x58] sm:$0xff]   ;;  %v2039_v16 = vld [vmem:[#allocation2 + $0x60] sm:$0xff]  }
  0x3c   :  { %1828 = vmatprep.subr.bf16.mxu1 %v2028_v5  ;;  %v2036_v13 = vld [vmem:[#allocation2 + $0xd8] sm:$0xff]   ;;  %v2040_v17 = vld [vmem:[#allocation2 + $0xe0] sm:$0xff]   ;;  %v2043_v20 = vld [vmem:[#allocation2 + $0x68] sm:$0xff]  }
  0x3d   :  { %v2037_v14 = vld [vmem:[#allocation2 + $0x18] sm:$0xff]   ;;  %v2041_v18 = vld [vmem:[#allocation2 + $0x20] sm:$0xff]   ;;  %v2044_v21 = vld [vmem:[#allocation2 + $0xe8] sm:$0xff]  }
  0x3e   :  { %1765 = vmatpush3.bf16.msra.mxu0 %v2029_v6  ;;  %v2038_v15 = vld [vmem:[#allocation2 + $0x98] sm:$0xff]   ;;  %v2042_v19 = vld [vmem:[#allocation2 + $0xa0] sm:$0xff]   ;;  %v2045_v22 = vld [vmem:[#allocation2 + $0x28] sm:$0xff]  }
  0x3f   :  { %1829 = vmatpush3.bf16.msra.mxu1 %v2030_v7  ;;  %1766 = vmatprep.subr.bf16.mxu0 %v2031_v8  ;;  %v2046_v23 = vld [vmem:[#allocation2 + $0xa8] sm:$0xff]   ;;  %v2047_v24 = vld [vmem:[#allocation2 + $0x70] sm:$0xff]   ;;  %v2051_v28 = vld [vmem:[#allocation2 + $0x78] sm:$0xff]  }
  0x40   :  { %1830 = vmatprep.subr.bf16.mxu1 %v2032_v9  ;;  %v2048_v25 = vld [vmem:[#allocation2 + $0xf0] sm:$0xff]   ;;  %v2052_v29 = vld [vmem:[#allocation2 + $0xf8] sm:$0xff]   ;;  %v55_v32 = vld [vmem:[%s2580_s0] sm:$0xff] }
  0x41   :  { %v2049_v26 = vld [vmem:[#allocation2 + $0x30] sm:$0xff]   ;;  %v2053_v30 = vld [vmem:[#allocation2 + $0x38] sm:$0xff]   ;;  %v59_v33 = vld [vmem:[%s2580_s0 + $0x20] sm:$0xff] }
  0x42   :  { %1767 = vmatpush3.bf16.msra.mxu0 %v2033_v10  ;;  %v2050_v27 = vld [vmem:[#allocation2 + $0xb0] sm:$0xff]   ;;  %v2054_v31 = vld [vmem:[#allocation2 + $0xb8] sm:$0xff]   ;;  %v56_v34 = vld [vmem:[%s2580_s0 + $0x8] sm:$0xff]  ;;  %v1555_v35 = vcombine.low %v55_v32, %v59_v33  ;;  %v1556_v36 = vcombine.high %v55_v32, %v59_v33 }
  0x43   :  { %1831 = vmatpush3.bf16.msra.mxu1 %v2034_v11  ;;  %1768 = vmatprep.subr.bf16.mxu0 %v2035_v12  ;;  %v60_v37 = vld [vmem:[%s2580_s0 + $0x28] sm:$0xff]  ;;  %v2055_v40 = vld [vmem:[#allocation2 + $0x140] sm:$0xff]   ;;  %v2063_v62 = vld [vmem:[#allocation2 + $0x150] sm:$0xff]  }
  0x44   :  { %1832 = vmatprep.subr.bf16.mxu1 %v2036_v13  ;;  %v1557_v38 = vcombine.low %v56_v34, %v60_v37  ;;  %v1558_v39 = vcombine.high %v56_v34, %v60_v37  ;;  %983 = vmatprep.mubr.bf16.mxu0 %v1556_v36  ;;  %v2056_v41 = vld [vmem:[#allocation2 + $0x100] sm:$0xff]   ;;  %v64_v47 = vld [vmem:[%s2580_s0 + $0x48] sm:$0xff]  ;;  %v2064_v63 = vld [vmem:[#allocation2 + $0x110] sm:$0xff]  }
  0x45   :  { %v2057_v42 = vld [vmem:[#allocation2 + $0x1c0] sm:$0xff]   ;;  %v68_v48 = vld [vmem:[%s2580_s0 + $0x68] sm:$0xff]  ;;  %v2065_v0 = vld [vmem:[#allocation2 + $0x1d0] sm:$0xff]  }
  0x46   :  { %1769 = vmatpush3.bf16.msra.mxu0 %v2037_v14  ;;  %1080 = vmatprep.mubr.bf16.mxu1 %v1558_v39  ;;  %v2058_v43 = vld [vmem:[#allocation2 + $0x180] sm:$0xff]   ;;  %v1566_v49 = vcombine.high %v64_v47, %v68_v48  ;;  %v2059_v50 = vld [vmem:[#allocation2 + $0x148] sm:$0xff]   ;;  %v1565_v53 = vcombine.low %v64_v47, %v68_v48  ;;  %v2066_v1 = vld [vmem:[#allocation2 + $0x190] sm:$0xff]  }
  0x47   :  { %1833 = vmatpush3.bf16.msra.mxu1 %v2038_v15  ;;  %1770 = vmatprep.subr.bf16.mxu0 %v2039_v16  ;;  %v63_v44 = vld [vmem:[%s2580_s0 + $0x40] sm:$0xff]  ;;  %v2060_v52 = vld [vmem:[#allocation2 + $0x108] sm:$0xff]   ;;  %v2067_v10 = vld [vmem:[#allocation2 + $0x158] sm:$0xff]  }
  0x48   :  { %1834 = vmatprep.subr.bf16.mxu1 %v2040_v17  ;;  %v67_v45 = vld [vmem:[%s2580_s0 + $0x60] sm:$0xff]  ;;  %v2061_v54 = vld [vmem:[#allocation2 + $0x1c8] sm:$0xff]   ;;  %v2068_v11 = vld [vmem:[#allocation2 + $0x118] sm:$0xff]  }
  0x49   :  { %v1564_v46 = vcombine.high %v63_v44, %v67_v45  ;;  %v1563_v51 = vcombine.low %v63_v44, %v67_v45  ;;  %v2062_v55 = vld [vmem:[#allocation2 + $0x188] sm:$0xff]   ;;  %v71_v56 = vld [vmem:[%s2580_s0 + $0x80] sm:$0xff]  ;;  %v2069_v12 = vld [vmem:[#allocation2 + $0x1d8] sm:$0xff]  }
  0x4a   :  { %1771 = vmatpush3.bf16.msra.mxu0 %v2041_v18  ;;  %v75_v57 = vld [vmem:[%s2580_s0 + $0xa0] sm:$0xff]  ;;  %v72_v58 = vld [vmem:[%s2580_s0 + $0x88] sm:$0xff]  ;;  %v2070_v13 = vld [vmem:[#allocation2 + $0x198] sm:$0xff]  }
  0x4b   :  { %1835 = vmatpush3.bf16.msra.mxu1 %v2042_v19  ;;  %1772 = vmatprep.subr.bf16.mxu0 %v2043_v20  ;;  %v76_v59 = vld [vmem:[%s2580_s0 + $0xa8] sm:$0xff]  ;;  %v1572_v60 = vcombine.high %v71_v56, %v75_v57  ;;  %v1571_v2 = vcombine.low %v71_v56, %v75_v57  ;;  %v79_v3 = vld [vmem:[%s2580_s0 + $0xc0] sm:$0xff]  ;;  %v2080_v39 = vld [vmem:[#allocation2 + $0x130] sm:$0xff]  }
  0x4c   :  { %1836 = vmatprep.subr.bf16.mxu1 %v2044_v21  ;;  %v1574_v61 = vcombine.high %v72_v58, %v76_v59  ;;  %v83_v4 = vld [vmem:[%s2580_s0 + $0xe0] sm:$0xff]  ;;  %v80_v5 = vld [vmem:[%s2580_s0 + $0xc8] sm:$0xff]  ;;  %v1573_v6 = vcombine.low %v72_v58, %v76_v59  ;;  %v2084_v48 = vld [vmem:[#allocation2 + $0x138] sm:$0xff]  }
  0x4d   :  { %v1580_v7 = vcombine.high %v79_v3, %v83_v4  ;;  %v84_v8 = vld [vmem:[%s2580_s0 + $0xe8] sm:$0xff]  ;;  %v87_v14 = vld [vmem:[%s2580_s0 + $0x100] sm:$0xff]  ;;  %v1579_v19 = vcombine.low %v79_v3, %v83_v4 }
  0x4e   :  { %1773 = vmatpush3.bf16.msra.mxu0 %v2045_v22  ;;  %v1582_v9 = vcombine.high %v80_v5, %v84_v8  ;;  %v91_v15 = vld [vmem:[%s2580_s0 + $0x120] sm:$0xff]  ;;  %v88_v16 = vld [vmem:[%s2580_s0 + $0x108] sm:$0xff]  ;;  %v1581_v21 = vcombine.low %v80_v5, %v84_v8  ;;  %v66_v8 = vld [vmem:[%s2580_s0 + $0x58] sm:$0xff] }
  0x4f   :  { %1837 = vmatpush3.bf16.msra.mxu1 %v2046_v23  ;;  %1774 = vmatprep.subr.bf16.mxu0 %v2047_v24  ;;  %v92_v17 = vld [vmem:[%s2580_s0 + $0x128] sm:$0xff]  ;;  %v2071_v18 = vld [vmem:[#allocation2 + $0x160] sm:$0xff]   ;;  %v1588_v22 = vcombine.high %v87_v14, %v91_v15  ;;  %v1587_v34 = vcombine.low %v87_v14, %v91_v15  ;;  %v73_v14 = vld [vmem:[%s2580_s0 + $0x90] sm:$0xff] }
  0x50   :  { %1838 = vmatprep.subr.bf16.mxu1 %v2048_v25  ;;  %v2072_v20 = vld [vmem:[#allocation2 + $0x120] sm:$0xff]   ;;  %v1590_v24 = vcombine.high %v88_v16, %v92_v17  ;;  %v2077_v32 = vld [vmem:[#allocation2 + $0x1e8] sm:$0xff]   ;;  %v77_v15 = vld [vmem:[%s2580_s0 + $0xb0] sm:$0xff] }
  0x51   :  { %v2073_v23 = vld [vmem:[#allocation2 + $0x1e0] sm:$0xff]   ;;  %v2078_v33 = vld [vmem:[#allocation2 + $0x1a8] sm:$0xff]  }
  0x52   :  { %1775 = vmatpush3.bf16.msra.mxu0 %v2049_v26  ;;  %v2074_v25 = vld [vmem:[#allocation2 + $0x1a0] sm:$0xff]   ;;  %v104_v44 = vld [vmem:[%s2580_s0 + $0x188] sm:$0xff] }
  0x53   :  { %1839 = vmatpush3.bf16.msra.mxu1 %v2050_v27  ;;  %1776 = vmatprep.subr.bf16.mxu0 %v2051_v28  ;;  %v95_v26 = vld [vmem:[%s2580_s0 + $0x140] sm:$0xff]  ;;  %v2075_v28 = vld [vmem:[#allocation2 + $0x168] sm:$0xff]  }
  0x54   :  { %1840 = vmatprep.subr.bf16.mxu1 %v2052_v29  ;;  %v99_v27 = vld [vmem:[%s2580_s0 + $0x160] sm:$0xff]  ;;  %v96_v29 = vld [vmem:[%s2580_s0 + $0x148] sm:$0xff] }
  0x55   :  { %v1596_v36 = vcombine.high %v95_v26, %v99_v27  ;;  %v108_v45 = vld [vmem:[%s2580_s0 + $0x1a8] sm:$0xff]  ;;  %v1595_v47 = vcombine.low %v95_v26, %v99_v27  ;;  %v1575_v26 = vcombine.low %v73_v14, %v77_v15 }
  0x56   :  { %1777 = vmatpush3.bf16.msra.mxu0 %v2053_v30  ;;  %v100_v30 = vld [vmem:[%s2580_s0 + $0x168] sm:$0xff]  ;;  %v1605_v59 = vcombine.low %v104_v44, %v108_v45 }
  0x57   :  { %1841 = vmatpush3.bf16.msra.mxu1 %v2054_v31  ;;  %1890 = vmatprep.subr.bf16.mxu0 %v2055_v40  ;;  %v2076_v31 = vld [vmem:[#allocation2 + $0x128] sm:$0xff]   ;;  %v1598_v37 = vcombine.high %v96_v29, %v100_v30  ;;  %v2081_v40 = vld [vmem:[#allocation2 + $0x1f0] sm:$0xff]  }
  0x58   :  { %1954 = vmatprep.subr.bf16.mxu1 %v2057_v42  ;;  %v107_v42 = vld [vmem:[%s2580_s0 + $0x1a0] sm:$0xff]  ;;  %v112_v56 = vld [vmem:[%s2580_s0 + $0x1c8] sm:$0xff] }
  0x59   :  { %984 = vmatmul.mubr.bf16.vlgmr.msra.gmra.mrb[0].mxu0 %v1555_v35  ;;  %v1589_v35 = vcombine.low %v88_v16, %v92_v17  ;;  %v116_v57 = vld [vmem:[%s2580_s0 + $0x1e8] sm:$0xff]  ;;  %v74_v16 = vld [vmem:[%s2580_s0 + $0x98] sm:$0xff] }
  0x5a   :  { %1081 = vmatmul.mubr.bf16.vlgmr.msra.gmra.mrb[0].mxu1 %v1557_v38  ;;  %1891 = vmatpush3.bf16.msra.mxu0 %v2056_v41  ;;  %v2079_v38 = vld [vmem:[#allocation2 + $0x170] sm:$0xff]   ;;  %v103_v41 = vld [vmem:[%s2580_s0 + $0x180] sm:$0xff]  ;;  %v1613_v3 = vcombine.low %v112_v56, %v116_v57  ;;  %v78_v17 = vld [vmem:[%s2580_s0 + $0xb8] sm:$0xff] }
  0x5b   :  { %1955 = vmatpush3.bf16.msra.mxu1 %v2058_v43  ;;  %991 = vmatprep.mubr.bf16.mxu0 %v1564_v46  ;;  %v2082_v43 = vld [vmem:[#allocation2 + $0x1b0] sm:$0xff]   ;;  %v2083_v46 = vld [vmem:[#allocation2 + $0x178] sm:$0xff]   ;;  %v1603_v58 = vcombine.low %v103_v41, %v107_v42  ;;  %v1577_v27 = vcombine.low %v74_v16, %v78_v17 }
  0x5c   :  { %1088 = vmatprep.mubr.bf16.mxu1 %v1566_v49  ;;  %1892 = vmatprep.subr.bf16.mxu0 %v2059_v50  ;;  %v1597_v49 = vcombine.low %v96_v29, %v100_v30  ;;  %v1604_v50 = vcombine.high %v103_v41, %v107_v42  ;;  %v89_v30 = vld [vmem:[%s2580_s0 + $0x110] sm:$0xff]  ;;  %v102_v41 = vld [vmem:[%s2580_s0 + $0x178] sm:$0xff] }
  0x5d   :  { %1956 = vmatprep.subr.bf16.mxu1 %v2061_v54  ;;  %v111_v54 = vld [vmem:[%s2580_s0 + $0x1c0] sm:$0xff] }
  0x5e   :  { %1893 = vmatpush3.bf16.msra.mxu0 %v2060_v52  ;;  %v1606_v52 = vcombine.high %v104_v44, %v108_v45 }
  0x5f   :  { %1957 = vmatpush3.bf16.msra.mxu1 %v2062_v55  ;;  %1894 = vmatprep.subr.bf16.mxu0 %v2063_v62  ;;  %v115_v55 = vld [vmem:[%s2580_s0 + $0x1e0] sm:$0xff]  ;;  %v57_v62 = vld [vmem:[%s2580_s0 + $0x10] sm:$0xff] }
  0x60   :  { %1958 = vmatprep.subr.bf16.mxu1 %v2065_v0  ;;  %v58_v0 = vld [vmem:[%s2580_s0 + $0x18] sm:$0xff] }
  0x61   :  { %992 = vmatmul.mubr.bf16.gmra.mrb[4].mxu0 %v1563_v51  ;;  %v2085_v51 = vld [vmem:[#allocation2 + $0x1f8] sm:$0xff]  }
  0x62   :  { %1089 = vmatmul.mubr.bf16.gmra.mrb[4].mxu1 %v1565_v53  ;;  %999 = vmatprep.mubr.bf16.mxu0 %v1572_v60  ;;  %v2086_v53 = vld [vmem:[#allocation2 + $0x1b8] sm:$0xff]   ;;  %v1612_v60 = vcombine.high %v111_v54, %v115_v55 }
  0x63   :  { %1096 = vmatprep.mubr.bf16.mxu1 %v1574_v61  ;;  %1895 = vmatpush3.bf16.msra.mxu0 %v2064_v63  ;;  %v1614_v61 = vcombine.high %v112_v56, %v116_v57  ;;  %v61_v63 = vld [vmem:[%s2580_s0 + $0x30] sm:$0xff]  ;;  %v114_v56 = vld [vmem:[%s2580_s0 + $0x1d8] sm:$0xff] }
  0x64   :  { %1959 = vmatpush3.bf16.msra.mxu1 %v2066_v1  ;;  %1896 = vmatprep.subr.bf16.mxu0 %v2067_v10  ;;  %v62_v1 = vld [vmem:[%s2580_s0 + $0x38] sm:$0xff]  ;;  %v1560_v4 = vcombine.high %v57_v62, %v61_v63  ;;  %v1559_v10 = vcombine.low %v57_v62, %v61_v63 }
  0x65   :  { %1960 = vmatprep.subr.bf16.mxu1 %v2069_v12  ;;  %v1562_v5 = vcombine.high %v58_v0, %v62_v1  ;;  %v118_v57 = vld [vmem:[%s2580_s0 + $0x1f8] sm:$0xff] }
  0x66   :  { %v1617_v63 = vcombine.low %v114_v56, %v118_v57 }
  0x67   :  { %1897 = vmatpush3.bf16.msra.mxu0 %v2068_v11  ;;  %v1561_v11 = vcombine.low %v58_v0, %v62_v1 }
  0x68   :  { %1961 = vmatpush3.bf16.msra.mxu1 %v2070_v13  ;;  %1898 = vmatprep.subr.bf16.mxu0 %v2071_v18 }
  0x69   :  { %1000 = vmatmul.mubr.bf16.gmra.mrb[8].mxu0 %v1571_v2  ;;  %1962 = vmatprep.subr.bf16.mxu1 %v2073_v23  ;;  %v1611_v2 = vcombine.low %v111_v54, %v115_v55  ;;  %v85_v23 = vld [vmem:[%s2580_s0 + $0xf0] sm:$0xff] }
  0x6a   :  { %1097 = vmatmul.mubr.bf16.gmra.mrb[8].mxu1 %v1573_v6  ;;  %1007 = vmatprep.mubr.bf16.mxu0 %v1580_v7  ;;  %v65_v6 = vld [vmem:[%s2580_s0 + $0x50] sm:$0xff] }
  0x6b   :  { %1104 = vmatprep.mubr.bf16.mxu1 %v1582_v9  ;;  %1899 = vmatpush3.bf16.msra.mxu0 %v2072_v20  ;;  %v69_v7 = vld [vmem:[%s2580_s0 + $0x70] sm:$0xff]  ;;  %v70_v9 = vld [vmem:[%s2580_s0 + $0x78] sm:$0xff]  ;;  %v1576_v20 = vcombine.high %v73_v14, %v77_v15 }
  0x6c   :  { %1963 = vmatpush3.bf16.msra.mxu1 %v2074_v25  ;;  %1900 = vmatprep.subr.bf16.mxu0 %v2075_v28  ;;  %v1568_v12 = vcombine.high %v65_v6, %v69_v7  ;;  %v1570_v13 = vcombine.high %v66_v8, %v70_v9  ;;  %v1567_v18 = vcombine.low %v65_v6, %v69_v7  ;;  %v86_v25 = vld [vmem:[%s2580_s0 + $0xf8] sm:$0xff]  ;;  %v113_v54 = vld [vmem:[%s2580_s0 + $0x1d0] sm:$0xff] }
  0x6d   :  { %1964 = vmatprep.subr.bf16.mxu1 %v2077_v32  ;;  %v90_v32 = vld [vmem:[%s2580_s0 + $0x118] sm:$0xff]  ;;  %v117_v55 = vld [vmem:[%s2580_s0 + $0x1f0] sm:$0xff] }
  0x6e   :  { %v1615_v62 = vcombine.low %v113_v54, %v117_v55 }
  0x6f   :  { %1901 = vmatpush3.bf16.msra.mxu0 %v2076_v31  ;;  %v93_v31 = vld [vmem:[%s2580_s0 + $0x130] sm:$0xff] }
  0x70   :  { %1965 = vmatpush3.bf16.msra.mxu1 %v2078_v33  ;;  %1902 = vmatprep.subr.bf16.mxu0 %v2079_v38  ;;  %v94_v33 = vld [vmem:[%s2580_s0 + $0x138] sm:$0xff]  ;;  %v97_v38 = vld [vmem:[%s2580_s0 + $0x150] sm:$0xff]  ;;  %v1591_v42 = vcombine.low %v89_v30, %v93_v31 }
  0x71   :  { %1008 = vmatmul.mubr.bf16.gmra.mrb[12].mxu0 %v1579_v19  ;;  %1966 = vmatprep.subr.bf16.mxu1 %v2081_v40  ;;  %v1569_v19 = vcombine.low %v66_v8, %v70_v9  ;;  %v98_v40 = vld [vmem:[%s2580_s0 + $0x158] sm:$0xff] }
  0x72   :  { %1105 = vmatmul.mubr.bf16.gmra.mrb[12].mxu1 %v1581_v21  ;;  %1015 = vmatprep.mubr.bf16.mxu0 %v1588_v22  ;;  %v1578_v21 = vcombine.high %v74_v16, %v78_v17  ;;  %v81_v22 = vld [vmem:[%s2580_s0 + $0xd0] sm:$0xff]  ;;  %v1602_v45 = vcombine.high %v98_v40, %v102_v41 }
  0x73   :  { %1112 = vmatprep.mubr.bf16.mxu1 %v1590_v24  ;;  %1903 = vmatpush3.bf16.msra.mxu0 %v2080_v39  ;;  %v82_v24 = vld [vmem:[%s2580_s0 + $0xd8] sm:$0xff]  ;;  %v1584_v28 = vcombine.high %v81_v22, %v85_v23  ;;  %v101_v39 = vld [vmem:[%s2580_s0 + $0x170] sm:$0xff] }
  0x74   :  { %1967 = vmatpush3.bf16.msra.mxu1 %v2082_v43  ;;  %1904 = vmatprep.subr.bf16.mxu0 %v2083_v46  ;;  %v1586_v29 = vcombine.high %v82_v24, %v86_v25  ;;  %v1593_v43 = vcombine.low %v90_v32, %v94_v33  ;;  %v1600_v44 = vcombine.high %v97_v38, %v101_v39  ;;  %v105_v46 = vld [vmem:[%s2580_s0 + $0x190] sm:$0xff] }
  0x75   :  { %1968 = vmatprep.subr.bf16.mxu1 %v2085_v51  ;;  %v1601_v51 = vcombine.low %v98_v40, %v102_v41 }
  0x77   :  { %1905 = vmatpush3.bf16.msra.mxu0 %v2084_v48  ;;  %v106_v48 = vld [vmem:[%s2580_s0 + $0x198] sm:$0xff] }
  0x78   :  { %1969 = vmatpush3.bf16.msra.mxu1 %v2086_v53 }
  0x79   :  { %1016 = vmatmul.mubr.bf16.gmra.mrb[16].mxu0 %v1587_v34  ;;  %v1583_v34 = vcombine.low %v81_v22, %v85_v23 }
  0x7a   :  { %1113 = vmatmul.mubr.bf16.gmra.mrb[16].mxu1 %v1589_v35  ;;  %1023 = vmatprep.mubr.bf16.mxu0 %v1596_v36  ;;  %v1585_v35 = vcombine.low %v82_v24, %v86_v25  ;;  %v1592_v36 = vcombine.high %v89_v30, %v93_v31 }
  0x7b   :  { %1120 = vmatprep.mubr.bf16.mxu1 %v1598_v37  ;;  %v1594_v37 = vcombine.high %v90_v32, %v94_v33 }
  0x81   :  { %1024 = vmatmul.mubr.bf16.gmra.mrb[20].mxu0 %v1595_v47  ;;  %v109_v47 = vld [vmem:[%s2580_s0 + $0x1b0] sm:$0xff] }
  0x82   :  { %1121 = vmatmul.mubr.bf16.gmra.mrb[20].mxu1 %v1597_v49  ;;  %1031 = vmatprep.mubr.bf16.mxu0 %v1604_v50  ;;  %v110_v49 = vld [vmem:[%s2580_s0 + $0x1b8] sm:$0xff]  ;;  %v1599_v50 = vcombine.low %v97_v38, %v101_v39 }
  0x83   :  { %1128 = vmatprep.mubr.bf16.mxu1 %v1606_v52  ;;  %v1608_v52 = vcombine.high %v105_v46, %v109_v47  ;;  %v1610_v53 = vcombine.high %v106_v48, %v110_v49 }
  0x89   :  { %1032 = vmatmul.mubr.bf16.gmra.mrb[24].mxu0 %v1603_v58  ;;  %v1607_v58 = vcombine.low %v105_v46, %v109_v47 }
  0x8a   :  { %1129 = vmatmul.mubr.bf16.gmra.mrb[24].mxu1 %v1605_v59  ;;  %1039 = vmatprep.mubr.bf16.mxu0 %v1612_v60  ;;  %v1609_v59 = vcombine.low %v106_v48, %v110_v49  ;;  %v1616_v60 = vcombine.high %v113_v54, %v117_v55 }
  0x8b   :  { %1136 = vmatprep.mubr.bf16.mxu1 %v1614_v61  ;;  %v1618_v61 = vcombine.high %v114_v56, %v118_v57 }
  0x91   :  { %1040 = vmatmul.mubr.bf16.gmra.mrb[28].mxu0 %v1611_v2 }
  0x92   :  { %1137 = vmatmul.mubr.bf16.gmra.mrb[28].mxu1 %v1613_v3  ;;  %1177 = vmatprep.mubr.bf16.mxu0 %v1560_v4 }
  0x93   :  { %1274 = vmatprep.mubr.bf16.mxu1 %v1562_v5 }
  0x99   :  { %1178 = vmatmul.mubr.bf16.vlgmr.msra.gmra.mrb[32].mxu0 %v1559_v10 }
  0x9a   :  { %1275 = vmatmul.mubr.bf16.vlgmr.msra.gmra.mrb[32].mxu1 %v1561_v11  ;;  %1185 = vmatprep.mubr.bf16.mxu0 %v1568_v12 }
  0x9b   :  { %1282 = vmatprep.mubr.bf16.mxu1 %v1570_v13 }
  0xa1   :  { %1186 = vmatmul.mubr.bf16.gmra.mrb[36].mxu0 %v1567_v18 }
  0xa2   :  { %1283 = vmatmul.mubr.bf16.gmra.mrb[36].mxu1 %v1569_v19  ;;  %1193 = vmatprep.mubr.bf16.mxu0 %v1576_v20 }
  0xa3   :  { %1290 = vmatprep.mubr.bf16.mxu1 %v1578_v21 }
  0xa9   :  { %1194 = vmatmul.mubr.bf16.gmra.mrb[40].mxu0 %v1575_v26 }
  0xaa   :  { %1291 = vmatmul.mubr.bf16.gmra.mrb[40].mxu1 %v1577_v27  ;;  %1201 = vmatprep.mubr.bf16.mxu0 %v1584_v28 }
  0xab   :  { %1298 = vmatprep.mubr.bf16.mxu1 %v1586_v29 }
  0xb1   :  { %1202 = vmatmul.mubr.bf16.gmra.mrb[44].mxu0 %v1583_v34 }
  0xb2   :  { %1299 = vmatmul.mubr.bf16.gmra.mrb[44].mxu1 %v1585_v35  ;;  %1209 = vmatprep.mubr.bf16.mxu0 %v1592_v36 }
  0xb3   :  { %1306 = vmatprep.mubr.bf16.mxu1 %v1594_v37 }
  0xb9   :  { %1210 = vmatmul.mubr.bf16.gmra.mrb[48].mxu0 %v1591_v42 }
  0xba   :  { %1307 = vmatmul.mubr.bf16.gmra.mrb[48].mxu1 %v1593_v43  ;;  %1217 = vmatprep.mubr.bf16.mxu0 %v1600_v44 }
  0xbb   :  { %1314 = vmatprep.mubr.bf16.mxu1 %v1602_v45 }
  0xc1   :  { %1218 = vmatmul.mubr.bf16.gmra.mrb[52].mxu0 %v1599_v50 }
  0xc2   :  { %1315 = vmatmul.mubr.bf16.gmra.mrb[52].mxu1 %v1601_v51  ;;  %1225 = vmatprep.mubr.bf16.mxu0 %v1608_v52 }
  0xc3   :  { %1322 = vmatprep.mubr.bf16.mxu1 %v1610_v53 }
  0xc9   :  { %1226 = vmatmul.mubr.bf16.gmra.mrb[56].mxu0 %v1607_v58 }
  0xca   :  { %1323 = vmatmul.mubr.bf16.gmra.mrb[56].mxu1 %v1609_v59  ;;  %1233 = vmatprep.mubr.bf16.mxu0 %v1616_v60 }
  0xcb   :  { %1330 = vmatprep.mubr.bf16.mxu1 %v1618_v61 }
  0xd1   :  { %1234 = vmatmul.mubr.bf16.gmra.mrb[60].mxu0 %v1615_v62 }
  0xd2   :  { %1331 = vmatmul.mubr.bf16.gmra.mrb[60].mxu1 %v1617_v63 }
 0x12c   :  { %v1778_v0 = vpop.f32.mrb[0].mxu0 }
 0x12d   :  { %v1842_v1 = vpop.f32.mrb[0].mxu1  ;;  %v1779_v2 = vpop.f32.mrb[1].mxu0 }
 0x12e   :  { %v1780_v3 = vadd.f32 %v1779_v2, %v1778_v0  ;;  %v1843_v4 = vpop.f32.mrb[1].mxu1  ;;  %v1781_v5 = vpop.f32.mrb[2].mxu0 }
 0x12f   :  { %v1844_v6 = vadd.f32 %v1843_v4, %v1842_v1  ;;  %v1845_v7 = vpop.f32.mrb[2].mxu1  ;;  %v1782_v8 = vpop.f32.mrb[3].mxu0 }
 0x130   :  { %v1783_v9 = vadd.f32 %v1782_v8, %v1781_v5  ;;  %v1846_v10 = vpop.f32.mrb[3].mxu1 }
 0x131   :  { %v2424_v11 = vadd.f32 %v1844_v6, %v1780_v3  ;;  %v1847_v12 = vadd.f32 %v1846_v10, %v1845_v7 }
 0x133   :  { %v2426_v13 = vadd.f32 %v1847_v12, %v1783_v9 }
 0x134   :  { %v1784_v14 = vpop.f32.mrb[4].mxu0 }
 0x135   :  { %v1848_v15 = vpop.f32.mrb[4].mxu1  ;;  %v1785_v16 = vpop.f32.mrb[5].mxu0 }
 0x136   :  { %v1786_v17 = vadd.f32 %v1785_v16, %v1784_v14  ;;  %v1849_v18 = vpop.f32.mrb[5].mxu1  ;;  %v1787_v19 = vpop.f32.mrb[6].mxu0 }
 0x137   :  { %v1850_v20 = vadd.f32 %v1849_v18, %v1848_v15  ;;  %v1851_v21 = vpop.f32.mrb[6].mxu1  ;;  %v1788_v22 = vpop.f32.mrb[7].mxu0 }
 0x138   :  { %v1789_v23 = vadd.f32 %v1788_v22, %v1787_v19  ;;  %v1852_v24 = vpop.f32.mrb[7].mxu1 }
 0x139   :  { %v2428_v25 = vadd.f32 %v1850_v20, %v1786_v17  ;;  %v1853_v26 = vadd.f32 %v1852_v24, %v1851_v21 }
 0x13b   :  { %v2430_v27 = vadd.f32 %v1853_v26, %v1789_v23 }
 0x13c   :  { %v1790_v28 = vpop.f32.mrb[8].mxu0 }
 0x13d   :  { %v1854_v29 = vpop.f32.mrb[8].mxu1  ;;  %v1791_v30 = vpop.f32.mrb[9].mxu0 }
 0x13e   :  { %v1792_v31 = vadd.f32 %v1791_v30, %v1790_v28  ;;  %v1855_v32 = vpop.f32.mrb[9].mxu1  ;;  %v1793_v33 = vpop.f32.mrb[10].mxu0 }
 0x13f   :  { %v1856_v34 = vadd.f32 %v1855_v32, %v1854_v29  ;;  %v1857_v35 = vpop.f32.mrb[10].mxu1  ;;  %v1794_v36 = vpop.f32.mrb[11].mxu0 }
 0x140   :  { %v1795_v37 = vadd.f32 %v1794_v36, %v1793_v33  ;;  %v1858_v38 = vpop.f32.mrb[11].mxu1 }
 0x141   :  { %v2432_v39 = vadd.f32 %v1856_v34, %v1792_v31  ;;  %v1859_v40 = vadd.f32 %v1858_v38, %v1857_v35 }
 0x143   :  { %v2434_v41 = vadd.f32 %v1859_v40, %v1795_v37 }
 0x144   :  { %v1796_v42 = vpop.f32.mrb[12].mxu0 }
 0x145   :  { %v1860_v43 = vpop.f32.mrb[12].mxu1  ;;  %v1797_v44 = vpop.f32.mrb[13].mxu0 }
 0x146   :  { %v1798_v45 = vadd.f32 %v1797_v44, %v1796_v42  ;;  %v1861_v46 = vpop.f32.mrb[13].mxu1  ;;  %v1799_v47 = vpop.f32.mrb[14].mxu0 }
 0x147   :  { %v1862_v48 = vadd.f32 %v1861_v46, %v1860_v43  ;;  %v1863_v49 = vpop.f32.mrb[14].mxu1  ;;  %v1800_v50 = vpop.f32.mrb[15].mxu0 }
 0x148   :  { %v1801_v51 = vadd.f32 %v1800_v50, %v1799_v47  ;;  %v1864_v52 = vpop.f32.mrb[15].mxu1 }
 0x149   :  { %v2436_v53 = vadd.f32 %v1862_v48, %v1798_v45  ;;  %v1865_v54 = vadd.f32 %v1864_v52, %v1863_v49 }
 0x14b   :  { %v2438_v55 = vadd.f32 %v1865_v54, %v1801_v51 }
 0x14c   :  { %v1802_v56 = vpop.f32.mrb[16].mxu0 }
 0x14d   :  { %v1866_v57 = vpop.f32.mrb[16].mxu1  ;;  %v1803_v58 = vpop.f32.mrb[17].mxu0 }
 0x14e   :  { %v1804_v59 = vadd.f32 %v1803_v58, %v1802_v56  ;;  %v1867_v60 = vpop.f32.mrb[17].mxu1  ;;  %v1805_v61 = vpop.f32.mrb[18].mxu0 }
 0x14f   :  { %v1868_v62 = vadd.f32 %v1867_v60, %v1866_v57  ;;  %v1869_v63 = vpop.f32.mrb[18].mxu1  ;;  %v1806_v0 = vpop.f32.mrb[19].mxu0 }
 0x150   :  { %v1807_v1 = vadd.f32 %v1806_v0, %v1805_v61  ;;  %v1870_v2 = vpop.f32.mrb[19].mxu1 }
 0x151   :  { %v2440_v3 = vadd.f32 %v1868_v62, %v1804_v59  ;;  %v1871_v4 = vadd.f32 %v1870_v2, %v1869_v63 }
 0x153   :  { %v2442_v5 = vadd.f32 %v1871_v4, %v1807_v1 }
 0x154   :  { %v1808_v6 = vpop.f32.mrb[20].mxu0 }
 0x155   :  { %v1872_v7 = vpop.f32.mrb[20].mxu1  ;;  %v1809_v8 = vpop.f32.mrb[21].mxu0 }
 0x156   :  { %v1810_v9 = vadd.f32 %v1809_v8, %v1808_v6  ;;  %v1873_v10 = vpop.f32.mrb[21].mxu1  ;;  %v1811_v12 = vpop.f32.mrb[22].mxu0 }
 0x157   :  { %v1874_v14 = vadd.f32 %v1873_v10, %v1872_v7  ;;  %v1875_v15 = vpop.f32.mrb[22].mxu1  ;;  %v1812_v16 = vpop.f32.mrb[23].mxu0 }
 0x158   :  { %v1813_v17 = vadd.f32 %v1812_v16, %v1811_v12  ;;  %v1876_v18 = vpop.f32.mrb[23].mxu1 }
 0x159   :  { %v2444_v19 = vadd.f32 %v1874_v14, %v1810_v9  ;;  %v1877_v20 = vadd.f32 %v1876_v18, %v1875_v15 }
 0x15b   :  { %v2446_v21 = vadd.f32 %v1877_v20, %v1813_v17 }
 0x15c   :  { %v1814_v22 = vpop.f32.mrb[24].mxu0 }
 0x15d   :  { %v1878_v23 = vpop.f32.mrb[24].mxu1  ;;  %v1815_v24 = vpop.f32.mrb[25].mxu0 }
 0x15e   :  { %v1816_v26 = vadd.f32 %v1815_v24, %v1814_v22  ;;  %v1879_v28 = vpop.f32.mrb[25].mxu1  ;;  %v1817_v29 = vpop.f32.mrb[26].mxu0 }
 0x15f   :  { %v1880_v30 = vadd.f32 %v1879_v28, %v1878_v23  ;;  %v1881_v31 = vpop.f32.mrb[26].mxu1  ;;  %v1818_v32 = vpop.f32.mrb[27].mxu0 }
 0x160   :  { %v1819_v33 = vadd.f32 %v1818_v32, %v1817_v29  ;;  %v1882_v34 = vpop.f32.mrb[27].mxu1 }
 0x161   :  { %v2448_v35 = vadd.f32 %v1880_v30, %v1816_v26  ;;  %v1883_v36 = vadd.f32 %v1882_v34, %v1881_v31 }
 0x163   :  { %v2450_v37 = vadd.f32 %v1883_v36, %v1819_v33 }
 0x164   :  { %v1820_v38 = vpop.f32.mrb[28].mxu0 }
 0x165   :  { %v1884_v40 = vpop.f32.mrb[28].mxu1  ;;  %v1821_v42 = vpop.f32.mrb[29].mxu0 }
 0x166   :  { %v1822_v43 = vadd.f32 %v1821_v42, %v1820_v38  ;;  %v1885_v44 = vpop.f32.mrb[29].mxu1  ;;  %v1823_v45 = vpop.f32.mrb[30].mxu0 }
 0x167   :  { %v1886_v46 = vadd.f32 %v1885_v44, %v1884_v40  ;;  %v1887_v47 = vpop.f32.mrb[30].mxu1  ;;  %v1824_v48 = vpop.f32.mrb[31].mxu0 }
 0x168   :  { %v1825_v49 = vadd.f32 %v1824_v48, %v1823_v45  ;;  %v1888_v50 = vpop.f32.mrb[31].mxu1 }
 0x169   :  { %v2452_v51 = vadd.f32 %v1886_v46, %v1822_v43  ;;  %v1889_v52 = vadd.f32 %v1888_v50, %v1887_v47 }
 0x16b   :  { %v2454_v54 = vadd.f32 %v1889_v52, %v1825_v49 }
 0x16c   :  { %v1906_v56 = vpop.f32.mrb[32].mxu0 }
 0x16d   :  { %v1970_v57 = vpop.f32.mrb[32].mxu1  ;;  %v1907_v58 = vpop.f32.mrb[33].mxu0 }
 0x16e   :  { %v1908_v59 = vadd.f32 %v1907_v58, %v1906_v56  ;;  %v1971_v60 = vpop.f32.mrb[33].mxu1  ;;  %v1909_v61 = vpop.f32.mrb[34].mxu0 }
 0x16f   :  { %v1972_v62 = vadd.f32 %v1971_v60, %v1970_v57  ;;  %v1973_v63 = vpop.f32.mrb[34].mxu1  ;;  %v1910_v0 = vpop.f32.mrb[35].mxu0 }
 0x170   :  { %v1180_v1 = vadd.f32 %v1908_v59, %v2424_v11  ;;  %v1911_v2 = vadd.f32 %v1910_v0, %v1909_v61  ;;  %v1974_v4 = vpop.f32.mrb[35].mxu1 }
 0x171   :  { %v1975_v6 = vadd.f32 %v1974_v4, %v1973_v63 }
 0x172   :  { %v2457_v7 = vadd.f32 %v1972_v62, %v1180_v1  ;;  %v1183_v8 = vadd.f32 %v1911_v2, %v2426_v13 }
 0x174   :  { %v2460_v9 = vadd.f32 %v1975_v6, %v1183_v8  ;;  %v1912_v10 = vpop.f32.mrb[36].mxu0  ;;  %v1360_v30 = vmul.f32 %v2457_v7, %v2457_v7 }
 0x175   :  { %v1976_v12 = vpop.f32.mrb[36].mxu1  ;;  %v1913_v14 = vpop.f32.mrb[37].mxu0 }
 0x176   :  { %v1914_v15 = vadd.f32 %v1913_v14, %v1912_v10  ;;  %v1977_v16 = vpop.f32.mrb[37].mxu1  ;;  %v1915_v17 = vpop.f32.mrb[38].mxu0  ;;  %v1361_v28 = vmul.f32 %v2460_v9, %v2460_v9  ;;  %v1339_v31 = vadd.f32 %v2460_v9, %v2457_v7 }
 0x177   :  { %v1978_v18 = vadd.f32 %v1977_v16, %v1976_v12  ;;  %v1979_v20 = vpop.f32.mrb[38].mxu1  ;;  %v1916_v22 = vpop.f32.mrb[39].mxu0 }
 0x178   :  { %v1188_v11 = vadd.f32 %v1914_v15, %v2428_v25  ;;  %v1917_v23 = vadd.f32 %v1916_v22, %v1915_v17  ;;  %v1980_v24 = vpop.f32.mrb[39].mxu1  ;;  %v1376_v38 = vadd.f32 %v1361_v28, %v1360_v30 }
 0x179   :  { %v1981_v26 = vadd.f32 %v1980_v24, %v1979_v20 }
 0x17a   :  { %v2465_v13 = vadd.f32 %v1978_v18, %v1188_v11  ;;  %v1191_v29 = vadd.f32 %v1917_v23, %v2430_v27 }
 0x17c   :  { %v1362_v32 = vmul.f32 %v2465_v13, %v2465_v13  ;;  %v2474_v25 = vadd.f32 %v1981_v26, %v1191_v29  ;;  %v1918_v33 = vpop.f32.mrb[40].mxu0  ;;  %v1340_v40 = vadd.f32 %v1339_v31, %v2465_v13 }
 0x17d   :  { %v1982_v34 = vpop.f32.mrb[40].mxu1  ;;  %v1919_v36 = vpop.f32.mrb[41].mxu0 }
 0x17e   :  { %v1920_v42 = vadd.f32 %v1919_v36, %v1918_v33  ;;  %v1983_v43 = vpop.f32.mrb[41].mxu1  ;;  %v1921_v27 = vpop.f32.mrb[42].mxu0  ;;  %v1377_v47 = vadd.f32 %v1376_v38, %v1362_v32  ;;  %v1363_v48 = vmul.f32 %v2474_v25, %v2474_v25  ;;  %v1341_v57 = vadd.f32 %v1340_v40, %v2474_v25 }
 0x17f   :  { %v1984_v44 = vadd.f32 %v1983_v43, %v1982_v34  ;;  %v1985_v45 = vpop.f32.mrb[42].mxu1  ;;  %v1922_v46 = vpop.f32.mrb[43].mxu0 }
 0x180   :  { %v1196_v49 = vadd.f32 %v1920_v42, %v2432_v39  ;;  %v1923_v50 = vadd.f32 %v1922_v46, %v1921_v27  ;;  %v1986_v52 = vpop.f32.mrb[43].mxu1  ;;  %v1378_v60 = vadd.f32 %v1377_v47, %v1363_v48 }
 0x181   :  { %v1987_v56 = vadd.f32 %v1986_v52, %v1985_v45 }
 0x182   :  { %v2481_v58 = vadd.f32 %v1984_v44, %v1196_v49  ;;  %v1199_v59 = vadd.f32 %v1923_v50, %v2434_v41 }
 0x184   :  { %v1342_v61 = vadd.f32 %v1341_v57, %v2481_v58  ;;  %v1364_v62 = vmul.f32 %v2481_v58, %v2481_v58  ;;  %v2487_v63 = vadd.f32 %v1987_v56, %v1199_v59  ;;  %v1924_v0 = vpop.f32.mrb[44].mxu0 }
 0x185   :  { %v1988_v1 = vpop.f32.mrb[44].mxu1  ;;  %v1925_v39 = vpop.f32.mrb[45].mxu0 }
 0x186   :  { %v1379_v2 = vadd.f32 %v1378_v60, %v1364_v62  ;;  %v1343_v4 = vadd.f32 %v1342_v61, %v2487_v63  ;;  %v1365_v6 = vmul.f32 %v2487_v63, %v2487_v63  ;;  %v1926_v8 = vadd.f32 %v1925_v39, %v1924_v0  ;;  %v1989_v10 = vpop.f32.mrb[45].mxu1  ;;  %v1927_v41 = vpop.f32.mrb[46].mxu0 }
 0x187   :  { %v1990_v12 = vadd.f32 %v1989_v10, %v1988_v1  ;;  %v1991_v14 = vpop.f32.mrb[46].mxu1  ;;  %v1928_v15 = vpop.f32.mrb[47].mxu0 }
 0x188   :  { %v1380_v16 = vadd.f32 %v1379_v2, %v1365_v6  ;;  %v1204_v17 = vadd.f32 %v1926_v8, %v2436_v53  ;;  %v1929_v18 = vadd.f32 %v1928_v15, %v1927_v41  ;;  %v1992_v20 = vpop.f32.mrb[47].mxu1 }
 0x189   :  { %v1993_v22 = vadd.f32 %v1992_v20, %v1991_v14 }
 0x18a   :  { %v2493_v11 = vadd.f32 %v1990_v12, %v1204_v17  ;;  %v1207_v23 = vadd.f32 %v1929_v18, %v2438_v55 }
 0x18c   :  { %v1344_v24 = vadd.f32 %v1343_v4, %v2493_v11  ;;  %v1366_v26 = vmul.f32 %v2493_v11, %v2493_v11  ;;  %v2499_v28 = vadd.f32 %v1993_v22, %v1207_v23  ;;  %v1930_v29 = vpop.f32.mrb[48].mxu0 }
 0x18d   :  { %v1994_v30 = vpop.f32.mrb[48].mxu1  ;;  %v1931_v31 = vpop.f32.mrb[49].mxu0 }
 0x18e   :  { %v1381_v32 = vadd.f32 %v1380_v16, %v1366_v26  ;;  %v1345_v53 = vadd.f32 %v1344_v24, %v2499_v28  ;;  %v1367_v33 = vmul.f32 %v2499_v28, %v2499_v28  ;;  %v1932_v34 = vadd.f32 %v1931_v31, %v1930_v29  ;;  %v1995_v36 = vpop.f32.mrb[49].mxu1  ;;  %v1933_v38 = vpop.f32.mrb[50].mxu0 }
 0x18f   :  { %v1996_v55 = vadd.f32 %v1995_v36, %v1994_v30  ;;  %v1997_v40 = vpop.f32.mrb[50].mxu1  ;;  %v1934_v42 = vpop.f32.mrb[51].mxu0 }
 0x190   :  { %v1382_v43 = vadd.f32 %v1381_v32, %v1367_v33  ;;  %v1212_v27 = vadd.f32 %v1932_v34, %v2440_v3  ;;  %v1935_v44 = vadd.f32 %v1934_v42, %v1933_v38  ;;  %v1998_v45 = vpop.f32.mrb[51].mxu1 }
 0x191   :  { %v1999_v46 = vadd.f32 %v1998_v45, %v1997_v40 }
 0x192   :  { %v2505_v47 = vadd.f32 %v1996_v55, %v1212_v27  ;;  %v1215_v48 = vadd.f32 %v1935_v44, %v2442_v5 }
 0x194   :  { %v1346_v49 = vadd.f32 %v1345_v53, %v2505_v47  ;;  %v1368_v50 = vmul.f32 %v2505_v47, %v2505_v47  ;;  %v2511_v52 = vadd.f32 %v1999_v46, %v1215_v48  ;;  %v1936_v56 = vpop.f32.mrb[52].mxu0 }
 0x195   :  { %v2000_v57 = vpop.f32.mrb[52].mxu1  ;;  %v1937_v59 = vpop.f32.mrb[53].mxu0 }
 0x196   :  { %v1383_v60 = vadd.f32 %v1382_v43, %v1368_v50  ;;  %v1347_v3 = vadd.f32 %v1346_v49, %v2511_v52  ;;  %v1369_v61 = vmul.f32 %v2511_v52, %v2511_v52  ;;  %v1938_v62 = vadd.f32 %v1937_v59, %v1936_v56  ;;  %v2001_v0 = vpop.f32.mrb[53].mxu1  ;;  %v1939_v1 = vpop.f32.mrb[54].mxu0 }
 0x197   :  { %v2002_v5 = vadd.f32 %v2001_v0, %v2000_v57  ;;  %v2003_v39 = vpop.f32.mrb[54].mxu1  ;;  %v1940_v2 = vpop.f32.mrb[55].mxu0 }
 0x198   :  { %v1384_v4 = vadd.f32 %v1383_v60, %v1369_v61  ;;  %v1220_v6 = vadd.f32 %v1938_v62, %v2444_v19  ;;  %v1941_v8 = vadd.f32 %v1940_v2, %v1939_v1  ;;  %v2004_v10 = vpop.f32.mrb[55].mxu1 }
 0x199   :  { %v2005_v41 = vadd.f32 %v2004_v10, %v2003_v39 }
 0x19a   :  { %v2517_v12 = vadd.f32 %v2002_v5, %v1220_v6  ;;  %v1223_v14 = vadd.f32 %v1941_v8, %v2446_v21 }
 0x19c   :  { %v1348_v15 = vadd.f32 %v1347_v3, %v2517_v12  ;;  %v1370_v16 = vmul.f32 %v2517_v12, %v2517_v12  ;;  %v2523_v17 = vadd.f32 %v2005_v41, %v1223_v14  ;;  %v1942_v18 = vpop.f32.mrb[56].mxu0 }
 0x19d   :  { %v2006_v20 = vpop.f32.mrb[56].mxu1  ;;  %v1943_v22 = vpop.f32.mrb[57].mxu0 }
 0x19e   :  { %v1385_v23 = vadd.f32 %v1384_v4, %v1370_v16  ;;  %v1349_v19 = vadd.f32 %v1348_v15, %v2523_v17  ;;  %v1371_v24 = vmul.f32 %v2523_v17, %v2523_v17  ;;  %v1944_v26 = vadd.f32 %v1943_v22, %v1942_v18  ;;  %v2007_v29 = vpop.f32.mrb[57].mxu1  ;;  %v1945_v30 = vpop.f32.mrb[58].mxu0 }
 0x19f   :  { %v2008_v21 = vadd.f32 %v2007_v29, %v2006_v20  ;;  %v2009_v31 = vpop.f32.mrb[58].mxu1  ;;  %v1946_v32 = vpop.f32.mrb[59].mxu0 }
 0x1a0   :  { %v1386_v53 = vadd.f32 %v1385_v23, %v1371_v24  ;;  %v1228_v33 = vadd.f32 %v1944_v26, %v2448_v35  ;;  %v1947_v34 = vadd.f32 %v1946_v32, %v1945_v30  ;;  %v2010_v36 = vpop.f32.mrb[59].mxu1 }
 0x1a1   :  { %v2011_v38 = vadd.f32 %v2010_v36, %v2009_v31 }
 0x1a2   :  { %v2529_v55 = vadd.f32 %v2008_v21, %v1228_v33  ;;  %v1231_v40 = vadd.f32 %v1947_v34, %v2450_v37  ;;  %v1410_v34 = vlaneseq }
 0x1a4   :  { %v1350_v42 = vadd.f32 %v1349_v19, %v2529_v55  ;;  %v1372_v43 = vmul.f32 %v2529_v55, %v2529_v55  ;;  %v2535_v27 = vadd.f32 %v2011_v38, %v1231_v40  ;;  %v1948_v44 = vpop.f32.mrb[60].mxu0  ;;  %v1411_v36 = vshrl.u32 %v1410_v34, 7  ;;  %v1402_v38 = vld [vmem:[#allocation4] sm:$0x1] }
 0x1a5   :  { %v2012_v45 = vpop.f32.mrb[60].mxu1  ;;  %v1949_v46 = vpop.f32.mrb[61].mxu0 }
 0x1a6   :  { %v1387_v48 = vadd.f32 %v1386_v53, %v1372_v43  ;;  %v1351_v35 = vadd.f32 %v1350_v42, %v2535_v27  ;;  %v1373_v49 = vmul.f32 %v2535_v27, %v2535_v27  ;;  %v1950_v50 = vadd.f32 %v1949_v46, %v1948_v44  ;;  %v2013_v56 = vpop.f32.mrb[61].mxu1  ;;  %v1951_v57 = vpop.f32.mrb[62].mxu0  ;;  %v1406_v44 = vld [vmem:[#allocation6] sm:$0x1] }
 0x1a7   :  { %v2014_v37 = vadd.f32 %v2013_v56, %v2012_v45  ;;  %v2015_v59 = vpop.f32.mrb[62].mxu1  ;;  %v1952_v60 = vpop.f32.mrb[63].mxu0  ;;  %v1412_v40 = vsub.s32 0, %v1411_v36 }
 0x1a8   :  { %v1388_v3 = vadd.f32 %v1387_v48, %v1373_v49  ;;  %v1236_v61 = vadd.f32 %v1950_v50, %v2452_v51  ;;  %v1953_v62 = vadd.f32 %v1952_v60, %v1951_v57  ;;  %v2016_v0 = vpop.f32.mrb[63].mxu1 }
 0x1a9   :  { %v2017_v1 = vadd.f32 %v2016_v0, %v2015_v59 }
 0x1aa   :  { %v1333_v5 = vadd.f32 %v2014_v37, %v1236_v61  ;;  %v1239_v39 = vadd.f32 %v1953_v62, %v2454_v54 }
 0x1ac   :  { %v1352_v2 = vadd.f32 %v1351_v35, %v1333_v5  ;;  %v1374_v4 = vmul.f32 %v1333_v5, %v1333_v5  ;;  %v1336_v6 = vadd.f32 %v2017_v1, %v1239_v39 }
 0x1ae   :  { %v1389_v8 = vadd.f32 %v1388_v3, %v1374_v4  ;;  %v1353_v10 = vadd.f32 %v1352_v2, %v1336_v6  ;;  %v1375_v41 = vmul.f32 %v1336_v6, %v1336_v6 }
 0x1b0   :  { %v1354_v14 = vrot.slane %v1353_v10, 4  ;;  %v1390_v15 = vadd.f32 %v1389_v8, %v1375_v41 }
 0x1b2   :  { %v1355_v16 = vadd.f32 %v1354_v14, %v1353_v10  ;;  %v1391_v18 = vrot.slane %v1390_v15, 4 }
 0x1b4   :  { %v1356_v20 = vrot.slane %v1355_v16, 2  ;;  %v1392_v22 = vadd.f32 %v1391_v18, %v1390_v15 }
 0x1b6   :  { %v1357_v23 = vadd.f32 %v1356_v20, %v1355_v16  ;;  %v1393_v51 = vrot.slane %v1392_v22, 2 }
 0x1b8   :  { %v1358_v19 = vrot.slane %v1357_v23, 1  ;;  %v1394_v24 = vadd.f32 %v1393_v51, %v1392_v22 }
 0x1ba   :  { %v1359_v26 = vadd.f32 %v1358_v19, %v1357_v23  ;;  %v1395_v29 = vrot.slane %v1394_v24, 1 }
 0x1bc   :  { %v1396_v30 = vadd.f32 %v1395_v29, %v1394_v24  ;;  %v1397_v54 = vmul.f32 0.0078125, %v1359_v26 }
 0x1be   :  { %v1398_v21 = vmul.f32 0.0078125, %v1396_v30  ;;  %v1399_v31 = vmul.f32 %v1397_v54, %v1397_v54 }
 0x1c0   :  { %v1400_v32 = vsub.f32 %v1398_v21, %v1399_v31 }
 0x1c2   :  { %v1401_v53 = vmax.f32 %v1400_v32, 0.0 }
 0x1c4   :  { %v1403_v33 = vadd.f32 1e-05, %v1401_v53 }
 0x1c6   :  { %2087 = vrsqrt.f32 %v1403_v33 }
 0x1d0   :  { %v2088_v42 = vpop.eup %2087 }
 0x1d1   :  { %v1405_v43 = vmul.f32 %v2088_v42, %v1402_v38 }
 0x1d3   :  { %v1407_v45 = vmul.f32 %v1405_v43, %v1397_v54  ;;  %v1413_v46 = vrot.slane %v1405_v43, %v1412_v40 }
 0x1d5   :  { %v1408_v48 = vsub.f32 %v1406_v44, %v1407_v45  ;;  %v1415_v35 = vmul.f32 %v1413_v46, %v2457_v7  ;;  %v1416_v49 = vmul.f32 %v1413_v46, %v2460_v9  ;;  %v1419_v50 = vmul.f32 %v1413_v46, %v2481_v58 }
 0x1d6   :  { %v1420_v56 = vmul.f32 %v1413_v46, %v2487_v63  ;;  %v1421_v57 = vmul.f32 %v1413_v46, %v2493_v11  ;;  %v1422_v37 = vmul.f32 %v1413_v46, %v2499_v28  ;;  %v1423_v59 = vmul.f32 %v1413_v46, %v2505_v47 }
 0x1d7   :  { %v1424_v60 = vmul.f32 %v1413_v46, %v2511_v52  ;;  %v1425_v3 = vmul.f32 %v1413_v46, %v2517_v12  ;;  %v1426_v61 = vmul.f32 %v1413_v46, %v2523_v17  ;;  %v1427_v7 = vmul.f32 %v1413_v46, %v2529_v55 }
 0x1d8   :  { %v1428_v9 = vmul.f32 %v1413_v46, %v2535_v27  ;;  %v1429_v62 = vmul.f32 %v1413_v46, %v1333_v5  ;;  %v1417_v58 = vmul.f32 %v1413_v46, %v2465_v13  ;;  %v1418_v63 = vmul.f32 %v1413_v46, %v2474_v25 }
 0x1d9   :  { %v1430_v11 = vmul.f32 %v1413_v46, %v1336_v6  ;;  %v1435_v0 = vrot.slane %v1408_v48, %v1412_v40 }
 0x1db   :  { %v1437_v28 = vadd.f32 %v1435_v0, %v1415_v35  ;;  %v1438_v1 = vadd.f32 %v1435_v0, %v1416_v49  ;;  %v1439_v47 = vadd.f32 %v1435_v0, %v1417_v58  ;;  %v1440_v39 = vadd.f32 %v1435_v0, %v1418_v63 }
 0x1dc   :  { %v1441_v52 = vadd.f32 %v1435_v0, %v1419_v50  ;;  %v1442_v2 = vadd.f32 %v1435_v0, %v1420_v56  ;;  %v1443_v12 = vadd.f32 %v1435_v0, %v1421_v57  ;;  %v1444_v4 = vadd.f32 %v1435_v0, %v1422_v37 }
 0x1dd   :  { %v1445_v17 = vadd.f32 %v1435_v0, %v1423_v59  ;;  %v1446_v8 = vadd.f32 %v1435_v0, %v1424_v60  ;;  %v1447_v55 = vadd.f32 %v1435_v0, %v1425_v3  ;;  %v1448_v10 = vadd.f32 %v1435_v0, %v1426_v61 }
 0x1de   :  { %v1449_v27 = vadd.f32 %v1435_v0, %v1427_v7  ;;  %v1450_v5 = vadd.f32 %v1435_v0, %v1428_v9  ;;  %v1451_v41 = vadd.f32 %v1435_v0, %v1429_v62  ;;  %v1452_v13 = vadd.f32 %v1435_v0, %v1430_v11 }
 0x1df   :  { %v1453_v14 = vmax.f32 %v1437_v28, 0.0  ;;  %v1454_v25 = vmax.f32 %v1438_v1, 0.0  ;;  %v1455_v6 = vmax.f32 %v1439_v47, 0.0  ;;  %v1456_v15 = vmax.f32 %v1440_v39, 0.0 }
 0x1e0   :  { %v1457_v16 = vmax.f32 %v1441_v52, 0.0  ;;  %v1458_v18 = vmax.f32 %v1442_v2, 0.0  ;;  %v1459_v20 = vmax.f32 %v1443_v12, 0.0  ;;  %v1460_v22 = vmax.f32 %v1444_v4, 0.0 }
 0x1e1   :  { %v1461_v23 = vmax.f32 %v1445_v17, 0.0  ;;  %v1462_v51 = vmax.f32 %v1446_v8, 0.0  ;;  %v1463_v19 = vmax.f32 %v1447_v55, 0.0  ;;  %v1464_v24 = vmax.f32 %v1448_v10, 0.0 }
 0x1e2   :  { %v1465_v26 = vmax.f32 %v1449_v27, 0.0  ;;  %v1466_v29 = vmax.f32 %v1450_v5, 0.0  ;;  %v1467_v30 = vmax.f32 %v1451_v41, 0.0  ;;  %v1468_v54 = vmax.f32 %v1452_v13, 0.0 }
 0x1e3   :  { %v1718_v21 = vpack.c.bf16 %v1454_v25, %v1453_v14  ;;  %v1723_v31 = vpack.c.bf16 %v1456_v15, %v1455_v6  ;;  %v1728_v32 = vpack.c.bf16 %v1458_v18, %v1457_v16  ;;  %v1733_v53 = vpack.c.bf16 %v1460_v22, %v1459_v20 }
 0x1e4   :  { %v1738_v33 = vpack.c.bf16 %v1462_v51, %v1461_v23  ;;  %v1743_v34 = vpack.c.bf16 %v1464_v24, %v1463_v19  ;;  %v1748_v36 = vpack.c.bf16 %v1466_v29, %v1465_v26  ;;  %v1753_v38 = vpack.c.bf16 %v1468_v54, %v1467_v30 }
 0x1e5   :  { %1719 = vst [vmem:[%s2584_s4] sm:$0xff] %v1718_v21   ;;  %1755 = vst [vmem:[%s2584_s4 + $0x8] sm:$0xff] %v1723_v31  }
 0x1e6   :  { %1756 = vst [vmem:[%s2584_s4 + $0x10] sm:$0xff] %v1728_v32   ;;  %1757 = vst [vmem:[%s2584_s4 + $0x18] sm:$0xff] %v1733_v53  }
 0x1e7   :  { %1758 = vst [vmem:[%s2584_s4 + $0x20] sm:$0xff] %v1738_v33   ;;  %1759 = vst [vmem:[%s2584_s4 + $0x28] sm:$0xff] %v1743_v34  }
 0x1e8   :  { %1760 = vst [vmem:[%s2584_s4 + $0x30] sm:$0xff] %v1748_v36   ;;  %1761 = vst [vmem:[%s2584_s4 + $0x38] sm:$0xff] %v1753_v38  }
 0x1e9   :  { %1553 = vsyncpa [#allocation3], 1 }
 0x1ea   :  { %1554 = vsyncpa [#allocation5], 1 }

// kernel: generator_forward.7
= control target key start
LH: loop header
LB: loop body
LE: loop exit
PB: predicated region body
PF: predicated region fallthrough
CT: control target
= control target key end

     0   :  { %v3132_v0 = vmov 0   ;;  %s4677_s1 = inlined_call_operand.vmem [shape: bf16[512,128], index: 1, kind: input, shape index: {}]   ;;  %s4678_s0 = inlined_call_operand.vmem [shape: bf16[512,512], index: 0, kind: input, shape index: {}]   ;;  %s4679_s2 = inlined_call_operand.vmem [shape: f32[1,128], index: 2, kind: input, shape index: {}]   ;;  %s4680_s3 = inlined_call_operand.vmem [shape: f32[1,128], index: 3, kind: input, shape index: {}]   ;;  %s4681_s4 = inlined_call_operand.vmem [shape: bf16[512,128], index: 4, kind: output, shape index: {}]  }
   0x1   :  { %1042 = vmatprep.subr.bf16.mxu1 %v3132_v0  ;;  %1331 = vmatprep.subr.bf16.mxu0 %v3132_v0  ;;  %v2906_v1 = vld [vmem:[%s4677_s1] sm:$0xff]   ;;  %v2908_v3 = vld [vmem:[%s4677_s1 + $0x8] sm:$0xff]   ;;  %v2910_v5 = vld [vmem:[%s4677_s1 + $0x10] sm:$0xff]  }
   0x2   :  { %v2907_v2 = vld [vmem:[%s4677_s1 + $0x80] sm:$0xff]   ;;  %1043 = vmatpush1.bf16.msra.mxu1 %v2906_v1  ;;  %v2909_v4 = vld [vmem:[%s4677_s1 + $0x88] sm:$0xff]   ;;  %v2911_v6 = vld [vmem:[%s4677_s1 + $0x90] sm:$0xff]  }
   0x3   :  { %1332 = vmatpush1.bf16.msra.mxu0 %v2907_v2  ;;  %1044 = vmatprep.subr.bf16.mxu1 %v3132_v0  ;;  %v2912_v7 = vld [vmem:[%s4677_s1 + $0x18] sm:$0xff]   ;;  %v2914_v9 = vld [vmem:[%s4677_s1 + $0x20] sm:$0xff]   ;;  %v2916_v11 = vld [vmem:[%s4677_s1 + $0x28] sm:$0xff]  }
   0x4   :  { %1333 = vmatprep.subr.bf16.mxu0 %v3132_v0  ;;  %v2913_v8 = vld [vmem:[%s4677_s1 + $0x98] sm:$0xff]   ;;  %v2915_v10 = vld [vmem:[%s4677_s1 + $0xa0] sm:$0xff]   ;;  %v2917_v12 = vld [vmem:[%s4677_s1 + $0xa8] sm:$0xff]  }
   0x5   :  { %v2918_v13 = vld [vmem:[%s4677_s1 + $0x30] sm:$0xff]   ;;  %v2920_v15 = vld [vmem:[%s4677_s1 + $0x38] sm:$0xff]   ;;  %v2922_v17 = vld [vmem:[%s4677_s1 + $0x40] sm:$0xff]  }
   0x6   :  { %1045 = vmatpush1.bf16.msra.mxu1 %v2908_v3  ;;  %v2919_v14 = vld [vmem:[%s4677_s1 + $0xb0] sm:$0xff]   ;;  %v2921_v16 = vld [vmem:[%s4677_s1 + $0xb8] sm:$0xff]   ;;  %v2923_v18 = vld [vmem:[%s4677_s1 + $0xc0] sm:$0xff]  }
   0x7   :  { %1334 = vmatpush1.bf16.msra.mxu0 %v2909_v4  ;;  %1046 = vmatprep.subr.bf16.mxu1 %v3132_v0  ;;  %v2940_v19 = vld [vmem:[%s4678_s0 + $0x4] ss:$16 sps:$4 sm:$0xff]   ;;  %v2924_v20 = vld [vmem:[%s4677_s1 + $0x48] sm:$0xff]   ;;  %v2928_v25 = vld [vmem:[%s4677_s1 + $0x58] sm:$0xff]  }
   0x8   :  { %1335 = vmatprep.subr.bf16.mxu0 %v3132_v0  ;;  %v2943_v21 = vld [vmem:[%s4678_s0 + $0xc] ss:$16 sps:$4 sm:$0xff]   ;;  %1074 = vmatprep.mubr.bf16.mxu1 %v2940_v19  ;;  %v2926_v23 = vld [vmem:[%s4677_s1 + $0x50] sm:$0xff]   ;;  %v2930_v27 = vld [vmem:[%s4677_s1 + $0x60] sm:$0xff]  }
   0x9   :  { %v2925_v22 = vld [vmem:[%s4677_s1 + $0xc8] sm:$0xff]   ;;  %1363 = vmatprep.mubr.bf16.mxu0 %v2943_v21  ;;  %v2927_v24 = vld [vmem:[%s4677_s1 + $0xd0] sm:$0xff]   ;;  %v2929_v26 = vld [vmem:[%s4677_s1 + $0xd8] sm:$0xff]  }
   0xa   :  { %1047 = vmatpush1.bf16.msra.mxu1 %v2910_v5  ;;  %v2931_v28 = vld [vmem:[%s4677_s1 + $0xe0] sm:$0xff]   ;;  %v2932_v29 = vld [vmem:[%s4677_s1 + $0x68] sm:$0xff]   ;;  %v2934_v31 = vld [vmem:[%s4677_s1 + $0x70] sm:$0xff]  }
   0xb   :  { %1336 = vmatpush1.bf16.msra.mxu0 %v2911_v6  ;;  %1048 = vmatprep.subr.bf16.mxu1 %v3132_v0  ;;  %v2933_v30 = vld [vmem:[%s4677_s1 + $0xe8] sm:$0xff]   ;;  %v2935_v32 = vld [vmem:[%s4677_s1 + $0xf0] sm:$0xff]   ;;  %v2936_v33 = vld [vmem:[%s4677_s1 + $0x78] sm:$0xff]  }
   0xc   :  { %1337 = vmatprep.subr.bf16.mxu0 %v3132_v0  ;;  %v2937_v34 = vld [vmem:[%s4677_s1 + $0xf8] sm:$0xff]   ;;  %v2938_v35 = vld [vmem:[%s4678_s0] ss:$16 sps:$4 sm:$0xff]   ;;  %v2944_v37 = vld [vmem:[%s4678_s0 + $0x24] ss:$16 sps:$4 sm:$0xff]  }
   0xd   :  { %v2941_v36 = vld [vmem:[%s4678_s0 + $0x8] ss:$16 sps:$4 sm:$0xff]   ;;  %v2946_v38 = vld [vmem:[%s4678_s0 + $0x2c] ss:$16 sps:$4 sm:$0xff]   ;;  %v2948_v39 = vld [vmem:[%s4678_s0 + $0x20] ss:$16 sps:$4 sm:$0xff]  }
   0xe   :  { %1049 = vmatpush1.bf16.msra.mxu1 %v2912_v7  ;;  %v2949_v40 = vld [vmem:[%s4678_s0 + $0x28] ss:$16 sps:$4 sm:$0xff]   ;;  %v2950_v41 = vld [vmem:[%s4678_s0 + $0x44] ss:$16 sps:$4 sm:$0xff]   ;;  %v2952_v42 = vld [vmem:[%s4678_s0 + $0x4c] ss:$16 sps:$4 sm:$0xff]  }
   0xf   :  { %1338 = vmatpush1.bf16.msra.mxu0 %v2913_v8  ;;  %1050 = vmatprep.subr.bf16.mxu1 %v3132_v0  ;;  %v2954_v43 = vld [vmem:[%s4678_s0 + $0x40] ss:$16 sps:$4 sm:$0xff]   ;;  %v2955_v44 = vld [vmem:[%s4678_s0 + $0x48] ss:$16 sps:$4 sm:$0xff]   ;;  %v2956_v45 = vld [vmem:[%s4678_s0 + $0x64] ss:$16 sps:$4 sm:$0xff]  }
  0x10   :  { %1339 = vmatprep.subr.bf16.mxu0 %v3132_v0  ;;  %v2958_v46 = vld [vmem:[%s4678_s0 + $0x6c] ss:$16 sps:$4 sm:$0xff]   ;;  %v2960_v47 = vld [vmem:[%s4678_s0 + $0x60] ss:$16 sps:$4 sm:$0xff]   ;;  %v2961_v48 = vld [vmem:[%s4678_s0 + $0x68] ss:$16 sps:$4 sm:$0xff]  }
  0x11   :  { %v2962_v49 = vld [vmem:[%s4678_s0 + $0x84] ss:$16 sps:$4 sm:$0xff]   ;;  %v2964_v50 = vld [vmem:[%s4678_s0 + $0x8c] ss:$16 sps:$4 sm:$0xff]   ;;  %v2966_v51 = vld [vmem:[%s4678_s0 + $0x80] ss:$16 sps:$4 sm:$0xff]  }
  0x12   :  { %1051 = vmatpush1.bf16.msra.mxu1 %v2914_v9  ;;  %v2967_v52 = vld [vmem:[%s4678_s0 + $0x88] ss:$16 sps:$4 sm:$0xff]   ;;  %v2968_v53 = vld [vmem:[%s4678_s0 + $0xa4] ss:$16 sps:$4 sm:$0xff]   ;;  %v2970_v54 = vld [vmem:[%s4678_s0 + $0xac] ss:$16 sps:$4 sm:$0xff]  }
  0x13   :  { %1340 = vmatpush1.bf16.msra.mxu0 %v2915_v10  ;;  %1052 = vmatprep.subr.bf16.mxu1 %v3132_v0  ;;  %v2972_v55 = vld [vmem:[%s4678_s0 + $0xa0] ss:$16 sps:$4 sm:$0xff]   ;;  %v2973_v56 = vld [vmem:[%s4678_s0 + $0xa8] ss:$16 sps:$4 sm:$0xff]   ;;  %v2974_v57 = vld [vmem:[%s4678_s0 + $0xc4] ss:$16 sps:$4 sm:$0xff]  }
  0x14   :  { %1341 = vmatprep.subr.bf16.mxu0 %v3132_v0  ;;  %v2976_v58 = vld [vmem:[%s4678_s0 + $0xcc] ss:$16 sps:$4 sm:$0xff]   ;;  %v2978_v59 = vld [vmem:[%s4678_s0 + $0xc0] ss:$16 sps:$4 sm:$0xff]   ;;  %v2979_v60 = vld [vmem:[%s4678_s0 + $0xc8] ss:$16 sps:$4 sm:$0xff]  }
  0x15   :  { %v2980_v61 = vld [vmem:[%s4678_s0 + $0xe4] ss:$16 sps:$4 sm:$0xff]   ;;  %v2982_v62 = vld [vmem:[%s4678_s0 + $0xec] ss:$16 sps:$4 sm:$0xff]   ;;  %v2984_v63 = vld [vmem:[%s4678_s0 + $0xe0] ss:$16 sps:$4 sm:$0xff]  }
  0x16   :  { %1053 = vmatpush1.bf16.msra.mxu1 %v2916_v11  ;;  %v2986_v1 = vld [vmem:[%s4678_s0 + $0x104] ss:$16 sps:$4 sm:$0xff]   ;;  %v2988_v2 = vld [vmem:[%s4678_s0 + $0x10c] ss:$16 sps:$4 sm:$0xff]   ;;  %v2990_v3 = vld [vmem:[%s4678_s0 + $0x100] ss:$16 sps:$4 sm:$0xff]  }
  0x17   :  { %1342 = vmatpush1.bf16.msra.mxu0 %v2917_v12  ;;  %1054 = vmatprep.subr.bf16.mxu1 %v3132_v0  ;;  %v2991_v4 = vld [vmem:[%s4678_s0 + $0x108] ss:$16 sps:$4 sm:$0xff]   ;;  %v2992_v5 = vld [vmem:[%s4678_s0 + $0x124] ss:$16 sps:$4 sm:$0xff]   ;;  %v2994_v6 = vld [vmem:[%s4678_s0 + $0x12c] ss:$16 sps:$4 sm:$0xff]  }
  0x18   :  { %1343 = vmatprep.subr.bf16.mxu0 %v3132_v0  ;;  %v2996_v7 = vld [vmem:[%s4678_s0 + $0x120] ss:$16 sps:$4 sm:$0xff]   ;;  %v2997_v8 = vld [vmem:[%s4678_s0 + $0x128] ss:$16 sps:$4 sm:$0xff]   ;;  %v2998_v9 = vld [vmem:[%s4678_s0 + $0x144] ss:$16 sps:$4 sm:$0xff]  }
  0x19   :  { %v3000_v10 = vld [vmem:[%s4678_s0 + $0x14c] ss:$16 sps:$4 sm:$0xff]   ;;  %v3002_v11 = vld [vmem:[%s4678_s0 + $0x140] ss:$16 sps:$4 sm:$0xff]   ;;  %v3003_v12 = vld [vmem:[%s4678_s0 + $0x148] ss:$16 sps:$4 sm:$0xff]  }
  0x1a   :  { %1055 = vmatpush1.bf16.msra.mxu1 %v2918_v13  ;;  %v3004_v13 = vld [vmem:[%s4678_s0 + $0x164] ss:$16 sps:$4 sm:$0xff]   ;;  %v3014_v19 = vld [vmem:[%s4678_s0 + $0x180] ss:$16 sps:$4 sm:$0xff]  }
  0x1b   :  { %1344 = vmatpush1.bf16.msra.mxu0 %v2919_v14  ;;  %1056 = vmatprep.subr.bf16.mxu1 %v3132_v0  ;;  %v3006_v14 = vld [vmem:[%s4678_s0 + $0x16c] ss:$16 sps:$4 sm:$0xff]   ;;  %v3016_v21 = vld [vmem:[%s4678_s0 + $0x1a4] ss:$16 sps:$4 sm:$0xff]  }
  0x1c   :  { %1345 = vmatprep.subr.bf16.mxu0 %v3132_v0 }
  0x1e   :  { %1057 = vmatpush1.bf16.msra.mxu1 %v2920_v15  ;;  %v3008_v15 = vld [vmem:[%s4678_s0 + $0x160] ss:$16 sps:$4 sm:$0xff]  }
  0x1f   :  { %1346 = vmatpush1.bf16.msra.mxu0 %v2921_v16  ;;  %1058 = vmatprep.subr.bf16.mxu1 %v3132_v0  ;;  %v3009_v16 = vld [vmem:[%s4678_s0 + $0x168] ss:$16 sps:$4 sm:$0xff]  }
  0x20   :  { %1347 = vmatprep.subr.bf16.mxu0 %v3132_v0 }
  0x22   :  { %1059 = vmatpush1.bf16.msra.mxu1 %v2922_v17  ;;  %v3010_v17 = vld [vmem:[%s4678_s0 + $0x184] ss:$16 sps:$4 sm:$0xff]  }
  0x23   :  { %1348 = vmatpush1.bf16.msra.mxu0 %v2923_v18  ;;  %1060 = vmatprep.subr.bf16.mxu1 %v3132_v0  ;;  %v3012_v18 = vld [vmem:[%s4678_s0 + $0x18c] ss:$16 sps:$4 sm:$0xff]  }
  0x24   :  { %1349 = vmatprep.subr.bf16.mxu0 %v3132_v0 }
  0x26   :  { %1061 = vmatpush1.bf16.msra.mxu1 %v2924_v20  ;;  %v3015_v20 = vld [vmem:[%s4678_s0 + $0x188] ss:$16 sps:$4 sm:$0xff]  }
  0x27   :  { %1350 = vmatpush1.bf16.msra.mxu0 %v2925_v22  ;;  %1062 = vmatprep.subr.bf16.mxu1 %v3132_v0  ;;  %v3018_v22 = vld [vmem:[%s4678_s0 + $0x1ac] ss:$16 sps:$4 sm:$0xff]  }
  0x28   :  { %1351 = vmatprep.subr.bf16.mxu0 %v3132_v0 }
  0x2a   :  { %1063 = vmatpush1.bf16.msra.mxu1 %v2926_v23  ;;  %v3020_v23 = vld [vmem:[%s4678_s0 + $0x1a0] ss:$16 sps:$4 sm:$0xff]  }
  0x2b   :  { %1352 = vmatpush1.bf16.msra.mxu0 %v2927_v24  ;;  %1064 = vmatprep.subr.bf16.mxu1 %v3132_v0  ;;  %v3021_v24 = vld [vmem:[%s4678_s0 + $0x1a8] ss:$16 sps:$4 sm:$0xff]  }
  0x2c   :  { %1353 = vmatprep.subr.bf16.mxu0 %v3132_v0 }
  0x2e   :  { %1065 = vmatpush1.bf16.msra.mxu1 %v2928_v25  ;;  %v3022_v25 = vld [vmem:[%s4678_s0 + $0x1c4] ss:$16 sps:$4 sm:$0xff]  }
  0x2f   :  { %1354 = vmatpush1.bf16.msra.mxu0 %v2929_v26  ;;  %1066 = vmatprep.subr.bf16.mxu1 %v3132_v0  ;;  %v3024_v26 = vld [vmem:[%s4678_s0 + $0x1cc] ss:$16 sps:$4 sm:$0xff]  }
  0x30   :  { %1355 = vmatprep.subr.bf16.mxu0 %v3132_v0 }
  0x32   :  { %1067 = vmatpush1.bf16.msra.mxu1 %v2930_v27  ;;  %v3026_v27 = vld [vmem:[%s4678_s0 + $0x1c0] ss:$16 sps:$4 sm:$0xff]  }
  0x33   :  { %1356 = vmatpush1.bf16.msra.mxu0 %v2931_v28  ;;  %1068 = vmatprep.subr.bf16.mxu1 %v3132_v0  ;;  %v3027_v28 = vld [vmem:[%s4678_s0 + $0x1c8] ss:$16 sps:$4 sm:$0xff]  }
  0x34   :  { %1357 = vmatprep.subr.bf16.mxu0 %v3132_v0 }
  0x36   :  { %1069 = vmatpush1.bf16.msra.mxu1 %v2932_v29  ;;  %v3028_v29 = vld [vmem:[%s4678_s0 + $0x1e4] ss:$16 sps:$4 sm:$0xff]  }
  0x37   :  { %1358 = vmatpush1.bf16.msra.mxu0 %v2933_v30  ;;  %1070 = vmatprep.subr.bf16.mxu1 %v3132_v0  ;;  %v3030_v30 = vld [vmem:[%s4678_s0 + $0x1ec] ss:$16 sps:$4 sm:$0xff]  }
  0x38   :  { %1359 = vmatprep.subr.bf16.mxu0 %v3132_v0 }
  0x3a   :  { %1071 = vmatpush1.bf16.msra.mxu1 %v2934_v31  ;;  %v3032_v31 = vld [vmem:[%s4678_s0 + $0x1e0] ss:$16 sps:$4 sm:$0xff]  }
  0x3b   :  { %1360 = vmatpush1.bf16.msra.mxu0 %v2935_v32  ;;  %1072 = vmatprep.subr.bf16.mxu1 %v3132_v0  ;;  %v3033_v32 = vld [vmem:[%s4678_s0 + $0x1e8] ss:$16 sps:$4 sm:$0xff]  }
  0x3c   :  { %1361 = vmatprep.subr.bf16.mxu0 %v3132_v0  ;;  %v2985_v0 = vld [vmem:[%s4678_s0 + $0xe8] ss:$16 sps:$4 sm:$0xff]  }
  0x3e   :  { %1073 = vmatpush1.bf16.msra.mxu1 %v2936_v33  ;;  %v3034_v33 = vld [vmem:[%s4678_s0 + $0x204] ss:$16 sps:$4 sm:$0xff]  }
  0x3f   :  { %1362 = vmatpush1.bf16.msra.mxu0 %v2937_v34  ;;  %v3036_v34 = vld [vmem:[%s4678_s0 + $0x20c] ss:$16 sps:$4 sm:$0xff]  }
  0x41   :  { %1075 = vmatmul.mubr.bf16.vlgmr.msra.gmra.mrb[0].mxu1 %v2938_v35  ;;  %v3038_v35 = vld [vmem:[%s4678_s0 + $0x200] ss:$16 sps:$4 sm:$0xff]  }
  0x42   :  { %1364 = vmatmul.mubr.bf16.vlgmr.msra.gmra.mrb[0].mxu0 %v2941_v36  ;;  %1082 = vmatprep.mubr.bf16.mxu1 %v2944_v37  ;;  %v3039_v36 = vld [vmem:[%s4678_s0 + $0x208] ss:$16 sps:$4 sm:$0xff]   ;;  %v3040_v37 = vld [vmem:[%s4678_s0 + $0x224] ss:$16 sps:$4 sm:$0xff]  }
  0x43   :  { %1371 = vmatprep.mubr.bf16.mxu0 %v2946_v38  ;;  %v3042_v38 = vld [vmem:[%s4678_s0 + $0x22c] ss:$16 sps:$4 sm:$0xff]  }
  0x49   :  { %1083 = vmatmul.mubr.bf16.gmra.mrb[4].mxu1 %v2948_v39  ;;  %v3044_v39 = vld [vmem:[%s4678_s0 + $0x220] ss:$16 sps:$4 sm:$0xff]  }
  0x4a   :  { %1372 = vmatmul.mubr.bf16.gmra.mrb[4].mxu0 %v2949_v40  ;;  %1090 = vmatprep.mubr.bf16.mxu1 %v2950_v41  ;;  %v3045_v40 = vld [vmem:[%s4678_s0 + $0x228] ss:$16 sps:$4 sm:$0xff]   ;;  %v3046_v41 = vld [vmem:[%s4678_s0 + $0x244] ss:$16 sps:$4 sm:$0xff]  }
  0x4b   :  { %1379 = vmatprep.mubr.bf16.mxu0 %v2952_v42  ;;  %v3048_v42 = vld [vmem:[%s4678_s0 + $0x24c] ss:$16 sps:$4 sm:$0xff]  }
  0x51   :  { %1091 = vmatmul.mubr.bf16.gmra.mrb[8].mxu1 %v2954_v43  ;;  %v3050_v43 = vld [vmem:[%s4678_s0 + $0x240] ss:$16 sps:$4 sm:$0xff]  }
  0x52   :  { %1380 = vmatmul.mubr.bf16.gmra.mrb[8].mxu0 %v2955_v44  ;;  %1098 = vmatprep.mubr.bf16.mxu1 %v2956_v45  ;;  %v3051_v44 = vld [vmem:[%s4678_s0 + $0x248] ss:$16 sps:$4 sm:$0xff]   ;;  %v3052_v45 = vld [vmem:[%s4678_s0 + $0x264] ss:$16 sps:$4 sm:$0xff]  }
  0x53   :  { %1387 = vmatprep.mubr.bf16.mxu0 %v2958_v46  ;;  %v3054_v46 = vld [vmem:[%s4678_s0 + $0x26c] ss:$16 sps:$4 sm:$0xff]  }
  0x59   :  { %1099 = vmatmul.mubr.bf16.gmra.mrb[12].mxu1 %v2960_v47  ;;  %v3056_v47 = vld [vmem:[%s4678_s0 + $0x260] ss:$16 sps:$4 sm:$0xff]  }
  0x5a   :  { %1388 = vmatmul.mubr.bf16.gmra.mrb[12].mxu0 %v2961_v48  ;;  %1106 = vmatprep.mubr.bf16.mxu1 %v2962_v49  ;;  %v3057_v48 = vld [vmem:[%s4678_s0 + $0x268] ss:$16 sps:$4 sm:$0xff]   ;;  %v3058_v49 = vld [vmem:[%s4678_s0 + $0x284] ss:$16 sps:$4 sm:$0xff]  }
  0x5b   :  { %1395 = vmatprep.mubr.bf16.mxu0 %v2964_v50  ;;  %v3060_v50 = vld [vmem:[%s4678_s0 + $0x28c] ss:$16 sps:$4 sm:$0xff]  }
  0x61   :  { %1107 = vmatmul.mubr.bf16.gmra.mrb[16].mxu1 %v2966_v51  ;;  %v3062_v51 = vld [vmem:[%s4678_s0 + $0x280] ss:$16 sps:$4 sm:$0xff]  }
  0x62   :  { %1396 = vmatmul.mubr.bf16.gmra.mrb[16].mxu0 %v2967_v52  ;;  %1114 = vmatprep.mubr.bf16.mxu1 %v2968_v53  ;;  %v3063_v52 = vld [vmem:[%s4678_s0 + $0x288] ss:$16 sps:$4 sm:$0xff]   ;;  %v3064_v53 = vld [vmem:[%s4678_s0 + $0x2a4] ss:$16 sps:$4 sm:$0xff]  }
  0x63   :  { %1403 = vmatprep.mubr.bf16.mxu0 %v2970_v54  ;;  %v3066_v54 = vld [vmem:[%s4678_s0 + $0x2ac] ss:$16 sps:$4 sm:$0xff]  }
  0x69   :  { %1115 = vmatmul.mubr.bf16.gmra.mrb[20].mxu1 %v2972_v55  ;;  %v3068_v55 = vld [vmem:[%s4678_s0 + $0x2a0] ss:$16 sps:$4 sm:$0xff]  }
  0x6a   :  { %1404 = vmatmul.mubr.bf16.gmra.mrb[20].mxu0 %v2973_v56  ;;  %1122 = vmatprep.mubr.bf16.mxu1 %v2974_v57  ;;  %v3069_v56 = vld [vmem:[%s4678_s0 + $0x2a8] ss:$16 sps:$4 sm:$0xff]   ;;  %v3070_v57 = vld [vmem:[%s4678_s0 + $0x2c4] ss:$16 sps:$4 sm:$0xff]  }
  0x6b   :  { %1411 = vmatprep.mubr.bf16.mxu0 %v2976_v58  ;;  %v3072_v58 = vld [vmem:[%s4678_s0 + $0x2cc] ss:$16 sps:$4 sm:$0xff]  }
  0x71   :  { %1123 = vmatmul.mubr.bf16.gmra.mrb[24].mxu1 %v2978_v59  ;;  %v3074_v59 = vld [vmem:[%s4678_s0 + $0x2c0] ss:$16 sps:$4 sm:$0xff]  }
  0x72   :  { %1412 = vmatmul.mubr.bf16.gmra.mrb[24].mxu0 %v2979_v60  ;;  %1130 = vmatprep.mubr.bf16.mxu1 %v2980_v61  ;;  %v3075_v60 = vld [vmem:[%s4678_s0 + $0x2c8] ss:$16 sps:$4 sm:$0xff]   ;;  %v3076_v61 = vld [vmem:[%s4678_s0 + $0x2e4] ss:$16 sps:$4 sm:$0xff]  }
  0x73   :  { %1419 = vmatprep.mubr.bf16.mxu0 %v2982_v62  ;;  %v3078_v62 = vld [vmem:[%s4678_s0 + $0x2ec] ss:$16 sps:$4 sm:$0xff]  }
  0x79   :  { %1131 = vmatmul.mubr.bf16.gmra.mrb[28].mxu1 %v2984_v63  ;;  %v3080_v63 = vld [vmem:[%s4678_s0 + $0x2e0] ss:$16 sps:$4 sm:$0xff]  }
  0x7a   :  { %1420 = vmatmul.mubr.bf16.gmra.mrb[28].mxu0 %v2985_v0  ;;  %1138 = vmatprep.mubr.bf16.mxu1 %v2986_v1  ;;  %v3081_v0 = vld [vmem:[%s4678_s0 + $0x2e8] ss:$16 sps:$4 sm:$0xff]   ;;  %v3082_v1 = vld [vmem:[%s4678_s0 + $0x304] ss:$16 sps:$4 sm:$0xff]  }
  0x7b   :  { %1427 = vmatprep.mubr.bf16.mxu0 %v2988_v2  ;;  %v3084_v2 = vld [vmem:[%s4678_s0 + $0x30c] ss:$16 sps:$4 sm:$0xff]  }
  0x81   :  { %1139 = vmatmul.mubr.bf16.gmra.mrb[32].mxu1 %v2990_v3  ;;  %v3086_v3 = vld [vmem:[%s4678_s0 + $0x300] ss:$16 sps:$4 sm:$0xff]  }
  0x82   :  { %1428 = vmatmul.mubr.bf16.gmra.mrb[32].mxu0 %v2991_v4  ;;  %1146 = vmatprep.mubr.bf16.mxu1 %v2992_v5  ;;  %v3087_v4 = vld [vmem:[%s4678_s0 + $0x308] ss:$16 sps:$4 sm:$0xff]   ;;  %v3088_v5 = vld [vmem:[%s4678_s0 + $0x324] ss:$16 sps:$4 sm:$0xff]  }
  0x83   :  { %1435 = vmatprep.mubr.bf16.mxu0 %v2994_v6  ;;  %v3090_v6 = vld [vmem:[%s4678_s0 + $0x32c] ss:$16 sps:$4 sm:$0xff]  }
  0x89   :  { %1147 = vmatmul.mubr.bf16.gmra.mrb[36].mxu1 %v2996_v7  ;;  %v3092_v7 = vld [vmem:[%s4678_s0 + $0x320] ss:$16 sps:$4 sm:$0xff]  }
  0x8a   :  { %1436 = vmatmul.mubr.bf16.gmra.mrb[36].mxu0 %v2997_v8  ;;  %1154 = vmatprep.mubr.bf16.mxu1 %v2998_v9  ;;  %v3093_v8 = vld [vmem:[%s4678_s0 + $0x328] ss:$16 sps:$4 sm:$0xff]   ;;  %v3094_v9 = vld [vmem:[%s4678_s0 + $0x344] ss:$16 sps:$4 sm:$0xff]  }
  0x8b   :  { %1443 = vmatprep.mubr.bf16.mxu0 %v3000_v10  ;;  %v3096_v10 = vld [vmem:[%s4678_s0 + $0x34c] ss:$16 sps:$4 sm:$0xff]  }
  0x91   :  { %1155 = vmatmul.mubr.bf16.gmra.mrb[40].mxu1 %v3002_v11  ;;  %v3098_v11 = vld [vmem:[%s4678_s0 + $0x340] ss:$16 sps:$4 sm:$0xff]  }
  0x92   :  { %1444 = vmatmul.mubr.bf16.gmra.mrb[40].mxu0 %v3003_v12  ;;  %1162 = vmatprep.mubr.bf16.mxu1 %v3004_v13  ;;  %v3099_v12 = vld [vmem:[%s4678_s0 + $0x348] ss:$16 sps:$4 sm:$0xff]   ;;  %v3100_v13 = vld [vmem:[%s4678_s0 + $0x364] ss:$16 sps:$4 sm:$0xff]  }
  0x93   :  { %1451 = vmatprep.mubr.bf16.mxu0 %v3006_v14  ;;  %v3102_v14 = vld [vmem:[%s4678_s0 + $0x36c] ss:$16 sps:$4 sm:$0xff]  }
  0x99   :  { %1163 = vmatmul.mubr.bf16.gmra.mrb[44].mxu1 %v3008_v15 }
  0x9a   :  { %1452 = vmatmul.mubr.bf16.gmra.mrb[44].mxu0 %v3009_v16  ;;  %1170 = vmatprep.mubr.bf16.mxu1 %v3010_v17 }
  0x9b   :  { %1459 = vmatprep.mubr.bf16.mxu0 %v3012_v18  ;;  %v3104_v18 = vld [vmem:[%s4678_s0 + $0x360] ss:$16 sps:$4 sm:$0xff]  }
  0xa1   :  { %1171 = vmatmul.mubr.bf16.gmra.mrb[48].mxu1 %v3014_v19 }
  0xa2   :  { %1460 = vmatmul.mubr.bf16.gmra.mrb[48].mxu0 %v3015_v20  ;;  %1178 = vmatprep.mubr.bf16.mxu1 %v3016_v21 }
  0xa3   :  { %1467 = vmatprep.mubr.bf16.mxu0 %v3018_v22  ;;  %v3105_v22 = vld [vmem:[%s4678_s0 + $0x368] ss:$16 sps:$4 sm:$0xff]  }
  0xa9   :  { %1179 = vmatmul.mubr.bf16.gmra.mrb[52].mxu1 %v3020_v23  ;;  %v3106_v23 = vld [vmem:[%s4678_s0 + $0x384] ss:$16 sps:$4 sm:$0xff]  }
  0xaa   :  { %1468 = vmatmul.mubr.bf16.gmra.mrb[52].mxu0 %v3021_v24  ;;  %1186 = vmatprep.mubr.bf16.mxu1 %v3022_v25 }
  0xab   :  { %1475 = vmatprep.mubr.bf16.mxu0 %v3024_v26  ;;  %v3108_v26 = vld [vmem:[%s4678_s0 + $0x38c] ss:$16 sps:$4 sm:$0xff]  }
  0xb1   :  { %1187 = vmatmul.mubr.bf16.gmra.mrb[56].mxu1 %v3026_v27 }
  0xb2   :  { %1476 = vmatmul.mubr.bf16.gmra.mrb[56].mxu0 %v3027_v28  ;;  %1194 = vmatprep.mubr.bf16.mxu1 %v3028_v29 }
  0xb3   :  { %1483 = vmatprep.mubr.bf16.mxu0 %v3030_v30 }
  0xb9   :  { %1195 = vmatmul.mubr.bf16.gmra.mrb[60].mxu1 %v3032_v31 }
  0xba   :  { %1484 = vmatmul.mubr.bf16.gmra.mrb[60].mxu0 %v3033_v32  ;;  %1202 = vmatprep.mubr.bf16.mxu1 %v3034_v33  ;;  %v3110_v32 = vld [vmem:[%s4678_s0 + $0x380] ss:$16 sps:$4 sm:$0xff]  }
  0xbb   :  { %1491 = vmatprep.mubr.bf16.mxu0 %v3036_v34 }
  0xc1   :  { %1203 = vmatmul.mubr.bf16.gmra.mrb[64].mxu1 %v3038_v35 }
  0xc2   :  { %1492 = vmatmul.mubr.bf16.gmra.mrb[64].mxu0 %v3039_v36  ;;  %1210 = vmatprep.mubr.bf16.mxu1 %v3040_v37  ;;  %v3111_v36 = vld [vmem:[%s4678_s0 + $0x388] ss:$16 sps:$4 sm:$0xff]   ;;  %v3112_v37 = vld [vmem:[%s4678_s0 + $0x3a4] ss:$16 sps:$4 sm:$0xff]  }
  0xc3   :  { %1499 = vmatprep.mubr.bf16.mxu0 %v3042_v38 }
  0xc9   :  { %1211 = vmatmul.mubr.bf16.gmra.mrb[68].mxu1 %v3044_v39 }
  0xca   :  { %1500 = vmatmul.mubr.bf16.gmra.mrb[68].mxu0 %v3045_v40  ;;  %1218 = vmatprep.mubr.bf16.mxu1 %v3046_v41  ;;  %v3114_v40 = vld [vmem:[%s4678_s0 + $0x3ac] ss:$16 sps:$4 sm:$0xff]  }
  0xcb   :  { %1507 = vmatprep.mubr.bf16.mxu0 %v3048_v42 }
  0xd1   :  { %1219 = vmatmul.mubr.bf16.gmra.mrb[72].mxu1 %v3050_v43 }
  0xd2   :  { %1508 = vmatmul.mubr.bf16.gmra.mrb[72].mxu0 %v3051_v44  ;;  %1226 = vmatprep.mubr.bf16.mxu1 %v3052_v45 }
  0xd3   :  { %1515 = vmatprep.mubr.bf16.mxu0 %v3054_v46  ;;  %v3116_v46 = vld [vmem:[%s4678_s0 + $0x3a0] ss:$16 sps:$4 sm:$0xff]  }
  0xd9   :  { %1227 = vmatmul.mubr.bf16.gmra.mrb[76].mxu1 %v3056_v47 }
  0xda   :  { %1516 = vmatmul.mubr.bf16.gmra.mrb[76].mxu0 %v3057_v48  ;;  %1234 = vmatprep.mubr.bf16.mxu1 %v3058_v49 }
  0xdb   :  { %1523 = vmatprep.mubr.bf16.mxu0 %v3060_v50  ;;  %v3117_v50 = vld [vmem:[%s4678_s0 + $0x3a8] ss:$16 sps:$4 sm:$0xff]  }
  0xe1   :  { %1235 = vmatmul.mubr.bf16.gmra.mrb[80].mxu1 %v3062_v51  ;;  %v3118_v51 = vld [vmem:[%s4678_s0 + $0x3c4] ss:$16 sps:$4 sm:$0xff]  }
  0xe2   :  { %1524 = vmatmul.mubr.bf16.gmra.mrb[80].mxu0 %v3063_v52  ;;  %1242 = vmatprep.mubr.bf16.mxu1 %v3064_v53 }
  0xe3   :  { %1531 = vmatprep.mubr.bf16.mxu0 %v3066_v54  ;;  %v3120_v54 = vld [vmem:[%s4678_s0 + $0x3cc] ss:$16 sps:$4 sm:$0xff]  }
  0xe9   :  { %1243 = vmatmul.mubr.bf16.gmra.mrb[84].mxu1 %v3068_v55 }
  0xea   :  { %1532 = vmatmul.mubr.bf16.gmra.mrb[84].mxu0 %v3069_v56  ;;  %1250 = vmatprep.mubr.bf16.mxu1 %v3070_v57 }
  0xeb   :  { %1539 = vmatprep.mubr.bf16.mxu0 %v3072_v58 }
  0xf1   :  { %1251 = vmatmul.mubr.bf16.gmra.mrb[88].mxu1 %v3074_v59 }
  0xf2   :  { %1540 = vmatmul.mubr.bf16.gmra.mrb[88].mxu0 %v3075_v60  ;;  %1258 = vmatprep.mubr.bf16.mxu1 %v3076_v61  ;;  %v3122_v60 = vld [vmem:[%s4678_s0 + $0x3c0] ss:$16 sps:$4 sm:$0xff]  }
  0xf3   :  { %1547 = vmatprep.mubr.bf16.mxu0 %v3078_v62 }
  0xf9   :  { %1259 = vmatmul.mubr.bf16.gmra.mrb[92].mxu1 %v3080_v63 }
  0xfa   :  { %1548 = vmatmul.mubr.bf16.gmra.mrb[92].mxu0 %v3081_v0  ;;  %1266 = vmatprep.mubr.bf16.mxu1 %v3082_v1  ;;  %v3123_v0 = vld [vmem:[%s4678_s0 + $0x3c8] ss:$16 sps:$4 sm:$0xff]   ;;  %v3124_v1 = vld [vmem:[%s4678_s0 + $0x3e4] ss:$16 sps:$4 sm:$0xff]  }
  0xfb   :  { %1555 = vmatprep.mubr.bf16.mxu0 %v3084_v2 }
 0x101   :  { %1267 = vmatmul.mubr.bf16.gmra.mrb[96].mxu1 %v3086_v3 }
 0x102   :  { %1556 = vmatmul.mubr.bf16.gmra.mrb[96].mxu0 %v3087_v4  ;;  %1274 = vmatprep.mubr.bf16.mxu1 %v3088_v5  ;;  %v3126_v4 = vld [vmem:[%s4678_s0 + $0x3ec] ss:$16 sps:$4 sm:$0xff]  }
 0x103   :  { %1563 = vmatprep.mubr.bf16.mxu0 %v3090_v6 }
 0x109   :  { %1275 = vmatmul.mubr.bf16.gmra.mrb[100].mxu1 %v3092_v7 }
 0x10a   :  { %1564 = vmatmul.mubr.bf16.gmra.mrb[100].mxu0 %v3093_v8  ;;  %1282 = vmatprep.mubr.bf16.mxu1 %v3094_v9 }
 0x10b   :  { %1571 = vmatprep.mubr.bf16.mxu0 %v3096_v10  ;;  %v3128_v10 = vld [vmem:[%s4678_s0 + $0x3e0] ss:$16 sps:$4 sm:$0xff]  }
 0x111   :  { %1283 = vmatmul.mubr.bf16.gmra.mrb[104].mxu1 %v3098_v11 }
 0x112   :  { %1572 = vmatmul.mubr.bf16.gmra.mrb[104].mxu0 %v3099_v12  ;;  %1290 = vmatprep.mubr.bf16.mxu1 %v3100_v13 }
 0x113   :  { %1579 = vmatprep.mubr.bf16.mxu0 %v3102_v14  ;;  %v3129_v14 = vld [vmem:[%s4678_s0 + $0x3e8] ss:$16 sps:$4 sm:$0xff]  }
 0x114   :  { %v1076_v15 = vpop.f32.mrb[0].mxu1 }
 0x115   :  { %v1365_v16 = vpop.f32.mrb[0].mxu0  ;;  %v1078_v17 = vpop.f32.mrb[1].mxu1 }
 0x116   :  { %v3619_v19 = vadd.f32 %v1365_v16, %v1076_v15  ;;  %v1367_v20 = vpop.f32.mrb[1].mxu0  ;;  %v1079_v21 = vpop.f32.mrb[2].mxu1 }
 0x117   :  { %v1368_v24 = vpop.f32.mrb[2].mxu0  ;;  %v1081_v25 = vpop.f32.mrb[3].mxu1 }
 0x118   :  { %v3630_v27 = vadd.f32 %v1368_v24, %v1079_v21  ;;  %v1370_v28 = vpop.f32.mrb[3].mxu0 }
 0x119   :  { %1291 = vmatmul.mubr.bf16.gmra.mrb[108].mxu1 %v3104_v18 }
 0x11a   :  { %1580 = vmatmul.mubr.bf16.gmra.mrb[108].mxu0 %v3105_v22  ;;  %1298 = vmatprep.mubr.bf16.mxu1 %v3106_v23 }
 0x11b   :  { %1587 = vmatprep.mubr.bf16.mxu0 %v3108_v26 }
 0x11c   :  { %v1084_v29 = vpop.f32.mrb[4].mxu1 }
 0x11d   :  { %v1373_v30 = vpop.f32.mrb[4].mxu0  ;;  %v1086_v31 = vpop.f32.mrb[5].mxu1 }
 0x11e   :  { %v3635_v33 = vadd.f32 %v1373_v30, %v1084_v29  ;;  %v1375_v34 = vpop.f32.mrb[5].mxu0  ;;  %v1087_v35 = vpop.f32.mrb[6].mxu1 }
 0x11f   :  { %v1376_v38 = vpop.f32.mrb[6].mxu0  ;;  %v1089_v39 = vpop.f32.mrb[7].mxu1 }
 0x120   :  { %v3646_v41 = vadd.f32 %v1376_v38, %v1087_v35  ;;  %v1378_v42 = vpop.f32.mrb[7].mxu0 }
 0x121   :  { %1299 = vmatmul.mubr.bf16.gmra.mrb[112].mxu1 %v3110_v32 }
 0x122   :  { %1588 = vmatmul.mubr.bf16.gmra.mrb[112].mxu0 %v3111_v36  ;;  %1306 = vmatprep.mubr.bf16.mxu1 %v3112_v37 }
 0x123   :  { %1595 = vmatprep.mubr.bf16.mxu0 %v3114_v40 }
 0x124   :  { %v1092_v43 = vpop.f32.mrb[8].mxu1 }
 0x125   :  { %v1381_v44 = vpop.f32.mrb[8].mxu0  ;;  %v1094_v45 = vpop.f32.mrb[9].mxu1 }
 0x126   :  { %v3651_v47 = vadd.f32 %v1381_v44, %v1092_v43  ;;  %v1383_v48 = vpop.f32.mrb[9].mxu0  ;;  %v1095_v49 = vpop.f32.mrb[10].mxu1 }
 0x127   :  { %v1384_v52 = vpop.f32.mrb[10].mxu0  ;;  %v1097_v53 = vpop.f32.mrb[11].mxu1 }
 0x128   :  { %v3662_v55 = vadd.f32 %v1384_v52, %v1095_v49  ;;  %v1386_v56 = vpop.f32.mrb[11].mxu0 }
 0x129   :  { %1307 = vmatmul.mubr.bf16.gmra.mrb[116].mxu1 %v3116_v46  ;;  %v1689_v56 = vmul.f32 %v3619_v19, %v3619_v19 }
 0x12a   :  { %1596 = vmatmul.mubr.bf16.gmra.mrb[116].mxu0 %v3117_v50  ;;  %1314 = vmatprep.mubr.bf16.mxu1 %v3118_v51 }
 0x12b   :  { %1603 = vmatprep.mubr.bf16.mxu0 %v3120_v54  ;;  %v1690_v54 = vmul.f32 %v3630_v27, %v3630_v27 }
 0x12c   :  { %v1100_v57 = vpop.f32.mrb[12].mxu1 }
 0x12d   :  { %v1389_v58 = vpop.f32.mrb[12].mxu0  ;;  %v1102_v59 = vpop.f32.mrb[13].mxu1 }
 0x12e   :  { %v3667_v61 = vadd.f32 %v1389_v58, %v1100_v57  ;;  %v1391_v62 = vpop.f32.mrb[13].mxu0  ;;  %v1103_v63 = vpop.f32.mrb[14].mxu1  ;;  %v1620_v57 = vadd.f32 %v3630_v27, %v3619_v19  ;;  %v1691_v58 = vmul.f32 %v3635_v33, %v3635_v33 }
 0x12f   :  { %v1392_v2 = vpop.f32.mrb[14].mxu0  ;;  %v1105_v3 = vpop.f32.mrb[15].mxu1 }
 0x130   :  { %v3678_v5 = vadd.f32 %v1392_v2, %v1103_v63  ;;  %v1394_v6 = vpop.f32.mrb[15].mxu0  ;;  %v1753_v63 = vadd.f32 %v1690_v54, %v1689_v56 }
 0x131   :  { %1315 = vmatmul.mubr.bf16.gmra.mrb[120].mxu1 %v3122_v60 }
 0x132   :  { %1604 = vmatmul.mubr.bf16.gmra.mrb[120].mxu0 %v3123_v0  ;;  %1322 = vmatprep.mubr.bf16.mxu1 %v3124_v1  ;;  %v1621_v0 = vadd.f32 %v1620_v57, %v3635_v33 }
 0x133   :  { %1611 = vmatprep.mubr.bf16.mxu0 %v3126_v4 }
 0x134   :  { %v1108_v7 = vpop.f32.mrb[16].mxu1 }
 0x135   :  { %v1397_v8 = vpop.f32.mrb[16].mxu0  ;;  %v1110_v9 = vpop.f32.mrb[17].mxu1 }
 0x136   :  { %v3683_v11 = vadd.f32 %v1397_v8, %v1108_v7  ;;  %v1399_v12 = vpop.f32.mrb[17].mxu0  ;;  %v1111_v13 = vpop.f32.mrb[18].mxu1  ;;  %v1754_v7 = vadd.f32 %v1753_v63, %v1691_v58  ;;  %v1692_v8 = vmul.f32 %v3646_v41, %v3646_v41 }
 0x137   :  { %v1400_v15 = vpop.f32.mrb[18].mxu0  ;;  %v1113_v16 = vpop.f32.mrb[19].mxu1  ;;  %v1622_v12 = vadd.f32 %v1621_v0, %v3646_v41 }
 0x138   :  { %v3688_v17 = vadd.f32 %v1400_v15, %v1111_v13  ;;  %v1402_v18 = vpop.f32.mrb[19].mxu0  ;;  %v1693_v13 = vmul.f32 %v3651_v47, %v3651_v47 }
 0x139   :  { %1323 = vmatmul.mubr.bf16.gmra.mrb[124].mxu1 %v3128_v10  ;;  %v1623_v15 = vadd.f32 %v1622_v12, %v3651_v47 }
 0x13a   :  { %1612 = vmatmul.mubr.bf16.gmra.mrb[124].mxu0 %v3129_v14  ;;  %v1755_v14 = vadd.f32 %v1754_v7, %v1692_v8  ;;  %v1698_v63 = vmul.f32 %v3688_v17, %v3688_v17 }
 0x13c   :  { %v1116_v20 = vpop.f32.mrb[20].mxu1 }
 0x13d   :  { %v1405_v21 = vpop.f32.mrb[20].mxu0  ;;  %v1118_v22 = vpop.f32.mrb[21].mxu1 }
 0x13e   :  { %v3690_v23 = vadd.f32 %v1405_v21, %v1116_v20  ;;  %v1407_v24 = vpop.f32.mrb[21].mxu0  ;;  %v1119_v25 = vpop.f32.mrb[22].mxu1  ;;  %v1756_v21 = vadd.f32 %v1755_v14, %v1693_v13  ;;  %v1694_v22 = vmul.f32 %v3662_v55, %v3662_v55 }
 0x13f   :  { %v1408_v26 = vpop.f32.mrb[22].mxu0  ;;  %v1121_v28 = vpop.f32.mrb[23].mxu1 }
 0x140   :  { %v3692_v29 = vadd.f32 %v1408_v26, %v1119_v25  ;;  %v1410_v30 = vpop.f32.mrb[23].mxu0 }
 0x144   :  { %v1124_v31 = vpop.f32.mrb[24].mxu1 }
 0x145   :  { %v1413_v32 = vpop.f32.mrb[24].mxu0  ;;  %v1126_v34 = vpop.f32.mrb[25].mxu1 }
 0x146   :  { %v3694_v35 = vadd.f32 %v1413_v32, %v1124_v31  ;;  %v1415_v36 = vpop.f32.mrb[25].mxu0  ;;  %v1127_v37 = vpop.f32.mrb[26].mxu1  ;;  %v1624_v31 = vadd.f32 %v1623_v15, %v3662_v55  ;;  %v1695_v32 = vmul.f32 %v3667_v61, %v3667_v61 }
 0x147   :  { %v1416_v38 = vpop.f32.mrb[26].mxu0  ;;  %v1129_v39 = vpop.f32.mrb[27].mxu1 }
 0x148   :  { %v3696_v40 = vadd.f32 %v1416_v38, %v1127_v37  ;;  %v1418_v42 = vpop.f32.mrb[27].mxu0  ;;  %v1757_v37 = vadd.f32 %v1756_v21, %v1694_v22  ;;  %v1625_v38 = vadd.f32 %v1624_v31, %v3667_v61 }
 0x149   :  { %v1696_v42 = vmul.f32 %v3678_v5, %v3678_v5 }
 0x14a   :  { %v1758_v39 = vadd.f32 %v1757_v37, %v1695_v32  ;;  %v1702_v37 = vmul.f32 %v3696_v40, %v3696_v40 }
 0x14c   :  { %v1132_v43 = vpop.f32.mrb[28].mxu1  ;;  %v1759_v57 = vadd.f32 %v1758_v39, %v1696_v42 }
 0x14d   :  { %v1421_v44 = vpop.f32.mrb[28].mxu0  ;;  %v1134_v45 = vpop.f32.mrb[29].mxu1 }
 0x14e   :  { %v3698_v46 = vadd.f32 %v1421_v44, %v1132_v43  ;;  %v1423_v48 = vpop.f32.mrb[29].mxu0  ;;  %v1135_v49 = vpop.f32.mrb[30].mxu1 }
 0x14f   :  { %v1424_v50 = vpop.f32.mrb[30].mxu0  ;;  %v1137_v51 = vpop.f32.mrb[31].mxu1  ;;  %v1626_v48 = vadd.f32 %v1625_v38, %v3678_v5 }
 0x150   :  { %v3700_v52 = vadd.f32 %v1424_v50, %v1135_v49  ;;  %v1426_v53 = vpop.f32.mrb[31].mxu0  ;;  %v1697_v49 = vmul.f32 %v3683_v11, %v3683_v11 }
 0x151   :  { %v1627_v58 = vadd.f32 %v1626_v48, %v3683_v11  ;;  %v1703_v48 = vmul.f32 %v3698_v46, %v3698_v46 }
 0x153   :  { %v1628_v0 = vadd.f32 %v1627_v58, %v3688_v17 }
 0x154   :  { %v1140_v59 = vpop.f32.mrb[32].mxu1 }
 0x155   :  { %v1429_v60 = vpop.f32.mrb[32].mxu0  ;;  %v1142_v62 = vpop.f32.mrb[33].mxu1  ;;  %v1629_v8 = vadd.f32 %v1628_v0, %v3690_v23 }
 0x156   :  { %v3711_v1 = vadd.f32 %v1429_v60, %v1140_v59  ;;  %v1431_v2 = vpop.f32.mrb[33].mxu0  ;;  %v1143_v3 = vpop.f32.mrb[34].mxu1  ;;  %v1760_v62 = vadd.f32 %v1759_v57, %v1697_v49  ;;  %v1704_v57 = vmul.f32 %v3700_v52, %v3700_v52 }
 0x157   :  { %v1432_v4 = vpop.f32.mrb[34].mxu0  ;;  %v1145_v6 = vpop.f32.mrb[35].mxu1  ;;  %v1699_v2 = vmul.f32 %v3690_v23, %v3690_v23  ;;  %v1630_v22 = vadd.f32 %v1629_v8, %v3692_v29 }
 0x158   :  { %v3715_v9 = vadd.f32 %v1432_v4, %v1143_v3  ;;  %v1434_v10 = vpop.f32.mrb[35].mxu0  ;;  %v1761_v7 = vadd.f32 %v1760_v62, %v1698_v63  ;;  %v1705_v0 = vmul.f32 %v3711_v1, %v3711_v1 }
 0x15c   :  { %v1148_v16 = vpop.f32.mrb[36].mxu1 }
 0x15d   :  { %v1437_v18 = vpop.f32.mrb[36].mxu0  ;;  %v1150_v20 = vpop.f32.mrb[37].mxu1 }
 0x15e   :  { %v3723_v24 = vadd.f32 %v1437_v18, %v1148_v16  ;;  %v1439_v25 = vpop.f32.mrb[37].mxu0  ;;  %v1151_v26 = vpop.f32.mrb[38].mxu1  ;;  %v1762_v16 = vadd.f32 %v1761_v7, %v1699_v2  ;;  %v1700_v18 = vmul.f32 %v3692_v29, %v3692_v29 }
 0x15f   :  { %v1440_v28 = vpop.f32.mrb[38].mxu0  ;;  %v1153_v30 = vpop.f32.mrb[39].mxu1  ;;  %v1701_v25 = vmul.f32 %v3694_v35, %v3694_v35 }
 0x160   :  { %v3728_v34 = vadd.f32 %v1440_v28, %v1151_v26  ;;  %v1442_v36 = vpop.f32.mrb[39].mxu0  ;;  %v1763_v26 = vadd.f32 %v1762_v16, %v1700_v18  ;;  %v1631_v28 = vadd.f32 %v1630_v22, %v3694_v35  ;;  %v1706_v16 = vmul.f32 %v3715_v9, %v3715_v9 }
 0x162   :  { %v1764_v36 = vadd.f32 %v1763_v26, %v1701_v25 }
 0x164   :  { %v1156_v43 = vpop.f32.mrb[40].mxu1 }
 0x165   :  { %v1445_v44 = vpop.f32.mrb[40].mxu0  ;;  %v1158_v45 = vpop.f32.mrb[41].mxu1 }
 0x166   :  { %v3736_v50 = vadd.f32 %v1445_v44, %v1156_v43  ;;  %v1447_v51 = vpop.f32.mrb[41].mxu0  ;;  %v1159_v53 = vpop.f32.mrb[42].mxu1  ;;  %v1632_v45 = vadd.f32 %v1631_v28, %v3696_v40 }
 0x167   :  { %v1448_v54 = vpop.f32.mrb[42].mxu0  ;;  %v1161_v56 = vpop.f32.mrb[43].mxu1 }
 0x168   :  { %v3739_v59 = vadd.f32 %v1448_v54, %v1159_v53  ;;  %v1450_v60 = vpop.f32.mrb[43].mxu0  ;;  %v1765_v53 = vadd.f32 %v1764_v36, %v1702_v37  ;;  %v1633_v54 = vadd.f32 %v1632_v45, %v3698_v46 }
 0x16a   :  { %v1766_v56 = vadd.f32 %v1765_v53, %v1703_v48  ;;  %v1634_v63 = vadd.f32 %v1633_v54, %v3700_v52 }
 0x16c   :  { %v1164_v3 = vpop.f32.mrb[44].mxu1  ;;  %v1767_v8 = vadd.f32 %v1766_v56, %v1704_v57 }
 0x16d   :  { %v1453_v4 = vpop.f32.mrb[44].mxu0  ;;  %v1166_v6 = vpop.f32.mrb[45].mxu1 }
 0x16e   :  { %v3747_v10 = vadd.f32 %v1453_v4, %v1164_v3  ;;  %v1455_v12 = vpop.f32.mrb[45].mxu0  ;;  %v1167_v13 = vpop.f32.mrb[46].mxu1 }
 0x16f   :  { %v1456_v14 = vpop.f32.mrb[46].mxu0  ;;  %v1169_v15 = vpop.f32.mrb[47].mxu1  ;;  %v1635_v12 = vadd.f32 %v1634_v63, %v3711_v1 }
 0x170   :  { %v3751_v20 = vadd.f32 %v1456_v14, %v1167_v13  ;;  %v1458_v21 = vpop.f32.mrb[47].mxu0  ;;  %v1768_v15 = vadd.f32 %v1767_v8, %v1705_v0  ;;  %v1711_v8 = vmul.f32 %v3747_v10, %v3747_v10 }
 0x171   :  { %v1636_v18 = vadd.f32 %v1635_v12, %v3715_v9  ;;  %v1707_v21 = vmul.f32 %v3723_v24, %v3723_v24 }
 0x172   :  { %v1769_v28 = vadd.f32 %v1768_v15, %v1706_v16 }
 0x174   :  { %v1172_v30 = vpop.f32.mrb[48].mxu1 }
 0x175   :  { %v1461_v31 = vpop.f32.mrb[48].mxu0  ;;  %v1174_v32 = vpop.f32.mrb[49].mxu1 }
 0x176   :  { %v3759_v38 = vadd.f32 %v1461_v31, %v1172_v30  ;;  %v1463_v39 = vpop.f32.mrb[49].mxu0  ;;  %v1175_v42 = vpop.f32.mrb[50].mxu1  ;;  %v1637_v30 = vadd.f32 %v1636_v18, %v3723_v24 }
 0x177   :  { %v1464_v43 = vpop.f32.mrb[50].mxu0  ;;  %v1177_v44 = vpop.f32.mrb[51].mxu1 }
 0x178   :  { %v3764_v49 = vadd.f32 %v1464_v43, %v1175_v42  ;;  %v1466_v51 = vpop.f32.mrb[51].mxu0  ;;  %v1770_v42 = vadd.f32 %v1769_v28, %v1707_v21  ;;  %v1708_v43 = vmul.f32 %v3728_v34, %v3728_v34  ;;  %v1638_v48 = vadd.f32 %v1637_v30, %v3728_v34 }
 0x179   :  { %v1709_v51 = vmul.f32 %v3736_v50, %v3736_v50  ;;  %v1712_v21 = vmul.f32 %v3751_v20, %v3751_v20  ;;  %v1713_v30 = vmul.f32 %v3759_v38, %v3759_v38 }
 0x17a   :  { %v1771_v53 = vadd.f32 %v1770_v42, %v1708_v43  ;;  %v1639_v54 = vadd.f32 %v1638_v48, %v3736_v50 }
 0x17c   :  { %v1180_v58 = vpop.f32.mrb[52].mxu1 }
 0x17d   :  { %v1469_v60 = vpop.f32.mrb[52].mxu0  ;;  %v1182_v62 = vpop.f32.mrb[53].mxu1 }
 0x17e   :  { %v3772_v2 = vadd.f32 %v1469_v60, %v1180_v58  ;;  %v1471_v3 = vpop.f32.mrb[53].mxu0  ;;  %v1183_v4 = vpop.f32.mrb[54].mxu1  ;;  %v1772_v60 = vadd.f32 %v1771_v53, %v1709_v51  ;;  %v1710_v62 = vmul.f32 %v3739_v59, %v3739_v59 }
 0x17f   :  { %v1472_v6 = vpop.f32.mrb[54].mxu0  ;;  %v1185_v7 = vpop.f32.mrb[55].mxu1 }
 0x180   :  { %v3775_v13 = vadd.f32 %v1472_v6, %v1183_v4  ;;  %v1474_v14 = vpop.f32.mrb[55].mxu0  ;;  %v1640_v7 = vadd.f32 %v1639_v54, %v3739_v59  ;;  %v1773_v15 = vadd.f32 %v1772_v60, %v1710_v62  ;;  %v1714_v54 = vmul.f32 %v3764_v49, %v3764_v49 }
 0x182   :  { %v1641_v16 = vadd.f32 %v1640_v7, %v3747_v10  ;;  %v1774_v18 = vadd.f32 %v1773_v15, %v1711_v8 }
 0x184   :  { %v1188_v22 = vpop.f32.mrb[56].mxu1  ;;  %v1642_v28 = vadd.f32 %v1641_v16, %v3751_v20  ;;  %v1775_v43 = vadd.f32 %v1774_v18, %v1712_v21  ;;  %v1716_v16 = vmul.f32 %v3775_v13, %v3775_v13 }
 0x185   :  { %v1477_v25 = vpop.f32.mrb[56].mxu0  ;;  %v1190_v26 = vpop.f32.mrb[57].mxu1 }
 0x186   :  { %v3783_v31 = vadd.f32 %v1477_v25, %v1188_v22  ;;  %v1479_v32 = vpop.f32.mrb[57].mxu0  ;;  %v1191_v36 = vpop.f32.mrb[58].mxu1  ;;  %v1776_v53 = vadd.f32 %v1775_v43, %v1713_v30 }
 0x187   :  { %v1480_v37 = vpop.f32.mrb[58].mxu0  ;;  %v1193_v39 = vpop.f32.mrb[59].mxu1 }
 0x188   :  { %v3787_v44 = vadd.f32 %v1480_v37, %v1191_v36  ;;  %v1482_v45 = vpop.f32.mrb[59].mxu0 }
 0x189   :  { %v1643_v45 = vadd.f32 %v1642_v28, %v3759_v38 }
 0x18c   :  { %v1196_v56 = vpop.f32.mrb[60].mxu1 }
 0x18d   :  { %v1485_v57 = vpop.f32.mrb[60].mxu0  ;;  %v1198_v58 = vpop.f32.mrb[61].mxu1 }
 0x18e   :  { %v3795_v63 = vadd.f32 %v1485_v57, %v1196_v56  ;;  %v1487_v0 = vpop.f32.mrb[61].mxu0  ;;  %v1199_v3 = vpop.f32.mrb[62].mxu1  ;;  %v1644_v56 = vadd.f32 %v1643_v45, %v3764_v49  ;;  %v1715_v57 = vmul.f32 %v3772_v2, %v3772_v2 }
 0x18f   :  { %v1488_v4 = vpop.f32.mrb[62].mxu0  ;;  %v1201_v6 = vpop.f32.mrb[63].mxu1  ;;  %v1777_v0 = vadd.f32 %v1776_v53, %v1714_v54 }
 0x190   :  { %v3800_v12 = vadd.f32 %v1488_v4, %v1199_v3  ;;  %v1490_v14 = vpop.f32.mrb[63].mxu0  ;;  %v1645_v3 = vadd.f32 %v1644_v56, %v3772_v2 }
 0x191   :  { %v1778_v15 = vadd.f32 %v1777_v0, %v1715_v57  ;;  %v1719_v57 = vmul.f32 %v3795_v63, %v3795_v63 }
 0x194   :  { %v1204_v22 = vpop.f32.mrb[64].mxu1 }
 0x195   :  { %v1493_v25 = vpop.f32.mrb[64].mxu0  ;;  %v1206_v26 = vpop.f32.mrb[65].mxu1 }
 0x196   :  { %v3808_v32 = vadd.f32 %v1493_v25, %v1204_v22  ;;  %v1495_v36 = vpop.f32.mrb[65].mxu0  ;;  %v1207_v37 = vpop.f32.mrb[66].mxu1  ;;  %v1646_v22 = vadd.f32 %v1645_v3, %v3775_v13  ;;  %v1717_v25 = vmul.f32 %v3783_v31, %v3783_v31  ;;  %v1779_v26 = vadd.f32 %v1778_v15, %v1716_v16 }
 0x197   :  { %v1496_v39 = vpop.f32.mrb[66].mxu0  ;;  %v1209_v42 = vpop.f32.mrb[67].mxu1 }
 0x198   :  { %v3811_v48 = vadd.f32 %v1496_v39, %v1207_v37  ;;  %v1498_v51 = vpop.f32.mrb[67].mxu0  ;;  %v1647_v28 = vadd.f32 %v1646_v22, %v3783_v31  ;;  %v1780_v39 = vadd.f32 %v1779_v26, %v1717_v25  ;;  %v1718_v42 = vmul.f32 %v3787_v44, %v3787_v44 }
 0x199   :  { %v1721_v16 = vmul.f32 %v3808_v32, %v3808_v32 }
 0x19a   :  { %v1648_v56 = vadd.f32 %v1647_v28, %v3787_v44 }
 0x19c   :  { %v1212_v58 = vpop.f32.mrb[68].mxu1  ;;  %v1649_v0 = vadd.f32 %v1648_v56, %v3795_v63 }
 0x19d   :  { %v1501_v60 = vpop.f32.mrb[68].mxu0  ;;  %v1214_v62 = vpop.f32.mrb[69].mxu1 }
 0x19e   :  { %v3819_v4 = vadd.f32 %v1501_v60, %v1212_v58  ;;  %v1503_v6 = vpop.f32.mrb[69].mxu0  ;;  %v1215_v7 = vpop.f32.mrb[70].mxu1  ;;  %v1781_v62 = vadd.f32 %v1780_v39, %v1718_v42  ;;  %v1650_v15 = vadd.f32 %v1649_v0, %v3800_v12 }
 0x19f   :  { %v1504_v8 = vpop.f32.mrb[70].mxu0  ;;  %v1217_v14 = vpop.f32.mrb[71].mxu1  ;;  %v1720_v6 = vmul.f32 %v3800_v12, %v3800_v12 }
 0x1a0   :  { %v3823_v18 = vadd.f32 %v1504_v8, %v1215_v7  ;;  %v1506_v21 = vpop.f32.mrb[71].mxu0  ;;  %v1782_v3 = vadd.f32 %v1781_v62, %v1719_v57 }
 0x1a4   :  { %v1220_v30 = vpop.f32.mrb[72].mxu1 }
 0x1a5   :  { %v1509_v36 = vpop.f32.mrb[72].mxu0  ;;  %v1222_v37 = vpop.f32.mrb[73].mxu1 }
 0x1a6   :  { %v3831_v43 = vadd.f32 %v1509_v36, %v1220_v30  ;;  %v1511_v45 = vpop.f32.mrb[73].mxu0  ;;  %v1223_v51 = vpop.f32.mrb[74].mxu1  ;;  %v1783_v30 = vadd.f32 %v1782_v3, %v1720_v6  ;;  %v1651_v36 = vadd.f32 %v1650_v15, %v3808_v32  ;;  %v1724_v15 = vmul.f32 %v3823_v18, %v3823_v18 }
 0x1a7   :  { %v1512_v53 = vpop.f32.mrb[74].mxu0  ;;  %v1225_v54 = vpop.f32.mrb[75].mxu1  ;;  %v1722_v45 = vmul.f32 %v3811_v48, %v3811_v48 }
 0x1a8   :  { %v3836_v58 = vadd.f32 %v1512_v53, %v1223_v51  ;;  %v1514_v60 = vpop.f32.mrb[75].mxu0  ;;  %v1784_v42 = vadd.f32 %v1783_v30, %v1721_v16  ;;  %v1652_v51 = vadd.f32 %v1651_v36, %v3811_v48  ;;  %v1723_v53 = vmul.f32 %v3819_v4, %v3819_v4 }
 0x1aa   :  { %v1785_v60 = vadd.f32 %v1784_v42, %v1722_v45  ;;  %v1653_v62 = vadd.f32 %v1652_v51, %v3819_v4  ;;  %v1726_v51 = vmul.f32 %v3836_v58, %v3836_v58 }
 0x1ac   :  { %v1228_v7 = vpop.f32.mrb[76].mxu1 }
 0x1ad   :  { %v1517_v8 = vpop.f32.mrb[76].mxu0  ;;  %v1230_v14 = vpop.f32.mrb[77].mxu1 }
 0x1ae   :  { %v3844_v21 = vadd.f32 %v1517_v8, %v1228_v7  ;;  %v1519_v22 = vpop.f32.mrb[77].mxu0  ;;  %v1231_v25 = vpop.f32.mrb[78].mxu1  ;;  %v1786_v14 = vadd.f32 %v1785_v60, %v1723_v53 }
 0x1af   :  { %v1520_v26 = vpop.f32.mrb[78].mxu0  ;;  %v1233_v28 = vpop.f32.mrb[79].mxu1 }
 0x1b0   :  { %v3847_v37 = vadd.f32 %v1520_v26, %v1231_v25  ;;  %v1522_v39 = vpop.f32.mrb[79].mxu0  ;;  %v1654_v25 = vadd.f32 %v1653_v62, %v3823_v18  ;;  %v1725_v26 = vmul.f32 %v3831_v43, %v3831_v43  ;;  %v1787_v28 = vadd.f32 %v1786_v14, %v1724_v15 }
 0x1b2   :  { %v1655_v30 = vadd.f32 %v1654_v25, %v3831_v43  ;;  %v1788_v45 = vadd.f32 %v1787_v28, %v1725_v26 }
 0x1b4   :  { %v1236_v54 = vpop.f32.mrb[80].mxu1  ;;  %v1656_v62 = vadd.f32 %v1655_v30, %v3836_v58 }
 0x1b5   :  { %v1525_v56 = vpop.f32.mrb[80].mxu0  ;;  %v1238_v57 = vpop.f32.mrb[81].mxu1 }
 0x1b6   :  { %v3855_v0 = vadd.f32 %v1525_v56, %v1236_v54  ;;  %v1527_v3 = vpop.f32.mrb[81].mxu0  ;;  %v1239_v6 = vpop.f32.mrb[82].mxu1  ;;  %v1657_v14 = vadd.f32 %v1656_v62, %v3844_v21 }
 0x1b7   :  { %v1528_v7 = vpop.f32.mrb[82].mxu0  ;;  %v1241_v8 = vpop.f32.mrb[83].mxu1  ;;  %v1727_v3 = vmul.f32 %v3844_v21, %v3844_v21 }
 0x1b8   :  { %v3859_v16 = vadd.f32 %v1528_v7, %v1239_v6  ;;  %v1530_v22 = vpop.f32.mrb[83].mxu0  ;;  %v1789_v8 = vadd.f32 %v1788_v45, %v1726_v51  ;;  %v1729_v30 = vmul.f32 %v3855_v0, %v3855_v0 }
 0x1b9   :  { %v1728_v22 = vmul.f32 %v3847_v37, %v3847_v37 }
 0x1ba   :  { %4711 = vst [vmem:[#allocation2_spill] sm:$0xff] %v3859_v16  ;;  %v1790_v15 = vadd.f32 %v1789_v8, %v1727_v3 }
 0x1bc   :  { %v1244_v36 = vpop.f32.mrb[84].mxu1  ;;  %v1791_v51 = vadd.f32 %v1790_v15, %v1728_v22 }
 0x1bd   :  { %v1533_v39 = vpop.f32.mrb[84].mxu0  ;;  %v1246_v42 = vpop.f32.mrb[85].mxu1 }
 0x1be   :  { %v3867_v53 = vadd.f32 %v1533_v39, %v1244_v36  ;;  %v1535_v54 = vpop.f32.mrb[85].mxu0  ;;  %v1247_v56 = vpop.f32.mrb[86].mxu1  ;;  %v1658_v36 = vadd.f32 %v1657_v14, %v3847_v37  ;;  %v1792_v3 = vadd.f32 %v1791_v51, %v1729_v30 }
 0x1bf   :  { %v1536_v57 = vpop.f32.mrb[86].mxu0  ;;  %v1249_v60 = vpop.f32.mrb[87].mxu1 }
 0x1c0   :  { %4712 = vst [vmem:[#allocation3_spill] sm:$0xff] %v3867_v53  ;;  %v3872_v6 = vadd.f32 %v1536_v57, %v1247_v56  ;;  %v1538_v7 = vpop.f32.mrb[87].mxu0  ;;  %v1659_v57 = vadd.f32 %v1658_v36, %v3855_v0  ;;  %v1731_v14 = vmul.f32 %v3867_v53, %v3867_v53 }
 0x1c1   :  { %v1730_v7 = vmul.f32 %v3859_v16, %v3859_v16 }
 0x1c2   :  { %4713 = vst [vmem:[#allocation4_spill] sm:$0xff] %v3872_v6  ;;  %v1660_v8 = vadd.f32 %v1659_v57, %v3859_v16  ;;  %v1732_v51 = vmul.f32 %v3872_v6, %v3872_v6 }
 0x1c4   :  { %v1252_v25 = vpop.f32.mrb[88].mxu1  ;;  %v1661_v15 = vadd.f32 %v1660_v8, %v3867_v53 }
 0x1c5   :  { %v1541_v26 = vpop.f32.mrb[88].mxu0  ;;  %v1254_v28 = vpop.f32.mrb[89].mxu1 }
 0x1c6   :  { %v3880_v39 = vadd.f32 %v1541_v26, %v1252_v25  ;;  %v1543_v42 = vpop.f32.mrb[89].mxu0  ;;  %v1255_v54 = vpop.f32.mrb[90].mxu1  ;;  %v1662_v16 = vadd.f32 %v1661_v15, %v3872_v6 }
 0x1c7   :  { %v1544_v56 = vpop.f32.mrb[90].mxu0  ;;  %v1257_v45 = vpop.f32.mrb[91].mxu1  ;;  %v1793_v42 = vadd.f32 %v1792_v3, %v1730_v7 }
 0x1c8   :  { %4714 = vst [vmem:[#allocation5_spill] sm:$0xff] %v3880_v39  ;;  %v3883_v60 = vadd.f32 %v1544_v56, %v1255_v54  ;;  %v1546_v62 = vpop.f32.mrb[91].mxu0  ;;  %v1733_v3 = vmul.f32 %v3880_v39, %v3880_v39  ;;  %v1663_v8 = vadd.f32 %v1662_v16, %v3880_v39 }
 0x1c9   :  { %v1794_v45 = vadd.f32 %v1793_v42, %v1731_v14 }
 0x1ca   :  { %4715 = vst [vmem:[#allocation6_spill] sm:$0xff] %v3883_v60  ;;  %v1734_v14 = vmul.f32 %v3883_v60, %v3883_v60  ;;  %v1664_v15 = vadd.f32 %v1663_v8, %v3883_v60 }
 0x1cb   :  { %v1795_v7 = vadd.f32 %v1794_v45, %v1732_v51 }
 0x1cc   :  { %v1260_v25 = vpop.f32.mrb[92].mxu1 }
 0x1cd   :  { %v1549_v26 = vpop.f32.mrb[92].mxu0  ;;  %v1262_v28 = vpop.f32.mrb[93].mxu1 }
 0x1ce   :  { %v3891_v22 = vadd.f32 %v1549_v26, %v1260_v25  ;;  %v1551_v36 = vpop.f32.mrb[93].mxu0  ;;  %v1263_v54 = vpop.f32.mrb[94].mxu1 }
 0x1cf   :  { %v1552_v56 = vpop.f32.mrb[94].mxu0  ;;  %v1265_v30 = vpop.f32.mrb[95].mxu1  ;;  %v1796_v36 = vadd.f32 %v1795_v7, %v1733_v3 }
 0x1d0   :  { %4716 = vst [vmem:[#allocation7_spill] sm:$0xff] %v3891_v22  ;;  %v3895_v57 = vadd.f32 %v1552_v56, %v1263_v54  ;;  %v1554_v62 = vpop.f32.mrb[95].mxu0  ;;  %v1735_v45 = vmul.f32 %v3891_v22, %v3891_v22  ;;  %v1665_v3 = vadd.f32 %v1664_v15, %v3891_v22 }
 0x1d1   :  { %v1797_v39 = vadd.f32 %v1796_v36, %v1734_v14 }
 0x1d2   :  { %4717 = vst [vmem:[#allocation8_spill] sm:$0xff] %v3895_v57 }
 0x1d3   :  { %v1798_v7 = vadd.f32 %v1797_v39, %v1735_v45 }
 0x1d4   :  { %v1268_v25 = vpop.f32.mrb[96].mxu1 }
 0x1d5   :  { %v1557_v26 = vpop.f32.mrb[96].mxu0  ;;  %v1270_v28 = vpop.f32.mrb[97].mxu1 }
 0x1d6   :  { %v3903_v42 = vadd.f32 %v1557_v26, %v1268_v25  ;;  %v1559_v54 = vpop.f32.mrb[97].mxu0  ;;  %v1271_v56 = vpop.f32.mrb[98].mxu1  ;;  %v1736_v25 = vmul.f32 %v3895_v57, %v3895_v57 }
 0x1d7   :  { %v1560_v30 = vpop.f32.mrb[98].mxu0  ;;  %v1273_v62 = vpop.f32.mrb[99].mxu1 }
 0x1d8   :  { %4718 = vst [vmem:[#allocation9_spill] sm:$0xff] %v3903_v42  ;;  %v3908_v51 = vadd.f32 %v1560_v30, %v1271_v56  ;;  %v1562_v16 = vpop.f32.mrb[99].mxu0  ;;  %v1666_v62 = vadd.f32 %v1665_v3, %v3895_v57  ;;  %v1737_v8 = vmul.f32 %v3903_v42, %v3903_v42  ;;  %v1799_v14 = vadd.f32 %v1798_v7, %v1736_v25 }
 0x1da   :  { %4719 = vst [vmem:[#allocation10_spill] sm:$0xff] %v3908_v51  ;;  %v1667_v39 = vadd.f32 %v1666_v62, %v3903_v42  ;;  %v1800_v22 = vadd.f32 %v1799_v14, %v1737_v8 }
 0x1dc   :  { %v1276_v26 = vpop.f32.mrb[100].mxu1  ;;  %v1668_v3 = vadd.f32 %v1667_v39, %v3908_v51 }
 0x1dd   :  { %v1565_v28 = vpop.f32.mrb[100].mxu0  ;;  %v1278_v54 = vpop.f32.mrb[101].mxu1 }
 0x1de   :  { %v3916_v60 = vadd.f32 %v1565_v28, %v1276_v26  ;;  %v1567_v56 = vpop.f32.mrb[101].mxu0  ;;  %v1279_v30 = vpop.f32.mrb[102].mxu1  ;;  %v1738_v54 = vmul.f32 %v3908_v51, %v3908_v51 }
 0x1df   :  { %v1568_v16 = vpop.f32.mrb[102].mxu0  ;;  %v1281_v36 = vpop.f32.mrb[103].mxu1 }
 0x1e0   :  { %4720 = vst [vmem:[#allocation11_spill] sm:$0xff] %v3916_v60  ;;  %v3919_v15 = vadd.f32 %v1568_v16, %v1279_v30  ;;  %v1570_v45 = vpop.f32.mrb[103].mxu0  ;;  %v1739_v26 = vmul.f32 %v3916_v60, %v3916_v60  ;;  %v1801_v6 = vadd.f32 %v1800_v22, %v1738_v54  ;;  %v1669_v7 = vadd.f32 %v1668_v3, %v3916_v60 }
 0x1e2   :  { %4721 = vst [vmem:[#allocation12_spill] sm:$0xff] %v3919_v15  ;;  %v1802_v36 = vadd.f32 %v1801_v6, %v1739_v26  ;;  %v1740_v14 = vmul.f32 %v3919_v15, %v3919_v15  ;;  %v1670_v51 = vadd.f32 %v1669_v7, %v3919_v15 }
 0x1e4   :  { %v1284_v28 = vpop.f32.mrb[104].mxu1 }
 0x1e5   :  { %v1573_v56 = vpop.f32.mrb[104].mxu0  ;;  %v1286_v57 = vpop.f32.mrb[105].mxu1 }
 0x1e6   :  { %v3927_v25 = vadd.f32 %v1573_v56, %v1284_v28  ;;  %v1575_v62 = vpop.f32.mrb[105].mxu0  ;;  %v1287_v30 = vpop.f32.mrb[106].mxu1  ;;  %v1803_v57 = vadd.f32 %v1802_v36, %v1740_v14 }
 0x1e7   :  { %v1576_v16 = vpop.f32.mrb[106].mxu0  ;;  %v1289_v8 = vpop.f32.mrb[107].mxu1 }
 0x1e8   :  { %4722 = vst [vmem:[#allocation13_spill] sm:$0xff] %v3927_v25  ;;  %v3931_v39 = vadd.f32 %v1576_v16, %v1287_v30  ;;  %v1578_v45 = vpop.f32.mrb[107].mxu0  ;;  %v1741_v22 = vmul.f32 %v3927_v25, %v3927_v25  ;;  %v1671_v54 = vadd.f32 %v1670_v51, %v3927_v25 }
 0x1ea   :  { %4723 = vst [vmem:[#allocation14_spill] sm:$0xff] %v3931_v39  ;;  %v1804_v62 = vadd.f32 %v1803_v57, %v1741_v22  ;;  %v1742_v6 = vmul.f32 %v3931_v39, %v3931_v39  ;;  %v1672_v7 = vadd.f32 %v1671_v54, %v3931_v39 }
 0x1ec   :  { %v1292_v3 = vpop.f32.mrb[108].mxu1  ;;  %v1805_v25 = vadd.f32 %v1804_v62, %v1742_v6 }
 0x1ed   :  { %v1581_v28 = vpop.f32.mrb[108].mxu0  ;;  %v1294_v56 = vpop.f32.mrb[109].mxu1 }
 0x1ee   :  { %v3939_v26 = vadd.f32 %v1581_v28, %v1292_v3  ;;  %v1583_v30 = vpop.f32.mrb[109].mxu0  ;;  %v1295_v16 = vpop.f32.mrb[110].mxu1 }
 0x1ef   :  { %v1584_v8 = vpop.f32.mrb[110].mxu0  ;;  %v1297_v45 = vpop.f32.mrb[111].mxu1 }
 0x1f0   :  { %4724 = vst [vmem:[#allocation15_spill] sm:$0xff] %v3939_v26  ;;  %v1743_v36 = vmul.f32 %v3939_v26, %v3939_v26  ;;  %v3944_v14 = vadd.f32 %v1584_v8, %v1295_v16  ;;  %v1586_v51 = vpop.f32.mrb[111].mxu0  ;;  %v1673_v22 = vadd.f32 %v1672_v7, %v3939_v26 }
 0x1f2   :  { %4725 = vst [vmem:[#allocation16_spill] sm:$0xff] %v3944_v14  ;;  %v1806_v57 = vadd.f32 %v1805_v25, %v1743_v36  ;;  %v1744_v3 = vmul.f32 %v3944_v14, %v3944_v14  ;;  %v1674_v45 = vadd.f32 %v1673_v22, %v3944_v14 }
 0x1f4   :  { %v1300_v28 = vpop.f32.mrb[112].mxu1  ;;  %v1807_v8 = vadd.f32 %v1806_v57, %v1744_v3 }
 0x1f5   :  { %v1589_v56 = vpop.f32.mrb[112].mxu0  ;;  %v1302_v30 = vpop.f32.mrb[113].mxu1 }
 0x1f6   :  { %v3950_v15 = vadd.f32 %v1589_v56, %v1300_v28  ;;  %v1591_v54 = vpop.f32.mrb[113].mxu0  ;;  %v1303_v39 = vpop.f32.mrb[114].mxu1 }
 0x1f7   :  { %v1592_v60 = vpop.f32.mrb[114].mxu0  ;;  %v1305_v16 = vpop.f32.mrb[115].mxu1 }
 0x1f8   :  { %4726 = vst [vmem:[#allocation17_spill] sm:$0xff] %v3950_v15  ;;  %v1675_v62 = vadd.f32 %v1674_v45, %v3950_v15  ;;  %v1745_v25 = vmul.f32 %v3950_v15, %v3950_v15  ;;  %v3955_v6 = vadd.f32 %v1592_v60, %v1303_v39  ;;  %v1594_v7 = vpop.f32.mrb[115].mxu0 }
 0x1fa   :  { %4727 = vst [vmem:[#allocation18_spill] sm:$0xff] %v3955_v6  ;;  %v1808_v36 = vadd.f32 %v1807_v8, %v1745_v25  ;;  %v1676_v51 = vadd.f32 %v1675_v62, %v3955_v6  ;;  %v1746_v22 = vmul.f32 %v3955_v6, %v3955_v6 }
 0x1fc   :  { %v1809_v28 = vadd.f32 %v1808_v36, %v1746_v22  ;;  %v1308_v56 = vpop.f32.mrb[116].mxu1 }
 0x1fd   :  { %v1597_v30 = vpop.f32.mrb[116].mxu0  ;;  %v1310_v54 = vpop.f32.mrb[117].mxu1 }
 0x1fe   :  { %v3960_v16 = vadd.f32 %v1597_v30, %v1308_v56  ;;  %v1599_v57 = vpop.f32.mrb[117].mxu0  ;;  %v1311_v3 = vpop.f32.mrb[118].mxu1 }
 0x1ff   :  { %v1600_v45 = vpop.f32.mrb[118].mxu0  ;;  %v1313_v26 = vpop.f32.mrb[119].mxu1 }
 0x200   :  { %4728 = vst [vmem:[#allocation19_spill] sm:$0xff] %v3960_v16  ;;  %v1677_v60 = vadd.f32 %v1676_v51, %v3960_v16  ;;  %v1747_v39 = vmul.f32 %v3960_v16, %v3960_v16  ;;  %v3965_v8 = vadd.f32 %v1600_v45, %v1311_v3  ;;  %v1602_v62 = vpop.f32.mrb[119].mxu0 }
 0x202   :  { %4729 = vst [vmem:[#allocation20_spill] sm:$0xff] %v3965_v8  ;;  %v1810_v25 = vadd.f32 %v1809_v28, %v1747_v39  ;;  %v1678_v7 = vadd.f32 %v1677_v60, %v3965_v8  ;;  %v1748_v36 = vmul.f32 %v3965_v8, %v3965_v8 }
 0x204   :  { %v1811_v22 = vadd.f32 %v1810_v25, %v1748_v36  ;;  %v1316_v56 = vpop.f32.mrb[120].mxu1 }
 0x205   :  { %v1605_v30 = vpop.f32.mrb[120].mxu0  ;;  %v1318_v54 = vpop.f32.mrb[121].mxu1 }
 0x206   :  { %v3970_v57 = vadd.f32 %v1605_v30, %v1316_v56  ;;  %v1607_v26 = vpop.f32.mrb[121].mxu0  ;;  %v1319_v51 = vpop.f32.mrb[122].mxu1 }
 0x207   :  { %v1608_v6 = vpop.f32.mrb[122].mxu0  ;;  %v1321_v15 = vpop.f32.mrb[123].mxu1 }
 0x208   :  { %4730 = vst [vmem:[#allocation21_spill] sm:$0xff] %v3970_v57  ;;  %v1679_v3 = vadd.f32 %v1678_v7, %v3970_v57  ;;  %v1749_v28 = vmul.f32 %v3970_v57, %v3970_v57  ;;  %v3975_v45 = vadd.f32 %v1608_v6, %v1319_v51  ;;  %v1610_v60 = vpop.f32.mrb[123].mxu0 }
 0x20a   :  { %4731 = vst [vmem:[#allocation22_spill] sm:$0xff] %v3975_v45  ;;  %v1812_v39 = vadd.f32 %v1811_v22, %v1749_v28  ;;  %v1680_v62 = vadd.f32 %v1679_v3, %v3975_v45  ;;  %v1750_v25 = vmul.f32 %v3975_v45, %v3975_v45 }
 0x20c   :  { %v1813_v36 = vadd.f32 %v1812_v39, %v1750_v25  ;;  %v1324_v56 = vpop.f32.mrb[124].mxu1 }
 0x20d   :  { %v1613_v30 = vpop.f32.mrb[124].mxu0  ;;  %v1326_v54 = vpop.f32.mrb[125].mxu1 }
 0x20e   :  { %v3980_v26 = vadd.f32 %v1613_v30, %v1324_v56  ;;  %v1615_v15 = vpop.f32.mrb[125].mxu0  ;;  %v1327_v7 = vpop.f32.mrb[126].mxu1 }
 0x20f   :  { %v1616_v8 = vpop.f32.mrb[126].mxu0  ;;  %v1329_v16 = vpop.f32.mrb[127].mxu1 }
 0x210   :  { %4732 = vst [vmem:[#allocation23_spill] sm:$0xff] %v3980_v26  ;;  %v1681_v6 = vadd.f32 %v1680_v62, %v3980_v26  ;;  %v1751_v22 = vmul.f32 %v3980_v26, %v3980_v26  ;;  %v3985_v51 = vadd.f32 %v1616_v8, %v1327_v7  ;;  %v1618_v3 = vpop.f32.mrb[127].mxu0 }
 0x212   :  { %4733 = vst [vmem:[#allocation24_spill] sm:$0xff] %v3985_v51  ;;  %v1814_v28 = vadd.f32 %v1813_v36, %v1751_v22  ;;  %v1682_v60 = vadd.f32 %v1681_v6, %v3985_v51  ;;  %v1752_v39 = vmul.f32 %v3985_v51, %v3985_v51  ;;  %v1835_v51 = vlaneseq }
 0x214   :  { %v1683_v25 = vrot.slane %v1682_v60, 4  ;;  %v1815_v56 = vadd.f32 %v1814_v28, %v1752_v39  ;;  %v3990_v28 = vshrl.u32 %v1835_v51, 7 }
 0x216   :  { %v1684_v30 = vadd.f32 %v1683_v25, %v1682_v60  ;;  %v1816_v54 = vrot.slane %v1815_v56, 4  ;;  %v1827_v60 = vld [vmem:[%s4679_s2] sm:$0x1]  ;;  %v4705_v39 = vsub.s32 0, %v3990_v28 }
 0x218   :  { %v1685_v15 = vrot.slane %v1684_v30, 2  ;;  %v1817_v16 = vadd.f32 %v1816_v54, %v1815_v56 }
 0x21a   :  { %v1686_v45 = vadd.f32 %v1685_v15, %v1684_v30  ;;  %v1818_v62 = vrot.slane %v1817_v16, 2  ;;  %v4734_v15 = vld [vmem:[#allocation2_spill] sm:$0xff] }
 0x21c   :  { %v1687_v57 = vrot.slane %v1686_v45, 1  ;;  %v1819_v14 = vadd.f32 %v1818_v62, %v1817_v16  ;;  %v4735_v16 = vld [vmem:[#allocation3_spill] sm:$0xff]  ;;  %v4736_v62 = vld [vmem:[#allocation4_spill] sm:$0xff] }
 0x21e   :  { %v1688_v26 = vadd.f32 %v1687_v57, %v1686_v45  ;;  %v1820_v8 = vrot.slane %v1819_v14, 1 }
 0x220   :  { %v1821_v7 = vadd.f32 %v1820_v8, %v1819_v14  ;;  %v1822_v3 = vmul.f32 0.001953125, %v1688_v26  ;;  %v3999_v14 = vld [vmem:[%s4680_s3] sm:$0x1]  ;;  %v4737_v8 = vld [vmem:[#allocation5_spill] sm:$0xff] }
 0x222   :  { %v1823_v36 = vmul.f32 0.001953125, %v1821_v7  ;;  %v1824_v22 = vmul.f32 %v1822_v3, %v1822_v3  ;;  %v4738_v7 = vld [vmem:[#allocation6_spill] sm:$0xff] }
 0x224   :  { %v1825_v6 = vsub.f32 %v1823_v36, %v1824_v22  ;;  %v4740_v22 = vld [vmem:[#allocation8_spill] sm:$0xff] }
 0x226   :  { %v1826_v42 = vmax.f32 %v1825_v6, 0.0 }
 0x228   :  { %v1828_v53 = vadd.f32 1e-05, %v1826_v42 }
 0x22a   :  { %3130 = vrsqrt.f32 %v1828_v53 }
 0x234   :  { %v3131_v25 = vpop.eup %3130 }
 0x235   :  { %v1830_v57 = vmul.f32 %v3131_v25, %v1827_v60  ;;  %v4742_v60 = vld [vmem:[#allocation9_spill] sm:$0xff] }
 0x237   :  { %v4001_v45 = vmul.f32 %v1830_v57, %v1822_v3  ;;  %v4005_v53 = vrot.slane %v1830_v57, %v4705_v39  ;;  %v4739_v3 = vld [vmem:[#allocation7_spill] sm:$0xff]  ;;  %v4744_v57 = vld [vmem:[#allocation16_spill] sm:$0xff]  ;;  %v4756_v39 = vld [vmem:[#allocation22_spill] sm:$0xff] }
 0x239   :  { %v1833_v42 = vsub.f32 %v3999_v14, %v4001_v45  ;;  %v4011_v26 = vmul.f32 %v4005_v53, %v3619_v19  ;;  %v4015_v51 = vmul.f32 %v4005_v53, %v3630_v27  ;;  %v4019_v56 = vmul.f32 %v4005_v53, %v3635_v33  ;;  %v4746_v45 = vld [vmem:[#allocation17_spill] sm:$0xff] }
 0x23a   :  { %v4023_v30 = vmul.f32 %v4005_v53, %v3646_v41  ;;  %v4027_v54 = vmul.f32 %v4005_v53, %v3651_v47  ;;  %v4031_v19 = vmul.f32 %v4005_v53, %v3662_v55  ;;  %v4035_v27 = vmul.f32 %v4005_v53, %v3667_v61 }
 0x23b   :  { %v4039_v33 = vmul.f32 %v4005_v53, %v3678_v5  ;;  %v4043_v41 = vmul.f32 %v4005_v53, %v3683_v11  ;;  %v4047_v47 = vmul.f32 %v4005_v53, %v3688_v17  ;;  %v4051_v55 = vmul.f32 %v4005_v53, %v3690_v23 }
 0x23c   :  { %v4055_v61 = vmul.f32 %v4005_v53, %v3692_v29  ;;  %v4059_v5 = vmul.f32 %v4005_v53, %v3694_v35  ;;  %v4063_v11 = vmul.f32 %v4005_v53, %v3696_v40  ;;  %v4067_v17 = vmul.f32 %v4005_v53, %v3698_v46 }
 0x23d   :  { %v4071_v23 = vmul.f32 %v4005_v53, %v3700_v52  ;;  %v4075_v29 = vmul.f32 %v4005_v53, %v3711_v1  ;;  %v4079_v35 = vmul.f32 %v4005_v53, %v3715_v9  ;;  %v4083_v40 = vmul.f32 %v4005_v53, %v3723_v24 }
 0x23e   :  { %v4087_v46 = vmul.f32 %v4005_v53, %v3728_v34  ;;  %v4091_v52 = vmul.f32 %v4005_v53, %v3736_v50  ;;  %v4095_v1 = vmul.f32 %v4005_v53, %v3739_v59  ;;  %v4099_v9 = vmul.f32 %v4005_v53, %v3747_v10 }
 0x23f   :  { %v4103_v24 = vmul.f32 %v4005_v53, %v3751_v20  ;;  %v4107_v34 = vmul.f32 %v4005_v53, %v3759_v38  ;;  %v4111_v50 = vmul.f32 %v4005_v53, %v3764_v49  ;;  %v4115_v59 = vmul.f32 %v4005_v53, %v3772_v2 }
 0x240   :  { %v4119_v10 = vmul.f32 %v4005_v53, %v3775_v13  ;;  %v4123_v20 = vmul.f32 %v4005_v53, %v3783_v31  ;;  %v4127_v38 = vmul.f32 %v4005_v53, %v3787_v44  ;;  %v4131_v49 = vmul.f32 %v4005_v53, %v3795_v63 }
 0x241   :  { %v4135_v2 = vmul.f32 %v4005_v53, %v3800_v12  ;;  %v4139_v13 = vmul.f32 %v4005_v53, %v3808_v32  ;;  %v4143_v31 = vmul.f32 %v4005_v53, %v3811_v48  ;;  %v4147_v44 = vmul.f32 %v4005_v53, %v3819_v4 }
 0x242   :  { %v4151_v63 = vmul.f32 %v4005_v53, %v3823_v18  ;;  %v4155_v12 = vmul.f32 %v4005_v53, %v3831_v43  ;;  %v4159_v32 = vmul.f32 %v4005_v53, %v3836_v58  ;;  %v4163_v48 = vmul.f32 %v4005_v53, %v3844_v21 }
 0x243   :  { %v4167_v4 = vmul.f32 %v4005_v53, %v3847_v37  ;;  %v4171_v18 = vmul.f32 %v4005_v53, %v3855_v0  ;;  %v4175_v43 = vmul.f32 %v4005_v53, %v4734_v15  ;;  %v4179_v58 = vmul.f32 %v4005_v53, %v4735_v16  ;;  %v4748_v16 = vld [vmem:[#allocation18_spill] sm:$0xff] }
 0x244   :  { %v4183_v21 = vmul.f32 %v4005_v53, %v4736_v62  ;;  %v4187_v37 = vmul.f32 %v4005_v53, %v4737_v8  ;;  %v4191_v0 = vmul.f32 %v4005_v53, %v4738_v7  ;;  %v4195_v36 = vmul.f32 %v4005_v53, %v4739_v3  ;;  %v4750_v8 = vld [vmem:[#allocation19_spill] sm:$0xff]  ;;  %v4752_v3 = vld [vmem:[#allocation20_spill] sm:$0xff] }
 0x245   :  { %v4199_v6 = vmul.f32 %v4005_v53, %v4740_v22  ;;  %v4203_v25 = vmul.f32 %v4005_v53, %v4742_v60  ;;  %v4207_v14 = vmul.f32 %v4005_v53, %v4744_v57  ;;  %v4211_v15 = vmul.f32 %v4005_v53, %v4746_v45  ;;  %v4754_v60 = vld [vmem:[#allocation21_spill] sm:$0xff] }
 0x246   :  { %v4215_v62 = vmul.f32 %v4005_v53, %v4748_v16  ;;  %v4219_v7 = vmul.f32 %v4005_v53, %v4750_v8  ;;  %v4223_v22 = vmul.f32 %v4005_v53, %v4752_v3  ;;  %v4227_v57 = vmul.f32 %v4005_v53, %v4754_v60  ;;  %v4762_v3 = vld [vmem:[#allocation24_spill] sm:$0xff] }
 0x247   :  { %4741 = vst [vmem:[#allocation2_spill] sm:$0xff] %v4199_v6  ;;  %4743 = vst [vmem:[#allocation3_spill] sm:$0xff] %v4203_v25  ;;  %v4231_v45 = vmul.f32 %v4005_v53, %v4756_v39  ;;  %v4763_v60 = vsub.s32 0, %v3990_v28  ;;  %v4764_v39 = vld [vmem:[#allocation12_spill] sm:$0xff]  ;;  %v4765_v25 = vld [vmem:[#allocation13_spill] sm:$0xff] }
 0x248   :  { %4745 = vst [vmem:[#allocation4_spill] sm:$0xff] %v4207_v14  ;;  %4747 = vst [vmem:[#allocation5_spill] sm:$0xff] %v4211_v15  ;;  %v4758_v15 = vld [vmem:[#allocation23_spill] sm:$0xff] }
 0x249   :  { %4749 = vst [vmem:[#allocation6_spill] sm:$0xff] %v4215_v62  ;;  %4751 = vst [vmem:[#allocation7_spill] sm:$0xff] %v4219_v7  ;;  %v4235_v16 = vmul.f32 %v4005_v53, %v4758_v15  ;;  %v4760_v62 = vld [vmem:[#allocation10_spill] sm:$0xff]  ;;  %v4761_v7 = vld [vmem:[#allocation11_spill] sm:$0xff]  ;;  %v1892_v15 = vmul.f32 %v4005_v53, %v4765_v25 }
 0x24a   :  { %4753 = vst [vmem:[#allocation8_spill] sm:$0xff] %v4223_v22  ;;  %4755 = vst [vmem:[#allocation9_spill] sm:$0xff] %v4227_v57  ;;  %v1889_v8 = vmul.f32 %v4005_v53, %v4760_v62  ;;  %v1890_v14 = vmul.f32 %v4005_v53, %v4761_v7  ;;  %v4243_v22 = vmul.f32 %v4005_v53, %v4762_v3  ;;  %v4767_v6 = vld [vmem:[#allocation15_spill] sm:$0xff] }
 0x24b   :  { %4757 = vst [vmem:[#allocation16_spill] sm:$0xff] %v4231_v45  ;;  %4759 = vst [vmem:[#allocation17_spill] sm:$0xff] %v4235_v16  ;;  %v4247_v57 = vrot.slane %v1833_v42, %v4763_v60  ;;  %v1891_v45 = vmul.f32 %v4005_v53, %v4764_v39  ;;  %v4766_v16 = vld [vmem:[#allocation14_spill] sm:$0xff]  ;;  %v1894_v7 = vmul.f32 %v4005_v53, %v4767_v6 }
 0x24c   :  { %v1893_v62 = vmul.f32 %v4005_v53, %v4766_v16 }
 0x24d   :  { %v4259_v3 = vadd.f32 %v4247_v57, %v4011_v26  ;;  %v4263_v28 = vadd.f32 %v4247_v57, %v4015_v51  ;;  %v4267_v42 = vadd.f32 %v4247_v57, %v4019_v56  ;;  %v4271_v25 = vadd.f32 %v4247_v57, %v4023_v30 }
 0x24e   :  { %v4275_v16 = vadd.f32 %v4247_v57, %v4027_v54  ;;  %v4279_v53 = vadd.f32 %v4247_v57, %v4031_v19  ;;  %v4283_v26 = vadd.f32 %v4247_v57, %v4035_v27  ;;  %v4287_v51 = vadd.f32 %v4247_v57, %v4039_v33  ;;  %v4774_v6 = vld [vmem:[#allocation3_spill] sm:$0xff] }
 0x24f   :  { %4768 = vst [vmem:[#allocation18_spill] sm:$0xff] %v4259_v3  ;;  %4769 = vst [vmem:[#allocation19_spill] sm:$0xff] %v4263_v28  ;;  %v4291_v56 = vadd.f32 %v4247_v57, %v4043_v41  ;;  %v4295_v30 = vadd.f32 %v4247_v57, %v4047_v47  ;;  %v4299_v54 = vadd.f32 %v4247_v57, %v4051_v55 }
 0x250   :  { %4770 = vst [vmem:[#allocation20_spill] sm:$0xff] %v4267_v42  ;;  %4771 = vst [vmem:[#allocation21_spill] sm:$0xff] %v4271_v25  ;;  %v4303_v19 = vadd.f32 %v4247_v57, %v4055_v61  ;;  %v4307_v27 = vadd.f32 %v4247_v57, %v4059_v5  ;;  %v4311_v33 = vadd.f32 %v4247_v57, %v4063_v11 }
 0x251   :  { %4772 = vst [vmem:[#allocation22_spill] sm:$0xff] %v4275_v16  ;;  %v4315_v41 = vadd.f32 %v4247_v57, %v4067_v17  ;;  %v4319_v47 = vadd.f32 %v4247_v57, %v4071_v23  ;;  %v4323_v55 = vadd.f32 %v4247_v57, %v4075_v29  ;;  %v4327_v61 = vadd.f32 %v4247_v57, %v4079_v35 }
 0x252   :  { %v4331_v5 = vadd.f32 %v4247_v57, %v4083_v40  ;;  %v4335_v11 = vadd.f32 %v4247_v57, %v4087_v46  ;;  %v4339_v17 = vadd.f32 %v4247_v57, %v4091_v52  ;;  %v4343_v23 = vadd.f32 %v4247_v57, %v4095_v1 }
 0x253   :  { %v4347_v29 = vadd.f32 %v4247_v57, %v4099_v9  ;;  %v4351_v35 = vadd.f32 %v4247_v57, %v4103_v24  ;;  %v4355_v40 = vadd.f32 %v4247_v57, %v4107_v34  ;;  %v4359_v46 = vadd.f32 %v4247_v57, %v4111_v50 }
 0x254   :  { %v4363_v52 = vadd.f32 %v4247_v57, %v4115_v59  ;;  %v4367_v1 = vadd.f32 %v4247_v57, %v4119_v10  ;;  %v4371_v9 = vadd.f32 %v4247_v57, %v4123_v20  ;;  %v4375_v24 = vadd.f32 %v4247_v57, %v4127_v38 }
 0x255   :  { %v4379_v34 = vadd.f32 %v4247_v57, %v4131_v49  ;;  %v4383_v50 = vadd.f32 %v4247_v57, %v4135_v2  ;;  %v4387_v59 = vadd.f32 %v4247_v57, %v4139_v13  ;;  %v4391_v10 = vadd.f32 %v4247_v57, %v4143_v31 }
 0x256   :  { %v4395_v20 = vadd.f32 %v4247_v57, %v4147_v44  ;;  %v4399_v38 = vadd.f32 %v4247_v57, %v4151_v63  ;;  %v4403_v49 = vadd.f32 %v4247_v57, %v4155_v12  ;;  %v4407_v2 = vadd.f32 %v4247_v57, %v4159_v32 }
 0x257   :  { %v4411_v13 = vadd.f32 %v4247_v57, %v4163_v48  ;;  %v4415_v31 = vadd.f32 %v4247_v57, %v4167_v4  ;;  %v4419_v44 = vadd.f32 %v4247_v57, %v4171_v18  ;;  %v4423_v63 = vadd.f32 %v4247_v57, %v4175_v43  ;;  %v4773_v43 = vld [vmem:[#allocation2_spill] sm:$0xff] }
 0x258   :  { %v4427_v12 = vadd.f32 %v4247_v57, %v4179_v58  ;;  %v4431_v32 = vadd.f32 %v4247_v57, %v4183_v21  ;;  %v4435_v48 = vadd.f32 %v4247_v57, %v4187_v37  ;;  %v4439_v4 = vadd.f32 %v4247_v57, %v4191_v0 }
 0x259   :  { %v4443_v18 = vadd.f32 %v4247_v57, %v4195_v36  ;;  %v4447_v58 = vadd.f32 %v4247_v57, %v4773_v43  ;;  %v4451_v21 = vadd.f32 %v4247_v57, %v4774_v6  ;;  %v4454_v60 = vadd.f32 %v4247_v57, %v1889_v8  ;;  %v4779_v6 = vld [vmem:[#allocation4_spill] sm:$0xff]  ;;  %v4781_v8 = vld [vmem:[#allocation5_spill] sm:$0xff] }
 0x25a   :  { %v4457_v37 = vadd.f32 %v4247_v57, %v1890_v14  ;;  %v4460_v0 = vadd.f32 %v4247_v57, %v1891_v45  ;;  %v4463_v36 = vadd.f32 %v4247_v57, %v1892_v15  ;;  %v4466_v39 = vadd.f32 %v4247_v57, %v1893_v62  ;;  %v4784_v15 = vld [vmem:[#allocation7_spill] sm:$0xff]  ;;  %v4786_v62 = vld [vmem:[#allocation8_spill] sm:$0xff] }
 0x25b   :  { %4775 = vst [vmem:[#allocation23_spill] sm:$0xff] %v4451_v21  ;;  %v4469_v43 = vadd.f32 %v4247_v57, %v1894_v7  ;;  %v4473_v21 = vadd.f32 %v4247_v57, %v4779_v6  ;;  %v4477_v14 = vadd.f32 %v4247_v57, %v4781_v8  ;;  %v4489_v7 = vadd.f32 %v4247_v57, %v4786_v62 }
 0x25c   :  { %4776 = vst [vmem:[#allocation10_spill] sm:$0xff] %v4457_v37  ;;  %4777 = vst [vmem:[#allocation11_spill] sm:$0xff] %v4463_v36  ;;  %v4783_v37 = vld [vmem:[#allocation6_spill] sm:$0xff]  ;;  %v4485_v36 = vadd.f32 %v4247_v57, %v4784_v15  ;;  %v4505_v15 = vadd.f32 %v4247_v57, %v4243_v22  ;;  %v1983_v22 = vmax.f32 %v4295_v30, 0.0  ;;  %v1985_v62 = vmax.f32 %v4303_v19, 0.0 }
 0x25d   :  { %4778 = vst [vmem:[#allocation24_spill] sm:$0xff] %v4469_v43  ;;  %4780 = vst [vmem:[#allocation12_spill] sm:$0xff] %v4473_v21  ;;  %v4481_v45 = vadd.f32 %v4247_v57, %v4783_v37  ;;  %v4788_v43 = vld [vmem:[#allocation9_spill] sm:$0xff]  ;;  %v4790_v21 = vld [vmem:[#allocation16_spill] sm:$0xff]  ;;  %v1993_v30 = vmax.f32 %v4335_v11, 0.0  ;;  %v1995_v19 = vmax.f32 %v4343_v23, 0.0 }
 0x25e   :  { %4782 = vst [vmem:[#allocation13_spill] sm:$0xff] %v4477_v14  ;;  %4785 = vst [vmem:[#allocation14_spill] sm:$0xff] %v4485_v36  ;;  %v4493_v6 = vadd.f32 %v4247_v57, %v4788_v43  ;;  %v4497_v8 = vadd.f32 %v4247_v57, %v4790_v21  ;;  %v4792_v14 = vld [vmem:[#allocation17_spill] sm:$0xff]  ;;  %v1979_v21 = vmax.f32 %v4279_v53, 0.0  ;;  %v1987_v43 = vmax.f32 %v4311_v33, 0.0 }
 0x25f   :  { %4787 = vst [vmem:[#allocation15_spill] sm:$0xff] %v4489_v7  ;;  %v4501_v37 = vadd.f32 %v4247_v57, %v4792_v14  ;;  %4794 = vst [vmem:[#allocation5_spill] sm:$0xff] %v4505_v15  ;;  %v1981_v14 = vmax.f32 %v4287_v51, 0.0  ;;  %v1984_v57 = vmax.f32 %v4299_v54, 0.0  ;;  %v1986_v7 = vmax.f32 %v4307_v27, 0.0 }
 0x260   :  { %4789 = vst [vmem:[#allocation2_spill] sm:$0xff] %v4493_v6  ;;  %4791 = vst [vmem:[#allocation3_spill] sm:$0xff] %v4497_v8  ;;  %v1980_v8 = vmax.f32 %v4283_v26, 0.0  ;;  %v1988_v6 = vmax.f32 %v4315_v41, 0.0  ;;  %v1989_v53 = vmax.f32 %v4319_v47, 0.0  ;;  %v1990_v26 = vmax.f32 %v4323_v55, 0.0 }
 0x261   :  { %4793 = vst [vmem:[#allocation4_spill] sm:$0xff] %v4501_v37  ;;  %v1982_v37 = vmax.f32 %v4291_v56, 0.0  ;;  %v1991_v51 = vmax.f32 %v4327_v61, 0.0  ;;  %v1992_v56 = vmax.f32 %v4331_v5, 0.0  ;;  %v1994_v54 = vmax.f32 %v4339_v17, 0.0 }
 0x262   :  { %v1996_v27 = vmax.f32 %v4347_v29, 0.0  ;;  %v1997_v33 = vmax.f32 %v4351_v35, 0.0  ;;  %v1998_v41 = vmax.f32 %v4355_v40, 0.0  ;;  %v1999_v47 = vmax.f32 %v4359_v46, 0.0  ;;  %v4795_v36 = vld [vmem:[#allocation23_spill] sm:$0xff] }
 0x263   :  { %v2000_v55 = vmax.f32 %v4363_v52, 0.0  ;;  %v2001_v61 = vmax.f32 %v4367_v1, 0.0  ;;  %v2002_v5 = vmax.f32 %v4371_v9, 0.0  ;;  %v2003_v11 = vmax.f32 %v4375_v24, 0.0  ;;  %v4796_v16 = vld [vmem:[#allocation10_spill] sm:$0xff]  ;;  %v4797_v25 = vld [vmem:[#allocation11_spill] sm:$0xff] }
 0x264   :  { %v2004_v17 = vmax.f32 %v4379_v34, 0.0  ;;  %v2005_v23 = vmax.f32 %v4383_v50, 0.0  ;;  %v2006_v29 = vmax.f32 %v4387_v59, 0.0  ;;  %v2007_v35 = vmax.f32 %v4391_v10, 0.0  ;;  %v4798_v42 = vld [vmem:[#allocation24_spill] sm:$0xff] }
 0x265   :  { %v2008_v40 = vmax.f32 %v4395_v20, 0.0  ;;  %v2009_v46 = vmax.f32 %v4399_v38, 0.0  ;;  %v2010_v52 = vmax.f32 %v4403_v49, 0.0  ;;  %v2011_v1 = vmax.f32 %v4407_v2, 0.0  ;;  %v4799_v28 = vld [vmem:[#allocation12_spill] sm:$0xff]  ;;  %v4800_v3 = vld [vmem:[#allocation13_spill] sm:$0xff] }
 0x266   :  { %v2012_v9 = vmax.f32 %v4411_v13, 0.0  ;;  %v2013_v24 = vmax.f32 %v4415_v31, 0.0  ;;  %v2014_v34 = vmax.f32 %v4419_v44, 0.0  ;;  %v2015_v50 = vmax.f32 %v4423_v63, 0.0  ;;  %v4801_v15 = vld [vmem:[#allocation14_spill] sm:$0xff] }
 0x267   :  { %v2016_v59 = vmax.f32 %v4427_v12, 0.0  ;;  %v2017_v10 = vmax.f32 %v4431_v32, 0.0  ;;  %v2018_v20 = vmax.f32 %v4435_v48, 0.0  ;;  %v2019_v38 = vmax.f32 %v4439_v4, 0.0 }
 0x268   :  { %v2020_v49 = vmax.f32 %v4443_v18, 0.0  ;;  %v2021_v2 = vmax.f32 %v4447_v58, 0.0  ;;  %v2022_v13 = vmax.f32 %v4795_v36, 0.0  ;;  %v2023_v31 = vmax.f32 %v4454_v60, 0.0  ;;  %v4802_v60 = vld [vmem:[#allocation15_spill] sm:$0xff] }
 0x269   :  { %v2024_v44 = vmax.f32 %v4796_v16, 0.0  ;;  %v2025_v63 = vmax.f32 %v4460_v0, 0.0  ;;  %v2026_v12 = vmax.f32 %v4797_v25, 0.0  ;;  %v2027_v32 = vmax.f32 %v4466_v39, 0.0  ;;  %v4803_v0 = vld [vmem:[#allocation2_spill] sm:$0xff]  ;;  %v4804_v39 = vld [vmem:[#allocation3_spill] sm:$0xff] }
 0x26a   :  { %v2028_v48 = vmax.f32 %v4798_v42, 0.0  ;;  %v2029_v4 = vmax.f32 %v4799_v28, 0.0  ;;  %v2030_v18 = vmax.f32 %v4800_v3, 0.0  ;;  %v2031_v58 = vmax.f32 %v4481_v45, 0.0  ;;  %v4805_v28 = vld [vmem:[#allocation4_spill] sm:$0xff]  ;;  %v4806_v45 = vld [vmem:[#allocation5_spill] sm:$0xff] }
 0x26b   :  { %v2032_v36 = vmax.f32 %v4801_v15, 0.0  ;;  %v2033_v16 = vmax.f32 %v4802_v60, 0.0  ;;  %v2034_v25 = vmax.f32 %v4803_v0, 0.0  ;;  %v2035_v42 = vmax.f32 %v4804_v39, 0.0  ;;  %v4807_v60 = vld [vmem:[#allocation18_spill] sm:$0xff]  ;;  %v4809_v39 = vld [vmem:[#allocation19_spill] sm:$0xff] }
 0x26c   :  { %v2036_v3 = vmax.f32 %v4805_v28, 0.0  ;;  %v2037_v15 = vmax.f32 %v4806_v45, 0.0  ;;  %v4808_v0 = vmax.f32 %v4807_v60, 0.0  ;;  %v4810_v28 = vmax.f32 %v4809_v39, 0.0  ;;  %v4811_v60 = vld [vmem:[#allocation20_spill] sm:$0xff] }
 0x26d   :  { %v4812_v39 = vmax.f32 %v4811_v60, 0.0 }
 0x26e   :  { %v2653_v45 = vpack.c.bf16 %v4810_v28, %v4808_v0  ;;  %v4813_v0 = vld [vmem:[#allocation21_spill] sm:$0xff] }
 0x26f   :  { %v4814_v28 = vmax.f32 %v4813_v0, 0.0  ;;  %v4815_v0 = vld [vmem:[#allocation22_spill] sm:$0xff] }
 0x270   :  { %2654 = vst [vmem:[%s4681_s4] sm:$0xff] %v2653_v45  }
 0x271   :  { %v2658_v60 = vpack.c.bf16 %v4814_v28, %v4812_v39  ;;  %v4816_v28 = vmax.f32 %v4815_v0, 0.0  ;;  %v2668_v0 = vpack.c.bf16 %v1981_v14, %v1980_v8  ;;  %v2683_v8 = vpack.c.bf16 %v1987_v43, %v1986_v7 }
 0x272   :  { %v2688_v14 = vpack.c.bf16 %v1989_v53, %v1988_v6  ;;  %v2703_v7 = vpack.c.bf16 %v1995_v19, %v1994_v54  ;;  %v2708_v6 = vpack.c.bf16 %v1997_v33, %v1996_v27  ;;  %v2713_v43 = vpack.c.bf16 %v1999_v47, %v1998_v41 }
 0x273   :  { %v2663_v39 = vpack.c.bf16 %v1979_v21, %v4816_v28  ;;  %v2673_v21 = vpack.c.bf16 %v1983_v22, %v1982_v37  ;;  %v2678_v28 = vpack.c.bf16 %v1985_v62, %v1984_v57  ;;  %2810 = vst [vmem:[%s4681_s4 + $0x8] sm:$0xff] %v2658_v60   ;;  %2812 = vst [vmem:[%s4681_s4 + $0x18] sm:$0xff] %v2668_v0  }
 0x274   :  { %v2693_v37 = vpack.c.bf16 %v1991_v51, %v1990_v26  ;;  %v2698_v62 = vpack.c.bf16 %v1993_v30, %v1992_v56  ;;  %2815 = vst [vmem:[%s4681_s4 + $0x30] sm:$0xff] %v2683_v8   ;;  %2816 = vst [vmem:[%s4681_s4 + $0x38] sm:$0xff] %v2688_v14   ;;  %v2718_v22 = vpack.c.bf16 %v2001_v61, %v2000_v55 }
 0x275   :  { %2811 = vst [vmem:[%s4681_s4 + $0x10] sm:$0xff] %v2663_v39   ;;  %2813 = vst [vmem:[%s4681_s4 + $0x20] sm:$0xff] %v2673_v21   ;;  %v2723_v57 = vpack.c.bf16 %v2003_v11, %v2002_v5  ;;  %v2728_v53 = vpack.c.bf16 %v2005_v23, %v2004_v17  ;;  %v2733_v26 = vpack.c.bf16 %v2007_v35, %v2006_v29 }
 0x276   :  { %2814 = vst [vmem:[%s4681_s4 + $0x28] sm:$0xff] %v2678_v28   ;;  %2817 = vst [vmem:[%s4681_s4 + $0x40] sm:$0xff] %v2693_v37   ;;  %v2738_v51 = vpack.c.bf16 %v2009_v46, %v2008_v40  ;;  %v2743_v56 = vpack.c.bf16 %v2011_v1, %v2010_v52  ;;  %v2748_v30 = vpack.c.bf16 %v2013_v24, %v2012_v9 }
 0x277   :  { %2818 = vst [vmem:[%s4681_s4 + $0x48] sm:$0xff] %v2698_v62   ;;  %2819 = vst [vmem:[%s4681_s4 + $0x50] sm:$0xff] %v2703_v7   ;;  %v2753_v54 = vpack.c.bf16 %v2015_v50, %v2014_v34  ;;  %v2758_v19 = vpack.c.bf16 %v2017_v10, %v2016_v59  ;;  %v2763_v27 = vpack.c.bf16 %v2019_v38, %v2018_v20 }
 0x278   :  { %2820 = vst [vmem:[%s4681_s4 + $0x58] sm:$0xff] %v2708_v6   ;;  %2821 = vst [vmem:[%s4681_s4 + $0x60] sm:$0xff] %v2713_v43   ;;  %v2768_v33 = vpack.c.bf16 %v2021_v2, %v2020_v49  ;;  %v2773_v41 = vpack.c.bf16 %v2023_v31, %v2022_v13  ;;  %v2778_v47 = vpack.c.bf16 %v2025_v63, %v2024_v44 }
 0x279   :  { %2822 = vst [vmem:[%s4681_s4 + $0x68] sm:$0xff] %v2718_v22   ;;  %2823 = vst [vmem:[%s4681_s4 + $0x70] sm:$0xff] %v2723_v57   ;;  %v2783_v55 = vpack.c.bf16 %v2027_v32, %v2026_v12  ;;  %v2788_v61 = vpack.c.bf16 %v2029_v4, %v2028_v48  ;;  %v2793_v5 = vpack.c.bf16 %v2031_v58, %v2030_v18 }
 0x27a   :  { %2824 = vst [vmem:[%s4681_s4 + $0x78] sm:$0xff] %v2728_v53   ;;  %2825 = vst [vmem:[%s4681_s4 + $0x80] sm:$0xff] %v2733_v26   ;;  %v2798_v11 = vpack.c.bf16 %v2033_v16, %v2032_v36  ;;  %v2803_v17 = vpack.c.bf16 %v2035_v42, %v2034_v25  ;;  %v2808_v23 = vpack.c.bf16 %v2037_v15, %v2036_v3 }
 0x27b   :  { %2826 = vst [vmem:[%s4681_s4 + $0x88] sm:$0xff] %v2738_v51   ;;  %2827 = vst [vmem:[%s4681_s4 + $0x90] sm:$0xff] %v2743_v56  }
 0x27c   :  { %2828 = vst [vmem:[%s4681_s4 + $0x98] sm:$0xff] %v2748_v30   ;;  %2829 = vst [vmem:[%s4681_s4 + $0xa0] sm:$0xff] %v2753_v54  }
 0x27d   :  { %2830 = vst [vmem:[%s4681_s4 + $0xa8] sm:$0xff] %v2758_v19   ;;  %2831 = vst [vmem:[%s4681_s4 + $0xb0] sm:$0xff] %v2763_v27  }
 0x27e   :  { %2832 = vst [vmem:[%s4681_s4 + $0xb8] sm:$0xff] %v2768_v33   ;;  %2833 = vst [vmem:[%s4681_s4 + $0xc0] sm:$0xff] %v2773_v41  }
 0x27f   :  { %2834 = vst [vmem:[%s4681_s4 + $0xc8] sm:$0xff] %v2778_v47   ;;  %2835 = vst [vmem:[%s4681_s4 + $0xd0] sm:$0xff] %v2783_v55  }
 0x280   :  { %2836 = vst [vmem:[%s4681_s4 + $0xd8] sm:$0xff] %v2788_v61   ;;  %2837 = vst [vmem:[%s4681_s4 + $0xe0] sm:$0xff] %v2793_v5  }
 0x281   :  { %2838 = vst [vmem:[%s4681_s4 + $0xe8] sm:$0xff] %v2798_v11   ;;  %2839 = vst [vmem:[%s4681_s4 + $0xf0] sm:$0xff] %v2803_v17  }
 0x282   :  { %2840 = vst [vmem:[%s4681_s4 + $0xf8] sm:$0xff] %v2808_v23  }

// kernel: generator_forward.8
= control target key start
LH: loop header
LB: loop body
LE: loop exit
PB: predicated region body
PF: predicated region fallthrough
CT: control target
= control target key end

     0   :  { %v7579_v0 = vmov 0   ;;  %s12959_s1 = inlined_call_operand.vmem [shape: bf16[256,128], index: 1, kind: input, shape index: {}]   ;;  %s12960_s0 = inlined_call_operand.vmem [shape: bf16[2048,256], index: 0, kind: input, shape index: {}]   ;;  %s12961_s2 = inlined_call_operand.vmem [shape: f32[1,128], index: 2, kind: input, shape index: {}]   ;;  %s12962_s3 = inlined_call_operand.vmem [shape: f32[1,128], index: 3, kind: input, shape index: {}]   ;;  %s12963_s4 = inlined_call_operand.vmem [shape: bf16[2048,128], index: 4, kind: output, shape index: {}]  }
   0x1   :  { %1682 = vmatprep.subr.bf16.mxu0 %v7579_v0  ;;  %v7177_v1 = vld [vmem:[%s12959_s1] sm:$0xff]   ;;  %7144 = vmatprep.subr.bf16.mxu1 %v7579_v0  ;;  %v7178_v2 = vld [vmem:[%s12959_s1 + $0x8] sm:$0xff]   ;;  %v7179_v3 = vld [vmem:[%s12959_s1 + $0x10] sm:$0xff]  }
   0x2   :  { %1683 = vmatpush1.bf16.msra.mxu0 %v7177_v1  ;;  %7160 = vmatpush1.bf16.msra.mxu1 %v7177_v1  ;;  %v7180_v4 = vld [vmem:[%s12959_s1 + $0x18] sm:$0xff]   ;;  %v7181_v5 = vld [vmem:[%s12959_s1 + $0x20] sm:$0xff]   ;;  %v7182_v7 = vld [vmem:[%s12959_s1 + $0x28] sm:$0xff]  }
   0x3   :  { %1684 = vmatprep.subr.bf16.mxu0 %v7579_v0  ;;  %7145 = vmatprep.subr.bf16.mxu1 %v7579_v0  ;;  %v7195_v6 = vld [vmem:[%s12960_s0 + $0x4] ss:$8 sps:$4 sm:$0xff]   ;;  %v7183_v8 = vld [vmem:[%s12959_s1 + $0x30] sm:$0xff]   ;;  %v7184_v9 = vld [vmem:[%s12959_s1 + $0x38] sm:$0xff]  }
   0x4   :  { %1714 = vmatprep.mubr.bf16.mxu0 %v7195_v6  ;;  %v7185_v10 = vld [vmem:[%s12959_s1 + $0x40] sm:$0xff]   ;;  %v7186_v11 = vld [vmem:[%s12959_s1 + $0x48] sm:$0xff]   ;;  %v7187_v12 = vld [vmem:[%s12959_s1 + $0x50] sm:$0xff]  }
   0x5   :  { %v7188_v13 = vld [vmem:[%s12959_s1 + $0x58] sm:$0xff]   ;;  %v7189_v14 = vld [vmem:[%s12959_s1 + $0x60] sm:$0xff]   ;;  %v7190_v15 = vld [vmem:[%s12959_s1 + $0x68] sm:$0xff]  }
   0x6   :  { %1685 = vmatpush1.bf16.msra.mxu0 %v7178_v2  ;;  %7161 = vmatpush1.bf16.msra.mxu1 %v7178_v2  ;;  %v7191_v16 = vld [vmem:[%s12959_s1 + $0x70] sm:$0xff]   ;;  %v7192_v17 = vld [vmem:[%s12959_s1 + $0x78] sm:$0xff]   ;;  %v7193_v18 = vld [vmem:[%s12960_s0] ss:$8 sps:$4 sm:$0xff]  }
   0x7   :  { %1686 = vmatprep.subr.bf16.mxu0 %v7579_v0  ;;  %7146 = vmatprep.subr.bf16.mxu1 %v7579_v0  ;;  %v7196_v19 = vld [vmem:[%s12960_s0 + $0x14] ss:$8 sps:$4 sm:$0xff]   ;;  %v7198_v20 = vld [vmem:[%s12960_s0 + $0x10] ss:$8 sps:$4 sm:$0xff]   ;;  %v7199_v21 = vld [vmem:[%s12960_s0 + $0x24] ss:$8 sps:$4 sm:$0xff]  }
   0x8   :  { %v7201_v22 = vld [vmem:[%s12960_s0 + $0x20] ss:$8 sps:$4 sm:$0xff]   ;;  %v7202_v23 = vld [vmem:[%s12960_s0 + $0x34] ss:$8 sps:$4 sm:$0xff]   ;;  %v7204_v24 = vld [vmem:[%s12960_s0 + $0x30] ss:$8 sps:$4 sm:$0xff]  }
   0x9   :  { %v7205_v25 = vld [vmem:[%s12960_s0 + $0x44] ss:$8 sps:$4 sm:$0xff]   ;;  %v7207_v26 = vld [vmem:[%s12960_s0 + $0x40] ss:$8 sps:$4 sm:$0xff]   ;;  %v7208_v27 = vld [vmem:[%s12960_s0 + $0x54] ss:$8 sps:$4 sm:$0xff]  }
   0xa   :  { %1687 = vmatpush1.bf16.msra.mxu0 %v7179_v3  ;;  %7162 = vmatpush1.bf16.msra.mxu1 %v7179_v3  ;;  %v7210_v28 = vld [vmem:[%s12960_s0 + $0x50] ss:$8 sps:$4 sm:$0xff]   ;;  %v7211_v29 = vld [vmem:[%s12960_s0 + $0x64] ss:$8 sps:$4 sm:$0xff]   ;;  %v7213_v30 = vld [vmem:[%s12960_s0 + $0x60] ss:$8 sps:$4 sm:$0xff]  }
   0xb   :  { %1688 = vmatprep.subr.bf16.mxu0 %v7579_v0  ;;  %7147 = vmatprep.subr.bf16.mxu1 %v7579_v0  ;;  %v7214_v31 = vld [vmem:[%s12960_s0 + $0x74] ss:$8 sps:$4 sm:$0xff]   ;;  %v7216_v32 = vld [vmem:[%s12960_s0 + $0x70] ss:$8 sps:$4 sm:$0xff]   ;;  %v7217_v33 = vld [vmem:[%s12960_s0 + $0x84] ss:$8 sps:$4 sm:$0xff]  }
   0xc   :  { %v7219_v34 = vld [vmem:[%s12960_s0 + $0x80] ss:$8 sps:$4 sm:$0xff]   ;;  %v7220_v35 = vld [vmem:[%s12960_s0 + $0x94] ss:$8 sps:$4 sm:$0xff]   ;;  %v7222_v36 = vld [vmem:[%s12960_s0 + $0x90] ss:$8 sps:$4 sm:$0xff]  }
   0xd   :  { %v7223_v37 = vld [vmem:[%s12960_s0 + $0xa4] ss:$8 sps:$4 sm:$0xff]   ;;  %v7225_v38 = vld [vmem:[%s12960_s0 + $0xa0] ss:$8 sps:$4 sm:$0xff]   ;;  %v7226_v39 = vld [vmem:[%s12960_s0 + $0xb4] ss:$8 sps:$4 sm:$0xff]  }
   0xe   :  { %1689 = vmatpush1.bf16.msra.mxu0 %v7180_v4  ;;  %7163 = vmatpush1.bf16.msra.mxu1 %v7180_v4  ;;  %v7228_v40 = vld [vmem:[%s12960_s0 + $0xb0] ss:$8 sps:$4 sm:$0xff]   ;;  %v7229_v41 = vld [vmem:[%s12960_s0 + $0xc4] ss:$8 sps:$4 sm:$0xff]   ;;  %v7231_v42 = vld [vmem:[%s12960_s0 + $0xc0] ss:$8 sps:$4 sm:$0xff]  }
   0xf   :  { %1690 = vmatprep.subr.bf16.mxu0 %v7579_v0  ;;  %7148 = vmatprep.subr.bf16.mxu1 %v7579_v0  ;;  %v7232_v43 = vld [vmem:[%s12960_s0 + $0xd4] ss:$8 sps:$4 sm:$0xff]   ;;  %v7234_v44 = vld [vmem:[%s12960_s0 + $0xd0] ss:$8 sps:$4 sm:$0xff]   ;;  %v7235_v45 = vld [vmem:[%s12960_s0 + $0xe4] ss:$8 sps:$4 sm:$0xff]  }
  0x10   :  { %v7237_v46 = vld [vmem:[%s12960_s0 + $0xe0] ss:$8 sps:$4 sm:$0xff]   ;;  %v7238_v47 = vld [vmem:[%s12960_s0 + $0xf4] ss:$8 sps:$4 sm:$0xff]   ;;  %v7240_v48 = vld [vmem:[%s12960_s0 + $0xf0] ss:$8 sps:$4 sm:$0xff]  }
  0x11   :  { %v7241_v49 = vld [vmem:[%s12960_s0 + $0x104] ss:$8 sps:$4 sm:$0xff]   ;;  %v7289_v51 = vld [vmem:[%s12960_s0 + $0x400] ss:$8 sps:$4 sm:$0xff]   ;;  %v7244_v53 = vld [vmem:[%s12960_s0 + $0x114] ss:$8 sps:$4 sm:$0xff]  }
  0x12   :  { %1691 = vmatpush1.bf16.msra.mxu0 %v7181_v5  ;;  %7164 = vmatpush1.bf16.msra.mxu1 %v7181_v5  ;;  %v7291_v50 = vld [vmem:[%s12960_s0 + $0x404] ss:$8 sps:$4 sm:$0xff]   ;;  %v7243_v52 = vld [vmem:[%s12960_s0 + $0x100] ss:$8 sps:$4 sm:$0xff]   ;;  %v7295_v54 = vld [vmem:[%s12960_s0 + $0x414] ss:$8 sps:$4 sm:$0xff]  }
  0x13   :  { %1692 = vmatprep.subr.bf16.mxu0 %v7579_v0  ;;  %7149 = vmatprep.subr.bf16.mxu1 %v7579_v0  ;;  %v7297_v55 = vld [vmem:[%s12960_s0 + $0x410] ss:$8 sps:$4 sm:$0xff]   ;;  %v7247_v57 = vld [vmem:[%s12960_s0 + $0x124] ss:$8 sps:$4 sm:$0xff]   ;;  %v7303_v59 = vld [vmem:[%s12960_s0 + $0x420] ss:$8 sps:$4 sm:$0xff]  }
  0x14   :  { %2226 = vmatprep.mubr.bf16.mxu1 %v7291_v50  ;;  %v7246_v56 = vld [vmem:[%s12960_s0 + $0x110] ss:$8 sps:$4 sm:$0xff]   ;;  %v7301_v58 = vld [vmem:[%s12960_s0 + $0x424] ss:$8 sps:$4 sm:$0xff]   ;;  %v7249_v60 = vld [vmem:[%s12960_s0 + $0x120] ss:$8 sps:$4 sm:$0xff]  }
  0x15   :  { %v7250_v61 = vld [vmem:[%s12960_s0 + $0x134] ss:$8 sps:$4 sm:$0xff]   ;;  %v7309_v63 = vld [vmem:[%s12960_s0 + $0x430] ss:$8 sps:$4 sm:$0xff]   ;;  %v7253_v1 = vld [vmem:[%s12960_s0 + $0x144] ss:$8 sps:$4 sm:$0xff]  }
  0x16   :  { %1693 = vmatpush1.bf16.msra.mxu0 %v7182_v7  ;;  %7165 = vmatpush1.bf16.msra.mxu1 %v7182_v7  ;;  %v7307_v62 = vld [vmem:[%s12960_s0 + $0x434] ss:$8 sps:$4 sm:$0xff]   ;;  %v7313_v2 = vld [vmem:[%s12960_s0 + $0x444] ss:$8 sps:$4 sm:$0xff]   ;;  %v7315_v3 = vld [vmem:[%s12960_s0 + $0x440] ss:$8 sps:$4 sm:$0xff]  }
  0x17   :  { %1694 = vmatprep.subr.bf16.mxu0 %v7579_v0  ;;  %7150 = vmatprep.subr.bf16.mxu1 %v7579_v0  ;;  %v7255_v4 = vld [vmem:[%s12960_s0 + $0x140] ss:$8 sps:$4 sm:$0xff]   ;;  %v7256_v5 = vld [vmem:[%s12960_s0 + $0x154] ss:$8 sps:$4 sm:$0xff]   ;;  %v7321_v7 = vld [vmem:[%s12960_s0 + $0x450] ss:$8 sps:$4 sm:$0xff]  }
  0x18   :  { %v7319_v6 = vld [vmem:[%s12960_s0 + $0x454] ss:$8 sps:$4 sm:$0xff]  }
  0x19   :  { %v7280_v50 = vld [vmem:[%s12960_s0 + $0x1d4] ss:$8 sps:$4 sm:$0xff]  }
  0x1a   :  { %1695 = vmatpush1.bf16.msra.mxu0 %v7183_v8  ;;  %7166 = vmatpush1.bf16.msra.mxu1 %v7183_v8  ;;  %v7258_v8 = vld [vmem:[%s12960_s0 + $0x150] ss:$8 sps:$4 sm:$0xff]  }
  0x1b   :  { %1696 = vmatprep.subr.bf16.mxu0 %v7579_v0  ;;  %7151 = vmatprep.subr.bf16.mxu1 %v7579_v0 }
  0x1e   :  { %1697 = vmatpush1.bf16.msra.mxu0 %v7184_v9  ;;  %7167 = vmatpush1.bf16.msra.mxu1 %v7184_v9  ;;  %v7259_v9 = vld [vmem:[%s12960_s0 + $0x164] ss:$8 sps:$4 sm:$0xff]  }
  0x1f   :  { %1698 = vmatprep.subr.bf16.mxu0 %v7579_v0  ;;  %7152 = vmatprep.subr.bf16.mxu1 %v7579_v0 }
  0x22   :  { %1699 = vmatpush1.bf16.msra.mxu0 %v7185_v10  ;;  %7168 = vmatpush1.bf16.msra.mxu1 %v7185_v10  ;;  %v7325_v10 = vld [vmem:[%s12960_s0 + $0x464] ss:$8 sps:$4 sm:$0xff]  }
  0x23   :  { %1700 = vmatprep.subr.bf16.mxu0 %v7579_v0  ;;  %7153 = vmatprep.subr.bf16.mxu1 %v7579_v0 }
  0x26   :  { %1701 = vmatpush1.bf16.msra.mxu0 %v7186_v11  ;;  %7169 = vmatpush1.bf16.msra.mxu1 %v7186_v11  ;;  %v7327_v11 = vld [vmem:[%s12960_s0 + $0x460] ss:$8 sps:$4 sm:$0xff]  }
  0x27   :  { %1702 = vmatprep.subr.bf16.mxu0 %v7579_v0  ;;  %7154 = vmatprep.subr.bf16.mxu1 %v7579_v0 }
  0x2a   :  { %1703 = vmatpush1.bf16.msra.mxu0 %v7187_v12  ;;  %7170 = vmatpush1.bf16.msra.mxu1 %v7187_v12  ;;  %v7261_v12 = vld [vmem:[%s12960_s0 + $0x160] ss:$8 sps:$4 sm:$0xff]  }
  0x2b   :  { %1704 = vmatprep.subr.bf16.mxu0 %v7579_v0  ;;  %7155 = vmatprep.subr.bf16.mxu1 %v7579_v0 }
  0x2e   :  { %1705 = vmatpush1.bf16.msra.mxu0 %v7188_v13  ;;  %7171 = vmatpush1.bf16.msra.mxu1 %v7188_v13  ;;  %v7262_v13 = vld [vmem:[%s12960_s0 + $0x174] ss:$8 sps:$4 sm:$0xff]  }
  0x2f   :  { %1706 = vmatprep.subr.bf16.mxu0 %v7579_v0  ;;  %7156 = vmatprep.subr.bf16.mxu1 %v7579_v0 }
  0x32   :  { %1707 = vmatpush1.bf16.msra.mxu0 %v7189_v14  ;;  %7172 = vmatpush1.bf16.msra.mxu1 %v7189_v14  ;;  %v7331_v14 = vld [vmem:[%s12960_s0 + $0x474] ss:$8 sps:$4 sm:$0xff]  }
  0x33   :  { %1708 = vmatprep.subr.bf16.mxu0 %v7579_v0  ;;  %7157 = vmatprep.subr.bf16.mxu1 %v7579_v0 }
  0x36   :  { %1709 = vmatpush1.bf16.msra.mxu0 %v7190_v15  ;;  %7173 = vmatpush1.bf16.msra.mxu1 %v7190_v15  ;;  %v7333_v15 = vld [vmem:[%s12960_s0 + $0x470] ss:$8 sps:$4 sm:$0xff]  }
  0x37   :  { %1710 = vmatprep.subr.bf16.mxu0 %v7579_v0  ;;  %7158 = vmatprep.subr.bf16.mxu1 %v7579_v0 }
  0x3a   :  { %1711 = vmatpush1.bf16.msra.mxu0 %v7191_v16  ;;  %7174 = vmatpush1.bf16.msra.mxu1 %v7191_v16  ;;  %v7264_v16 = vld [vmem:[%s12960_s0 + $0x170] ss:$8 sps:$4 sm:$0xff]  }
  0x3b   :  { %1712 = vmatprep.subr.bf16.mxu0 %v7579_v0  ;;  %7159 = vmatprep.subr.bf16.mxu1 %v7579_v0  ;;  %v7252_v0 = vld [vmem:[%s12960_s0 + $0x130] ss:$8 sps:$4 sm:$0xff]  }
  0x3e   :  { %1713 = vmatpush1.bf16.msra.mxu0 %v7192_v17  ;;  %7175 = vmatpush1.bf16.msra.mxu1 %v7192_v17  ;;  %v7265_v17 = vld [vmem:[%s12960_s0 + $0x184] ss:$8 sps:$4 sm:$0xff]  }
  0x41   :  { %1715 = vmatmul.mubr.bf16.vlgmr.msra.gmra.mrb[0].mxu0 %v7193_v18  ;;  %2227 = vmatmul.mubr.bf16.vlgmr.msra.gmra.mrb[0].mxu1 %v7289_v51  ;;  %v7337_v18 = vld [vmem:[%s12960_s0 + $0x484] ss:$8 sps:$4 sm:$0xff]  }
  0x42   :  { %1722 = vmatprep.mubr.bf16.mxu0 %v7196_v19  ;;  %2234 = vmatprep.mubr.bf16.mxu1 %v7295_v54  ;;  %v7339_v19 = vld [vmem:[%s12960_s0 + $0x480] ss:$8 sps:$4 sm:$0xff]  }
  0x49   :  { %1723 = vmatmul.mubr.bf16.gmra.mrb[4].mxu0 %v7198_v20  ;;  %2235 = vmatmul.mubr.bf16.gmra.mrb[4].mxu1 %v7297_v55  ;;  %v7267_v20 = vld [vmem:[%s12960_s0 + $0x180] ss:$8 sps:$4 sm:$0xff]  }
  0x4a   :  { %1730 = vmatprep.mubr.bf16.mxu0 %v7199_v21  ;;  %2242 = vmatprep.mubr.bf16.mxu1 %v7301_v58  ;;  %v7268_v21 = vld [vmem:[%s12960_s0 + $0x194] ss:$8 sps:$4 sm:$0xff]   ;;  %v7369_v58 = vld [vmem:[%s12960_s0 + $0x4d0] ss:$8 sps:$4 sm:$0xff]  }
  0x51   :  { %1731 = vmatmul.mubr.bf16.gmra.mrb[8].mxu0 %v7201_v22  ;;  %2243 = vmatmul.mubr.bf16.gmra.mrb[8].mxu1 %v7303_v59  ;;  %v7343_v22 = vld [vmem:[%s12960_s0 + $0x494] ss:$8 sps:$4 sm:$0xff]  }
  0x52   :  { %1738 = vmatprep.mubr.bf16.mxu0 %v7202_v23  ;;  %2250 = vmatprep.mubr.bf16.mxu1 %v7307_v62  ;;  %v7345_v23 = vld [vmem:[%s12960_s0 + $0x490] ss:$8 sps:$4 sm:$0xff]  }
  0x53   :  { %v7282_v62 = vld [vmem:[%s12960_s0 + $0x1d0] ss:$8 sps:$4 sm:$0xff]  }
  0x59   :  { %1739 = vmatmul.mubr.bf16.gmra.mrb[12].mxu0 %v7204_v24  ;;  %2251 = vmatmul.mubr.bf16.gmra.mrb[12].mxu1 %v7309_v63  ;;  %v7270_v24 = vld [vmem:[%s12960_s0 + $0x190] ss:$8 sps:$4 sm:$0xff]  }
  0x5a   :  { %1746 = vmatprep.mubr.bf16.mxu0 %v7205_v25  ;;  %2258 = vmatprep.mubr.bf16.mxu1 %v7313_v2  ;;  %v7271_v25 = vld [vmem:[%s12960_s0 + $0x1a4] ss:$8 sps:$4 sm:$0xff]  }
  0x61   :  { %1747 = vmatmul.mubr.bf16.gmra.mrb[16].mxu0 %v7207_v26  ;;  %2259 = vmatmul.mubr.bf16.gmra.mrb[16].mxu1 %v7315_v3  ;;  %v7349_v26 = vld [vmem:[%s12960_s0 + $0x4a4] ss:$8 sps:$4 sm:$0xff]  }
  0x62   :  { %1754 = vmatprep.mubr.bf16.mxu0 %v7208_v27  ;;  %2266 = vmatprep.mubr.bf16.mxu1 %v7319_v6  ;;  %v7351_v27 = vld [vmem:[%s12960_s0 + $0x4a0] ss:$8 sps:$4 sm:$0xff]   ;;  %v7373_v6 = vld [vmem:[%s12960_s0 + $0x4e4] ss:$8 sps:$4 sm:$0xff]  }
  0x69   :  { %1755 = vmatmul.mubr.bf16.gmra.mrb[20].mxu0 %v7210_v28  ;;  %2267 = vmatmul.mubr.bf16.gmra.mrb[20].mxu1 %v7321_v7  ;;  %v7273_v28 = vld [vmem:[%s12960_s0 + $0x1a0] ss:$8 sps:$4 sm:$0xff]  }
  0x6a   :  { %1762 = vmatprep.mubr.bf16.mxu0 %v7211_v29  ;;  %2274 = vmatprep.mubr.bf16.mxu1 %v7325_v10  ;;  %v7274_v29 = vld [vmem:[%s12960_s0 + $0x1b4] ss:$8 sps:$4 sm:$0xff]  }
  0x71   :  { %1763 = vmatmul.mubr.bf16.gmra.mrb[24].mxu0 %v7213_v30  ;;  %2275 = vmatmul.mubr.bf16.gmra.mrb[24].mxu1 %v7327_v11  ;;  %v7355_v30 = vld [vmem:[%s12960_s0 + $0x4b4] ss:$8 sps:$4 sm:$0xff]  }
  0x72   :  { %1770 = vmatprep.mubr.bf16.mxu0 %v7214_v31  ;;  %2282 = vmatprep.mubr.bf16.mxu1 %v7331_v14  ;;  %v7286_v14 = vld [vmem:[%s12960_s0 + $0x1f4] ss:$8 sps:$4 sm:$0xff]  }
  0x79   :  { %1771 = vmatmul.mubr.bf16.gmra.mrb[28].mxu0 %v7216_v32  ;;  %2283 = vmatmul.mubr.bf16.gmra.mrb[28].mxu1 %v7333_v15  ;;  %v7357_v32 = vld [vmem:[%s12960_s0 + $0x4b0] ss:$8 sps:$4 sm:$0xff]  }
  0x7a   :  { %1778 = vmatprep.mubr.bf16.mxu0 %v7217_v33  ;;  %2290 = vmatprep.mubr.bf16.mxu1 %v7337_v18 }
  0x81   :  { %1779 = vmatmul.mubr.bf16.gmra.mrb[32].mxu0 %v7219_v34  ;;  %2291 = vmatmul.mubr.bf16.gmra.mrb[32].mxu1 %v7339_v19  ;;  %v7276_v34 = vld [vmem:[%s12960_s0 + $0x1b0] ss:$8 sps:$4 sm:$0xff]  }
  0x82   :  { %1786 = vmatprep.mubr.bf16.mxu0 %v7220_v35  ;;  %2298 = vmatprep.mubr.bf16.mxu1 %v7343_v22  ;;  %v7381_v22 = vld [vmem:[%s12960_s0 + $0x4f0] ss:$8 sps:$4 sm:$0xff]  }
  0x89   :  { %1787 = vmatmul.mubr.bf16.gmra.mrb[36].mxu0 %v7222_v36  ;;  %2299 = vmatmul.mubr.bf16.gmra.mrb[36].mxu1 %v7345_v23  ;;  %v7277_v36 = vld [vmem:[%s12960_s0 + $0x1c4] ss:$8 sps:$4 sm:$0xff]  }
  0x8a   :  { %1794 = vmatprep.mubr.bf16.mxu0 %v7223_v37  ;;  %2306 = vmatprep.mubr.bf16.mxu1 %v7349_v26  ;;  %v7288_v26 = vld [vmem:[%s12960_s0 + $0x1f0] ss:$8 sps:$4 sm:$0xff]  }
  0x91   :  { %1795 = vmatmul.mubr.bf16.gmra.mrb[40].mxu0 %v7225_v38  ;;  %2307 = vmatmul.mubr.bf16.gmra.mrb[40].mxu1 %v7351_v27 }
  0x92   :  { %1802 = vmatprep.mubr.bf16.mxu0 %v7226_v39  ;;  %2314 = vmatprep.mubr.bf16.mxu1 %v7355_v30 }
  0x99   :  { %1803 = vmatmul.mubr.bf16.gmra.mrb[44].mxu0 %v7228_v40  ;;  %2315 = vmatmul.mubr.bf16.gmra.mrb[44].mxu1 %v7357_v32 }
  0x9a   :  { %1810 = vmatprep.mubr.bf16.mxu0 %v7229_v41 }
  0xa1   :  { %1811 = vmatmul.mubr.bf16.gmra.mrb[48].mxu0 %v7231_v42  ;;  %v7361_v42 = vld [vmem:[%s12960_s0 + $0x4c4] ss:$8 sps:$4 sm:$0xff]  }
  0xa2   :  { %1818 = vmatprep.mubr.bf16.mxu0 %v7232_v43  ;;  %2322 = vmatprep.mubr.bf16.mxu1 %v7361_v42  ;;  %v7294_v42 = vld [vmem:[%s12960_s0 + $0x200] ss:$8 sps:$4 sm:$0xff]  }
  0xa9   :  { %1819 = vmatmul.mubr.bf16.gmra.mrb[52].mxu0 %v7234_v44  ;;  %v7363_v44 = vld [vmem:[%s12960_s0 + $0x4c0] ss:$8 sps:$4 sm:$0xff]  }
  0xaa   :  { %1826 = vmatprep.mubr.bf16.mxu0 %v7235_v45  ;;  %2323 = vmatmul.mubr.bf16.gmra.mrb[48].mxu1 %v7363_v44 }
  0xb1   :  { %1827 = vmatmul.mubr.bf16.gmra.mrb[56].mxu0 %v7237_v46 }
  0xb2   :  { %1834 = vmatprep.mubr.bf16.mxu0 %v7238_v47 }
  0xb9   :  { %1835 = vmatmul.mubr.bf16.gmra.mrb[60].mxu0 %v7240_v48  ;;  %v7279_v48 = vld [vmem:[%s12960_s0 + $0x1c0] ss:$8 sps:$4 sm:$0xff]  }
  0xba   :  { %1842 = vmatprep.mubr.bf16.mxu0 %v7241_v49 }
  0xc1   :  { %1843 = vmatmul.mubr.bf16.gmra.mrb[64].mxu0 %v7243_v52 }
  0xc2   :  { %1850 = vmatprep.mubr.bf16.mxu0 %v7244_v53 }
  0xc9   :  { %1851 = vmatmul.mubr.bf16.gmra.mrb[68].mxu0 %v7246_v56  ;;  %v7367_v56 = vld [vmem:[%s12960_s0 + $0x4d4] ss:$8 sps:$4 sm:$0xff]  }
  0xca   :  { %1858 = vmatprep.mubr.bf16.mxu0 %v7247_v57  ;;  %2330 = vmatprep.mubr.bf16.mxu1 %v7367_v56 }
  0xcb   :  { %2331 = vmatmul.mubr.bf16.gmra.mrb[52].mxu1 %v7369_v58 }
  0xcc   :  { %2338 = vmatprep.mubr.bf16.mxu1 %v7373_v6  ;;  %v7399_v6 = vld [vmem:[%s12960_s0 + $0x520] ss:$8 sps:$4 sm:$0xff]  }
  0xd1   :  { %1859 = vmatmul.mubr.bf16.gmra.mrb[72].mxu0 %v7249_v60 }
  0xd2   :  { %1866 = vmatprep.mubr.bf16.mxu0 %v7250_v61 }
  0xd9   :  { %1867 = vmatmul.mubr.bf16.gmra.mrb[76].mxu0 %v7252_v0  ;;  %v7283_v0 = vld [vmem:[%s12960_s0 + $0x1e4] ss:$8 sps:$4 sm:$0xff]  }
  0xda   :  { %1874 = vmatprep.mubr.bf16.mxu0 %v7253_v1 }
  0xe1   :  { %1875 = vmatmul.mubr.bf16.gmra.mrb[80].mxu0 %v7255_v4 }
  0xe2   :  { %1882 = vmatprep.mubr.bf16.mxu0 %v7256_v5 }
  0xe9   :  { %1883 = vmatmul.mubr.bf16.gmra.mrb[84].mxu0 %v7258_v8  ;;  %v7375_v8 = vld [vmem:[%s12960_s0 + $0x4e0] ss:$8 sps:$4 sm:$0xff]  }
  0xea   :  { %1890 = vmatprep.mubr.bf16.mxu0 %v7259_v9  ;;  %2339 = vmatmul.mubr.bf16.gmra.mrb[56].mxu1 %v7375_v8 }
  0xf1   :  { %1891 = vmatmul.mubr.bf16.gmra.mrb[88].mxu0 %v7261_v12  ;;  %v7285_v12 = vld [vmem:[%s12960_s0 + $0x1e0] ss:$8 sps:$4 sm:$0xff]  }
  0xf2   :  { %1898 = vmatprep.mubr.bf16.mxu0 %v7262_v13 }
  0xf9   :  { %1899 = vmatmul.mubr.bf16.gmra.mrb[92].mxu0 %v7264_v16 }
  0xfa   :  { %1906 = vmatprep.mubr.bf16.mxu0 %v7265_v17 }
 0x101   :  { %1907 = vmatmul.mubr.bf16.gmra.mrb[96].mxu0 %v7267_v20  ;;  %v7379_v20 = vld [vmem:[%s12960_s0 + $0x4f4] ss:$8 sps:$4 sm:$0xff]  }
 0x102   :  { %1914 = vmatprep.mubr.bf16.mxu0 %v7268_v21  ;;  %2346 = vmatprep.mubr.bf16.mxu1 %v7379_v20  ;;  %v7403_v20 = vld [vmem:[%s12960_s0 + $0x534] ss:$8 sps:$4 sm:$0xff]  }
 0x103   :  { %2347 = vmatmul.mubr.bf16.gmra.mrb[60].mxu1 %v7381_v22 }
 0x109   :  { %1915 = vmatmul.mubr.bf16.gmra.mrb[100].mxu0 %v7270_v24 }
 0x10a   :  { %1922 = vmatprep.mubr.bf16.mxu0 %v7271_v25 }
 0x111   :  { %1923 = vmatmul.mubr.bf16.gmra.mrb[104].mxu0 %v7273_v28  ;;  %v7292_v28 = vld [vmem:[%s12960_s0 + $0x204] ss:$8 sps:$4 sm:$0xff]  }
 0x112   :  { %1930 = vmatprep.mubr.bf16.mxu0 %v7274_v29 }
 0x114   :  { %v7919_v31 = vpop.f32.mrb[0].mxu0 }
 0x115   :  { %13467 = vst [vmem:[#allocation2_spill] sm:$0xff] %v7919_v31  ;;  %v1718_v33 = vpop.f32.mrb[1].mxu0  ;;  %v3000_v37 = vmul.f32 %v7919_v31, %v7919_v31 }
 0x116   :  { %v7927_v35 = vpop.f32.mrb[2].mxu0 }
 0x117   :  { %13468 = vst [vmem:[#allocation3_spill] sm:$0xff] %v7927_v35  ;;  %v2739_v38 = vadd.f32 %v7927_v35, %v7919_v31  ;;  %v3001_v39 = vmul.f32 %v7927_v35, %v7927_v35  ;;  %v1721_v40 = vpop.f32.mrb[3].mxu0 }
 0x119   :  { %v3256_v41 = vadd.f32 %v3001_v39, %v3000_v37  ;;  %1931 = vmatmul.mubr.bf16.gmra.mrb[108].mxu0 %v7276_v34 }
 0x11a   :  { %1938 = vmatprep.mubr.bf16.mxu0 %v7277_v36  ;;  %v7385_v36 = vld [vmem:[%s12960_s0 + $0x504] ss:$8 sps:$4 sm:$0xff]  }
 0x11b   :  { %2354 = vmatprep.mubr.bf16.mxu1 %v7385_v36 }
 0x11c   :  { %v7941_v43 = vpop.f32.mrb[4].mxu0 }
 0x11d   :  { %13469 = vst [vmem:[#allocation4_spill] sm:$0xff] %v7941_v43  ;;  %v2740_v45 = vadd.f32 %v2739_v38, %v7941_v43  ;;  %v3002_v46 = vmul.f32 %v7941_v43, %v7941_v43  ;;  %v1726_v47 = vpop.f32.mrb[5].mxu0  ;;  %v7387_v38 = vld [vmem:[%s12960_s0 + $0x500] ss:$8 sps:$4 sm:$0xff]  }
 0x11e   :  { %v7952_v49 = vpop.f32.mrb[6].mxu0  ;;  %2355 = vmatmul.mubr.bf16.gmra.mrb[64].mxu1 %v7387_v38 }
 0x11f   :  { %13470 = vst [vmem:[#allocation5_spill] sm:$0xff] %v7952_v49  ;;  %v3257_v51 = vadd.f32 %v3256_v41, %v3002_v46  ;;  %v2741_v52 = vadd.f32 %v2740_v45, %v7952_v49  ;;  %v3003_v53 = vmul.f32 %v7952_v49, %v7952_v49  ;;  %v1729_v54 = vpop.f32.mrb[7].mxu0  ;;  %v7298_v45 = vld [vmem:[%s12960_s0 + $0x214] ss:$8 sps:$4 sm:$0xff]  }
 0x120   :  { %v7393_v54 = vld [vmem:[%s12960_s0 + $0x510] ss:$8 sps:$4 sm:$0xff]  }
 0x121   :  { %v3258_v55 = vadd.f32 %v3257_v51, %v3003_v53  ;;  %1939 = vmatmul.mubr.bf16.gmra.mrb[112].mxu0 %v7279_v48 }
 0x122   :  { %1946 = vmatprep.mubr.bf16.mxu0 %v7280_v50 }
 0x124   :  { %v7963_v57 = vpop.f32.mrb[8].mxu0 }
 0x125   :  { %13471 = vst [vmem:[#allocation6_spill] sm:$0xff] %v7963_v57  ;;  %v2742_v59 = vadd.f32 %v2741_v52, %v7963_v57  ;;  %v3004_v60 = vmul.f32 %v7963_v57, %v7963_v57  ;;  %v1734_v61 = vpop.f32.mrb[9].mxu0  ;;  %v7391_v52 = vld [vmem:[%s12960_s0 + $0x514] ss:$8 sps:$4 sm:$0xff]  }
 0x126   :  { %v7974_v63 = vpop.f32.mrb[10].mxu0  ;;  %2362 = vmatprep.mubr.bf16.mxu1 %v7391_v52  ;;  %v7304_v61 = vld [vmem:[%s12960_s0 + $0x224] ss:$8 sps:$4 sm:$0xff]  }
 0x127   :  { %13472 = vst [vmem:[#allocation7_spill] sm:$0xff] %v7974_v63  ;;  %v3259_v1 = vadd.f32 %v3258_v55, %v3004_v60  ;;  %v2743_v2 = vadd.f32 %v2742_v59, %v7974_v63  ;;  %v3005_v3 = vmul.f32 %v7974_v63, %v7974_v63  ;;  %v1737_v4 = vpop.f32.mrb[11].mxu0  ;;  %v7300_v59 = vld [vmem:[%s12960_s0 + $0x210] ss:$8 sps:$4 sm:$0xff]   ;;  %2363 = vmatmul.mubr.bf16.gmra.mrb[68].mxu1 %v7393_v54 }
 0x128   :  { %v7397_v4 = vld [vmem:[%s12960_s0 + $0x524] ss:$8 sps:$4 sm:$0xff]  }
 0x129   :  { %v3260_v5 = vadd.f32 %v3259_v1, %v3005_v3  ;;  %1947 = vmatmul.mubr.bf16.gmra.mrb[116].mxu0 %v7282_v62  ;;  %2370 = vmatprep.mubr.bf16.mxu1 %v7397_v4  ;;  %v7328_v4 = vld [vmem:[%s12960_s0 + $0x264] ss:$8 sps:$4 sm:$0xff]  }
 0x12a   :  { %1954 = vmatprep.mubr.bf16.mxu0 %v7283_v0 }
 0x12c   :  { %v7985_v7 = vpop.f32.mrb[12].mxu0 }
 0x12d   :  { %13473 = vst [vmem:[#allocation8_spill] sm:$0xff] %v7985_v7  ;;  %v2744_v9 = vadd.f32 %v2743_v2, %v7985_v7  ;;  %v3006_v10 = vmul.f32 %v7985_v7, %v7985_v7  ;;  %v1742_v11 = vpop.f32.mrb[13].mxu0 }
 0x12e   :  { %v7996_v13 = vpop.f32.mrb[14].mxu0  ;;  %v7306_v11 = vld [vmem:[%s12960_s0 + $0x220] ss:$8 sps:$4 sm:$0xff]  }
 0x12f   :  { %13474 = vst [vmem:[#allocation9_spill] sm:$0xff] %v7996_v13  ;;  %v3261_v15 = vadd.f32 %v3260_v5, %v3006_v10  ;;  %v2745_v16 = vadd.f32 %v2744_v9, %v7996_v13  ;;  %v3007_v17 = vmul.f32 %v7996_v13, %v7996_v13  ;;  %v1745_v18 = vpop.f32.mrb[15].mxu0  ;;  %2371 = vmatmul.mubr.bf16.gmra.mrb[72].mxu1 %v7399_v6 }
 0x130   :  { %2378 = vmatprep.mubr.bf16.mxu1 %v7403_v20  ;;  %v7330_v20 = vld [vmem:[%s12960_s0 + $0x260] ss:$8 sps:$4 sm:$0xff]  }
 0x131   :  { %v3262_v19 = vadd.f32 %v3261_v15, %v3007_v17  ;;  %1955 = vmatmul.mubr.bf16.gmra.mrb[120].mxu0 %v7285_v12 }
 0x132   :  { %1962 = vmatprep.mubr.bf16.mxu0 %v7286_v14  ;;  %v7310_v14 = vld [vmem:[%s12960_s0 + $0x234] ss:$8 sps:$4 sm:$0xff]  }
 0x134   :  { %v8007_v21 = vpop.f32.mrb[16].mxu0 }
 0x135   :  { %13475 = vst [vmem:[#allocation10_spill] sm:$0xff] %v8007_v21  ;;  %v2746_v23 = vadd.f32 %v2745_v16, %v8007_v21  ;;  %v3008_v24 = vmul.f32 %v8007_v21, %v8007_v21  ;;  %v1750_v25 = vpop.f32.mrb[17].mxu0  ;;  %v7526_v21 = vld [vmem:[%s12960_s0 + $0x6f4] ss:$8 sps:$4 sm:$0xff]  }
 0x136   :  { %v8018_v27 = vpop.f32.mrb[18].mxu0 }
 0x137   :  { %13476 = vst [vmem:[#allocation11_spill] sm:$0xff] %v8018_v27  ;;  %v3263_v29 = vadd.f32 %v3262_v19, %v3008_v24  ;;  %v2747_v30 = vadd.f32 %v2746_v23, %v8018_v27  ;;  %v3009_v32 = vmul.f32 %v8018_v27, %v8018_v27  ;;  %v1753_v33 = vpop.f32.mrb[19].mxu0  ;;  %v7405_v23 = vld [vmem:[%s12960_s0 + $0x530] ss:$8 sps:$4 sm:$0xff]  }
 0x138   :  { %2379 = vmatmul.mubr.bf16.gmra.mrb[76].mxu1 %v7405_v23 }
 0x139   :  { %v3264_v34 = vadd.f32 %v3263_v29, %v3009_v32  ;;  %1963 = vmatmul.mubr.bf16.gmra.mrb[124].mxu0 %v7288_v26 }
 0x13a   :  { %1970 = vmatprep.mubr.bf16.mxu0 %v7292_v28  ;;  %v7312_v28 = vld [vmem:[%s12960_s0 + $0x230] ss:$8 sps:$4 sm:$0xff]  }
 0x13c   :  { %v8029_v37 = vpop.f32.mrb[20].mxu0 }
 0x13d   :  { %13477 = vst [vmem:[#allocation12_spill] sm:$0xff] %v8029_v37  ;;  %v2748_v39 = vadd.f32 %v2747_v30, %v8029_v37  ;;  %v3010_v40 = vmul.f32 %v8029_v37, %v8029_v37  ;;  %v1758_v41 = vpop.f32.mrb[21].mxu0  ;;  %v7316_v30 = vld [vmem:[%s12960_s0 + $0x244] ss:$8 sps:$4 sm:$0xff]  }
 0x13e   :  { %v8040_v44 = vpop.f32.mrb[22].mxu0  ;;  %v7411_v41 = vld [vmem:[%s12960_s0 + $0x540] ss:$8 sps:$4 sm:$0xff]   ;;  %v7523_v37 = vld [vmem:[%s12960_s0 + $0x6e4] ss:$8 sps:$4 sm:$0xff]  }
 0x13f   :  { %13478 = vst [vmem:[#allocation13_spill] sm:$0xff] %v8040_v44  ;;  %v3265_v46 = vadd.f32 %v3264_v34, %v3010_v40  ;;  %v2749_v47 = vadd.f32 %v2748_v39, %v8040_v44  ;;  %v3011_v48 = vmul.f32 %v8040_v44, %v8040_v44  ;;  %v1761_v50 = vpop.f32.mrb[23].mxu0  ;;  %v7409_v39 = vld [vmem:[%s12960_s0 + $0x544] ss:$8 sps:$4 sm:$0xff]  }
 0x140   :  { %2386 = vmatprep.mubr.bf16.mxu1 %v7409_v39  ;;  %v7322_v50 = vld [vmem:[%s12960_s0 + $0x254] ss:$8 sps:$4 sm:$0xff]  }
 0x141   :  { %v3266_v51 = vadd.f32 %v3265_v46, %v3011_v48  ;;  %1971 = vmatmul.mubr.bf16.gmra.mrb[128].mxu0 %v7294_v42  ;;  %2387 = vmatmul.mubr.bf16.gmra.mrb[80].mxu1 %v7411_v41 }
 0x142   :  { %1978 = vmatprep.mubr.bf16.mxu0 %v7298_v45 }
 0x144   :  { %v8051_v53 = vpop.f32.mrb[24].mxu0 }
 0x145   :  { %13479 = vst [vmem:[#allocation14_spill] sm:$0xff] %v8051_v53  ;;  %v2750_v55 = vadd.f32 %v2749_v47, %v8051_v53  ;;  %v3012_v56 = vmul.f32 %v8051_v53, %v8051_v53  ;;  %v1766_v58 = vpop.f32.mrb[25].mxu0  ;;  %v7318_v47 = vld [vmem:[%s12960_s0 + $0x240] ss:$8 sps:$4 sm:$0xff]   ;;  %v7520_v53 = vld [vmem:[%s12960_s0 + $0x6d4] ss:$8 sps:$4 sm:$0xff]  }
 0x146   :  { %v8062_v60 = vpop.f32.mrb[26].mxu0  ;;  %v7415_v58 = vld [vmem:[%s12960_s0 + $0x554] ss:$8 sps:$4 sm:$0xff]  }
 0x147   :  { %13480 = vst [vmem:[#allocation15_spill] sm:$0xff] %v8062_v60  ;;  %v3267_v62 = vadd.f32 %v3266_v51, %v3012_v56  ;;  %v2751_v0 = vadd.f32 %v2750_v55, %v8062_v60  ;;  %v3013_v1 = vmul.f32 %v8062_v60, %v8062_v60  ;;  %v1769_v2 = vpop.f32.mrb[27].mxu0  ;;  %2394 = vmatprep.mubr.bf16.mxu1 %v7415_v58  ;;  %v7435_v58 = vld [vmem:[%s12960_s0 + $0x580] ss:$8 sps:$4 sm:$0xff]  }
 0x148   :  { %v7324_v2 = vld [vmem:[%s12960_s0 + $0x250] ss:$8 sps:$4 sm:$0xff]  }
 0x149   :  { %v3268_v3 = vadd.f32 %v3267_v62, %v3013_v1  ;;  %1979 = vmatmul.mubr.bf16.gmra.mrb[132].mxu0 %v7300_v59 }
 0x14a   :  { %1986 = vmatprep.mubr.bf16.mxu0 %v7304_v61  ;;  %v7417_v61 = vld [vmem:[%s12960_s0 + $0x550] ss:$8 sps:$4 sm:$0xff]  }
 0x14b   :  { %2395 = vmatmul.mubr.bf16.gmra.mrb[84].mxu1 %v7417_v61 }
 0x14c   :  { %v8073_v5 = vpop.f32.mrb[28].mxu0 }
 0x14d   :  { %13481 = vst [vmem:[#allocation16_spill] sm:$0xff] %v8073_v5  ;;  %v2752_v8 = vadd.f32 %v2751_v0, %v8073_v5  ;;  %v3014_v9 = vmul.f32 %v8073_v5, %v8073_v5  ;;  %v1774_v10 = vpop.f32.mrb[29].mxu0  ;;  %v7517_v5 = vld [vmem:[%s12960_s0 + $0x6c4] ss:$8 sps:$4 sm:$0xff]  }
 0x14e   :  { %v8084_v12 = vpop.f32.mrb[30].mxu0 }
 0x14f   :  { %13482 = vst [vmem:[#allocation17_spill] sm:$0xff] %v8084_v12  ;;  %v3269_v15 = vadd.f32 %v3268_v3, %v3014_v9  ;;  %v2753_v16 = vadd.f32 %v2752_v8, %v8084_v12  ;;  %v3015_v17 = vmul.f32 %v8084_v12, %v8084_v12  ;;  %v1777_v18 = vpop.f32.mrb[31].mxu0 }
 0x151   :  { %v3270_v19 = vadd.f32 %v3269_v15, %v3015_v17  ;;  %1987 = vmatmul.mubr.bf16.gmra.mrb[136].mxu0 %v7306_v11 }
 0x152   :  { %1994 = vmatprep.mubr.bf16.mxu0 %v7310_v14  ;;  %v7421_v14 = vld [vmem:[%s12960_s0 + $0x564] ss:$8 sps:$4 sm:$0xff]  }
 0x153   :  { %2402 = vmatprep.mubr.bf16.mxu1 %v7421_v14  ;;  %v7439_v14 = vld [vmem:[%s12960_s0 + $0x594] ss:$8 sps:$4 sm:$0xff]  }
 0x154   :  { %v8095_v22 = vpop.f32.mrb[32].mxu0 }
 0x155   :  { %13483 = vst [vmem:[#allocation18_spill] sm:$0xff] %v8095_v22  ;;  %v2754_v24 = vadd.f32 %v2753_v16, %v8095_v22  ;;  %v3016_v25 = vmul.f32 %v8095_v22, %v8095_v22  ;;  %v1782_v26 = vpop.f32.mrb[33].mxu0  ;;  %v7423_v16 = vld [vmem:[%s12960_s0 + $0x560] ss:$8 sps:$4 sm:$0xff]   ;;  %v7514_v22 = vld [vmem:[%s12960_s0 + $0x6b4] ss:$8 sps:$4 sm:$0xff]  }
 0x156   :  { %v8106_v29 = vpop.f32.mrb[34].mxu0  ;;  %2403 = vmatmul.mubr.bf16.gmra.mrb[88].mxu1 %v7423_v16 }
 0x157   :  { %13484 = vst [vmem:[#allocation19_spill] sm:$0xff] %v8106_v29  ;;  %v3271_v32 = vadd.f32 %v3270_v19, %v3016_v25  ;;  %v2755_v33 = vadd.f32 %v2754_v24, %v8106_v29  ;;  %v3017_v34 = vmul.f32 %v8106_v29, %v8106_v29  ;;  %v1785_v36 = vpop.f32.mrb[35].mxu0  ;;  %v7334_v24 = vld [vmem:[%s12960_s0 + $0x274] ss:$8 sps:$4 sm:$0xff]  }
 0x158   :  { %v7429_v36 = vld [vmem:[%s12960_s0 + $0x570] ss:$8 sps:$4 sm:$0xff]  }
 0x159   :  { %v3272_v38 = vadd.f32 %v3271_v32, %v3017_v34  ;;  %1995 = vmatmul.mubr.bf16.gmra.mrb[140].mxu0 %v7312_v28 }
 0x15a   :  { %2002 = vmatprep.mubr.bf16.mxu0 %v7316_v30 }
 0x15c   :  { %v8117_v40 = vpop.f32.mrb[36].mxu0 }
 0x15d   :  { %13485 = vst [vmem:[#allocation20_spill] sm:$0xff] %v8117_v40  ;;  %v2756_v42 = vadd.f32 %v2755_v33, %v8117_v40  ;;  %v3018_v45 = vmul.f32 %v8117_v40, %v8117_v40  ;;  %v1790_v46 = vpop.f32.mrb[37].mxu0  ;;  %v7427_v33 = vld [vmem:[%s12960_s0 + $0x574] ss:$8 sps:$4 sm:$0xff]   ;;  %v7511_v40 = vld [vmem:[%s12960_s0 + $0x6a4] ss:$8 sps:$4 sm:$0xff]  }
 0x15e   :  { %v8128_v48 = vpop.f32.mrb[38].mxu0  ;;  %2410 = vmatprep.mubr.bf16.mxu1 %v7427_v33  ;;  %v7340_v46 = vld [vmem:[%s12960_s0 + $0x284] ss:$8 sps:$4 sm:$0xff]  }
 0x15f   :  { %13486 = vst [vmem:[#allocation21_spill] sm:$0xff] %v8128_v48  ;;  %v3273_v51 = vadd.f32 %v3272_v38, %v3018_v45  ;;  %v2757_v52 = vadd.f32 %v2756_v42, %v8128_v48  ;;  %v3019_v54 = vmul.f32 %v8128_v48, %v8128_v48  ;;  %v1793_v55 = vpop.f32.mrb[39].mxu0  ;;  %v7336_v42 = vld [vmem:[%s12960_s0 + $0x270] ss:$8 sps:$4 sm:$0xff]   ;;  %2411 = vmatmul.mubr.bf16.gmra.mrb[92].mxu1 %v7429_v36 }
 0x160   :  { %v7433_v55 = vld [vmem:[%s12960_s0 + $0x584] ss:$8 sps:$4 sm:$0xff]  }
 0x161   :  { %v3274_v56 = vadd.f32 %v3273_v51, %v3019_v54  ;;  %2003 = vmatmul.mubr.bf16.gmra.mrb[144].mxu0 %v7318_v47  ;;  %2418 = vmatprep.mubr.bf16.mxu1 %v7433_v55 }
 0x162   :  { %2010 = vmatprep.mubr.bf16.mxu0 %v7322_v50 }
 0x164   :  { %v8139_v59 = vpop.f32.mrb[40].mxu0 }
 0x165   :  { %13487 = vst [vmem:[#allocation22_spill] sm:$0xff] %v8139_v59  ;;  %v2758_v62 = vadd.f32 %v2757_v52, %v8139_v59  ;;  %v3020_v0 = vmul.f32 %v8139_v59, %v8139_v59  ;;  %v1798_v1 = vpop.f32.mrb[41].mxu0  ;;  %v7508_v59 = vld [vmem:[%s12960_s0 + $0x694] ss:$8 sps:$4 sm:$0xff]  }
 0x166   :  { %v8150_v3 = vpop.f32.mrb[42].mxu0  ;;  %v7342_v1 = vld [vmem:[%s12960_s0 + $0x280] ss:$8 sps:$4 sm:$0xff]  }
 0x167   :  { %13488 = vst [vmem:[#allocation23_spill] sm:$0xff] %v8150_v3  ;;  %v3275_v6 = vadd.f32 %v3274_v56, %v3020_v0  ;;  %v2759_v8 = vadd.f32 %v2758_v62, %v8150_v3  ;;  %v3021_v9 = vmul.f32 %v8150_v3, %v8150_v3  ;;  %v1801_v10 = vpop.f32.mrb[43].mxu0  ;;  %2419 = vmatmul.mubr.bf16.gmra.mrb[96].mxu1 %v7435_v58 }
 0x168   :  { %2426 = vmatprep.mubr.bf16.mxu1 %v7439_v14 }
 0x169   :  { %v3276_v11 = vadd.f32 %v3275_v6, %v3021_v9  ;;  %2011 = vmatmul.mubr.bf16.gmra.mrb[148].mxu0 %v7324_v2 }
 0x16a   :  { %2018 = vmatprep.mubr.bf16.mxu0 %v7328_v4  ;;  %v7346_v4 = vld [vmem:[%s12960_s0 + $0x294] ss:$8 sps:$4 sm:$0xff]  }
 0x16c   :  { %v8161_v15 = vpop.f32.mrb[44].mxu0 }
 0x16d   :  { %13489 = vst [vmem:[#allocation24_spill] sm:$0xff] %v8161_v15  ;;  %v2760_v17 = vadd.f32 %v2759_v8, %v8161_v15  ;;  %v3022_v18 = vmul.f32 %v8161_v15, %v8161_v15  ;;  %v1806_v19 = vpop.f32.mrb[45].mxu0  ;;  %v7505_v15 = vld [vmem:[%s12960_s0 + $0x684] ss:$8 sps:$4 sm:$0xff]  }
 0x16e   :  { %v8172_v23 = vpop.f32.mrb[46].mxu0 }
 0x16f   :  { %13490 = vst [vmem:[#allocation25_spill] sm:$0xff] %v8172_v23  ;;  %v3277_v25 = vadd.f32 %v3276_v11, %v3022_v18  ;;  %v2761_v26 = vadd.f32 %v2760_v17, %v8172_v23  ;;  %v3023_v28 = vmul.f32 %v8172_v23, %v8172_v23  ;;  %v1809_v30 = vpop.f32.mrb[47].mxu0  ;;  %v7441_v17 = vld [vmem:[%s12960_s0 + $0x590] ss:$8 sps:$4 sm:$0xff]  }
 0x170   :  { %2427 = vmatmul.mubr.bf16.gmra.mrb[100].mxu1 %v7441_v17 }
 0x171   :  { %v3278_v32 = vadd.f32 %v3277_v25, %v3023_v28  ;;  %2019 = vmatmul.mubr.bf16.gmra.mrb[152].mxu0 %v7330_v20 }
 0x172   :  { %2026 = vmatprep.mubr.bf16.mxu0 %v7334_v24  ;;  %v7348_v24 = vld [vmem:[%s12960_s0 + $0x290] ss:$8 sps:$4 sm:$0xff]  }
 0x174   :  { %v8183_v34 = vpop.f32.mrb[48].mxu0 }
 0x175   :  { %13491 = vst [vmem:[#allocation26_spill] sm:$0xff] %v8183_v34  ;;  %v2762_v38 = vadd.f32 %v2761_v26, %v8183_v34  ;;  %v3024_v39 = vmul.f32 %v8183_v34, %v8183_v34  ;;  %v1814_v41 = vpop.f32.mrb[49].mxu0  ;;  %v7352_v26 = vld [vmem:[%s12960_s0 + $0x2a4] ss:$8 sps:$4 sm:$0xff]   ;;  %v7502_v34 = vld [vmem:[%s12960_s0 + $0x674] ss:$8 sps:$4 sm:$0xff]  }
 0x176   :  { %v8194_v45 = vpop.f32.mrb[50].mxu0  ;;  %v7447_v41 = vld [vmem:[%s12960_s0 + $0x5a0] ss:$8 sps:$4 sm:$0xff]  }
 0x177   :  { %13492 = vst [vmem:[#allocation27_spill] sm:$0xff] %v8194_v45  ;;  %v3279_v47 = vadd.f32 %v3278_v32, %v3024_v39  ;;  %v2763_v50 = vadd.f32 %v2762_v38, %v8194_v45  ;;  %v3025_v51 = vmul.f32 %v8194_v45, %v8194_v45  ;;  %v1817_v52 = vpop.f32.mrb[51].mxu0  ;;  %v7445_v38 = vld [vmem:[%s12960_s0 + $0x5a4] ss:$8 sps:$4 sm:$0xff]  }
 0x178   :  { %2434 = vmatprep.mubr.bf16.mxu1 %v7445_v38  ;;  %v7358_v52 = vld [vmem:[%s12960_s0 + $0x2b4] ss:$8 sps:$4 sm:$0xff]  }
 0x179   :  { %v3280_v54 = vadd.f32 %v3279_v47, %v3025_v51  ;;  %2027 = vmatmul.mubr.bf16.gmra.mrb[156].mxu0 %v7336_v42  ;;  %2435 = vmatmul.mubr.bf16.gmra.mrb[104].mxu1 %v7447_v41  ;;  %v7457_v41 = vld [vmem:[%s12960_s0 + $0x5c4] ss:$8 sps:$4 sm:$0xff]  }
 0x17a   :  { %2034 = vmatprep.mubr.bf16.mxu0 %v7340_v46 }
 0x17c   :  { %v8205_v56 = vpop.f32.mrb[52].mxu0 }
 0x17d   :  { %13493 = vst [vmem:[#allocation28_spill] sm:$0xff] %v8205_v56  ;;  %v2764_v61 = vadd.f32 %v2763_v50, %v8205_v56  ;;  %v3026_v62 = vmul.f32 %v8205_v56, %v8205_v56  ;;  %v1822_v0 = vpop.f32.mrb[53].mxu0  ;;  %v7354_v50 = vld [vmem:[%s12960_s0 + $0x2a0] ss:$8 sps:$4 sm:$0xff]   ;;  %v7499_v56 = vld [vmem:[%s12960_s0 + $0x664] ss:$8 sps:$4 sm:$0xff]  }
 0x17e   :  { %v8216_v2 = vpop.f32.mrb[54].mxu0  ;;  %v8268_v0 = vpop.f32.mrb[0].mxu1 }
 0x17f   :  { %13494 = vst [vmem:[#allocation29_spill] sm:$0xff] %v8216_v2  ;;  %v3281_v6 = vadd.f32 %v3280_v54, %v3026_v62  ;;  %v2765_v8 = vadd.f32 %v2764_v61, %v8216_v2  ;;  %v3027_v9 = vmul.f32 %v8216_v2, %v8216_v2  ;;  %v1825_v10 = vpop.f32.mrb[55].mxu0 }
 0x180   :  { %v7453_v10 = vld [vmem:[%s12960_s0 + $0x5b0] ss:$8 sps:$4 sm:$0xff]  }
 0x181   :  { %v3282_v11 = vadd.f32 %v3281_v6, %v3027_v9  ;;  %2035 = vmatmul.mubr.bf16.gmra.mrb[160].mxu0 %v7342_v1  ;;  %v2230_v1 = vpop.f32.mrb[1].mxu1  ;;  %v7451_v6 = vld [vmem:[%s12960_s0 + $0x5b4] ss:$8 sps:$4 sm:$0xff]  }
 0x182   :  { %2042 = vmatprep.mubr.bf16.mxu0 %v7346_v4  ;;  %v8270_v4 = vpop.f32.mrb[2].mxu1  ;;  %2442 = vmatprep.mubr.bf16.mxu1 %v7451_v6 }
 0x183   :  { %13499 = vst [vmem:[#allocation34_spill] sm:$0xff] %v8270_v4  ;;  %v2233_v9 = vpop.f32.mrb[3].mxu1  ;;  %2443 = vmatmul.mubr.bf16.gmra.mrb[108].mxu1 %v7453_v10 }
 0x184   :  { %v8227_v16 = vpop.f32.mrb[56].mxu0  ;;  %2450 = vmatprep.mubr.bf16.mxu1 %v7457_v41 }
 0x185   :  { %13495 = vst [vmem:[#allocation30_spill] sm:$0xff] %v8227_v16  ;;  %v2766_v18 = vadd.f32 %v2765_v8, %v8227_v16  ;;  %v3028_v19 = vmul.f32 %v8227_v16, %v8227_v16  ;;  %v1830_v20 = vpop.f32.mrb[57].mxu0  ;;  %v7496_v16 = vld [vmem:[%s12960_s0 + $0x654] ss:$8 sps:$4 sm:$0xff]  }
 0x186   :  { %v8238_v25 = vpop.f32.mrb[58].mxu0  ;;  %v7364_v20 = vld [vmem:[%s12960_s0 + $0x2c4] ss:$8 sps:$4 sm:$0xff]  }
 0x187   :  { %13496 = vst [vmem:[#allocation31_spill] sm:$0xff] %v8238_v25  ;;  %v3283_v28 = vadd.f32 %v3282_v11, %v3028_v19  ;;  %v2767_v30 = vadd.f32 %v2766_v18, %v8238_v25  ;;  %v3029_v32 = vmul.f32 %v8238_v25, %v8238_v25  ;;  %v1833_v33 = vpop.f32.mrb[59].mxu0  ;;  %v7360_v18 = vld [vmem:[%s12960_s0 + $0x2b0] ss:$8 sps:$4 sm:$0xff]  }
 0x188   :  { %v8294_v33 = vpop.f32.mrb[4].mxu1 }
 0x189   :  { %v3284_v36 = vadd.f32 %v3283_v28, %v3029_v32  ;;  %2043 = vmatmul.mubr.bf16.gmra.mrb[164].mxu0 %v7348_v24  ;;  %13502 = vst [vmem:[#allocation37_spill] sm:$0xff] %v8294_v33 }
 0x18a   :  { %2050 = vmatprep.mubr.bf16.mxu0 %v7352_v26 }
 0x18c   :  { %v8249_v39 = vpop.f32.mrb[60].mxu0 }
 0x18d   :  { %13497 = vst [vmem:[#allocation32_spill] sm:$0xff] %v8249_v39  ;;  %v2768_v42 = vadd.f32 %v2767_v30, %v8249_v39  ;;  %v3030_v46 = vmul.f32 %v8249_v39, %v8249_v39  ;;  %v1838_v47 = vpop.f32.mrb[61].mxu0  ;;  %v7493_v39 = vld [vmem:[%s12960_s0 + $0x644] ss:$8 sps:$4 sm:$0xff]  }
 0x18e   :  { %v8260_v51 = vpop.f32.mrb[62].mxu0  ;;  %v7459_v47 = vld [vmem:[%s12960_s0 + $0x5c0] ss:$8 sps:$4 sm:$0xff]  }
 0x18f   :  { %13498 = vst [vmem:[#allocation33_spill] sm:$0xff] %v8260_v51  ;;  %v3285_v54 = vadd.f32 %v3284_v36, %v3030_v46  ;;  %v2769_v55 = vadd.f32 %v2768_v42, %v8260_v51  ;;  %v3031_v58 = vmul.f32 %v8260_v51, %v8260_v51  ;;  %v1841_v61 = vpop.f32.mrb[63].mxu0  ;;  %v2238_v36 = vpop.f32.mrb[5].mxu1  ;;  %2451 = vmatmul.mubr.bf16.gmra.mrb[112].mxu1 %v7459_v47 }
 0x190   :  { %v8296_v38 = vpop.f32.mrb[6].mxu1  ;;  %v7370_v61 = vld [vmem:[%s12960_s0 + $0x2d4] ss:$8 sps:$4 sm:$0xff]   ;;  %v7372_v36 = vld [vmem:[%s12960_s0 + $0x2d0] ss:$8 sps:$4 sm:$0xff]  }
 0x191   :  { %v3286_v62 = vadd.f32 %v3285_v54, %v3031_v58  ;;  %2051 = vmatmul.mubr.bf16.gmra.mrb[168].mxu0 %v7354_v50  ;;  %v2241_v46 = vpop.f32.mrb[7].mxu1 }
 0x192   :  { %2058 = vmatprep.mubr.bf16.mxu0 %v7358_v52  ;;  %v7376_v46 = vld [vmem:[%s12960_s0 + $0x2e4] ss:$8 sps:$4 sm:$0xff]  }
 0x194   :  { %v8275_v8 = vpop.f32.mrb[64].mxu0 }
 0x195   :  { %13500 = vst [vmem:[#allocation35_spill] sm:$0xff] %v8275_v8  ;;  %v2770_v11 = vadd.f32 %v2769_v55, %v8275_v8  ;;  %v3032_v14 = vmul.f32 %v8275_v8, %v8275_v8  ;;  %v1846_v17 = vpop.f32.mrb[65].mxu0  ;;  %v7366_v55 = vld [vmem:[%s12960_s0 + $0x2c0] ss:$8 sps:$4 sm:$0xff]   ;;  %v7490_v8 = vld [vmem:[%s12960_s0 + $0x634] ss:$8 sps:$4 sm:$0xff]  }
 0x196   :  { %v8286_v19 = vpop.f32.mrb[66].mxu0 }
 0x197   :  { %13501 = vst [vmem:[#allocation36_spill] sm:$0xff] %v8286_v19  ;;  %v3287_v24 = vadd.f32 %v3286_v62, %v3032_v14  ;;  %v2771_v26 = vadd.f32 %v2770_v11, %v8286_v19  ;;  %v3033_v28 = vmul.f32 %v8286_v19, %v8286_v19  ;;  %v1849_v30 = vpop.f32.mrb[67].mxu0  ;;  %v8320_v11 = vpop.f32.mrb[8].mxu1 }
 0x198   :  { %v2246_v14 = vpop.f32.mrb[9].mxu1 }
 0x199   :  { %v3288_v32 = vadd.f32 %v3287_v24, %v3033_v28  ;;  %2059 = vmatmul.mubr.bf16.gmra.mrb[172].mxu0 %v7360_v18  ;;  %v8322_v17 = vpop.f32.mrb[10].mxu1  ;;  %v7463_v18 = vld [vmem:[%s12960_s0 + $0x5d4] ss:$8 sps:$4 sm:$0xff]   ;;  %v7471_v14 = vld [vmem:[%s12960_s0 + $0x5e0] ss:$8 sps:$4 sm:$0xff]  }
 0x19a   :  { %2066 = vmatprep.mubr.bf16.mxu0 %v7364_v20  ;;  %13505 = vst [vmem:[#allocation40_spill] sm:$0xff] %v8322_v17  ;;  %v2249_v24 = vpop.f32.mrb[11].mxu1  ;;  %2458 = vmatprep.mubr.bf16.mxu1 %v7463_v18 }
 0x19c   :  { %v8301_v42 = vpop.f32.mrb[68].mxu0 }
 0x19d   :  { %13503 = vst [vmem:[#allocation38_spill] sm:$0xff] %v8301_v42  ;;  %v2772_v50 = vadd.f32 %v2771_v26, %v8301_v42  ;;  %v3034_v52 = vmul.f32 %v8301_v42, %v8301_v42  ;;  %v1854_v54 = vpop.f32.mrb[69].mxu0  ;;  %v7465_v26 = vld [vmem:[%s12960_s0 + $0x5d0] ss:$8 sps:$4 sm:$0xff]   ;;  %v7487_v42 = vld [vmem:[%s12960_s0 + $0x624] ss:$8 sps:$4 sm:$0xff]  }
 0x19e   :  { %v8312_v58 = vpop.f32.mrb[70].mxu0  ;;  %2459 = vmatmul.mubr.bf16.gmra.mrb[116].mxu1 %v7465_v26 }
 0x19f   :  { %13504 = vst [vmem:[#allocation39_spill] sm:$0xff] %v8312_v58  ;;  %v3289_v62 = vadd.f32 %v3288_v32, %v3034_v52  ;;  %v2773_v1 = vadd.f32 %v2772_v50, %v8312_v58  ;;  %v3035_v6 = vmul.f32 %v8312_v58, %v8312_v58  ;;  %v1857_v9 = vpop.f32.mrb[71].mxu0 }
 0x1a1   :  { %v3290_v10 = vadd.f32 %v3289_v62, %v3035_v6  ;;  %2067 = vmatmul.mubr.bf16.gmra.mrb[176].mxu0 %v7366_v55  ;;  %v7469_v6 = vld [vmem:[%s12960_s0 + $0x5e4] ss:$8 sps:$4 sm:$0xff]  }
 0x1a2   :  { %2074 = vmatprep.mubr.bf16.mxu0 %v7370_v61  ;;  %v8346_v61 = vpop.f32.mrb[12].mxu1  ;;  %2466 = vmatprep.mubr.bf16.mxu1 %v7469_v6 }
 0x1a3   :  { %13508 = vst [vmem:[#allocation43_spill] sm:$0xff] %v8346_v61  ;;  %v2254_v62 = vpop.f32.mrb[13].mxu1 }
 0x1a4   :  { %v8327_v20 = vpop.f32.mrb[72].mxu0 }
 0x1a5   :  { %13506 = vst [vmem:[#allocation41_spill] sm:$0xff] %v8327_v20  ;;  %v2774_v28 = vadd.f32 %v2773_v1, %v8327_v20  ;;  %v3036_v30 = vmul.f32 %v8327_v20, %v8327_v20  ;;  %v1862_v32 = vpop.f32.mrb[73].mxu0  ;;  %v8348_v1 = vpop.f32.mrb[14].mxu1  ;;  %v7484_v20 = vld [vmem:[%s12960_s0 + $0x614] ss:$8 sps:$4 sm:$0xff]  }
 0x1a6   :  { %v8338_v41 = vpop.f32.mrb[74].mxu0  ;;  %v7382_v32 = vld [vmem:[%s12960_s0 + $0x2f4] ss:$8 sps:$4 sm:$0xff]   ;;  %2467 = vmatmul.mubr.bf16.gmra.mrb[120].mxu1 %v7471_v14 }
 0x1a7   :  { %13507 = vst [vmem:[#allocation42_spill] sm:$0xff] %v8338_v41  ;;  %v3291_v47 = vadd.f32 %v3290_v10, %v3036_v30  ;;  %v2775_v50 = vadd.f32 %v2774_v28, %v8338_v41  ;;  %v3037_v52 = vmul.f32 %v8338_v41, %v8338_v41  ;;  %v1865_v54 = vpop.f32.mrb[75].mxu0  ;;  %v2257_v10 = vpop.f32.mrb[15].mxu1  ;;  %v7378_v28 = vld [vmem:[%s12960_s0 + $0x2e0] ss:$8 sps:$4 sm:$0xff]  }
 0x1a8   :  { %v8372_v54 = vpop.f32.mrb[16].mxu1  ;;  %v7475_v10 = vld [vmem:[%s12960_s0 + $0x5f4] ss:$8 sps:$4 sm:$0xff]  }
 0x1a9   :  { %v3292_v55 = vadd.f32 %v3291_v47, %v3037_v52  ;;  %2075 = vmatmul.mubr.bf16.gmra.mrb[180].mxu0 %v7372_v36  ;;  %v2262_v62 = vpop.f32.mrb[17].mxu1  ;;  %2474 = vmatprep.mubr.bf16.mxu1 %v7475_v10 }
 0x1aa   :  { %2082 = vmatprep.mubr.bf16.mxu0 %v7376_v46  ;;  %v8374_v6 = vpop.f32.mrb[18].mxu1 }
 0x1ab   :  { %13511 = vst [vmem:[#allocation46_spill] sm:$0xff] %v8374_v6 }
 0x1ac   :  { %v8353_v9 = vpop.f32.mrb[76].mxu0 }
 0x1ad   :  { %13509 = vst [vmem:[#allocation44_spill] sm:$0xff] %v8353_v9  ;;  %v2776_v18 = vadd.f32 %v2775_v50, %v8353_v9  ;;  %v3038_v24 = vmul.f32 %v8353_v9, %v8353_v9  ;;  %v1870_v26 = vpop.f32.mrb[77].mxu0  ;;  %v7481_v9 = vld [vmem:[%s12960_s0 + $0x604] ss:$8 sps:$4 sm:$0xff]  }
 0x1ae   :  { %v8364_v30 = vpop.f32.mrb[78].mxu0 }
 0x1af   :  { %13510 = vst [vmem:[#allocation45_spill] sm:$0xff] %v8364_v30  ;;  %v3293_v36 = vadd.f32 %v3292_v55, %v3038_v24  ;;  %v2777_v46 = vadd.f32 %v2776_v18, %v8364_v30  ;;  %v3039_v47 = vmul.f32 %v8364_v30, %v8364_v30  ;;  %v1873_v50 = vpop.f32.mrb[79].mxu0  ;;  %v2265_v55 = vpop.f32.mrb[19].mxu1  ;;  %v7477_v18 = vld [vmem:[%s12960_s0 + $0x5f0] ss:$8 sps:$4 sm:$0xff]  }
 0x1b0   :  { %2475 = vmatmul.mubr.bf16.gmra.mrb[124].mxu1 %v7477_v18 }
 0x1b1   :  { %v3294_v52 = vadd.f32 %v3293_v36, %v3039_v47  ;;  %2083 = vmatmul.mubr.bf16.gmra.mrb[184].mxu0 %v7378_v28  ;;  %v7388_v47 = vld [vmem:[%s12960_s0 + $0x304] ss:$8 sps:$4 sm:$0xff]   ;;  %2482 = vmatprep.mubr.bf16.mxu1 %v7481_v9 }
 0x1b2   :  { %2090 = vmatprep.mubr.bf16.mxu0 %v7382_v32  ;;  %v7384_v32 = vld [vmem:[%s12960_s0 + $0x2f0] ss:$8 sps:$4 sm:$0xff]  }
 0x1b4   :  { %v8379_v14 = vpop.f32.mrb[80].mxu0 }
 0x1b5   :  { %13512 = vst [vmem:[#allocation47_spill] sm:$0xff] %v8379_v14  ;;  %v2778_v24 = vadd.f32 %v2777_v46, %v8379_v14  ;;  %v3040_v26 = vmul.f32 %v8379_v14, %v8379_v14  ;;  %v1878_v28 = vpop.f32.mrb[81].mxu0  ;;  %v8398_v14 = vpop.f32.mrb[20].mxu1 }
 0x1b6   :  { %v8390_v36 = vpop.f32.mrb[82].mxu0  ;;  %13514 = vst [vmem:[#allocation49_spill] sm:$0xff] %v8398_v14  ;;  %v2270_v10 = vpop.f32.mrb[21].mxu1 }
 0x1b7   :  { %13513 = vst [vmem:[#allocation48_spill] sm:$0xff] %v8390_v36  ;;  %v3295_v50 = vadd.f32 %v3294_v52, %v3040_v26  ;;  %v2779_v62 = vadd.f32 %v2778_v24, %v8390_v36  ;;  %v3041_v46 = vmul.f32 %v8390_v36, %v8390_v36  ;;  %v1881_v55 = vpop.f32.mrb[83].mxu0  ;;  %v8400_v30 = vpop.f32.mrb[22].mxu1  ;;  %v7483_v24 = vld [vmem:[%s12960_s0 + $0x600] ss:$8 sps:$4 sm:$0xff]  }
 0x1b8   :  { %v2273_v52 = vpop.f32.mrb[23].mxu1  ;;  %v7394_v55 = vld [vmem:[%s12960_s0 + $0x314] ss:$8 sps:$4 sm:$0xff]   ;;  %2483 = vmatmul.mubr.bf16.gmra.mrb[128].mxu1 %v7483_v24 }
 0x1b9   :  { %v3296_v28 = vadd.f32 %v3295_v50, %v3041_v46  ;;  %2091 = vmatmul.mubr.bf16.gmra.mrb[188].mxu0 %v7384_v32  ;;  %v7390_v50 = vld [vmem:[%s12960_s0 + $0x300] ss:$8 sps:$4 sm:$0xff]   ;;  %v8424_v36 = vpop.f32.mrb[24].mxu1  ;;  %2490 = vmatprep.mubr.bf16.mxu1 %v7484_v20 }
 0x1ba   :  { %2098 = vmatprep.mubr.bf16.mxu0 %v7388_v47  ;;  %v2278_v9 = vpop.f32.mrb[25].mxu1 }
 0x1bb   :  { %v8426_v41 = vpop.f32.mrb[26].mxu1 }
 0x1bc   :  { %v8405_v18 = vpop.f32.mrb[84].mxu0  ;;  %13517 = vst [vmem:[#allocation52_spill] sm:$0xff] %v8426_v41 }
 0x1bd   :  { %13515 = vst [vmem:[#allocation50_spill] sm:$0xff] %v8405_v18  ;;  %v2780_v26 = vadd.f32 %v2779_v62, %v8405_v18  ;;  %v3042_v32 = vmul.f32 %v8405_v18, %v8405_v18  ;;  %v1886_v47 = vpop.f32.mrb[85].mxu0 }
 0x1be   :  { %v8416_v46 = vpop.f32.mrb[86].mxu0 }
 0x1bf   :  { %13516 = vst [vmem:[#allocation51_spill] sm:$0xff] %v8416_v46  ;;  %v3297_v10 = vadd.f32 %v3296_v28, %v3042_v32  ;;  %v2781_v52 = vadd.f32 %v2780_v26, %v8416_v46  ;;  %v3043_v62 = vmul.f32 %v8416_v46, %v8416_v46  ;;  %v1889_v18 = vpop.f32.mrb[87].mxu0  ;;  %v2281_v28 = vpop.f32.mrb[27].mxu1  ;;  %v7486_v26 = vld [vmem:[%s12960_s0 + $0x610] ss:$8 sps:$4 sm:$0xff]  }
 0x1c0   :  { %2491 = vmatmul.mubr.bf16.gmra.mrb[132].mxu1 %v7486_v26  ;;  %v8450_v46 = vpop.f32.mrb[28].mxu1 }
 0x1c1   :  { %v3298_v47 = vadd.f32 %v3297_v10, %v3043_v62  ;;  %2099 = vmatmul.mubr.bf16.gmra.mrb[192].mxu0 %v7390_v50  ;;  %v7400_v62 = vld [vmem:[%s12960_s0 + $0x324] ss:$8 sps:$4 sm:$0xff]   ;;  %13520 = vst [vmem:[#allocation55_spill] sm:$0xff] %v8450_v46  ;;  %v2286_v20 = vpop.f32.mrb[29].mxu1  ;;  %2498 = vmatprep.mubr.bf16.mxu1 %v7487_v42 }
 0x1c2   :  { %2106 = vmatprep.mubr.bf16.mxu0 %v7394_v55  ;;  %v7396_v55 = vld [vmem:[%s12960_s0 + $0x310] ss:$8 sps:$4 sm:$0xff]   ;;  %v8452_v58 = vpop.f32.mrb[30].mxu1 }
 0x1c4   :  { %v8431_v24 = vpop.f32.mrb[88].mxu0 }
 0x1c5   :  { %13518 = vst [vmem:[#allocation53_spill] sm:$0xff] %v8431_v24  ;;  %v2782_v18 = vadd.f32 %v2781_v52, %v8431_v24  ;;  %v3044_v32 = vmul.f32 %v8431_v24, %v8431_v24  ;;  %v1894_v50 = vpop.f32.mrb[89].mxu0 }
 0x1c6   :  { %v8442_v10 = vpop.f32.mrb[90].mxu0 }
 0x1c7   :  { %13519 = vst [vmem:[#allocation54_spill] sm:$0xff] %v8442_v10  ;;  %v3299_v9 = vadd.f32 %v3298_v47, %v3044_v32  ;;  %v2783_v28 = vadd.f32 %v2782_v18, %v8442_v10  ;;  %v3045_v52 = vmul.f32 %v8442_v10, %v8442_v10  ;;  %v1897_v24 = vpop.f32.mrb[91].mxu0  ;;  %v2289_v47 = vpop.f32.mrb[31].mxu1  ;;  %v7489_v18 = vld [vmem:[%s12960_s0 + $0x620] ss:$8 sps:$4 sm:$0xff]  }
 0x1c8   :  { %2499 = vmatmul.mubr.bf16.gmra.mrb[136].mxu1 %v7489_v18  ;;  %v8476_v10 = vpop.f32.mrb[32].mxu1 }
 0x1c9   :  { %v3300_v50 = vadd.f32 %v3299_v9, %v3045_v52  ;;  %2107 = vmatmul.mubr.bf16.gmra.mrb[196].mxu0 %v7396_v55  ;;  %v7406_v52 = vld [vmem:[%s12960_s0 + $0x334] ss:$8 sps:$4 sm:$0xff]   ;;  %v2294_v42 = vpop.f32.mrb[33].mxu1  ;;  %2506 = vmatprep.mubr.bf16.mxu1 %v7490_v8 }
 0x1ca   :  { %2114 = vmatprep.mubr.bf16.mxu0 %v7400_v62  ;;  %v7402_v62 = vld [vmem:[%s12960_s0 + $0x320] ss:$8 sps:$4 sm:$0xff]   ;;  %v8478_v19 = vpop.f32.mrb[34].mxu1 }
 0x1cb   :  { %13523 = vst [vmem:[#allocation58_spill] sm:$0xff] %v8478_v19 }
 0x1cc   :  { %v8457_v26 = vpop.f32.mrb[92].mxu0 }
 0x1cd   :  { %13521 = vst [vmem:[#allocation56_spill] sm:$0xff] %v8457_v26  ;;  %v2784_v24 = vadd.f32 %v2783_v28, %v8457_v26  ;;  %v3046_v32 = vmul.f32 %v8457_v26, %v8457_v26  ;;  %v1902_v55 = vpop.f32.mrb[93].mxu0 }
 0x1ce   :  { %v8468_v9 = vpop.f32.mrb[94].mxu0 }
 0x1cf   :  { %13522 = vst [vmem:[#allocation57_spill] sm:$0xff] %v8468_v9  ;;  %v3301_v20 = vadd.f32 %v3300_v50, %v3046_v32  ;;  %v2785_v47 = vadd.f32 %v2784_v24, %v8468_v9  ;;  %v3047_v28 = vmul.f32 %v8468_v9, %v8468_v9  ;;  %v1905_v26 = vpop.f32.mrb[95].mxu0  ;;  %v2297_v50 = vpop.f32.mrb[35].mxu1  ;;  %v7492_v24 = vld [vmem:[%s12960_s0 + $0x630] ss:$8 sps:$4 sm:$0xff]  }
 0x1d0   :  { %2507 = vmatmul.mubr.bf16.gmra.mrb[140].mxu1 %v7492_v24  ;;  %v8502_v9 = vpop.f32.mrb[36].mxu1 }
 0x1d1   :  { %v3302_v55 = vadd.f32 %v3301_v20, %v3047_v28  ;;  %2115 = vmatmul.mubr.bf16.gmra.mrb[200].mxu0 %v7402_v62  ;;  %v7412_v28 = vld [vmem:[%s12960_s0 + $0x344] ss:$8 sps:$4 sm:$0xff]   ;;  %13526 = vst [vmem:[#allocation61_spill] sm:$0xff] %v8502_v9  ;;  %v2302_v8 = vpop.f32.mrb[37].mxu1  ;;  %2514 = vmatprep.mubr.bf16.mxu1 %v7493_v39 }
 0x1d2   :  { %2122 = vmatprep.mubr.bf16.mxu0 %v7406_v52  ;;  %v7408_v52 = vld [vmem:[%s12960_s0 + $0x330] ss:$8 sps:$4 sm:$0xff]   ;;  %v8504_v51 = vpop.f32.mrb[38].mxu1 }
 0x1d4   :  { %v8483_v18 = vpop.f32.mrb[96].mxu0 }
 0x1d5   :  { %13524 = vst [vmem:[#allocation59_spill] sm:$0xff] %v8483_v18  ;;  %v2786_v26 = vadd.f32 %v2785_v47, %v8483_v18  ;;  %v3048_v32 = vmul.f32 %v8483_v18, %v8483_v18  ;;  %v1910_v62 = vpop.f32.mrb[97].mxu0 }
 0x1d6   :  { %v8494_v20 = vpop.f32.mrb[98].mxu0 }
 0x1d7   :  { %13525 = vst [vmem:[#allocation60_spill] sm:$0xff] %v8494_v20  ;;  %v3303_v42 = vadd.f32 %v3302_v55, %v3048_v32  ;;  %v2787_v50 = vadd.f32 %v2786_v26, %v8494_v20  ;;  %v3049_v47 = vmul.f32 %v8494_v20, %v8494_v20  ;;  %v1913_v18 = vpop.f32.mrb[99].mxu0  ;;  %v2305_v55 = vpop.f32.mrb[39].mxu1  ;;  %v7495_v26 = vld [vmem:[%s12960_s0 + $0x640] ss:$8 sps:$4 sm:$0xff]  }
 0x1d8   :  { %2515 = vmatmul.mubr.bf16.gmra.mrb[144].mxu1 %v7495_v26  ;;  %v8528_v20 = vpop.f32.mrb[40].mxu1 }
 0x1d9   :  { %v3304_v62 = vadd.f32 %v3303_v42, %v3049_v47  ;;  %2123 = vmatmul.mubr.bf16.gmra.mrb[204].mxu0 %v7408_v52  ;;  %v7418_v47 = vld [vmem:[%s12960_s0 + $0x354] ss:$8 sps:$4 sm:$0xff]   ;;  %v2310_v39 = vpop.f32.mrb[41].mxu1  ;;  %2522 = vmatprep.mubr.bf16.mxu1 %v7496_v16 }
 0x1da   :  { %2130 = vmatprep.mubr.bf16.mxu0 %v7412_v28  ;;  %v7414_v28 = vld [vmem:[%s12960_s0 + $0x340] ss:$8 sps:$4 sm:$0xff]   ;;  %v8530_v25 = vpop.f32.mrb[42].mxu1 }
 0x1db   :  { %13529 = vst [vmem:[#allocation64_spill] sm:$0xff] %v8530_v25 }
 0x1dc   :  { %v8509_v24 = vpop.f32.mrb[100].mxu0 }
 0x1dd   :  { %13527 = vst [vmem:[#allocation62_spill] sm:$0xff] %v8509_v24  ;;  %v2788_v18 = vadd.f32 %v2787_v50, %v8509_v24  ;;  %v3050_v32 = vmul.f32 %v8509_v24, %v8509_v24  ;;  %v1918_v52 = vpop.f32.mrb[101].mxu0 }
 0x1de   :  { %v8520_v42 = vpop.f32.mrb[102].mxu0 }
 0x1df   :  { %13528 = vst [vmem:[#allocation63_spill] sm:$0xff] %v8520_v42  ;;  %v3305_v8 = vadd.f32 %v3304_v62, %v3050_v32  ;;  %v2789_v55 = vadd.f32 %v2788_v18, %v8520_v42  ;;  %v3051_v50 = vmul.f32 %v8520_v42, %v8520_v42  ;;  %v1921_v24 = vpop.f32.mrb[103].mxu0  ;;  %v2313_v62 = vpop.f32.mrb[43].mxu1  ;;  %v7498_v18 = vld [vmem:[%s12960_s0 + $0x650] ss:$8 sps:$4 sm:$0xff]  }
 0x1e0   :  { %2523 = vmatmul.mubr.bf16.gmra.mrb[148].mxu1 %v7498_v18  ;;  %v8554_v42 = vpop.f32.mrb[44].mxu1 }
 0x1e1   :  { %v3306_v52 = vadd.f32 %v3305_v8, %v3051_v50  ;;  %2131 = vmatmul.mubr.bf16.gmra.mrb[208].mxu0 %v7414_v28  ;;  %v7424_v50 = vld [vmem:[%s12960_s0 + $0x364] ss:$8 sps:$4 sm:$0xff]   ;;  %13532 = vst [vmem:[#allocation67_spill] sm:$0xff] %v8554_v42  ;;  %v2318_v16 = vpop.f32.mrb[45].mxu1  ;;  %2530 = vmatprep.mubr.bf16.mxu1 %v7499_v56 }
 0x1e2   :  { %2138 = vmatprep.mubr.bf16.mxu0 %v7418_v47  ;;  %v7420_v47 = vld [vmem:[%s12960_s0 + $0x350] ss:$8 sps:$4 sm:$0xff]   ;;  %v8556_v2 = vpop.f32.mrb[46].mxu1 }
 0x1e4   :  { %v8535_v26 = vpop.f32.mrb[104].mxu0 }
 0x1e5   :  { %13530 = vst [vmem:[#allocation65_spill] sm:$0xff] %v8535_v26  ;;  %v2790_v24 = vadd.f32 %v2789_v55, %v8535_v26  ;;  %v3052_v32 = vmul.f32 %v8535_v26, %v8535_v26  ;;  %v1926_v28 = vpop.f32.mrb[105].mxu0 }
 0x1e6   :  { %v8546_v8 = vpop.f32.mrb[106].mxu0 }
 0x1e7   :  { %13531 = vst [vmem:[#allocation66_spill] sm:$0xff] %v8546_v8  ;;  %v3307_v39 = vadd.f32 %v3306_v52, %v3052_v32  ;;  %v2791_v62 = vadd.f32 %v2790_v24, %v8546_v8  ;;  %v3053_v55 = vmul.f32 %v8546_v8, %v8546_v8  ;;  %v1929_v26 = vpop.f32.mrb[107].mxu0  ;;  %v2321_v52 = vpop.f32.mrb[47].mxu1  ;;  %v7501_v24 = vld [vmem:[%s12960_s0 + $0x660] ss:$8 sps:$4 sm:$0xff]  }
 0x1e8   :  { %2531 = vmatmul.mubr.bf16.gmra.mrb[152].mxu1 %v7501_v24  ;;  %v8580_v8 = vpop.f32.mrb[48].mxu1 }
 0x1e9   :  { %v3308_v28 = vadd.f32 %v3307_v39, %v3053_v55  ;;  %2139 = vmatmul.mubr.bf16.gmra.mrb[212].mxu0 %v7420_v47  ;;  %v7430_v55 = vld [vmem:[%s12960_s0 + $0x374] ss:$8 sps:$4 sm:$0xff]   ;;  %13535 = vst [vmem:[#allocation70_spill] sm:$0xff] %v8580_v8  ;;  %v2326_v56 = vpop.f32.mrb[49].mxu1  ;;  %2538 = vmatprep.mubr.bf16.mxu1 %v7502_v34 }
 0x1ea   :  { %2146 = vmatprep.mubr.bf16.mxu0 %v7424_v50  ;;  %v7426_v50 = vld [vmem:[%s12960_s0 + $0x360] ss:$8 sps:$4 sm:$0xff]   ;;  %v8582_v45 = vpop.f32.mrb[50].mxu1 }
 0x1eb   :  { %13536 = vst [vmem:[#allocation71_spill] sm:$0xff] %v8582_v45 }
 0x1ec   :  { %v8561_v18 = vpop.f32.mrb[108].mxu0 }
 0x1ed   :  { %13533 = vst [vmem:[#allocation68_spill] sm:$0xff] %v8561_v18  ;;  %v2792_v26 = vadd.f32 %v2791_v62, %v8561_v18  ;;  %v3054_v32 = vmul.f32 %v8561_v18, %v8561_v18  ;;  %v1934_v47 = vpop.f32.mrb[109].mxu0 }
 0x1ee   :  { %v8572_v39 = vpop.f32.mrb[110].mxu0 }
 0x1ef   :  { %13534 = vst [vmem:[#allocation69_spill] sm:$0xff] %v8572_v39  ;;  %v3309_v16 = vadd.f32 %v3308_v28, %v3054_v32  ;;  %v2793_v52 = vadd.f32 %v2792_v26, %v8572_v39  ;;  %v3055_v62 = vmul.f32 %v8572_v39, %v8572_v39  ;;  %v1937_v18 = vpop.f32.mrb[111].mxu0  ;;  %v2329_v28 = vpop.f32.mrb[51].mxu1  ;;  %v7504_v26 = vld [vmem:[%s12960_s0 + $0x670] ss:$8 sps:$4 sm:$0xff]  }
 0x1f0   :  { %2539 = vmatmul.mubr.bf16.gmra.mrb[156].mxu1 %v7504_v26  ;;  %v8606_v39 = vpop.f32.mrb[52].mxu1 }
 0x1f1   :  { %v3310_v47 = vadd.f32 %v3309_v16, %v3055_v62  ;;  %2147 = vmatmul.mubr.bf16.gmra.mrb[216].mxu0 %v7426_v50  ;;  %v7436_v62 = vld [vmem:[%s12960_s0 + $0x384] ss:$8 sps:$4 sm:$0xff]   ;;  %13539 = vst [vmem:[#allocation74_spill] sm:$0xff] %v8606_v39  ;;  %v2334_v34 = vpop.f32.mrb[53].mxu1  ;;  %2546 = vmatprep.mubr.bf16.mxu1 %v7505_v15 }
 0x1f2   :  { %2154 = vmatprep.mubr.bf16.mxu0 %v7430_v55  ;;  %v7432_v55 = vld [vmem:[%s12960_s0 + $0x370] ss:$8 sps:$4 sm:$0xff]   ;;  %v8608_v23 = vpop.f32.mrb[54].mxu1 }
 0x1f3   :  { %13540 = vst [vmem:[#allocation75_spill] sm:$0xff] %v8608_v23 }
 0x1f4   :  { %v8587_v24 = vpop.f32.mrb[112].mxu0 }
 0x1f5   :  { %13537 = vst [vmem:[#allocation72_spill] sm:$0xff] %v8587_v24  ;;  %v2794_v18 = vadd.f32 %v2793_v52, %v8587_v24  ;;  %v3056_v32 = vmul.f32 %v8587_v24, %v8587_v24  ;;  %v1942_v50 = vpop.f32.mrb[113].mxu0 }
 0x1f6   :  { %v8598_v16 = vpop.f32.mrb[114].mxu0 }
 0x1f7   :  { %13538 = vst [vmem:[#allocation73_spill] sm:$0xff] %v8598_v16  ;;  %v3311_v56 = vadd.f32 %v3310_v47, %v3056_v32  ;;  %v2795_v28 = vadd.f32 %v2794_v18, %v8598_v16  ;;  %v3057_v52 = vmul.f32 %v8598_v16, %v8598_v16  ;;  %v1945_v24 = vpop.f32.mrb[115].mxu0  ;;  %v2337_v47 = vpop.f32.mrb[55].mxu1  ;;  %v7507_v18 = vld [vmem:[%s12960_s0 + $0x680] ss:$8 sps:$4 sm:$0xff]  }
 0x1f8   :  { %2547 = vmatmul.mubr.bf16.gmra.mrb[160].mxu1 %v7507_v18  ;;  %v8632_v16 = vpop.f32.mrb[56].mxu1 }
 0x1f9   :  { %v3312_v50 = vadd.f32 %v3311_v56, %v3057_v52  ;;  %2155 = vmatmul.mubr.bf16.gmra.mrb[220].mxu0 %v7432_v55  ;;  %v7442_v52 = vld [vmem:[%s12960_s0 + $0x394] ss:$8 sps:$4 sm:$0xff]   ;;  %13543 = vst [vmem:[#allocation78_spill] sm:$0xff] %v8632_v16  ;;  %v2342_v15 = vpop.f32.mrb[57].mxu1  ;;  %2554 = vmatprep.mubr.bf16.mxu1 %v7508_v59 }
 0x1fa   :  { %2162 = vmatprep.mubr.bf16.mxu0 %v7436_v62  ;;  %v7438_v62 = vld [vmem:[%s12960_s0 + $0x380] ss:$8 sps:$4 sm:$0xff]   ;;  %v8634_v3 = vpop.f32.mrb[58].mxu1 }
 0x1fb   :  { %13544 = vst [vmem:[#allocation79_spill] sm:$0xff] %v8634_v3 }
 0x1fc   :  { %v8613_v26 = vpop.f32.mrb[116].mxu0 }
 0x1fd   :  { %13541 = vst [vmem:[#allocation76_spill] sm:$0xff] %v8613_v26  ;;  %v2796_v24 = vadd.f32 %v2795_v28, %v8613_v26  ;;  %v3058_v32 = vmul.f32 %v8613_v26, %v8613_v26  ;;  %v1950_v55 = vpop.f32.mrb[117].mxu0 }
 0x1fe   :  { %v8624_v56 = vpop.f32.mrb[118].mxu0 }
 0x1ff   :  { %13542 = vst [vmem:[#allocation77_spill] sm:$0xff] %v8624_v56  ;;  %v3313_v34 = vadd.f32 %v3312_v50, %v3058_v32  ;;  %v2797_v47 = vadd.f32 %v2796_v24, %v8624_v56  ;;  %v3059_v28 = vmul.f32 %v8624_v56, %v8624_v56  ;;  %v1953_v26 = vpop.f32.mrb[119].mxu0  ;;  %v2345_v50 = vpop.f32.mrb[59].mxu1  ;;  %v7510_v24 = vld [vmem:[%s12960_s0 + $0x690] ss:$8 sps:$4 sm:$0xff]  }
 0x200   :  { %2555 = vmatmul.mubr.bf16.gmra.mrb[164].mxu1 %v7510_v24  ;;  %v8658_v56 = vpop.f32.mrb[60].mxu1 }
 0x201   :  { %v3314_v55 = vadd.f32 %v3313_v34, %v3059_v28  ;;  %2163 = vmatmul.mubr.bf16.gmra.mrb[224].mxu0 %v7438_v62  ;;  %v7448_v28 = vld [vmem:[%s12960_s0 + $0x3a4] ss:$8 sps:$4 sm:$0xff]   ;;  %13547 = vst [vmem:[#allocation82_spill] sm:$0xff] %v8658_v56  ;;  %v2350_v59 = vpop.f32.mrb[61].mxu1  ;;  %2562 = vmatprep.mubr.bf16.mxu1 %v7511_v40 }
 0x202   :  { %2170 = vmatprep.mubr.bf16.mxu0 %v7442_v52  ;;  %v7444_v52 = vld [vmem:[%s12960_s0 + $0x390] ss:$8 sps:$4 sm:$0xff]   ;;  %v8660_v48 = vpop.f32.mrb[62].mxu1 }
 0x203   :  { %13548 = vst [vmem:[#allocation83_spill] sm:$0xff] %v8660_v48 }
 0x204   :  { %v8639_v18 = vpop.f32.mrb[120].mxu0 }
 0x205   :  { %13545 = vst [vmem:[#allocation80_spill] sm:$0xff] %v8639_v18  ;;  %v2798_v26 = vadd.f32 %v2797_v47, %v8639_v18  ;;  %v3060_v32 = vmul.f32 %v8639_v18, %v8639_v18  ;;  %v1958_v62 = vpop.f32.mrb[121].mxu0 }
 0x206   :  { %v8650_v34 = vpop.f32.mrb[122].mxu0 }
 0x207   :  { %13546 = vst [vmem:[#allocation81_spill] sm:$0xff] %v8650_v34  ;;  %v3315_v15 = vadd.f32 %v3314_v55, %v3060_v32  ;;  %v2799_v50 = vadd.f32 %v2798_v26, %v8650_v34  ;;  %v3061_v47 = vmul.f32 %v8650_v34, %v8650_v34  ;;  %v1961_v18 = vpop.f32.mrb[123].mxu0  ;;  %v2353_v55 = vpop.f32.mrb[63].mxu1  ;;  %v7513_v26 = vld [vmem:[%s12960_s0 + $0x6a0] ss:$8 sps:$4 sm:$0xff]  }
 0x208   :  { %2563 = vmatmul.mubr.bf16.gmra.mrb[168].mxu1 %v7513_v26  ;;  %v8684_v34 = vpop.f32.mrb[64].mxu1 }
 0x209   :  { %v3316_v62 = vadd.f32 %v3315_v15, %v3061_v47  ;;  %2171 = vmatmul.mubr.bf16.gmra.mrb[228].mxu0 %v7444_v52  ;;  %v7454_v47 = vld [vmem:[%s12960_s0 + $0x3b4] ss:$8 sps:$4 sm:$0xff]   ;;  %13551 = vst [vmem:[#allocation86_spill] sm:$0xff] %v8684_v34  ;;  %v2358_v40 = vpop.f32.mrb[65].mxu1  ;;  %2570 = vmatprep.mubr.bf16.mxu1 %v7514_v22 }
 0x20a   :  { %2178 = vmatprep.mubr.bf16.mxu0 %v7448_v28  ;;  %v7450_v28 = vld [vmem:[%s12960_s0 + $0x3a0] ss:$8 sps:$4 sm:$0xff]   ;;  %v8686_v29 = vpop.f32.mrb[66].mxu1 }
 0x20b   :  { %13552 = vst [vmem:[#allocation87_spill] sm:$0xff] %v8686_v29 }
 0x20c   :  { %v8665_v24 = vpop.f32.mrb[124].mxu0 }
 0x20d   :  { %13549 = vst [vmem:[#allocation84_spill] sm:$0xff] %v8665_v24  ;;  %v2800_v18 = vadd.f32 %v2799_v50, %v8665_v24  ;;  %v3062_v32 = vmul.f32 %v8665_v24, %v8665_v24  ;;  %v1966_v52 = vpop.f32.mrb[125].mxu0 }
 0x20e   :  { %v8676_v15 = vpop.f32.mrb[126].mxu0 }
 0x20f   :  { %13550 = vst [vmem:[#allocation85_spill] sm:$0xff] %v8676_v15  ;;  %v3317_v59 = vadd.f32 %v3316_v62, %v3062_v32  ;;  %v2801_v55 = vadd.f32 %v2800_v18, %v8676_v15  ;;  %v3063_v50 = vmul.f32 %v8676_v15, %v8676_v15  ;;  %v1969_v24 = vpop.f32.mrb[127].mxu0  ;;  %v2361_v62 = vpop.f32.mrb[67].mxu1  ;;  %v7516_v18 = vld [vmem:[%s12960_s0 + $0x6b0] ss:$8 sps:$4 sm:$0xff]  }
 0x210   :  { %2571 = vmatmul.mubr.bf16.gmra.mrb[172].mxu1 %v7516_v18  ;;  %v8710_v15 = vpop.f32.mrb[68].mxu1 }
 0x211   :  { %v3318_v52 = vadd.f32 %v3317_v59, %v3063_v50  ;;  %2179 = vmatmul.mubr.bf16.gmra.mrb[232].mxu0 %v7450_v28  ;;  %v7460_v50 = vld [vmem:[%s12960_s0 + $0x3c4] ss:$8 sps:$4 sm:$0xff]   ;;  %13555 = vst [vmem:[#allocation90_spill] sm:$0xff] %v8710_v15  ;;  %v2366_v22 = vpop.f32.mrb[69].mxu1  ;;  %2578 = vmatprep.mubr.bf16.mxu1 %v7517_v5 }
 0x212   :  { %2186 = vmatprep.mubr.bf16.mxu0 %v7454_v47  ;;  %v7456_v47 = vld [vmem:[%s12960_s0 + $0x3b0] ss:$8 sps:$4 sm:$0xff]   ;;  %v8712_v12 = vpop.f32.mrb[70].mxu1 }
 0x213   :  { %13556 = vst [vmem:[#allocation91_spill] sm:$0xff] %v8712_v12 }
 0x214   :  { %v8691_v26 = vpop.f32.mrb[128].mxu0 }
 0x215   :  { %13553 = vst [vmem:[#allocation88_spill] sm:$0xff] %v8691_v26  ;;  %v2802_v24 = vadd.f32 %v2801_v55, %v8691_v26  ;;  %v3064_v32 = vmul.f32 %v8691_v26, %v8691_v26  ;;  %v1974_v28 = vpop.f32.mrb[129].mxu0 }
 0x216   :  { %v8702_v59 = vpop.f32.mrb[130].mxu0 }
 0x217   :  { %13554 = vst [vmem:[#allocation89_spill] sm:$0xff] %v8702_v59  ;;  %v3319_v40 = vadd.f32 %v3318_v52, %v3064_v32  ;;  %v2803_v62 = vadd.f32 %v2802_v24, %v8702_v59  ;;  %v3065_v55 = vmul.f32 %v8702_v59, %v8702_v59  ;;  %v1977_v26 = vpop.f32.mrb[131].mxu0  ;;  %v2369_v52 = vpop.f32.mrb[71].mxu1  ;;  %v7519_v24 = vld [vmem:[%s12960_s0 + $0x6c0] ss:$8 sps:$4 sm:$0xff]  }
 0x218   :  { %2579 = vmatmul.mubr.bf16.gmra.mrb[176].mxu1 %v7519_v24  ;;  %v8736_v59 = vpop.f32.mrb[72].mxu1 }
 0x219   :  { %v3320_v28 = vadd.f32 %v3319_v40, %v3065_v55  ;;  %2187 = vmatmul.mubr.bf16.gmra.mrb[236].mxu0 %v7456_v47  ;;  %v7466_v55 = vld [vmem:[%s12960_s0 + $0x3d4] ss:$8 sps:$4 sm:$0xff]   ;;  %13559 = vst [vmem:[#allocation94_spill] sm:$0xff] %v8736_v59  ;;  %v2374_v5 = vpop.f32.mrb[73].mxu1  ;;  %2586 = vmatprep.mubr.bf16.mxu1 %v7520_v53 }
 0x21a   :  { %2194 = vmatprep.mubr.bf16.mxu0 %v7460_v50  ;;  %v7462_v50 = vld [vmem:[%s12960_s0 + $0x3c0] ss:$8 sps:$4 sm:$0xff]   ;;  %v8738_v60 = vpop.f32.mrb[74].mxu1 }
 0x21b   :  { %13560 = vst [vmem:[#allocation95_spill] sm:$0xff] %v8738_v60 }
 0x21c   :  { %v8717_v18 = vpop.f32.mrb[132].mxu0 }
 0x21d   :  { %13557 = vst [vmem:[#allocation92_spill] sm:$0xff] %v8717_v18  ;;  %v2804_v26 = vadd.f32 %v2803_v62, %v8717_v18  ;;  %v3066_v32 = vmul.f32 %v8717_v18, %v8717_v18  ;;  %v1982_v47 = vpop.f32.mrb[133].mxu0 }
 0x21e   :  { %v8728_v40 = vpop.f32.mrb[134].mxu0 }
 0x21f   :  { %13558 = vst [vmem:[#allocation93_spill] sm:$0xff] %v8728_v40  ;;  %v3321_v22 = vadd.f32 %v3320_v28, %v3066_v32  ;;  %v2805_v52 = vadd.f32 %v2804_v26, %v8728_v40  ;;  %v3067_v62 = vmul.f32 %v8728_v40, %v8728_v40  ;;  %v1985_v18 = vpop.f32.mrb[135].mxu0  ;;  %v2377_v28 = vpop.f32.mrb[75].mxu1  ;;  %v7522_v26 = vld [vmem:[%s12960_s0 + $0x6d0] ss:$8 sps:$4 sm:$0xff]  }
 0x220   :  { %2587 = vmatmul.mubr.bf16.gmra.mrb[180].mxu1 %v7522_v26  ;;  %v8762_v40 = vpop.f32.mrb[76].mxu1 }
 0x221   :  { %v3322_v47 = vadd.f32 %v3321_v22, %v3067_v62  ;;  %2195 = vmatmul.mubr.bf16.gmra.mrb[240].mxu0 %v7462_v50  ;;  %v7472_v62 = vld [vmem:[%s12960_s0 + $0x3e4] ss:$8 sps:$4 sm:$0xff]   ;;  %13563 = vst [vmem:[#allocation98_spill] sm:$0xff] %v8762_v40  ;;  %v2382_v53 = vpop.f32.mrb[77].mxu1  ;;  %2594 = vmatprep.mubr.bf16.mxu1 %v7523_v37 }
 0x222   :  { %2202 = vmatprep.mubr.bf16.mxu0 %v7466_v55  ;;  %v7468_v55 = vld [vmem:[%s12960_s0 + $0x3d0] ss:$8 sps:$4 sm:$0xff]   ;;  %v8764_v44 = vpop.f32.mrb[78].mxu1 }
 0x223   :  { %13564 = vst [vmem:[#allocation99_spill] sm:$0xff] %v8764_v44 }
 0x224   :  { %v8743_v24 = vpop.f32.mrb[136].mxu0 }
 0x225   :  { %13561 = vst [vmem:[#allocation96_spill] sm:$0xff] %v8743_v24  ;;  %v2806_v18 = vadd.f32 %v2805_v52, %v8743_v24  ;;  %v3068_v32 = vmul.f32 %v8743_v24, %v8743_v24  ;;  %v1990_v50 = vpop.f32.mrb[137].mxu0 }
 0x226   :  { %v8754_v22 = vpop.f32.mrb[138].mxu0 }
 0x227   :  { %13562 = vst [vmem:[#allocation97_spill] sm:$0xff] %v8754_v22  ;;  %v3323_v5 = vadd.f32 %v3322_v47, %v3068_v32  ;;  %v2807_v28 = vadd.f32 %v2806_v18, %v8754_v22  ;;  %v3069_v52 = vmul.f32 %v8754_v22, %v8754_v22  ;;  %v1993_v24 = vpop.f32.mrb[139].mxu0  ;;  %v2385_v47 = vpop.f32.mrb[79].mxu1  ;;  %v7525_v18 = vld [vmem:[%s12960_s0 + $0x6e0] ss:$8 sps:$4 sm:$0xff]  }
 0x228   :  { %2595 = vmatmul.mubr.bf16.gmra.mrb[184].mxu1 %v7525_v18  ;;  %v8788_v22 = vpop.f32.mrb[80].mxu1 }
 0x229   :  { %v3324_v50 = vadd.f32 %v3323_v5, %v3069_v52  ;;  %2203 = vmatmul.mubr.bf16.gmra.mrb[244].mxu0 %v7468_v55  ;;  %v7478_v52 = vld [vmem:[%s12960_s0 + $0x3f4] ss:$8 sps:$4 sm:$0xff]   ;;  %13567 = vst [vmem:[#allocation102_spill] sm:$0xff] %v8788_v22  ;;  %v2390_v37 = vpop.f32.mrb[81].mxu1  ;;  %2602 = vmatprep.mubr.bf16.mxu1 %v7526_v21  ;;  %v7529_v21 = vld [vmem:[%s12960_s0 + $0x704] ss:$8 sps:$4 sm:$0xff]  }
 0x22a   :  { %2210 = vmatprep.mubr.bf16.mxu0 %v7472_v62  ;;  %v7474_v62 = vld [vmem:[%s12960_s0 + $0x3e0] ss:$8 sps:$4 sm:$0xff]   ;;  %v8790_v27 = vpop.f32.mrb[82].mxu1 }
 0x22b   :  { %13568 = vst [vmem:[#allocation103_spill] sm:$0xff] %v8790_v27 }
 0x22c   :  { %v8769_v26 = vpop.f32.mrb[140].mxu0 }
 0x22d   :  { %13565 = vst [vmem:[#allocation100_spill] sm:$0xff] %v8769_v26  ;;  %v2808_v24 = vadd.f32 %v2807_v28, %v8769_v26  ;;  %v3070_v32 = vmul.f32 %v8769_v26, %v8769_v26  ;;  %v1998_v55 = vpop.f32.mrb[141].mxu0 }
 0x22e   :  { %v8780_v5 = vpop.f32.mrb[142].mxu0 }
 0x22f   :  { %13566 = vst [vmem:[#allocation101_spill] sm:$0xff] %v8780_v5  ;;  %v3325_v53 = vadd.f32 %v3324_v50, %v3070_v32  ;;  %v2809_v47 = vadd.f32 %v2808_v24, %v8780_v5  ;;  %v3071_v28 = vmul.f32 %v8780_v5, %v8780_v5  ;;  %v2001_v26 = vpop.f32.mrb[143].mxu0  ;;  %v2393_v50 = vpop.f32.mrb[83].mxu1  ;;  %v7528_v24 = vld [vmem:[%s12960_s0 + $0x6f0] ss:$8 sps:$4 sm:$0xff]  }
 0x230   :  { %2603 = vmatmul.mubr.bf16.gmra.mrb[188].mxu1 %v7528_v24  ;;  %v8811_v13 = vpop.f32.mrb[84].mxu1  ;;  %v7531_v24 = vld [vmem:[%s12960_s0 + $0x700] ss:$8 sps:$4 sm:$0xff]  }
 0x231   :  { %v3326_v55 = vadd.f32 %v3325_v53, %v3071_v28  ;;  %2211 = vmatmul.mubr.bf16.gmra.mrb[248].mxu0 %v7474_v62  ;;  %13571 = vst [vmem:[#allocation106_spill] sm:$0xff] %v8811_v13  ;;  %2610 = vmatprep.mubr.bf16.mxu1 %v7529_v21  ;;  %v7532_v21 = vld [vmem:[%s12960_s0 + $0x714] ss:$8 sps:$4 sm:$0xff]  }
 0x232   :  { %2218 = vmatprep.mubr.bf16.mxu0 %v7478_v52  ;;  %v7480_v52 = vld [vmem:[%s12960_s0 + $0x3f0] ss:$8 sps:$4 sm:$0xff]  }
 0x234   :  { %v8795_v18 = vpop.f32.mrb[144].mxu0 }
 0x235   :  { %13569 = vst [vmem:[#allocation104_spill] sm:$0xff] %v8795_v18  ;;  %v2810_v26 = vadd.f32 %v2809_v47, %v8795_v18  ;;  %v3072_v32 = vmul.f32 %v8795_v18, %v8795_v18  ;;  %v2006_v62 = vpop.f32.mrb[145].mxu0 }
 0x236   :  { %v8806_v53 = vpop.f32.mrb[146].mxu0  ;;  %v2398_v62 = vpop.f32.mrb[85].mxu1 }
 0x237   :  { %13570 = vst [vmem:[#allocation105_spill] sm:$0xff] %v8806_v53  ;;  %v3327_v28 = vadd.f32 %v3326_v55, %v3072_v32  ;;  %v2811_v37 = vadd.f32 %v2810_v26, %v8806_v53  ;;  %v3073_v50 = vmul.f32 %v8806_v53, %v8806_v53  ;;  %v2009_v5 = vpop.f32.mrb[147].mxu0  ;;  %v8813_v18 = vpop.f32.mrb[86].mxu1 }
 0x238   :  { %13572 = vst [vmem:[#allocation107_spill] sm:$0xff] %v8813_v18  ;;  %v2401_v55 = vpop.f32.mrb[87].mxu1  ;;  %2611 = vmatmul.mubr.bf16.gmra.mrb[192].mxu1 %v7531_v24 }
 0x239   :  { %v3328_v47 = vadd.f32 %v3327_v28, %v3073_v50  ;;  %2219 = vmatmul.mubr.bf16.gmra.mrb[252].mxu0 %v7480_v52  ;;  %v8831_v63 = vpop.f32.mrb[88].mxu1  ;;  %2618 = vmatprep.mubr.bf16.mxu1 %v7532_v21  ;;  %v7535_v21 = vld [vmem:[%s12960_s0 + $0x724] ss:$8 sps:$4 sm:$0xff]  }
 0x23a   :  { %13575 = vst [vmem:[#allocation110_spill] sm:$0xff] %v8831_v63  ;;  %v2406_v57 = vpop.f32.mrb[89].mxu1 }
 0x23c   :  { %v8818_v7 = vpop.f32.mrb[148].mxu0 }
 0x23d   :  { %13573 = vst [vmem:[#allocation108_spill] sm:$0xff] %v8818_v7  ;;  %v2812_v5 = vadd.f32 %v2811_v37, %v8818_v7  ;;  %v3074_v26 = vmul.f32 %v8818_v7, %v8818_v7  ;;  %v2014_v32 = vpop.f32.mrb[149].mxu0  ;;  %v8833_v37 = vpop.f32.mrb[90].mxu1 }
 0x23e   :  { %v8826_v52 = vpop.f32.mrb[150].mxu0  ;;  %13576 = vst [vmem:[#allocation111_spill] sm:$0xff] %v8833_v37  ;;  %v2409_v24 = vpop.f32.mrb[91].mxu1 }
 0x23f   :  { %13574 = vst [vmem:[#allocation109_spill] sm:$0xff] %v8826_v52  ;;  %v3329_v28 = vadd.f32 %v3328_v47, %v3074_v26  ;;  %v2813_v50 = vadd.f32 %v2812_v5, %v8826_v52  ;;  %v3075_v62 = vmul.f32 %v8826_v52, %v8826_v52  ;;  %v2017_v55 = vpop.f32.mrb[151].mxu0  ;;  %v7534_v47 = vld [vmem:[%s12960_s0 + $0x710] ss:$8 sps:$4 sm:$0xff]   ;;  %v8851_v49 = vpop.f32.mrb[92].mxu1 }
 0x240   :  { %2619 = vmatmul.mubr.bf16.gmra.mrb[196].mxu1 %v7534_v47  ;;  %13579 = vst [vmem:[#allocation114_spill] sm:$0xff] %v8851_v49  ;;  %v2414_v43 = vpop.f32.mrb[93].mxu1 }
 0x241   :  { %v3330_v53 = vadd.f32 %v3329_v28, %v3075_v62  ;;  %2626 = vmatprep.mubr.bf16.mxu1 %v7535_v21  ;;  %v7538_v21 = vld [vmem:[%s12960_s0 + $0x734] ss:$8 sps:$4 sm:$0xff]  }
 0x244   :  { %v8838_v32 = vpop.f32.mrb[152].mxu0 }
 0x245   :  { %13577 = vst [vmem:[#allocation112_spill] sm:$0xff] %v8838_v32  ;;  %v2814_v5 = vadd.f32 %v2813_v50, %v8838_v32  ;;  %v3076_v26 = vmul.f32 %v8838_v32, %v8838_v32  ;;  %v2022_v28 = vpop.f32.mrb[153].mxu0  ;;  %v8853_v50 = vpop.f32.mrb[94].mxu1 }
 0x246   :  { %v8846_v57 = vpop.f32.mrb[154].mxu0  ;;  %13580 = vst [vmem:[#allocation115_spill] sm:$0xff] %v8853_v50  ;;  %v2417_v47 = vpop.f32.mrb[95].mxu1 }
 0x247   :  { %13578 = vst [vmem:[#allocation113_spill] sm:$0xff] %v8846_v57  ;;  %v3331_v62 = vadd.f32 %v3330_v53, %v3076_v26  ;;  %v2815_v55 = vadd.f32 %v2814_v5, %v8846_v57  ;;  %v3077_v24 = vmul.f32 %v8846_v57, %v8846_v57  ;;  %v2025_v52 = vpop.f32.mrb[155].mxu0  ;;  %v7537_v53 = vld [vmem:[%s12960_s0 + $0x720] ss:$8 sps:$4 sm:$0xff]   ;;  %v8871_v35 = vpop.f32.mrb[96].mxu1 }
 0x248   :  { %2627 = vmatmul.mubr.bf16.gmra.mrb[200].mxu1 %v7537_v53  ;;  %13583 = vst [vmem:[#allocation118_spill] sm:$0xff] %v8871_v35  ;;  %v2422_v31 = vpop.f32.mrb[97].mxu1 }
 0x249   :  { %v3332_v7 = vadd.f32 %v3331_v62, %v3077_v24  ;;  %2634 = vmatprep.mubr.bf16.mxu1 %v7538_v21  ;;  %v7541_v21 = vld [vmem:[%s12960_s0 + $0x744] ss:$8 sps:$4 sm:$0xff]  }
 0x24c   :  { %v8858_v28 = vpop.f32.mrb[156].mxu0 }
 0x24d   :  { %13581 = vst [vmem:[#allocation116_spill] sm:$0xff] %v8858_v28  ;;  %v2816_v5 = vadd.f32 %v2815_v55, %v8858_v28  ;;  %v3078_v52 = vmul.f32 %v8858_v28, %v8858_v28  ;;  %v2030_v26 = vpop.f32.mrb[157].mxu0  ;;  %v8873_v55 = vpop.f32.mrb[98].mxu1 }
 0x24e   :  { %v8866_v43 = vpop.f32.mrb[158].mxu0  ;;  %13584 = vst [vmem:[#allocation119_spill] sm:$0xff] %v8873_v55  ;;  %v2425_v53 = vpop.f32.mrb[99].mxu1 }
 0x24f   :  { %13582 = vst [vmem:[#allocation117_spill] sm:$0xff] %v8866_v43  ;;  %v3333_v62 = vadd.f32 %v3332_v7, %v3078_v52  ;;  %v2817_v24 = vadd.f32 %v2816_v5, %v8866_v43  ;;  %v3079_v47 = vmul.f32 %v8866_v43, %v8866_v43  ;;  %v2033_v57 = vpop.f32.mrb[159].mxu0  ;;  %v7540_v7 = vld [vmem:[%s12960_s0 + $0x730] ss:$8 sps:$4 sm:$0xff]   ;;  %v8891_v55 = vpop.f32.mrb[100].mxu1 }
 0x250   :  { %2635 = vmatmul.mubr.bf16.gmra.mrb[204].mxu1 %v7540_v7  ;;  %13587 = vst [vmem:[#allocation122_spill] sm:$0xff] %v8891_v55  ;;  %v2430_v35 = vpop.f32.mrb[101].mxu1 }
 0x251   :  { %v3334_v32 = vadd.f32 %v3333_v62, %v3079_v47  ;;  %2642 = vmatprep.mubr.bf16.mxu1 %v7541_v21  ;;  %v7544_v21 = vld [vmem:[%s12960_s0 + $0x754] ss:$8 sps:$4 sm:$0xff]  }
 0x254   :  { %v8878_v26 = vpop.f32.mrb[160].mxu0 }
 0x255   :  { %13585 = vst [vmem:[#allocation120_spill] sm:$0xff] %v8878_v26  ;;  %v2818_v5 = vadd.f32 %v2817_v24, %v8878_v26  ;;  %v3080_v57 = vmul.f32 %v8878_v26, %v8878_v26  ;;  %v2038_v52 = vpop.f32.mrb[161].mxu0  ;;  %v8893_v24 = vpop.f32.mrb[102].mxu1 }
 0x256   :  { %v8886_v31 = vpop.f32.mrb[162].mxu0  ;;  %13588 = vst [vmem:[#allocation123_spill] sm:$0xff] %v8893_v24  ;;  %v2433_v7 = vpop.f32.mrb[103].mxu1 }
 0x257   :  { %13586 = vst [vmem:[#allocation121_spill] sm:$0xff] %v8886_v31  ;;  %v3335_v62 = vadd.f32 %v3334_v32, %v3080_v57  ;;  %v2819_v47 = vadd.f32 %v2818_v5, %v8886_v31  ;;  %v3081_v53 = vmul.f32 %v8886_v31, %v8886_v31  ;;  %v2041_v43 = vpop.f32.mrb[163].mxu0  ;;  %v7543_v32 = vld [vmem:[%s12960_s0 + $0x740] ss:$8 sps:$4 sm:$0xff]   ;;  %v8911_v24 = vpop.f32.mrb[104].mxu1 }
 0x258   :  { %2643 = vmatmul.mubr.bf16.gmra.mrb[208].mxu1 %v7543_v32  ;;  %13591 = vst [vmem:[#allocation126_spill] sm:$0xff] %v8911_v24  ;;  %v2438_v55 = vpop.f32.mrb[105].mxu1 }
 0x259   :  { %v3336_v28 = vadd.f32 %v3335_v62, %v3081_v53  ;;  %2650 = vmatprep.mubr.bf16.mxu1 %v7544_v21  ;;  %v7547_v21 = vld [vmem:[%s12960_s0 + $0x764] ss:$8 sps:$4 sm:$0xff]  }
 0x25c   :  { %v8898_v52 = vpop.f32.mrb[164].mxu0 }
 0x25d   :  { %13589 = vst [vmem:[#allocation124_spill] sm:$0xff] %v8898_v52  ;;  %v2820_v5 = vadd.f32 %v2819_v47, %v8898_v52  ;;  %v3082_v43 = vmul.f32 %v8898_v52, %v8898_v52  ;;  %v2046_v57 = vpop.f32.mrb[165].mxu0  ;;  %v8913_v47 = vpop.f32.mrb[106].mxu1 }
 0x25e   :  { %v8906_v35 = vpop.f32.mrb[166].mxu0  ;;  %13592 = vst [vmem:[#allocation127_spill] sm:$0xff] %v8913_v47  ;;  %v2441_v32 = vpop.f32.mrb[107].mxu1 }
 0x25f   :  { %13590 = vst [vmem:[#allocation125_spill] sm:$0xff] %v8906_v35  ;;  %v3337_v62 = vadd.f32 %v3336_v28, %v3082_v43  ;;  %v2821_v53 = vadd.f32 %v2820_v5, %v8906_v35  ;;  %v3083_v7 = vmul.f32 %v8906_v35, %v8906_v35  ;;  %v2049_v31 = vpop.f32.mrb[167].mxu0  ;;  %v7546_v28 = vld [vmem:[%s12960_s0 + $0x750] ss:$8 sps:$4 sm:$0xff]   ;;  %v8931_v47 = vpop.f32.mrb[108].mxu1 }
 0x260   :  { %2651 = vmatmul.mubr.bf16.gmra.mrb[212].mxu1 %v7546_v28  ;;  %13595 = vst [vmem:[#allocation130_spill] sm:$0xff] %v8931_v47  ;;  %v2446_v24 = vpop.f32.mrb[109].mxu1 }
 0x261   :  { %v3338_v26 = vadd.f32 %v3337_v62, %v3083_v7  ;;  %2658 = vmatprep.mubr.bf16.mxu1 %v7547_v21  ;;  %v7550_v21 = vld [vmem:[%s12960_s0 + $0x774] ss:$8 sps:$4 sm:$0xff]  }
 0x264   :  { %v8918_v57 = vpop.f32.mrb[168].mxu0 }
 0x265   :  { %13593 = vst [vmem:[#allocation128_spill] sm:$0xff] %v8918_v57  ;;  %v2822_v5 = vadd.f32 %v2821_v53, %v8918_v57  ;;  %v3084_v31 = vmul.f32 %v8918_v57, %v8918_v57  ;;  %v2054_v43 = vpop.f32.mrb[169].mxu0  ;;  %v8933_v53 = vpop.f32.mrb[110].mxu1 }
 0x266   :  { %v8926_v55 = vpop.f32.mrb[170].mxu0  ;;  %13596 = vst [vmem:[#allocation131_spill] sm:$0xff] %v8933_v53  ;;  %v2449_v28 = vpop.f32.mrb[111].mxu1 }
 0x267   :  { %13594 = vst [vmem:[#allocation129_spill] sm:$0xff] %v8926_v55  ;;  %v3339_v62 = vadd.f32 %v3338_v26, %v3084_v31  ;;  %v2823_v7 = vadd.f32 %v2822_v5, %v8926_v55  ;;  %v3085_v32 = vmul.f32 %v8926_v55, %v8926_v55  ;;  %v2057_v35 = vpop.f32.mrb[171].mxu0  ;;  %v7549_v26 = vld [vmem:[%s12960_s0 + $0x760] ss:$8 sps:$4 sm:$0xff]   ;;  %v8951_v53 = vpop.f32.mrb[112].mxu1 }
 0x268   :  { %2659 = vmatmul.mubr.bf16.gmra.mrb[216].mxu1 %v7549_v26  ;;  %13599 = vst [vmem:[#allocation134_spill] sm:$0xff] %v8951_v53  ;;  %v2454_v47 = vpop.f32.mrb[113].mxu1 }
 0x269   :  { %v3340_v52 = vadd.f32 %v3339_v62, %v3085_v32  ;;  %2666 = vmatprep.mubr.bf16.mxu1 %v7550_v21  ;;  %v7553_v21 = vld [vmem:[%s12960_s0 + $0x784] ss:$8 sps:$4 sm:$0xff]  }
 0x26c   :  { %v8938_v43 = vpop.f32.mrb[172].mxu0 }
 0x26d   :  { %13597 = vst [vmem:[#allocation132_spill] sm:$0xff] %v8938_v43  ;;  %v2824_v5 = vadd.f32 %v2823_v7, %v8938_v43  ;;  %v3086_v35 = vmul.f32 %v8938_v43, %v8938_v43  ;;  %v2062_v31 = vpop.f32.mrb[173].mxu0  ;;  %v8953_v7 = vpop.f32.mrb[114].mxu1 }
 0x26e   :  { %v8946_v24 = vpop.f32.mrb[174].mxu0  ;;  %13600 = vst [vmem:[#allocation135_spill] sm:$0xff] %v8953_v7  ;;  %v2457_v26 = vpop.f32.mrb[115].mxu1 }
 0x26f   :  { %13598 = vst [vmem:[#allocation133_spill] sm:$0xff] %v8946_v24  ;;  %v3341_v62 = vadd.f32 %v3340_v52, %v3086_v35  ;;  %v2825_v32 = vadd.f32 %v2824_v5, %v8946_v24  ;;  %v3087_v28 = vmul.f32 %v8946_v24, %v8946_v24  ;;  %v2065_v55 = vpop.f32.mrb[175].mxu0  ;;  %v7552_v52 = vld [vmem:[%s12960_s0 + $0x770] ss:$8 sps:$4 sm:$0xff]  }
 0x270   :  { %2667 = vmatmul.mubr.bf16.gmra.mrb[220].mxu1 %v7552_v52 }
 0x271   :  { %v3342_v57 = vadd.f32 %v3341_v62, %v3087_v28  ;;  %v8971_v7 = vpop.f32.mrb[116].mxu1  ;;  %2674 = vmatprep.mubr.bf16.mxu1 %v7553_v21  ;;  %v7556_v21 = vld [vmem:[%s12960_s0 + $0x794] ss:$8 sps:$4 sm:$0xff]  }
 0x272   :  { %13603 = vst [vmem:[#allocation138_spill] sm:$0xff] %v8971_v7  ;;  %v2462_v53 = vpop.f32.mrb[117].mxu1 }
 0x274   :  { %v8958_v31 = vpop.f32.mrb[176].mxu0 }
 0x275   :  { %13601 = vst [vmem:[#allocation136_spill] sm:$0xff] %v8958_v31  ;;  %v2826_v5 = vadd.f32 %v2825_v32, %v8958_v31  ;;  %v3088_v55 = vmul.f32 %v8958_v31, %v8958_v31  ;;  %v2070_v35 = vpop.f32.mrb[177].mxu0  ;;  %v8973_v32 = vpop.f32.mrb[118].mxu1 }
 0x276   :  { %v8966_v47 = vpop.f32.mrb[178].mxu0  ;;  %13604 = vst [vmem:[#allocation139_spill] sm:$0xff] %v8973_v32  ;;  %v2465_v52 = vpop.f32.mrb[119].mxu1 }
 0x277   :  { %13602 = vst [vmem:[#allocation137_spill] sm:$0xff] %v8966_v47  ;;  %v3343_v62 = vadd.f32 %v3342_v57, %v3088_v55  ;;  %v2827_v28 = vadd.f32 %v2826_v5, %v8966_v47  ;;  %v3089_v26 = vmul.f32 %v8966_v47, %v8966_v47  ;;  %v2073_v24 = vpop.f32.mrb[179].mxu0  ;;  %v7555_v57 = vld [vmem:[%s12960_s0 + $0x780] ss:$8 sps:$4 sm:$0xff]  }
 0x278   :  { %2675 = vmatmul.mubr.bf16.gmra.mrb[224].mxu1 %v7555_v57 }
 0x279   :  { %v3344_v43 = vadd.f32 %v3343_v62, %v3089_v26  ;;  %v8991_v32 = vpop.f32.mrb[120].mxu1  ;;  %2682 = vmatprep.mubr.bf16.mxu1 %v7556_v21  ;;  %v7559_v21 = vld [vmem:[%s12960_s0 + $0x7a4] ss:$8 sps:$4 sm:$0xff]  }
 0x27a   :  { %13607 = vst [vmem:[#allocation142_spill] sm:$0xff] %v8991_v32  ;;  %v2470_v7 = vpop.f32.mrb[121].mxu1 }
 0x27c   :  { %v8978_v35 = vpop.f32.mrb[180].mxu0 }
 0x27d   :  { %13605 = vst [vmem:[#allocation140_spill] sm:$0xff] %v8978_v35  ;;  %v2828_v5 = vadd.f32 %v2827_v28, %v8978_v35  ;;  %v3090_v24 = vmul.f32 %v8978_v35, %v8978_v35  ;;  %v2078_v55 = vpop.f32.mrb[181].mxu0  ;;  %v8993_v28 = vpop.f32.mrb[122].mxu1 }
 0x27e   :  { %v8986_v53 = vpop.f32.mrb[182].mxu0  ;;  %13608 = vst [vmem:[#allocation143_spill] sm:$0xff] %v8993_v28  ;;  %v2473_v57 = vpop.f32.mrb[123].mxu1 }
 0x27f   :  { %13606 = vst [vmem:[#allocation141_spill] sm:$0xff] %v8986_v53  ;;  %v3345_v62 = vadd.f32 %v3344_v43, %v3090_v24  ;;  %v2829_v26 = vadd.f32 %v2828_v5, %v8986_v53  ;;  %v3091_v52 = vmul.f32 %v8986_v53, %v8986_v53  ;;  %v2081_v47 = vpop.f32.mrb[183].mxu0  ;;  %v7558_v43 = vld [vmem:[%s12960_s0 + $0x790] ss:$8 sps:$4 sm:$0xff]  }
 0x280   :  { %2683 = vmatmul.mubr.bf16.gmra.mrb[228].mxu1 %v7558_v43 }
 0x281   :  { %v3346_v31 = vadd.f32 %v3345_v62, %v3091_v52  ;;  %2690 = vmatprep.mubr.bf16.mxu1 %v7559_v21  ;;  %v7562_v21 = vld [vmem:[%s12960_s0 + $0x7b4] ss:$8 sps:$4 sm:$0xff]  }
 0x283   :  { %v9011_v28 = vpop.f32.mrb[124].mxu1 }
 0x284   :  { %v8998_v55 = vpop.f32.mrb[184].mxu0  ;;  %13611 = vst [vmem:[#allocation146_spill] sm:$0xff] %v9011_v28  ;;  %v2478_v32 = vpop.f32.mrb[125].mxu1 }
 0x285   :  { %13609 = vst [vmem:[#allocation144_spill] sm:$0xff] %v8998_v55  ;;  %v2830_v5 = vadd.f32 %v2829_v26, %v8998_v55  ;;  %v3092_v47 = vmul.f32 %v8998_v55, %v8998_v55  ;;  %v2086_v24 = vpop.f32.mrb[185].mxu0  ;;  %v9013_v26 = vpop.f32.mrb[126].mxu1 }
 0x286   :  { %v9006_v7 = vpop.f32.mrb[186].mxu0  ;;  %13612 = vst [vmem:[#allocation147_spill] sm:$0xff] %v9013_v26  ;;  %v2481_v43 = vpop.f32.mrb[127].mxu1 }
 0x287   :  { %13610 = vst [vmem:[#allocation145_spill] sm:$0xff] %v9006_v7  ;;  %v3347_v62 = vadd.f32 %v3346_v31, %v3092_v47  ;;  %v2831_v52 = vadd.f32 %v2830_v5, %v9006_v7  ;;  %v3093_v57 = vmul.f32 %v9006_v7, %v9006_v7  ;;  %v2089_v53 = vpop.f32.mrb[187].mxu0  ;;  %v7561_v31 = vld [vmem:[%s12960_s0 + $0x7a0] ss:$8 sps:$4 sm:$0xff]  }
 0x288   :  { %2691 = vmatmul.mubr.bf16.gmra.mrb[232].mxu1 %v7561_v31 }
 0x289   :  { %v3348_v35 = vadd.f32 %v3347_v62, %v3093_v57  ;;  %2698 = vmatprep.mubr.bf16.mxu1 %v7562_v21  ;;  %v7565_v21 = vld [vmem:[%s12960_s0 + $0x7c4] ss:$8 sps:$4 sm:$0xff]  }
 0x28b   :  { %v9031_v26 = vpop.f32.mrb[128].mxu1 }
 0x28c   :  { %v9018_v24 = vpop.f32.mrb[188].mxu0  ;;  %13615 = vst [vmem:[#allocation150_spill] sm:$0xff] %v9031_v26  ;;  %v2486_v28 = vpop.f32.mrb[129].mxu1 }
 0x28d   :  { %13613 = vst [vmem:[#allocation148_spill] sm:$0xff] %v9018_v24  ;;  %v2832_v5 = vadd.f32 %v2831_v52, %v9018_v24  ;;  %v3094_v53 = vmul.f32 %v9018_v24, %v9018_v24  ;;  %v2094_v47 = vpop.f32.mrb[189].mxu0  ;;  %v9033_v52 = vpop.f32.mrb[130].mxu1 }
 0x28e   :  { %v9026_v32 = vpop.f32.mrb[190].mxu0  ;;  %13616 = vst [vmem:[#allocation151_spill] sm:$0xff] %v9033_v52  ;;  %v2489_v31 = vpop.f32.mrb[131].mxu1 }
 0x28f   :  { %13614 = vst [vmem:[#allocation149_spill] sm:$0xff] %v9026_v32  ;;  %v3349_v62 = vadd.f32 %v3348_v35, %v3094_v53  ;;  %v2833_v57 = vadd.f32 %v2832_v5, %v9026_v32  ;;  %v3095_v43 = vmul.f32 %v9026_v32, %v9026_v32  ;;  %v2097_v7 = vpop.f32.mrb[191].mxu0  ;;  %v7564_v35 = vld [vmem:[%s12960_s0 + $0x7b0] ss:$8 sps:$4 sm:$0xff]  }
 0x290   :  { %2699 = vmatmul.mubr.bf16.gmra.mrb[236].mxu1 %v7564_v35 }
 0x291   :  { %v3350_v55 = vadd.f32 %v3349_v62, %v3095_v43  ;;  %2706 = vmatprep.mubr.bf16.mxu1 %v7565_v21  ;;  %v7568_v21 = vld [vmem:[%s12960_s0 + $0x7d4] ss:$8 sps:$4 sm:$0xff]  }
 0x293   :  { %v9051_v52 = vpop.f32.mrb[132].mxu1 }
 0x294   :  { %v9038_v47 = vpop.f32.mrb[192].mxu0  ;;  %13619 = vst [vmem:[#allocation154_spill] sm:$0xff] %v9051_v52  ;;  %v2494_v26 = vpop.f32.mrb[133].mxu1 }
 0x295   :  { %13617 = vst [vmem:[#allocation152_spill] sm:$0xff] %v9038_v47  ;;  %v2834_v5 = vadd.f32 %v2833_v57, %v9038_v47  ;;  %v3096_v7 = vmul.f32 %v9038_v47, %v9038_v47  ;;  %v2102_v53 = vpop.f32.mrb[193].mxu0  ;;  %v9053_v57 = vpop.f32.mrb[134].mxu1 }
 0x296   :  { %v9046_v28 = vpop.f32.mrb[194].mxu0  ;;  %13620 = vst [vmem:[#allocation155_spill] sm:$0xff] %v9053_v57  ;;  %v2497_v35 = vpop.f32.mrb[135].mxu1 }
 0x297   :  { %13618 = vst [vmem:[#allocation153_spill] sm:$0xff] %v9046_v28  ;;  %v3351_v62 = vadd.f32 %v3350_v55, %v3096_v7  ;;  %v2835_v43 = vadd.f32 %v2834_v5, %v9046_v28  ;;  %v3097_v31 = vmul.f32 %v9046_v28, %v9046_v28  ;;  %v2105_v32 = vpop.f32.mrb[195].mxu0  ;;  %v7567_v55 = vld [vmem:[%s12960_s0 + $0x7c0] ss:$8 sps:$4 sm:$0xff]  }
 0x298   :  { %2707 = vmatmul.mubr.bf16.gmra.mrb[240].mxu1 %v7567_v55 }
 0x299   :  { %v3352_v24 = vadd.f32 %v3351_v62, %v3097_v31  ;;  %2714 = vmatprep.mubr.bf16.mxu1 %v7568_v21  ;;  %v7571_v21 = vld [vmem:[%s12960_s0 + $0x7e4] ss:$8 sps:$4 sm:$0xff]  }
 0x29b   :  { %v9071_v57 = vpop.f32.mrb[136].mxu1 }
 0x29c   :  { %v9058_v53 = vpop.f32.mrb[196].mxu0  ;;  %13623 = vst [vmem:[#allocation158_spill] sm:$0xff] %v9071_v57  ;;  %v2502_v52 = vpop.f32.mrb[137].mxu1 }
 0x29d   :  { %13621 = vst [vmem:[#allocation156_spill] sm:$0xff] %v9058_v53  ;;  %v2836_v5 = vadd.f32 %v2835_v43, %v9058_v53  ;;  %v3098_v32 = vmul.f32 %v9058_v53, %v9058_v53  ;;  %v2110_v7 = vpop.f32.mrb[197].mxu0  ;;  %v9073_v43 = vpop.f32.mrb[138].mxu1 }
 0x29e   :  { %v9066_v26 = vpop.f32.mrb[198].mxu0  ;;  %13624 = vst [vmem:[#allocation159_spill] sm:$0xff] %v9073_v43  ;;  %v2505_v55 = vpop.f32.mrb[139].mxu1 }
 0x29f   :  { %13622 = vst [vmem:[#allocation157_spill] sm:$0xff] %v9066_v26  ;;  %v3353_v62 = vadd.f32 %v3352_v24, %v3098_v32  ;;  %v2837_v31 = vadd.f32 %v2836_v5, %v9066_v26  ;;  %v3099_v35 = vmul.f32 %v9066_v26, %v9066_v26  ;;  %v2113_v28 = vpop.f32.mrb[199].mxu0  ;;  %v7570_v24 = vld [vmem:[%s12960_s0 + $0x7d0] ss:$8 sps:$4 sm:$0xff]  }
 0x2a0   :  { %2715 = vmatmul.mubr.bf16.gmra.mrb[244].mxu1 %v7570_v24 }
 0x2a1   :  { %v3354_v47 = vadd.f32 %v3353_v62, %v3099_v35  ;;  %2722 = vmatprep.mubr.bf16.mxu1 %v7571_v21  ;;  %v7574_v21 = vld [vmem:[%s12960_s0 + $0x7f4] ss:$8 sps:$4 sm:$0xff]  }
 0x2a3   :  { %v9091_v43 = vpop.f32.mrb[140].mxu1 }
 0x2a4   :  { %v9078_v7 = vpop.f32.mrb[200].mxu0  ;;  %13627 = vst [vmem:[#allocation162_spill] sm:$0xff] %v9091_v43  ;;  %v2510_v57 = vpop.f32.mrb[141].mxu1 }
 0x2a5   :  { %13625 = vst [vmem:[#allocation160_spill] sm:$0xff] %v9078_v7  ;;  %v2838_v5 = vadd.f32 %v2837_v31, %v9078_v7  ;;  %v3100_v28 = vmul.f32 %v9078_v7, %v9078_v7  ;;  %v2118_v32 = vpop.f32.mrb[201].mxu0  ;;  %v9093_v31 = vpop.f32.mrb[142].mxu1 }
 0x2a6   :  { %v9086_v52 = vpop.f32.mrb[202].mxu0  ;;  %13628 = vst [vmem:[#allocation163_spill] sm:$0xff] %v9093_v31  ;;  %v2513_v24 = vpop.f32.mrb[143].mxu1 }
 0x2a7   :  { %13626 = vst [vmem:[#allocation161_spill] sm:$0xff] %v9086_v52  ;;  %v3355_v62 = vadd.f32 %v3354_v47, %v3100_v28  ;;  %v2839_v35 = vadd.f32 %v2838_v5, %v9086_v52  ;;  %v3101_v55 = vmul.f32 %v9086_v52, %v9086_v52  ;;  %v2121_v26 = vpop.f32.mrb[203].mxu0  ;;  %v7573_v47 = vld [vmem:[%s12960_s0 + $0x7e0] ss:$8 sps:$4 sm:$0xff]  }
 0x2a8   :  { %2723 = vmatmul.mubr.bf16.gmra.mrb[248].mxu1 %v7573_v47 }
 0x2a9   :  { %v3356_v53 = vadd.f32 %v3355_v62, %v3101_v55  ;;  %2730 = vmatprep.mubr.bf16.mxu1 %v7574_v21 }
 0x2ab   :  { %v9111_v31 = vpop.f32.mrb[144].mxu1 }
 0x2ac   :  { %v9098_v32 = vpop.f32.mrb[204].mxu0  ;;  %13631 = vst [vmem:[#allocation166_spill] sm:$0xff] %v9111_v31  ;;  %v2518_v43 = vpop.f32.mrb[145].mxu1 }
 0x2ad   :  { %13629 = vst [vmem:[#allocation164_spill] sm:$0xff] %v9098_v32  ;;  %v2840_v5 = vadd.f32 %v2839_v35, %v9098_v32  ;;  %v3102_v26 = vmul.f32 %v9098_v32, %v9098_v32  ;;  %v2126_v28 = vpop.f32.mrb[205].mxu0  ;;  %v9113_v35 = vpop.f32.mrb[146].mxu1 }
 0x2ae   :  { %v9106_v57 = vpop.f32.mrb[206].mxu0  ;;  %13632 = vst [vmem:[#allocation167_spill] sm:$0xff] %v9113_v35  ;;  %v2521_v47 = vpop.f32.mrb[147].mxu1 }
 0x2af   :  { %13630 = vst [vmem:[#allocation165_spill] sm:$0xff] %v9106_v57  ;;  %v3357_v62 = vadd.f32 %v3356_v53, %v3102_v26  ;;  %v2841_v55 = vadd.f32 %v2840_v5, %v9106_v57  ;;  %v3103_v24 = vmul.f32 %v9106_v57, %v9106_v57  ;;  %v2129_v52 = vpop.f32.mrb[207].mxu0  ;;  %v7576_v53 = vld [vmem:[%s12960_s0 + $0x7f0] ss:$8 sps:$4 sm:$0xff]  }
 0x2b0   :  { %2731 = vmatmul.mubr.bf16.gmra.mrb[252].mxu1 %v7576_v53 }
 0x2b1   :  { %v3358_v7 = vadd.f32 %v3357_v62, %v3103_v24 }
 0x2b3   :  { %v9131_v35 = vpop.f32.mrb[148].mxu1 }
 0x2b4   :  { %v9118_v28 = vpop.f32.mrb[208].mxu0  ;;  %13635 = vst [vmem:[#allocation170_spill] sm:$0xff] %v9131_v35  ;;  %v2526_v31 = vpop.f32.mrb[149].mxu1 }
 0x2b5   :  { %13633 = vst [vmem:[#allocation168_spill] sm:$0xff] %v9118_v28  ;;  %v2842_v5 = vadd.f32 %v2841_v55, %v9118_v28  ;;  %v3104_v52 = vmul.f32 %v9118_v28, %v9118_v28  ;;  %v2134_v26 = vpop.f32.mrb[209].mxu0  ;;  %v9133_v55 = vpop.f32.mrb[150].mxu1 }
 0x2b6   :  { %v9126_v43 = vpop.f32.mrb[210].mxu0  ;;  %13636 = vst [vmem:[#allocation171_spill] sm:$0xff] %v9133_v55  ;;  %v2529_v26 = vpop.f32.mrb[151].mxu1 }
 0x2b7   :  { %13634 = vst [vmem:[#allocation169_spill] sm:$0xff] %v9126_v43  ;;  %v3359_v62 = vadd.f32 %v3358_v7, %v3104_v52  ;;  %v2843_v24 = vadd.f32 %v2842_v5, %v9126_v43  ;;  %v3105_v47 = vmul.f32 %v9126_v43, %v9126_v43  ;;  %v2137_v57 = vpop.f32.mrb[211].mxu0 }
 0x2b9   :  { %v3360_v32 = vadd.f32 %v3359_v62, %v3105_v47 }
 0x2bb   :  { %v9145_v43 = vpop.f32.mrb[152].mxu1 }
 0x2bc   :  { %v9135_v50 = vpop.f32.mrb[212].mxu0  ;;  %13639 = vst [vmem:[#allocation174_spill] sm:$0xff] %v9145_v43  ;;  %v2534_v28 = vpop.f32.mrb[153].mxu1 }
 0x2bd   :  { %13637 = vst [vmem:[#allocation172_spill] sm:$0xff] %v9135_v50  ;;  %v2844_v21 = vadd.f32 %v2843_v24, %v9135_v50  ;;  %v3106_v7 = vmul.f32 %v9135_v50, %v9135_v50  ;;  %v2142_v53 = vpop.f32.mrb[213].mxu0  ;;  %v9147_v26 = vpop.f32.mrb[154].mxu1 }
 0x2be   :  { %v9140_v5 = vpop.f32.mrb[214].mxu0  ;;  %13640 = vst [vmem:[#allocation175_spill] sm:$0xff] %v9147_v26  ;;  %v2537_v55 = vpop.f32.mrb[155].mxu1 }
 0x2bf   :  { %13638 = vst [vmem:[#allocation173_spill] sm:$0xff] %v9140_v5  ;;  %v3361_v52 = vadd.f32 %v3360_v32, %v3106_v7  ;;  %v2845_v57 = vadd.f32 %v2844_v21, %v9140_v5  ;;  %v3107_v62 = vmul.f32 %v9140_v5, %v9140_v5  ;;  %v2145_v31 = vpop.f32.mrb[215].mxu0 }
 0x2c1   :  { %v3362_v47 = vadd.f32 %v3361_v52, %v3107_v62 }
 0x2c3   :  { %v9159_v5 = vpop.f32.mrb[156].mxu1 }
 0x2c4   :  { %v9149_v24 = vpop.f32.mrb[216].mxu0  ;;  %13643 = vst [vmem:[#allocation178_spill] sm:$0xff] %v9159_v5  ;;  %v2542_v26 = vpop.f32.mrb[157].mxu1 }
 0x2c5   :  { %13641 = vst [vmem:[#allocation176_spill] sm:$0xff] %v9149_v24  ;;  %v2846_v53 = vadd.f32 %v2845_v57, %v9149_v24  ;;  %v3108_v32 = vmul.f32 %v9149_v24, %v9149_v24  ;;  %v2150_v7 = vpop.f32.mrb[217].mxu0  ;;  %v9161_v55 = vpop.f32.mrb[158].mxu1 }
 0x2c6   :  { %v9154_v21 = vpop.f32.mrb[218].mxu0  ;;  %13644 = vst [vmem:[#allocation179_spill] sm:$0xff] %v9161_v55  ;;  %v2545_v43 = vpop.f32.mrb[159].mxu1 }
 0x2c7   :  { %13642 = vst [vmem:[#allocation177_spill] sm:$0xff] %v9154_v21  ;;  %v3363_v50 = vadd.f32 %v3362_v47, %v3108_v32  ;;  %v2847_v31 = vadd.f32 %v2846_v53, %v9154_v21  ;;  %v3109_v52 = vmul.f32 %v9154_v21, %v9154_v21  ;;  %v2153_v28 = vpop.f32.mrb[219].mxu0 }
 0x2c9   :  { %v3364_v62 = vadd.f32 %v3363_v50, %v3109_v52 }
 0x2cb   :  { %v9173_v21 = vpop.f32.mrb[160].mxu1 }
 0x2cc   :  { %v9163_v57 = vpop.f32.mrb[220].mxu0  ;;  %13647 = vst [vmem:[#allocation182_spill] sm:$0xff] %v9173_v21  ;;  %v2550_v55 = vpop.f32.mrb[161].mxu1 }
 0x2cd   :  { %13645 = vst [vmem:[#allocation180_spill] sm:$0xff] %v9163_v57  ;;  %v2848_v7 = vadd.f32 %v2847_v31, %v9163_v57  ;;  %v3110_v47 = vmul.f32 %v9163_v57, %v9163_v57  ;;  %v2158_v32 = vpop.f32.mrb[221].mxu0  ;;  %v9175_v43 = vpop.f32.mrb[162].mxu1 }
 0x2ce   :  { %v9168_v53 = vpop.f32.mrb[222].mxu0  ;;  %13648 = vst [vmem:[#allocation183_spill] sm:$0xff] %v9175_v43  ;;  %v2553_v5 = vpop.f32.mrb[163].mxu1 }
 0x2cf   :  { %13646 = vst [vmem:[#allocation181_spill] sm:$0xff] %v9168_v53  ;;  %v3365_v24 = vadd.f32 %v3364_v62, %v3110_v47  ;;  %v2849_v28 = vadd.f32 %v2848_v7, %v9168_v53  ;;  %v3111_v50 = vmul.f32 %v9168_v53, %v9168_v53  ;;  %v2161_v26 = vpop.f32.mrb[223].mxu0 }
 0x2d1   :  { %v3366_v52 = vadd.f32 %v3365_v24, %v3111_v50 }
 0x2d3   :  { %v9187_v53 = vpop.f32.mrb[164].mxu1 }
 0x2d4   :  { %v9177_v31 = vpop.f32.mrb[224].mxu0  ;;  %13651 = vst [vmem:[#allocation186_spill] sm:$0xff] %v9187_v53  ;;  %v2558_v43 = vpop.f32.mrb[165].mxu1 }
 0x2d5   :  { %13649 = vst [vmem:[#allocation184_spill] sm:$0xff] %v9177_v31  ;;  %v2850_v32 = vadd.f32 %v2849_v28, %v9177_v31  ;;  %v3112_v62 = vmul.f32 %v9177_v31, %v9177_v31  ;;  %v2166_v47 = vpop.f32.mrb[225].mxu0  ;;  %v9189_v5 = vpop.f32.mrb[166].mxu1 }
 0x2d6   :  { %v9182_v7 = vpop.f32.mrb[226].mxu0  ;;  %13652 = vst [vmem:[#allocation187_spill] sm:$0xff] %v9189_v5  ;;  %v2561_v21 = vpop.f32.mrb[167].mxu1 }
 0x2d7   :  { %13650 = vst [vmem:[#allocation185_spill] sm:$0xff] %v9182_v7  ;;  %v3367_v57 = vadd.f32 %v3366_v52, %v3112_v62  ;;  %v2851_v26 = vadd.f32 %v2850_v32, %v9182_v7  ;;  %v3113_v24 = vmul.f32 %v9182_v7, %v9182_v7  ;;  %v2169_v55 = vpop.f32.mrb[227].mxu0 }
 0x2d9   :  { %v3368_v50 = vadd.f32 %v3367_v57, %v3113_v24 }
 0x2db   :  { %v9201_v7 = vpop.f32.mrb[168].mxu1 }
 0x2dc   :  { %v9191_v28 = vpop.f32.mrb[228].mxu0  ;;  %13655 = vst [vmem:[#allocation190_spill] sm:$0xff] %v9201_v7  ;;  %v2566_v5 = vpop.f32.mrb[169].mxu1 }
 0x2dd   :  { %13653 = vst [vmem:[#allocation188_spill] sm:$0xff] %v9191_v28  ;;  %v2852_v47 = vadd.f32 %v2851_v26, %v9191_v28  ;;  %v3114_v52 = vmul.f32 %v9191_v28, %v9191_v28  ;;  %v2174_v62 = vpop.f32.mrb[229].mxu0  ;;  %v9203_v21 = vpop.f32.mrb[170].mxu1 }
 0x2de   :  { %v9196_v32 = vpop.f32.mrb[230].mxu0  ;;  %13656 = vst [vmem:[#allocation191_spill] sm:$0xff] %v9203_v21  ;;  %v2569_v53 = vpop.f32.mrb[171].mxu1 }
 0x2df   :  { %13654 = vst [vmem:[#allocation189_spill] sm:$0xff] %v9196_v32  ;;  %v3369_v31 = vadd.f32 %v3368_v50, %v3114_v52  ;;  %v2853_v55 = vadd.f32 %v2852_v47, %v9196_v32  ;;  %v3115_v57 = vmul.f32 %v9196_v32, %v9196_v32  ;;  %v2177_v43 = vpop.f32.mrb[231].mxu0 }
 0x2e1   :  { %v3370_v24 = vadd.f32 %v3369_v31, %v3115_v57 }
 0x2e3   :  { %v9215_v32 = vpop.f32.mrb[172].mxu1 }
 0x2e4   :  { %v9205_v26 = vpop.f32.mrb[232].mxu0  ;;  %13659 = vst [vmem:[#allocation194_spill] sm:$0xff] %v9215_v32  ;;  %v2574_v21 = vpop.f32.mrb[173].mxu1 }
 0x2e5   :  { %13657 = vst [vmem:[#allocation192_spill] sm:$0xff] %v9205_v26  ;;  %v2854_v62 = vadd.f32 %v2853_v55, %v9205_v26  ;;  %v3116_v50 = vmul.f32 %v9205_v26, %v9205_v26  ;;  %v2182_v52 = vpop.f32.mrb[233].mxu0  ;;  %v9217_v53 = vpop.f32.mrb[174].mxu1 }
 0x2e6   :  { %v9210_v47 = vpop.f32.mrb[234].mxu0  ;;  %13660 = vst [vmem:[#allocation195_spill] sm:$0xff] %v9217_v53  ;;  %v2577_v7 = vpop.f32.mrb[175].mxu1 }
 0x2e7   :  { %13658 = vst [vmem:[#allocation193_spill] sm:$0xff] %v9210_v47  ;;  %v3371_v28 = vadd.f32 %v3370_v24, %v3116_v50  ;;  %v2855_v43 = vadd.f32 %v2854_v62, %v9210_v47  ;;  %v3117_v31 = vmul.f32 %v9210_v47, %v9210_v47  ;;  %v2185_v5 = vpop.f32.mrb[235].mxu0 }
 0x2e9   :  { %v3372_v57 = vadd.f32 %v3371_v28, %v3117_v31 }
 0x2eb   :  { %v9229_v47 = vpop.f32.mrb[176].mxu1 }
 0x2ec   :  { %v9219_v55 = vpop.f32.mrb[236].mxu0  ;;  %13663 = vst [vmem:[#allocation198_spill] sm:$0xff] %v9229_v47  ;;  %v2582_v53 = vpop.f32.mrb[177].mxu1 }
 0x2ed   :  { %13661 = vst [vmem:[#allocation196_spill] sm:$0xff] %v9219_v55  ;;  %v2856_v52 = vadd.f32 %v2855_v43, %v9219_v55  ;;  %v3118_v24 = vmul.f32 %v9219_v55, %v9219_v55  ;;  %v2190_v50 = vpop.f32.mrb[237].mxu0  ;;  %v9231_v7 = vpop.f32.mrb[178].mxu1 }
 0x2ee   :  { %v9224_v62 = vpop.f32.mrb[238].mxu0  ;;  %13664 = vst [vmem:[#allocation199_spill] sm:$0xff] %v9231_v7  ;;  %v2585_v32 = vpop.f32.mrb[179].mxu1 }
 0x2ef   :  { %13662 = vst [vmem:[#allocation197_spill] sm:$0xff] %v9224_v62  ;;  %v3373_v26 = vadd.f32 %v3372_v57, %v3118_v24  ;;  %v2857_v5 = vadd.f32 %v2856_v52, %v9224_v62  ;;  %v3119_v28 = vmul.f32 %v9224_v62, %v9224_v62  ;;  %v2193_v21 = vpop.f32.mrb[239].mxu0 }
 0x2f1   :  { %v3374_v31 = vadd.f32 %v3373_v26, %v3119_v28 }
 0x2f3   :  { %v9243_v62 = vpop.f32.mrb[180].mxu1 }
 0x2f4   :  { %v9233_v43 = vpop.f32.mrb[240].mxu0  ;;  %13667 = vst [vmem:[#allocation202_spill] sm:$0xff] %v9243_v62  ;;  %v2590_v7 = vpop.f32.mrb[181].mxu1 }
 0x2f5   :  { %13665 = vst [vmem:[#allocation200_spill] sm:$0xff] %v9233_v43  ;;  %v2858_v50 = vadd.f32 %v2857_v5, %v9233_v43  ;;  %v3120_v57 = vmul.f32 %v9233_v43, %v9233_v43  ;;  %v2198_v24 = vpop.f32.mrb[241].mxu0  ;;  %v9245_v32 = vpop.f32.mrb[182].mxu1 }
 0x2f6   :  { %v9238_v52 = vpop.f32.mrb[242].mxu0  ;;  %13668 = vst [vmem:[#allocation203_spill] sm:$0xff] %v9245_v32  ;;  %v2593_v47 = vpop.f32.mrb[183].mxu1 }
 0x2f7   :  { %13666 = vst [vmem:[#allocation201_spill] sm:$0xff] %v9238_v52  ;;  %v3375_v55 = vadd.f32 %v3374_v31, %v3120_v57  ;;  %v2859_v21 = vadd.f32 %v2858_v50, %v9238_v52  ;;  %v3121_v26 = vmul.f32 %v9238_v52, %v9238_v52  ;;  %v2201_v53 = vpop.f32.mrb[243].mxu0 }
 0x2f9   :  { %v3376_v28 = vadd.f32 %v3375_v55, %v3121_v26 }
 0x2fb   :  { %v9257_v52 = vpop.f32.mrb[184].mxu1 }
 0x2fc   :  { %v9247_v5 = vpop.f32.mrb[244].mxu0  ;;  %13671 = vst [vmem:[#allocation206_spill] sm:$0xff] %v9257_v52  ;;  %v2598_v32 = vpop.f32.mrb[185].mxu1 }
 0x2fd   :  { %13669 = vst [vmem:[#allocation204_spill] sm:$0xff] %v9247_v5  ;;  %v2860_v24 = vadd.f32 %v2859_v21, %v9247_v5  ;;  %v3122_v31 = vmul.f32 %v9247_v5, %v9247_v5  ;;  %v2206_v57 = vpop.f32.mrb[245].mxu0  ;;  %v9259_v47 = vpop.f32.mrb[186].mxu1 }
 0x2fe   :  { %v9252_v50 = vpop.f32.mrb[246].mxu0  ;;  %13672 = vst [vmem:[#allocation207_spill] sm:$0xff] %v9259_v47  ;;  %v2601_v62 = vpop.f32.mrb[187].mxu1 }
 0x2ff   :  { %13670 = vst [vmem:[#allocation205_spill] sm:$0xff] %v9252_v50  ;;  %v3377_v43 = vadd.f32 %v3376_v28, %v3122_v31  ;;  %v2861_v53 = vadd.f32 %v2860_v24, %v9252_v50  ;;  %v3123_v55 = vmul.f32 %v9252_v50, %v9252_v50  ;;  %v2209_v7 = vpop.f32.mrb[247].mxu0 }
 0x301   :  { %v3378_v26 = vadd.f32 %v3377_v43, %v3123_v55 }
 0x303   :  { %v9271_v50 = vpop.f32.mrb[188].mxu1 }
 0x304   :  { %v9261_v21 = vpop.f32.mrb[248].mxu0  ;;  %13675 = vst [vmem:[#allocation210_spill] sm:$0xff] %v9271_v50  ;;  %v2606_v47 = vpop.f32.mrb[189].mxu1 }
 0x305   :  { %13673 = vst [vmem:[#allocation208_spill] sm:$0xff] %v9261_v21  ;;  %v2862_v57 = vadd.f32 %v2861_v53, %v9261_v21  ;;  %v3124_v28 = vmul.f32 %v9261_v21, %v9261_v21  ;;  %v2214_v31 = vpop.f32.mrb[249].mxu0  ;;  %v9273_v62 = vpop.f32.mrb[190].mxu1 }
 0x306   :  { %v9266_v24 = vpop.f32.mrb[250].mxu0  ;;  %13676 = vst [vmem:[#allocation211_spill] sm:$0xff] %v9273_v62  ;;  %v2609_v52 = vpop.f32.mrb[191].mxu1 }
 0x307   :  { %13674 = vst [vmem:[#allocation209_spill] sm:$0xff] %v9266_v24  ;;  %v3379_v5 = vadd.f32 %v3378_v26, %v3124_v28  ;;  %v2863_v7 = vadd.f32 %v2862_v57, %v9266_v24  ;;  %v3125_v43 = vmul.f32 %v9266_v24, %v9266_v24  ;;  %v2217_v32 = vpop.f32.mrb[251].mxu0 }
 0x309   :  { %v3380_v55 = vadd.f32 %v3379_v5, %v3125_v43  ;;  %v3128_v43 = vmul.f32 %v8268_v0, %v8268_v0 }
 0x30c   :  { %v9275_v53 = vpop.f32.mrb[252].mxu0 }
 0x30d   :  { %13677 = vst [vmem:[#allocation212_spill] sm:$0xff] %v9275_v53  ;;  %v2864_v31 = vadd.f32 %v2863_v7, %v9275_v53  ;;  %v3126_v26 = vmul.f32 %v9275_v53, %v9275_v53  ;;  %v2222_v28 = vpop.f32.mrb[253].mxu0  ;;  %v9288_v7 = vpop.f32.mrb[192].mxu1 }
 0x30e   :  { %v9280_v57 = vpop.f32.mrb[254].mxu0  ;;  %v2614_v62 = vpop.f32.mrb[193].mxu1  ;;  %v3129_v28 = vmul.f32 %v8270_v4, %v8270_v4 }
 0x30f   :  { %13678 = vst [vmem:[#allocation213_spill] sm:$0xff] %v9280_v57  ;;  %v3381_v21 = vadd.f32 %v3380_v55, %v3126_v26  ;;  %v2865_v32 = vadd.f32 %v2864_v31, %v9280_v57  ;;  %v3127_v5 = vmul.f32 %v9280_v57, %v9280_v57  ;;  %v2225_v47 = vpop.f32.mrb[255].mxu0  ;;  %v9293_v31 = vpop.f32.mrb[194].mxu1 }
 0x310   :  { %v2617_v53 = vpop.f32.mrb[195].mxu1  ;;  %v3130_v47 = vmul.f32 %v8294_v33, %v8294_v33 }
 0x311   :  { %v2866_v52 = vadd.f32 %v2865_v32, %v8268_v0  ;;  %v3382_v24 = vadd.f32 %v3381_v21, %v3127_v5  ;;  %v3131_v21 = vmul.f32 %v8296_v38, %v8296_v38  ;;  %v3132_v5 = vmul.f32 %v8320_v11, %v8320_v11 }
 0x313   :  { %v2867_v55 = vadd.f32 %v2866_v52, %v8270_v4  ;;  %v3383_v26 = vadd.f32 %v3382_v24, %v3128_v43  ;;  %v9304_v52 = vpop.f32.mrb[196].mxu1  ;;  %v3133_v4 = vmul.f32 %v8322_v17, %v8322_v17 }
 0x314   :  { %v2622_v53 = vpop.f32.mrb[197].mxu1 }
 0x315   :  { %v2868_v57 = vadd.f32 %v2867_v55, %v8294_v33  ;;  %v3384_v50 = vadd.f32 %v3383_v26, %v3129_v28  ;;  %v9309_v26 = vpop.f32.mrb[198].mxu1  ;;  %v3136_v53 = vmul.f32 %v8372_v54, %v8372_v54 }
 0x316   :  { %v2625_v33 = vpop.f32.mrb[199].mxu1 }
 0x317   :  { %v2869_v62 = vadd.f32 %v2868_v57, %v8296_v38  ;;  %v3385_v32 = vadd.f32 %v3384_v50, %v3130_v47  ;;  %v3134_v50 = vmul.f32 %v8346_v61, %v8346_v61 }
 0x319   :  { %v2870_v24 = vadd.f32 %v2869_v62, %v8320_v11  ;;  %v3386_v43 = vadd.f32 %v3385_v32, %v3131_v21  ;;  %v3135_v21 = vmul.f32 %v8348_v1, %v8348_v1 }
 0x31b   :  { %v2871_v28 = vadd.f32 %v2870_v24, %v8322_v17  ;;  %v3387_v55 = vadd.f32 %v3386_v43, %v3132_v5  ;;  %v9320_v43 = vpop.f32.mrb[200].mxu1  ;;  %v3137_v17 = vmul.f32 %v8374_v6, %v8374_v6 }
 0x31c   :  { %v2630_v33 = vpop.f32.mrb[201].mxu1 }
 0x31d   :  { %v2872_v57 = vadd.f32 %v2871_v28, %v8346_v61  ;;  %v3388_v47 = vadd.f32 %v3387_v55, %v3133_v4  ;;  %v9325_v55 = vpop.f32.mrb[202].mxu1  ;;  %v3140_v33 = vmul.f32 %v8424_v36, %v8424_v36 }
 0x31e   :  { %v2633_v61 = vpop.f32.mrb[203].mxu1 }
 0x31f   :  { %v2873_v62 = vadd.f32 %v2872_v57, %v8348_v1  ;;  %v3389_v32 = vadd.f32 %v3388_v47, %v3134_v50  ;;  %v3138_v50 = vmul.f32 %v8398_v14, %v8398_v14 }
 0x321   :  { %v2874_v5 = vadd.f32 %v2873_v62, %v8372_v54  ;;  %v3390_v24 = vadd.f32 %v3389_v32, %v3135_v21  ;;  %v3139_v21 = vmul.f32 %v8400_v30, %v8400_v30 }
 0x323   :  { %v2875_v4 = vadd.f32 %v2874_v5, %v8374_v6  ;;  %v3391_v28 = vadd.f32 %v3390_v24, %v3136_v53  ;;  %v9336_v24 = vpop.f32.mrb[204].mxu1  ;;  %v3141_v6 = vmul.f32 %v8426_v41, %v8426_v41 }
 0x324   :  { %v2638_v61 = vpop.f32.mrb[205].mxu1 }
 0x325   :  { %v2876_v57 = vadd.f32 %v2875_v4, %v8398_v14  ;;  %v3392_v47 = vadd.f32 %v3391_v28, %v3137_v17  ;;  %v9341_v28 = vpop.f32.mrb[206].mxu1  ;;  %v3144_v61 = vmul.f32 %v8476_v10, %v8476_v10 }
 0x326   :  { %v2641_v14 = vpop.f32.mrb[207].mxu1 }
 0x327   :  { %v2877_v62 = vadd.f32 %v2876_v57, %v8400_v30  ;;  %v3393_v32 = vadd.f32 %v3392_v47, %v3138_v50  ;;  %v3142_v50 = vmul.f32 %v8450_v46, %v8450_v46 }
 0x329   :  { %v2878_v53 = vadd.f32 %v2877_v62, %v8424_v36  ;;  %v3394_v5 = vadd.f32 %v3393_v32, %v3139_v21  ;;  %v3143_v21 = vmul.f32 %v8452_v58, %v8452_v58 }
 0x32b   :  { %v2879_v17 = vadd.f32 %v2878_v53, %v8426_v41  ;;  %v3395_v4 = vadd.f32 %v3394_v5, %v3140_v33  ;;  %v9352_v5 = vpop.f32.mrb[208].mxu1  ;;  %v3145_v41 = vmul.f32 %v8478_v19, %v8478_v19 }
 0x32c   :  { %v2646_v14 = vpop.f32.mrb[209].mxu1 }
 0x32d   :  { %v2880_v57 = vadd.f32 %v2879_v17, %v8450_v46  ;;  %v3396_v47 = vadd.f32 %v3395_v4, %v3141_v6  ;;  %v9357_v4 = vpop.f32.mrb[210].mxu1  ;;  %v3148_v14 = vmul.f32 %v8528_v20, %v8528_v20 }
 0x32e   :  { %v2649_v46 = vpop.f32.mrb[211].mxu1 }
 0x32f   :  { %v2881_v62 = vadd.f32 %v2880_v57, %v8452_v58  ;;  %v3397_v32 = vadd.f32 %v3396_v47, %v3142_v50  ;;  %v3146_v50 = vmul.f32 %v8502_v9, %v8502_v9 }
 0x331   :  { %v2882_v33 = vadd.f32 %v2881_v62, %v8476_v10  ;;  %v3398_v53 = vadd.f32 %v3397_v32, %v3143_v21  ;;  %v3147_v21 = vmul.f32 %v8504_v51, %v8504_v51 }
 0x333   :  { %v2883_v6 = vadd.f32 %v2882_v33, %v8478_v19  ;;  %v3399_v17 = vadd.f32 %v3398_v53, %v3144_v61  ;;  %v9368_v53 = vpop.f32.mrb[212].mxu1  ;;  %v3149_v19 = vmul.f32 %v8530_v25, %v8530_v25 }
 0x334   :  { %v2654_v46 = vpop.f32.mrb[213].mxu1 }
 0x335   :  { %v2884_v57 = vadd.f32 %v2883_v6, %v8502_v9  ;;  %v3400_v47 = vadd.f32 %v3399_v17, %v3145_v41  ;;  %v9373_v17 = vpop.f32.mrb[214].mxu1  ;;  %v3152_v46 = vmul.f32 %v8580_v8, %v8580_v8 }
 0x336   :  { %v2657_v9 = vpop.f32.mrb[215].mxu1 }
 0x337   :  { %v2885_v62 = vadd.f32 %v2884_v57, %v8504_v51  ;;  %v3401_v32 = vadd.f32 %v3400_v47, %v3146_v50  ;;  %v3150_v50 = vmul.f32 %v8554_v42, %v8554_v42 }
 0x339   :  { %v2886_v61 = vadd.f32 %v2885_v62, %v8528_v20  ;;  %v3402_v33 = vadd.f32 %v3401_v32, %v3147_v21  ;;  %v3151_v21 = vmul.f32 %v8556_v2, %v8556_v2 }
 0x33b   :  { %v2887_v41 = vadd.f32 %v2886_v61, %v8530_v25  ;;  %v3403_v6 = vadd.f32 %v3402_v33, %v3148_v14  ;;  %v9384_v33 = vpop.f32.mrb[216].mxu1  ;;  %v3153_v25 = vmul.f32 %v8582_v45, %v8582_v45 }
 0x33c   :  { %v2662_v9 = vpop.f32.mrb[217].mxu1 }
 0x33d   :  { %v2888_v57 = vadd.f32 %v2887_v41, %v8554_v42  ;;  %v3404_v47 = vadd.f32 %v3403_v6, %v3149_v19  ;;  %v9389_v6 = vpop.f32.mrb[218].mxu1  ;;  %v3156_v9 = vmul.f32 %v8632_v16, %v8632_v16 }
 0x33e   :  { %v2665_v42 = vpop.f32.mrb[219].mxu1 }
 0x33f   :  { %v2889_v62 = vadd.f32 %v2888_v57, %v8556_v2  ;;  %v3405_v32 = vadd.f32 %v3404_v47, %v3150_v50  ;;  %v3154_v50 = vmul.f32 %v8606_v39, %v8606_v39 }
 0x341   :  { %v2890_v14 = vadd.f32 %v2889_v62, %v8580_v8  ;;  %v3406_v61 = vadd.f32 %v3405_v32, %v3151_v21  ;;  %v3155_v21 = vmul.f32 %v8608_v23, %v8608_v23 }
 0x343   :  { %v2891_v19 = vadd.f32 %v2890_v14, %v8582_v45  ;;  %v3407_v41 = vadd.f32 %v3406_v61, %v3152_v46  ;;  %v9400_v61 = vpop.f32.mrb[220].mxu1  ;;  %v3157_v45 = vmul.f32 %v8634_v3, %v8634_v3 }
 0x344   :  { %v2670_v42 = vpop.f32.mrb[221].mxu1 }
 0x345   :  { %v2892_v57 = vadd.f32 %v2891_v19, %v8606_v39  ;;  %v3408_v47 = vadd.f32 %v3407_v41, %v3153_v25  ;;  %v9405_v41 = vpop.f32.mrb[222].mxu1  ;;  %v3160_v42 = vmul.f32 %v8684_v34, %v8684_v34 }
 0x346   :  { %v2673_v39 = vpop.f32.mrb[223].mxu1 }
 0x347   :  { %v2893_v62 = vadd.f32 %v2892_v57, %v8608_v23  ;;  %v3409_v32 = vadd.f32 %v3408_v47, %v3154_v50  ;;  %v3158_v50 = vmul.f32 %v8658_v56, %v8658_v56 }
 0x349   :  { %v2894_v46 = vadd.f32 %v2893_v62, %v8632_v16  ;;  %v3410_v14 = vadd.f32 %v3409_v32, %v3155_v21  ;;  %v3159_v21 = vmul.f32 %v8660_v48, %v8660_v48 }
 0x34b   :  { %v2895_v25 = vadd.f32 %v2894_v46, %v8634_v3  ;;  %v3411_v19 = vadd.f32 %v3410_v14, %v3156_v9  ;;  %v9416_v14 = vpop.f32.mrb[224].mxu1  ;;  %v3161_v3 = vmul.f32 %v8686_v29, %v8686_v29 }
 0x34c   :  { %v2678_v39 = vpop.f32.mrb[225].mxu1 }
 0x34d   :  { %v2896_v57 = vadd.f32 %v2895_v25, %v8658_v56  ;;  %v3412_v47 = vadd.f32 %v3411_v19, %v3157_v45  ;;  %v9421_v19 = vpop.f32.mrb[226].mxu1  ;;  %v3164_v39 = vmul.f32 %v8736_v59, %v8736_v59 }
 0x34e   :  { %v2681_v56 = vpop.f32.mrb[227].mxu1 }
 0x34f   :  { %v2897_v62 = vadd.f32 %v2896_v57, %v8660_v48  ;;  %v3413_v32 = vadd.f32 %v3412_v47, %v3158_v50  ;;  %v3162_v50 = vmul.f32 %v8710_v15, %v8710_v15 }
 0x351   :  { %v2898_v9 = vadd.f32 %v2897_v62, %v8684_v34  ;;  %v3414_v46 = vadd.f32 %v3413_v32, %v3159_v21  ;;  %v3163_v21 = vmul.f32 %v8712_v12, %v8712_v12 }
 0x353   :  { %v2899_v45 = vadd.f32 %v2898_v9, %v8686_v29  ;;  %v3415_v25 = vadd.f32 %v3414_v46, %v3160_v42  ;;  %v9432_v46 = vpop.f32.mrb[228].mxu1  ;;  %v3165_v29 = vmul.f32 %v8738_v60, %v8738_v60 }
 0x354   :  { %v2686_v56 = vpop.f32.mrb[229].mxu1 }
 0x355   :  { %v2900_v57 = vadd.f32 %v2899_v45, %v8710_v15  ;;  %v3416_v47 = vadd.f32 %v3415_v25, %v3161_v3  ;;  %v9437_v25 = vpop.f32.mrb[230].mxu1  ;;  %v3168_v56 = vmul.f32 %v8788_v22, %v8788_v22 }
 0x356   :  { %v2689_v15 = vpop.f32.mrb[231].mxu1 }
 0x357   :  { %v2901_v62 = vadd.f32 %v2900_v57, %v8712_v12  ;;  %v3417_v32 = vadd.f32 %v3416_v47, %v3162_v50  ;;  %v3166_v50 = vmul.f32 %v8762_v40, %v8762_v40 }
 0x359   :  { %v2902_v42 = vadd.f32 %v2901_v62, %v8736_v59  ;;  %v3418_v9 = vadd.f32 %v3417_v32, %v3163_v21  ;;  %v3167_v21 = vmul.f32 %v8764_v44, %v8764_v44 }
 0x35b   :  { %v2903_v3 = vadd.f32 %v2902_v42, %v8738_v60  ;;  %v3419_v45 = vadd.f32 %v3418_v9, %v3164_v39  ;;  %v9448_v9 = vpop.f32.mrb[232].mxu1  ;;  %v3169_v60 = vmul.f32 %v8790_v27, %v8790_v27 }
 0x35c   :  { %v2694_v15 = vpop.f32.mrb[233].mxu1 }
 0x35d   :  { %v2904_v57 = vadd.f32 %v2903_v3, %v8762_v40  ;;  %v3420_v47 = vadd.f32 %v3419_v45, %v3165_v29  ;;  %v9453_v45 = vpop.f32.mrb[234].mxu1  ;;  %v3172_v15 = vmul.f32 %v8831_v63, %v8831_v63 }
 0x35e   :  { %v2697_v40 = vpop.f32.mrb[235].mxu1 }
 0x35f   :  { %v2905_v62 = vadd.f32 %v2904_v57, %v8764_v44  ;;  %v3421_v32 = vadd.f32 %v3420_v47, %v3166_v50  ;;  %v3170_v50 = vmul.f32 %v8811_v13, %v8811_v13  ;;  %v13690_v44 = vld [vmem:[#allocation127_spill] sm:$0xff] }
 0x360   :  { %v3181_v59 = vmul.f32 %v13690_v44, %v13690_v44 }
 0x361   :  { %v2906_v39 = vadd.f32 %v2905_v62, %v8788_v22  ;;  %v3422_v42 = vadd.f32 %v3421_v32, %v3167_v21  ;;  %v3171_v21 = vmul.f32 %v8813_v18, %v8813_v18 }
 0x363   :  { %v2907_v29 = vadd.f32 %v2906_v39, %v8790_v27  ;;  %v3423_v3 = vadd.f32 %v3422_v42, %v3168_v56  ;;  %v9464_v42 = vpop.f32.mrb[236].mxu1  ;;  %v3173_v27 = vmul.f32 %v8833_v37, %v8833_v37 }
 0x364   :  { %13679 = vst [vmem:[#allocation214_spill] sm:$0xff] %v9464_v42  ;;  %v2702_v40 = vpop.f32.mrb[237].mxu1 }
 0x365   :  { %v2908_v57 = vadd.f32 %v2907_v29, %v8811_v13  ;;  %v3424_v47 = vadd.f32 %v3423_v3, %v3169_v60  ;;  %v9469_v3 = vpop.f32.mrb[238].mxu1 }
 0x366   :  { %13680 = vst [vmem:[#allocation215_spill] sm:$0xff] %v9469_v3  ;;  %v2705_v13 = vpop.f32.mrb[239].mxu1 }
 0x367   :  { %v2909_v62 = vadd.f32 %v2908_v57, %v8813_v18  ;;  %v3425_v32 = vadd.f32 %v3424_v47, %v3170_v50  ;;  %v3174_v50 = vmul.f32 %v8851_v49, %v8851_v49 }
 0x369   :  { %v2910_v56 = vadd.f32 %v2909_v62, %v8831_v63  ;;  %v3426_v39 = vadd.f32 %v3425_v32, %v3171_v21  ;;  %v13681_v62 = vld [vmem:[#allocation115_spill] sm:$0xff]  ;;  %v13682_v63 = vld [vmem:[#allocation118_spill] sm:$0xff] }
 0x36a   :  { %v3175_v21 = vmul.f32 %v13681_v62, %v13681_v62  ;;  %v3176_v18 = vmul.f32 %v13682_v63, %v13682_v63 }
 0x36b   :  { %v2911_v60 = vadd.f32 %v2910_v56, %v8833_v37  ;;  %v3427_v29 = vadd.f32 %v3426_v39, %v3172_v15  ;;  %v9480_v39 = vpop.f32.mrb[240].mxu1  ;;  %v13684_v37 = vld [vmem:[#allocation119_spill] sm:$0xff] }
 0x36c   :  { %13683 = vst [vmem:[#allocation216_spill] sm:$0xff] %v9480_v39  ;;  %v2710_v13 = vpop.f32.mrb[241].mxu1  ;;  %v3177_v22 = vmul.f32 %v13684_v37, %v13684_v37 }
 0x36d   :  { %v2912_v57 = vadd.f32 %v2911_v60, %v8851_v49  ;;  %v3428_v47 = vadd.f32 %v3427_v29, %v3173_v27  ;;  %v9485_v29 = vpop.f32.mrb[242].mxu1 }
 0x36e   :  { %13685 = vst [vmem:[#allocation217_spill] sm:$0xff] %v9485_v29  ;;  %v2713_v49 = vpop.f32.mrb[243].mxu1 }
 0x36f   :  { %v2913_v32 = vadd.f32 %v2912_v57, %v13681_v62  ;;  %v3429_v40 = vadd.f32 %v3428_v47, %v3174_v50  ;;  %v13686_v57 = vld [vmem:[#allocation122_spill] sm:$0xff] }
 0x370   :  { %v3178_v50 = vmul.f32 %v13686_v57, %v13686_v57 }
 0x371   :  { %v2914_v15 = vadd.f32 %v2913_v32, %v13682_v63  ;;  %v3430_v56 = vadd.f32 %v3429_v40, %v3175_v21  ;;  %v13687_v32 = vld [vmem:[#allocation123_spill] sm:$0xff]  ;;  %v13688_v63 = vld [vmem:[#allocation126_spill] sm:$0xff] }
 0x372   :  { %v3179_v21 = vmul.f32 %v13687_v32, %v13687_v32 }
 0x373   :  { %v3431_v60 = vadd.f32 %v3430_v56, %v3176_v18  ;;  %v2915_v27 = vadd.f32 %v2914_v15, %v13684_v37  ;;  %v3180_v18 = vmul.f32 %v13688_v63, %v13688_v63  ;;  %v9496_v37 = vpop.f32.mrb[244].mxu1 }
 0x374   :  { %13689 = vst [vmem:[#allocation218_spill] sm:$0xff] %v9496_v37  ;;  %v2718_v49 = vpop.f32.mrb[245].mxu1 }
 0x375   :  { %v2916_v47 = vadd.f32 %v2915_v27, %v13686_v57  ;;  %v3432_v62 = vadd.f32 %v3431_v60, %v3177_v22  ;;  %v9501_v27 = vpop.f32.mrb[246].mxu1 }
 0x376   :  { %13691 = vst [vmem:[#allocation219_spill] sm:$0xff] %v9501_v27  ;;  %v2721_v57 = vpop.f32.mrb[247].mxu1 }
 0x377   :  { %v2917_v40 = vadd.f32 %v2916_v47, %v13687_v32  ;;  %v3433_v13 = vadd.f32 %v3432_v62, %v3178_v50  ;;  %v13692_v47 = vld [vmem:[#allocation130_spill] sm:$0xff] }
 0x378   :  { %v3182_v62 = vmul.f32 %v13692_v47, %v13692_v47 }
 0x379   :  { %v2918_v15 = vadd.f32 %v2917_v40, %v13688_v63  ;;  %v3434_v56 = vadd.f32 %v3433_v13, %v3179_v21  ;;  %v13693_v40 = vld [vmem:[#allocation131_spill] sm:$0xff]  ;;  %v13694_v63 = vld [vmem:[#allocation134_spill] sm:$0xff] }
 0x37a   :  { %v3183_v21 = vmul.f32 %v13693_v40, %v13693_v40  ;;  %v3184_v12 = vmul.f32 %v13694_v63, %v13694_v63 }
 0x37b   :  { %v2919_v22 = vadd.f32 %v2918_v15, %v13690_v44  ;;  %v3435_v60 = vadd.f32 %v3434_v56, %v3180_v18  ;;  %v9512_v56 = vpop.f32.mrb[248].mxu1  ;;  %v13696_v44 = vld [vmem:[#allocation135_spill] sm:$0xff] }
 0x37c   :  { %13695 = vst [vmem:[#allocation220_spill] sm:$0xff] %v9512_v56  ;;  %v2726_v57 = vpop.f32.mrb[249].mxu1  ;;  %v3185_v34 = vmul.f32 %v13696_v44, %v13696_v44 }
 0x37d   :  { %v2920_v50 = vadd.f32 %v2919_v22, %v13692_v47  ;;  %v3436_v32 = vadd.f32 %v3435_v60, %v3181_v59  ;;  %v9517_v60 = vpop.f32.mrb[250].mxu1 }
 0x37e   :  { %13697 = vst [vmem:[#allocation221_spill] sm:$0xff] %v9517_v60  ;;  %v2729_v47 = vpop.f32.mrb[251].mxu1 }
 0x37f   :  { %v2921_v13 = vadd.f32 %v2920_v50, %v13693_v40  ;;  %v3437_v49 = vadd.f32 %v3436_v32, %v3182_v62  ;;  %v13698_v50 = vld [vmem:[#allocation138_spill] sm:$0xff] }
 0x380   :  { %v3186_v32 = vmul.f32 %v13698_v50, %v13698_v50 }
 0x381   :  { %v2922_v18 = vadd.f32 %v2921_v13, %v13694_v63  ;;  %v3438_v15 = vadd.f32 %v3437_v49, %v3183_v21  ;;  %v13699_v13 = vld [vmem:[#allocation139_spill] sm:$0xff]  ;;  %v13700_v63 = vld [vmem:[#allocation142_spill] sm:$0xff] }
 0x382   :  { %v3187_v21 = vmul.f32 %v13699_v13, %v13699_v13  ;;  %v3188_v48 = vmul.f32 %v13700_v63, %v13700_v63 }
 0x383   :  { %v2923_v59 = vadd.f32 %v2922_v18, %v13696_v44  ;;  %v3439_v22 = vadd.f32 %v3438_v15, %v3184_v12  ;;  %v9528_v15 = vpop.f32.mrb[252].mxu1  ;;  %v13702_v44 = vld [vmem:[#allocation143_spill] sm:$0xff] }
 0x384   :  { %13701 = vst [vmem:[#allocation222_spill] sm:$0xff] %v9528_v15  ;;  %v2734_v47 = vpop.f32.mrb[253].mxu1  ;;  %v3189_v16 = vmul.f32 %v13702_v44, %v13702_v44 }
 0x385   :  { %v2924_v62 = vadd.f32 %v2923_v59, %v13698_v50  ;;  %v3440_v40 = vadd.f32 %v3439_v22, %v3185_v34  ;;  %v9533_v22 = vpop.f32.mrb[254].mxu1 }
 0x386   :  { %13703 = vst [vmem:[#allocation223_spill] sm:$0xff] %v9533_v22  ;;  %v2737_v50 = vpop.f32.mrb[255].mxu1 }
 0x387   :  { %v2925_v49 = vadd.f32 %v2924_v62, %v13699_v13  ;;  %v3441_v57 = vadd.f32 %v3440_v40, %v3186_v32  ;;  %v13704_v62 = vld [vmem:[#allocation146_spill] sm:$0xff]  ;;  %v13707_v50 = vld [vmem:[#allocation151_spill] sm:$0xff] }
 0x388   :  { %v3190_v40 = vmul.f32 %v13704_v62, %v13704_v62  ;;  %v3193_v8 = vmul.f32 %v13707_v50, %v13707_v50 }
 0x389   :  { %v2926_v12 = vadd.f32 %v2925_v49, %v13700_v63  ;;  %v3442_v18 = vadd.f32 %v3441_v57, %v3187_v21  ;;  %v13705_v49 = vld [vmem:[#allocation147_spill] sm:$0xff]  ;;  %v13706_v63 = vld [vmem:[#allocation150_spill] sm:$0xff] }
 0x38a   :  { %v3191_v21 = vmul.f32 %v13705_v49, %v13705_v49 }
 0x38b   :  { %v2927_v34 = vadd.f32 %v2926_v12, %v13702_v44  ;;  %v3443_v59 = vadd.f32 %v3442_v18, %v3188_v48  ;;  %v3192_v48 = vmul.f32 %v13706_v63, %v13706_v63 }
 0x38d   :  { %v2928_v32 = vadd.f32 %v2927_v34, %v13704_v62  ;;  %v3444_v13 = vadd.f32 %v3443_v59, %v3189_v16  ;;  %v13708_v16 = vld [vmem:[#allocation154_spill] sm:$0xff] }
 0x38e   :  { %v3194_v62 = vmul.f32 %v13708_v16, %v13708_v16 }
 0x38f   :  { %v2929_v57 = vadd.f32 %v2928_v32, %v13705_v49  ;;  %v3445_v47 = vadd.f32 %v3444_v13, %v3190_v40  ;;  %v13709_v13 = vld [vmem:[#allocation155_spill] sm:$0xff] }
 0x391   :  { %v2930_v23 = vadd.f32 %v2929_v57, %v13706_v63  ;;  %v3446_v12 = vadd.f32 %v3445_v47, %v3191_v21  ;;  %v3195_v57 = vmul.f32 %v13709_v13, %v13709_v13  ;;  %v13710_v21 = vld [vmem:[#allocation158_spill] sm:$0xff] }
 0x393   :  { %v3447_v18 = vadd.f32 %v3446_v12, %v3192_v48  ;;  %v2931_v44 = vadd.f32 %v2930_v23, %v13707_v50  ;;  %v3196_v23 = vmul.f32 %v13710_v21, %v13710_v21  ;;  %v13711_v12 = vld [vmem:[#allocation159_spill] sm:$0xff] }
 0x395   :  { %v3448_v34 = vadd.f32 %v3447_v18, %v3193_v8  ;;  %v2932_v59 = vadd.f32 %v2931_v44, %v13708_v16  ;;  %v3197_v44 = vmul.f32 %v13711_v12, %v13711_v12  ;;  %v13712_v16 = vld [vmem:[#allocation162_spill] sm:$0xff] }
 0x397   :  { %v3449_v32 = vadd.f32 %v3448_v34, %v3194_v62  ;;  %v2933_v40 = vadd.f32 %v2932_v59, %v13709_v13  ;;  %v3198_v34 = vmul.f32 %v13712_v16, %v13712_v16  ;;  %v13713_v13 = vld [vmem:[#allocation163_spill] sm:$0xff] }
 0x399   :  { %v3450_v63 = vadd.f32 %v3449_v32, %v3195_v57  ;;  %v2934_v47 = vadd.f32 %v2933_v40, %v13710_v21  ;;  %v3199_v40 = vmul.f32 %v13713_v13, %v13713_v13  ;;  %v13714_v21 = vld [vmem:[#allocation166_spill] sm:$0xff] }
 0x39b   :  { %v3451_v48 = vadd.f32 %v3450_v63, %v3196_v23  ;;  %v2935_v8 = vadd.f32 %v2934_v47, %v13711_v12  ;;  %v3200_v47 = vmul.f32 %v13714_v21, %v13714_v21  ;;  %v13715_v12 = vld [vmem:[#allocation167_spill] sm:$0xff] }
 0x39d   :  { %v3452_v18 = vadd.f32 %v3451_v48, %v3197_v44  ;;  %v2936_v62 = vadd.f32 %v2935_v8, %v13712_v16  ;;  %v3201_v8 = vmul.f32 %v13715_v12, %v13715_v12 }
 0x39f   :  { %v3453_v59 = vadd.f32 %v3452_v18, %v3198_v34  ;;  %v2937_v32 = vadd.f32 %v2936_v62, %v13713_v13  ;;  %v3202_v62 = vmul.f32 %v9131_v35, %v9131_v35  ;;  %v13716_v13 = vld [vmem:[#allocation171_spill] sm:$0xff] }
 0x3a1   :  { %v3454_v57 = vadd.f32 %v3453_v59, %v3199_v40  ;;  %v2938_v63 = vadd.f32 %v2937_v32, %v13714_v21  ;;  %v3203_v32 = vmul.f32 %v13716_v13, %v13716_v13  ;;  %v13717_v21 = vld [vmem:[#allocation174_spill] sm:$0xff] }
 0x3a3   :  { %v3455_v23 = vadd.f32 %v3454_v57, %v3200_v47  ;;  %v2939_v48 = vadd.f32 %v2938_v63, %v13715_v12  ;;  %v3204_v63 = vmul.f32 %v13717_v21, %v13717_v21  ;;  %v13718_v12 = vld [vmem:[#allocation175_spill] sm:$0xff] }
 0x3a5   :  { %v3456_v44 = vadd.f32 %v3455_v23, %v3201_v8  ;;  %v2940_v18 = vadd.f32 %v2939_v48, %v9131_v35  ;;  %v3205_v48 = vmul.f32 %v13718_v12, %v13718_v12  ;;  %v13719_v35 = vld [vmem:[#allocation178_spill] sm:$0xff] }
 0x3a7   :  { %v3457_v34 = vadd.f32 %v3456_v44, %v3202_v62  ;;  %v2941_v59 = vadd.f32 %v2940_v18, %v13716_v13  ;;  %v3206_v18 = vmul.f32 %v13719_v35, %v13719_v35  ;;  %v13720_v13 = vld [vmem:[#allocation179_spill] sm:$0xff] }
 0x3a9   :  { %v3458_v40 = vadd.f32 %v3457_v34, %v3203_v32  ;;  %v2942_v57 = vadd.f32 %v2941_v59, %v13717_v21  ;;  %v3207_v59 = vmul.f32 %v13720_v13, %v13720_v13  ;;  %v13721_v21 = vld [vmem:[#allocation182_spill] sm:$0xff] }
 0x3ab   :  { %v3459_v47 = vadd.f32 %v3458_v40, %v3204_v63  ;;  %v2943_v23 = vadd.f32 %v2942_v57, %v13718_v12  ;;  %v3208_v57 = vmul.f32 %v13721_v21, %v13721_v21  ;;  %v13722_v12 = vld [vmem:[#allocation183_spill] sm:$0xff] }
 0x3ad   :  { %v3460_v8 = vadd.f32 %v3459_v47, %v3205_v48  ;;  %v2944_v44 = vadd.f32 %v2943_v23, %v13719_v35  ;;  %v3209_v23 = vmul.f32 %v13722_v12, %v13722_v12  ;;  %v13723_v35 = vld [vmem:[#allocation186_spill] sm:$0xff] }
 0x3af   :  { %v3461_v62 = vadd.f32 %v3460_v8, %v3206_v18  ;;  %v2945_v34 = vadd.f32 %v2944_v44, %v13720_v13  ;;  %v3210_v44 = vmul.f32 %v13723_v35, %v13723_v35  ;;  %v13724_v13 = vld [vmem:[#allocation187_spill] sm:$0xff] }
 0x3b1   :  { %v3462_v32 = vadd.f32 %v3461_v62, %v3207_v59  ;;  %v2946_v40 = vadd.f32 %v2945_v34, %v13721_v21  ;;  %v3211_v34 = vmul.f32 %v13724_v13, %v13724_v13  ;;  %v13725_v21 = vld [vmem:[#allocation190_spill] sm:$0xff] }
 0x3b3   :  { %v3463_v63 = vadd.f32 %v3462_v32, %v3208_v57  ;;  %v2947_v47 = vadd.f32 %v2946_v40, %v13722_v12  ;;  %v3212_v40 = vmul.f32 %v13725_v21, %v13725_v21  ;;  %v13726_v12 = vld [vmem:[#allocation191_spill] sm:$0xff] }
 0x3b5   :  { %v3464_v48 = vadd.f32 %v3463_v63, %v3209_v23  ;;  %v2948_v8 = vadd.f32 %v2947_v47, %v13723_v35  ;;  %v3213_v47 = vmul.f32 %v13726_v12, %v13726_v12  ;;  %v13727_v35 = vld [vmem:[#allocation194_spill] sm:$0xff] }
 0x3b7   :  { %v3465_v18 = vadd.f32 %v3464_v48, %v3210_v44  ;;  %v2949_v62 = vadd.f32 %v2948_v8, %v13724_v13  ;;  %v3214_v8 = vmul.f32 %v13727_v35, %v13727_v35  ;;  %v13728_v13 = vld [vmem:[#allocation195_spill] sm:$0xff] }
 0x3b9   :  { %v3466_v59 = vadd.f32 %v3465_v18, %v3211_v34  ;;  %v2950_v32 = vadd.f32 %v2949_v62, %v13725_v21  ;;  %v3215_v62 = vmul.f32 %v13728_v13, %v13728_v13  ;;  %v13729_v21 = vld [vmem:[#allocation198_spill] sm:$0xff] }
 0x3bb   :  { %v3467_v57 = vadd.f32 %v3466_v59, %v3212_v40  ;;  %v2951_v63 = vadd.f32 %v2950_v32, %v13726_v12  ;;  %v3216_v32 = vmul.f32 %v13729_v21, %v13729_v21  ;;  %v13730_v12 = vld [vmem:[#allocation199_spill] sm:$0xff] }
 0x3bd   :  { %v3468_v23 = vadd.f32 %v3467_v57, %v3213_v47  ;;  %v2952_v48 = vadd.f32 %v2951_v63, %v13727_v35  ;;  %v3217_v63 = vmul.f32 %v13730_v12, %v13730_v12  ;;  %v13731_v35 = vld [vmem:[#allocation202_spill] sm:$0xff] }
 0x3bf   :  { %v3469_v44 = vadd.f32 %v3468_v23, %v3214_v8  ;;  %v2953_v18 = vadd.f32 %v2952_v48, %v13728_v13  ;;  %v3218_v48 = vmul.f32 %v13731_v35, %v13731_v35  ;;  %v13732_v13 = vld [vmem:[#allocation203_spill] sm:$0xff] }
 0x3c1   :  { %v3470_v34 = vadd.f32 %v3469_v44, %v3215_v62  ;;  %v2954_v59 = vadd.f32 %v2953_v18, %v13729_v21  ;;  %v3219_v18 = vmul.f32 %v13732_v13, %v13732_v13  ;;  %v13733_v21 = vld [vmem:[#allocation206_spill] sm:$0xff] }
 0x3c3   :  { %v3471_v40 = vadd.f32 %v3470_v34, %v3216_v32  ;;  %v2955_v57 = vadd.f32 %v2954_v59, %v13730_v12  ;;  %v3220_v59 = vmul.f32 %v13733_v21, %v13733_v21  ;;  %v13734_v12 = vld [vmem:[#allocation207_spill] sm:$0xff] }
 0x3c5   :  { %v3472_v47 = vadd.f32 %v3471_v40, %v3217_v63  ;;  %v2956_v23 = vadd.f32 %v2955_v57, %v13731_v35  ;;  %v3221_v57 = vmul.f32 %v13734_v12, %v13734_v12  ;;  %v13735_v35 = vld [vmem:[#allocation210_spill] sm:$0xff] }
 0x3c7   :  { %v3473_v8 = vadd.f32 %v3472_v47, %v3218_v48  ;;  %v2957_v44 = vadd.f32 %v2956_v23, %v13732_v13  ;;  %v3222_v23 = vmul.f32 %v13735_v35, %v13735_v35  ;;  %v13736_v13 = vld [vmem:[#allocation211_spill] sm:$0xff] }
 0x3c9   :  { %v3474_v62 = vadd.f32 %v3473_v8, %v3219_v18  ;;  %v2958_v34 = vadd.f32 %v2957_v44, %v13733_v21  ;;  %v3223_v44 = vmul.f32 %v13736_v13, %v13736_v13 }
 0x3cb   :  { %v3475_v32 = vadd.f32 %v3474_v62, %v3220_v59  ;;  %v2959_v40 = vadd.f32 %v2958_v34, %v13734_v12  ;;  %v3224_v34 = vmul.f32 %v9288_v7, %v9288_v7 }
 0x3cd   :  { %v3476_v63 = vadd.f32 %v3475_v32, %v3221_v57  ;;  %v2960_v47 = vadd.f32 %v2959_v40, %v13735_v35  ;;  %v3225_v40 = vmul.f32 %v9293_v31, %v9293_v31 }
 0x3cf   :  { %v3477_v48 = vadd.f32 %v3476_v63, %v3222_v23  ;;  %v2961_v8 = vadd.f32 %v2960_v47, %v13736_v13  ;;  %v3226_v47 = vmul.f32 %v9304_v52, %v9304_v52 }
 0x3d1   :  { %v3478_v18 = vadd.f32 %v3477_v48, %v3223_v44  ;;  %v2962_v62 = vadd.f32 %v2961_v8, %v9288_v7  ;;  %v3227_v8 = vmul.f32 %v9309_v26, %v9309_v26 }
 0x3d3   :  { %v3479_v59 = vadd.f32 %v3478_v18, %v3224_v34  ;;  %v2963_v32 = vadd.f32 %v2962_v62, %v9293_v31  ;;  %v3228_v62 = vmul.f32 %v9320_v43, %v9320_v43 }
 0x3d5   :  { %v3480_v57 = vadd.f32 %v3479_v59, %v3225_v40  ;;  %v2964_v63 = vadd.f32 %v2963_v32, %v9304_v52  ;;  %v3229_v32 = vmul.f32 %v9325_v55, %v9325_v55 }
 0x3d7   :  { %v3481_v23 = vadd.f32 %v3480_v57, %v3226_v47  ;;  %v2965_v48 = vadd.f32 %v2964_v63, %v9309_v26  ;;  %v3230_v63 = vmul.f32 %v9336_v24, %v9336_v24 }
 0x3d9   :  { %v3482_v44 = vadd.f32 %v3481_v23, %v3227_v8  ;;  %v2966_v18 = vadd.f32 %v2965_v48, %v9320_v43  ;;  %v3231_v48 = vmul.f32 %v9341_v28, %v9341_v28 }
 0x3db   :  { %v3483_v34 = vadd.f32 %v3482_v44, %v3228_v62  ;;  %v2967_v59 = vadd.f32 %v2966_v18, %v9325_v55  ;;  %v3232_v18 = vmul.f32 %v9352_v5, %v9352_v5 }
 0x3dd   :  { %v3484_v40 = vadd.f32 %v3483_v34, %v3229_v32  ;;  %v2968_v57 = vadd.f32 %v2967_v59, %v9336_v24  ;;  %v3233_v59 = vmul.f32 %v9357_v4, %v9357_v4 }
 0x3df   :  { %v3485_v47 = vadd.f32 %v3484_v40, %v3230_v63  ;;  %v2969_v23 = vadd.f32 %v2968_v57, %v9341_v28  ;;  %v3234_v57 = vmul.f32 %v9368_v53, %v9368_v53 }
 0x3e1   :  { %v3486_v8 = vadd.f32 %v3485_v47, %v3231_v48  ;;  %v2970_v44 = vadd.f32 %v2969_v23, %v9352_v5  ;;  %v3235_v23 = vmul.f32 %v9373_v17, %v9373_v17 }
 0x3e3   :  { %v3487_v62 = vadd.f32 %v3486_v8, %v3232_v18  ;;  %v2971_v34 = vadd.f32 %v2970_v44, %v9357_v4  ;;  %v3236_v44 = vmul.f32 %v9384_v33, %v9384_v33 }
 0x3e5   :  { %v3488_v32 = vadd.f32 %v3487_v62, %v3233_v59  ;;  %v2972_v40 = vadd.f32 %v2971_v34, %v9368_v53  ;;  %v3237_v34 = vmul.f32 %v9389_v6, %v9389_v6 }
 0x3e7   :  { %v3489_v63 = vadd.f32 %v3488_v32, %v3234_v57  ;;  %v2973_v47 = vadd.f32 %v2972_v40, %v9373_v17  ;;  %v3238_v40 = vmul.f32 %v9400_v61, %v9400_v61 }
 0x3e9   :  { %v3490_v48 = vadd.f32 %v3489_v63, %v3235_v23  ;;  %v2974_v8 = vadd.f32 %v2973_v47, %v9384_v33  ;;  %v3239_v47 = vmul.f32 %v9405_v41, %v9405_v41 }
 0x3eb   :  { %v3491_v18 = vadd.f32 %v3490_v48, %v3236_v44  ;;  %v2975_v62 = vadd.f32 %v2974_v8, %v9389_v6  ;;  %v3240_v8 = vmul.f32 %v9416_v14, %v9416_v14 }
 0x3ed   :  { %v3492_v59 = vadd.f32 %v3491_v18, %v3237_v34  ;;  %v2976_v32 = vadd.f32 %v2975_v62, %v9400_v61  ;;  %v3241_v62 = vmul.f32 %v9421_v19, %v9421_v19 }
 0x3ef   :  { %v3493_v57 = vadd.f32 %v3492_v59, %v3238_v40  ;;  %v2977_v63 = vadd.f32 %v2976_v32, %v9405_v41  ;;  %v3242_v32 = vmul.f32 %v9432_v46, %v9432_v46 }
 0x3f1   :  { %v3494_v23 = vadd.f32 %v3493_v57, %v3239_v47  ;;  %v2978_v48 = vadd.f32 %v2977_v63, %v9416_v14  ;;  %v3243_v63 = vmul.f32 %v9437_v25, %v9437_v25 }
 0x3f3   :  { %v3495_v44 = vadd.f32 %v3494_v23, %v3240_v8  ;;  %v2979_v18 = vadd.f32 %v2978_v48, %v9421_v19  ;;  %v3244_v48 = vmul.f32 %v9448_v9, %v9448_v9 }
 0x3f5   :  { %v3496_v34 = vadd.f32 %v3495_v44, %v3241_v62  ;;  %v2980_v59 = vadd.f32 %v2979_v18, %v9432_v46  ;;  %v3245_v18 = vmul.f32 %v9453_v45, %v9453_v45 }
 0x3f7   :  { %v3497_v40 = vadd.f32 %v3496_v34, %v3242_v32  ;;  %v2981_v57 = vadd.f32 %v2980_v59, %v9437_v25  ;;  %v3246_v59 = vmul.f32 %v9464_v42, %v9464_v42 }
 0x3f9   :  { %v3498_v47 = vadd.f32 %v3497_v40, %v3243_v63  ;;  %v2982_v23 = vadd.f32 %v2981_v57, %v9448_v9  ;;  %v3247_v57 = vmul.f32 %v9469_v3, %v9469_v3 }
 0x3fb   :  { %v3499_v8 = vadd.f32 %v3498_v47, %v3244_v48  ;;  %v2983_v44 = vadd.f32 %v2982_v23, %v9453_v45  ;;  %v3248_v23 = vmul.f32 %v9480_v39, %v9480_v39 }
 0x3fd   :  { %v3500_v62 = vadd.f32 %v3499_v8, %v3245_v18  ;;  %v2984_v34 = vadd.f32 %v2983_v44, %v9464_v42  ;;  %v3249_v44 = vmul.f32 %v9485_v29, %v9485_v29 }
 0x3ff   :  { %v3501_v32 = vadd.f32 %v3500_v62, %v3246_v59  ;;  %v2985_v40 = vadd.f32 %v2984_v34, %v9469_v3  ;;  %v3250_v34 = vmul.f32 %v9496_v37, %v9496_v37 }
 0x401   :  { %v3502_v63 = vadd.f32 %v3501_v32, %v3247_v57  ;;  %v2986_v47 = vadd.f32 %v2985_v40, %v9480_v39  ;;  %v3251_v40 = vmul.f32 %v9501_v27, %v9501_v27 }
 0x403   :  { %v3503_v48 = vadd.f32 %v3502_v63, %v3248_v23  ;;  %v2987_v8 = vadd.f32 %v2986_v47, %v9485_v29  ;;  %v3252_v47 = vmul.f32 %v9512_v56, %v9512_v56 }
 0x405   :  { %v3504_v18 = vadd.f32 %v3503_v48, %v3249_v44  ;;  %v2988_v62 = vadd.f32 %v2987_v8, %v9496_v37  ;;  %v3253_v8 = vmul.f32 %v9517_v60, %v9517_v60  ;;  %v3254_v44 = vmul.f32 %v9528_v15, %v9528_v15 }
 0x407   :  { %v3505_v59 = vadd.f32 %v3504_v18, %v3250_v34  ;;  %v2989_v32 = vadd.f32 %v2988_v62, %v9501_v27 }
 0x409   :  { %v3506_v57 = vadd.f32 %v3505_v59, %v3251_v40  ;;  %v2990_v63 = vadd.f32 %v2989_v32, %v9512_v56  ;;  %v3255_v32 = vmul.f32 %v9533_v22, %v9533_v22 }
 0x40b   :  { %v3507_v23 = vadd.f32 %v3506_v57, %v3252_v47  ;;  %v2991_v48 = vadd.f32 %v2990_v63, %v9517_v60 }
 0x40d   :  { %v3508_v18 = vadd.f32 %v3507_v23, %v3253_v8  ;;  %v2992_v62 = vadd.f32 %v2991_v48, %v9528_v15 }
 0x40f   :  { %v3509_v34 = vadd.f32 %v3508_v18, %v3254_v44  ;;  %v2993_v59 = vadd.f32 %v2992_v62, %v9533_v22  ;;  %v3530_v22 = vlaneseq }
 0x411   :  { %v2994_v40 = vrot.slane %v2993_v59, 4  ;;  %v3510_v56 = vadd.f32 %v3509_v34, %v3255_v32  ;;  %v9733_v34 = vshrl.u32 %v3530_v22, 7  ;;  %v13738_v22 = vld [vmem:[#allocation3_spill] sm:$0xff] }
 0x413   :  { %v2995_v57 = vadd.f32 %v2994_v40, %v2993_v59  ;;  %v3511_v47 = vrot.slane %v3510_v56, 4  ;;  %v13227_v59 = vsub.s32 0, %v9733_v34  ;;  %v13739_v40 = vld [vmem:[#allocation4_spill] sm:$0xff] }
 0x415   :  { %v2996_v63 = vrot.slane %v2995_v57, 2  ;;  %v3512_v27 = vadd.f32 %v3511_v47, %v3510_v56  ;;  %v3522_v56 = vld [vmem:[%s12961_s2] sm:$0x1]  ;;  %v13740_v47 = vld [vmem:[#allocation5_spill] sm:$0xff] }
 0x417   :  { %v2997_v37 = vadd.f32 %v2996_v63, %v2995_v57  ;;  %v3513_v60 = vrot.slane %v3512_v27, 2 }
 0x419   :  { %v2998_v29 = vrot.slane %v2997_v37, 1  ;;  %v3514_v39 = vadd.f32 %v3513_v60, %v3512_v27  ;;  %v13737_v60 = vld [vmem:[#allocation2_spill] sm:$0xff] }
 0x41b   :  { %v2999_v3 = vadd.f32 %v2998_v29, %v2997_v37  ;;  %v3515_v23 = vrot.slane %v3514_v39, 1  ;;  %v13753_v29 = vld [vmem:[#allocation14_spill] sm:$0xff] }
 0x41d   :  { %v3516_v8 = vadd.f32 %v3515_v23, %v3514_v39  ;;  %v3517_v48 = vmul.f32 0.00048828125, %v2999_v3  ;;  %v9742_v3 = vld [vmem:[%s12962_s3] sm:$0x1] }
 0x41e   :  { %v13741_v23 = vld [vmem:[#allocation6_spill] sm:$0xff] }
 0x41f   :  { %v3518_v44 = vmul.f32 0.00048828125, %v3516_v8  ;;  %v3519_v18 = vmul.f32 %v3517_v48, %v3517_v48 }
 0x421   :  { %v3520_v62 = vsub.f32 %v3518_v44, %v3519_v18  ;;  %v13743_v18 = vld [vmem:[#allocation8_spill] sm:$0xff] }
 0x423   :  { %v3521_v15 = vmax.f32 %v3520_v62, 0.0 }
 0x425   :  { %v3523_v42 = vadd.f32 1e-05, %v3521_v15 }
 0x427   :  { %7577 = vrsqrt.f32 %v3523_v42 }
 0x431   :  { %v7578_v27 = vpop.eup %7577 }
 0x432   :  { %v3525_v37 = vmul.f32 %v7578_v27, %v3522_v56  ;;  %v13744_v56 = vld [vmem:[#allocation9_spill] sm:$0xff] }
 0x434   :  { %v9744_v39 = vmul.f32 %v3525_v37, %v3517_v48  ;;  %v9748_v42 = vrot.slane %v3525_v37, %v13227_v59  ;;  %v13742_v48 = vld [vmem:[#allocation7_spill] sm:$0xff]  ;;  %v13745_v37 = vld [vmem:[#allocation10_spill] sm:$0xff] }
 0x435   :  { %v13755_v59 = vld [vmem:[#allocation15_spill] sm:$0xff] }
 0x436   :  { %v9754_v15 = vmul.f32 %v9748_v42, %v13737_v60  ;;  %v9758_v32 = vmul.f32 %v9748_v42, %v13738_v22  ;;  %v9762_v57 = vmul.f32 %v9748_v42, %v13739_v40  ;;  %v9766_v63 = vmul.f32 %v9748_v42, %v13740_v47  ;;  %v13747_v22 = vld [vmem:[#allocation11_spill] sm:$0xff]  ;;  %v13749_v47 = vld [vmem:[#allocation12_spill] sm:$0xff] }
 0x437   :  { %v9770_v8 = vmul.f32 %v9748_v42, %v13741_v23  ;;  %v9774_v44 = vmul.f32 %v9748_v42, %v13742_v48  ;;  %v9778_v62 = vmul.f32 %v9748_v42, %v13743_v18  ;;  %v9782_v27 = vmul.f32 %v9748_v42, %v13744_v56  ;;  %v13751_v48 = vld [vmem:[#allocation13_spill] sm:$0xff] }
 0x438   :  { %v9786_v60 = vmul.f32 %v9748_v42, %v13745_v37  ;;  %v9790_v40 = vmul.f32 %v9748_v42, %v13747_v22  ;;  %v9794_v23 = vmul.f32 %v9748_v42, %v13749_v47  ;;  %v9798_v18 = vmul.f32 %v9748_v42, %v13751_v48 }
 0x439   :  { %v9802_v56 = vmul.f32 %v9748_v42, %v13753_v29  ;;  %v9806_v37 = vmul.f32 %v9748_v42, %v13755_v59 }
 0x43a   :  { %13746 = vst [vmem:[#allocation147_spill] sm:$0xff] %v9786_v60  ;;  %13748 = vst [vmem:[#allocation151_spill] sm:$0xff] %v9790_v40  ;;  %v13757_v60 = vld [vmem:[#allocation16_spill] sm:$0xff]  ;;  %v13759_v40 = vld [vmem:[#allocation17_spill] sm:$0xff] }
 0x43b   :  { %13750 = vst [vmem:[#allocation162_spill] sm:$0xff] %v9794_v23  ;;  %13752 = vst [vmem:[#allocation206_spill] sm:$0xff] %v9798_v18  ;;  %v9810_v22 = vmul.f32 %v9748_v42, %v13757_v60  ;;  %v9814_v47 = vmul.f32 %v9748_v42, %v13759_v40  ;;  %v13761_v23 = vld [vmem:[#allocation18_spill] sm:$0xff]  ;;  %v13763_v18 = vld [vmem:[#allocation19_spill] sm:$0xff] }
 0x43c   :  { %13754 = vst [vmem:[#allocation207_spill] sm:$0xff] %v9802_v56  ;;  %13756 = vst [vmem:[#allocation210_spill] sm:$0xff] %v9806_v37  ;;  %v9818_v48 = vmul.f32 %v9748_v42, %v13761_v23  ;;  %v9822_v29 = vmul.f32 %v9748_v42, %v13763_v18  ;;  %v13765_v56 = vld [vmem:[#allocation20_spill] sm:$0xff]  ;;  %v13767_v37 = vld [vmem:[#allocation21_spill] sm:$0xff] }
 0x43d   :  { %13758 = vst [vmem:[#allocation211_spill] sm:$0xff] %v9810_v22  ;;  %13760 = vst [vmem:[#allocation2_spill] sm:$0xff] %v9814_v47  ;;  %v9826_v59 = vmul.f32 %v9748_v42, %v13765_v56  ;;  %v9830_v60 = vmul.f32 %v9748_v42, %v13767_v37  ;;  %v13769_v22 = vld [vmem:[#allocation22_spill] sm:$0xff]  ;;  %v13771_v47 = vld [vmem:[#allocation23_spill] sm:$0xff] }
 0x43e   :  { %13762 = vst [vmem:[#allocation3_spill] sm:$0xff] %v9818_v48  ;;  %13764 = vst [vmem:[#allocation4_spill] sm:$0xff] %v9822_v29  ;;  %v9834_v40 = vmul.f32 %v9748_v42, %v13769_v22  ;;  %v9838_v23 = vmul.f32 %v9748_v42, %v13771_v47  ;;  %v13773_v48 = vld [vmem:[#allocation24_spill] sm:$0xff]  ;;  %v13775_v29 = vld [vmem:[#allocation25_spill] sm:$0xff] }
 0x43f   :  { %13766 = vst [vmem:[#allocation5_spill] sm:$0xff] %v9826_v59  ;;  %13768 = vst [vmem:[#allocation6_spill] sm:$0xff] %v9830_v60  ;;  %v9842_v18 = vmul.f32 %v9748_v42, %v13773_v48  ;;  %v9846_v56 = vmul.f32 %v9748_v42, %v13775_v29  ;;  %v13777_v59 = vld [vmem:[#allocation26_spill] sm:$0xff]  ;;  %v13779_v60 = vld [vmem:[#allocation27_spill] sm:$0xff] }
 0x440   :  { %13770 = vst [vmem:[#allocation7_spill] sm:$0xff] %v9834_v40  ;;  %13772 = vst [vmem:[#allocation8_spill] sm:$0xff] %v9838_v23  ;;  %v9850_v37 = vmul.f32 %v9748_v42, %v13777_v59  ;;  %v9854_v22 = vmul.f32 %v9748_v42, %v13779_v60  ;;  %v13781_v40 = vld [vmem:[#allocation28_spill] sm:$0xff]  ;;  %v13783_v23 = vld [vmem:[#allocation29_spill] sm:$0xff] }
 0x441   :  { %13774 = vst [vmem:[#allocation9_spill] sm:$0xff] %v9842_v18  ;;  %13776 = vst [vmem:[#allocation10_spill] sm:$0xff] %v9846_v56  ;;  %v9858_v47 = vmul.f32 %v9748_v42, %v13781_v40  ;;  %v9862_v48 = vmul.f32 %v9748_v42, %v13783_v23  ;;  %v13785_v18 = vld [vmem:[#allocation30_spill] sm:$0xff]  ;;  %v13787_v56 = vld [vmem:[#allocation31_spill] sm:$0xff] }
 0x442   :  { %13778 = vst [vmem:[#allocation11_spill] sm:$0xff] %v9850_v37  ;;  %13780 = vst [vmem:[#allocation12_spill] sm:$0xff] %v9854_v22  ;;  %v9866_v29 = vmul.f32 %v9748_v42, %v13785_v18  ;;  %v9870_v59 = vmul.f32 %v9748_v42, %v13787_v56  ;;  %v13789_v37 = vld [vmem:[#allocation32_spill] sm:$0xff]  ;;  %v13791_v22 = vld [vmem:[#allocation33_spill] sm:$0xff] }
 0x443   :  { %13782 = vst [vmem:[#allocation13_spill] sm:$0xff] %v9858_v47  ;;  %13784 = vst [vmem:[#allocation14_spill] sm:$0xff] %v9862_v48  ;;  %v9874_v60 = vmul.f32 %v9748_v42, %v13789_v37  ;;  %v9878_v40 = vmul.f32 %v9748_v42, %v13791_v22  ;;  %v13793_v47 = vld [vmem:[#allocation35_spill] sm:$0xff]  ;;  %v13795_v48 = vld [vmem:[#allocation36_spill] sm:$0xff] }
 0x444   :  { %13786 = vst [vmem:[#allocation15_spill] sm:$0xff] %v9866_v29  ;;  %13788 = vst [vmem:[#allocation16_spill] sm:$0xff] %v9870_v59  ;;  %v9882_v23 = vmul.f32 %v9748_v42, %v13793_v47  ;;  %v9886_v18 = vmul.f32 %v9748_v42, %v13795_v48  ;;  %v13797_v29 = vld [vmem:[#allocation38_spill] sm:$0xff]  ;;  %v13799_v59 = vld [vmem:[#allocation39_spill] sm:$0xff] }
 0x445   :  { %13790 = vst [vmem:[#allocation17_spill] sm:$0xff] %v9874_v60  ;;  %13792 = vst [vmem:[#allocation18_spill] sm:$0xff] %v9878_v40  ;;  %v9890_v56 = vmul.f32 %v9748_v42, %v13797_v29  ;;  %v9894_v37 = vmul.f32 %v9748_v42, %v13799_v59  ;;  %v13801_v60 = vld [vmem:[#allocation41_spill] sm:$0xff]  ;;  %v13803_v40 = vld [vmem:[#allocation42_spill] sm:$0xff] }
 0x446   :  { %13794 = vst [vmem:[#allocation19_spill] sm:$0xff] %v9882_v23  ;;  %13796 = vst [vmem:[#allocation20_spill] sm:$0xff] %v9886_v18  ;;  %v9898_v22 = vmul.f32 %v9748_v42, %v13801_v60  ;;  %v9902_v47 = vmul.f32 %v9748_v42, %v13803_v40  ;;  %v13805_v23 = vld [vmem:[#allocation44_spill] sm:$0xff]  ;;  %v13807_v18 = vld [vmem:[#allocation45_spill] sm:$0xff] }
 0x447   :  { %13798 = vst [vmem:[#allocation21_spill] sm:$0xff] %v9890_v56  ;;  %13800 = vst [vmem:[#allocation22_spill] sm:$0xff] %v9894_v37  ;;  %v9906_v48 = vmul.f32 %v9748_v42, %v13805_v23  ;;  %v9910_v29 = vmul.f32 %v9748_v42, %v13807_v18  ;;  %v13809_v56 = vld [vmem:[#allocation47_spill] sm:$0xff]  ;;  %v13811_v37 = vld [vmem:[#allocation48_spill] sm:$0xff] }
 0x448   :  { %13802 = vst [vmem:[#allocation23_spill] sm:$0xff] %v9898_v22  ;;  %13804 = vst [vmem:[#allocation24_spill] sm:$0xff] %v9902_v47  ;;  %v9914_v59 = vmul.f32 %v9748_v42, %v13809_v56  ;;  %v9918_v60 = vmul.f32 %v9748_v42, %v13811_v37  ;;  %v13813_v22 = vld [vmem:[#allocation50_spill] sm:$0xff]  ;;  %v13815_v47 = vld [vmem:[#allocation51_spill] sm:$0xff] }
 0x449   :  { %13806 = vst [vmem:[#allocation25_spill] sm:$0xff] %v9906_v48  ;;  %13808 = vst [vmem:[#allocation26_spill] sm:$0xff] %v9910_v29  ;;  %v9922_v40 = vmul.f32 %v9748_v42, %v13813_v22  ;;  %v9926_v23 = vmul.f32 %v9748_v42, %v13815_v47  ;;  %v13817_v48 = vld [vmem:[#allocation53_spill] sm:$0xff]  ;;  %v13819_v29 = vld [vmem:[#allocation54_spill] sm:$0xff] }
 0x44a   :  { %13810 = vst [vmem:[#allocation27_spill] sm:$0xff] %v9914_v59  ;;  %13812 = vst [vmem:[#allocation28_spill] sm:$0xff] %v9918_v60  ;;  %v9930_v18 = vmul.f32 %v9748_v42, %v13817_v48  ;;  %v9934_v56 = vmul.f32 %v9748_v42, %v13819_v29  ;;  %v13821_v59 = vld [vmem:[#allocation56_spill] sm:$0xff]  ;;  %v13823_v60 = vld [vmem:[#allocation57_spill] sm:$0xff] }
 0x44b   :  { %13814 = vst [vmem:[#allocation29_spill] sm:$0xff] %v9922_v40  ;;  %13816 = vst [vmem:[#allocation30_spill] sm:$0xff] %v9926_v23  ;;  %v9938_v37 = vmul.f32 %v9748_v42, %v13821_v59  ;;  %v9942_v22 = vmul.f32 %v9748_v42, %v13823_v60  ;;  %v13825_v40 = vld [vmem:[#allocation59_spill] sm:$0xff]  ;;  %v13827_v23 = vld [vmem:[#allocation60_spill] sm:$0xff] }
 0x44c   :  { %13818 = vst [vmem:[#allocation31_spill] sm:$0xff] %v9930_v18  ;;  %13820 = vst [vmem:[#allocation32_spill] sm:$0xff] %v9934_v56  ;;  %v9946_v47 = vmul.f32 %v9748_v42, %v13825_v40  ;;  %v9950_v48 = vmul.f32 %v9748_v42, %v13827_v23  ;;  %v13829_v18 = vld [vmem:[#allocation62_spill] sm:$0xff]  ;;  %v13831_v56 = vld [vmem:[#allocation63_spill] sm:$0xff] }
 0x44d   :  { %13822 = vst [vmem:[#allocation33_spill] sm:$0xff] %v9938_v37  ;;  %13824 = vst [vmem:[#allocation35_spill] sm:$0xff] %v9942_v22  ;;  %v9954_v29 = vmul.f32 %v9748_v42, %v13829_v18  ;;  %v9958_v59 = vmul.f32 %v9748_v42, %v13831_v56  ;;  %v13833_v37 = vld [vmem:[#allocation65_spill] sm:$0xff]  ;;  %v13835_v22 = vld [vmem:[#allocation66_spill] sm:$0xff] }
 0x44e   :  { %13826 = vst [vmem:[#allocation36_spill] sm:$0xff] %v9946_v47  ;;  %13828 = vst [vmem:[#allocation38_spill] sm:$0xff] %v9950_v48  ;;  %v9962_v60 = vmul.f32 %v9748_v42, %v13833_v37  ;;  %v9966_v40 = vmul.f32 %v9748_v42, %v13835_v22  ;;  %v13837_v47 = vld [vmem:[#allocation68_spill] sm:$0xff]  ;;  %v13839_v48 = vld [vmem:[#allocation69_spill] sm:$0xff] }
 0x44f   :  { %13830 = vst [vmem:[#allocation39_spill] sm:$0xff] %v9954_v29  ;;  %13832 = vst [vmem:[#allocation41_spill] sm:$0xff] %v9958_v59  ;;  %v9970_v23 = vmul.f32 %v9748_v42, %v13837_v47  ;;  %v9974_v18 = vmul.f32 %v9748_v42, %v13839_v48  ;;  %v13841_v29 = vld [vmem:[#allocation72_spill] sm:$0xff]  ;;  %v13843_v59 = vld [vmem:[#allocation73_spill] sm:$0xff] }
 0x450   :  { %13834 = vst [vmem:[#allocation42_spill] sm:$0xff] %v9962_v60  ;;  %13836 = vst [vmem:[#allocation44_spill] sm:$0xff] %v9966_v40  ;;  %v9978_v56 = vmul.f32 %v9748_v42, %v13841_v29  ;;  %v9982_v37 = vmul.f32 %v9748_v42, %v13843_v59  ;;  %v13845_v60 = vld [vmem:[#allocation76_spill] sm:$0xff]  ;;  %v13847_v40 = vld [vmem:[#allocation77_spill] sm:$0xff] }
 0x451   :  { %13838 = vst [vmem:[#allocation45_spill] sm:$0xff] %v9970_v23  ;;  %13840 = vst [vmem:[#allocation47_spill] sm:$0xff] %v9974_v18  ;;  %v9986_v22 = vmul.f32 %v9748_v42, %v13845_v60  ;;  %v9990_v47 = vmul.f32 %v9748_v42, %v13847_v40  ;;  %v13849_v23 = vld [vmem:[#allocation80_spill] sm:$0xff]  ;;  %v13851_v18 = vld [vmem:[#allocation81_spill] sm:$0xff] }
 0x452   :  { %13842 = vst [vmem:[#allocation48_spill] sm:$0xff] %v9978_v56  ;;  %13844 = vst [vmem:[#allocation50_spill] sm:$0xff] %v9982_v37  ;;  %v9994_v48 = vmul.f32 %v9748_v42, %v13849_v23  ;;  %v9998_v29 = vmul.f32 %v9748_v42, %v13851_v18  ;;  %v13853_v56 = vld [vmem:[#allocation84_spill] sm:$0xff]  ;;  %v13855_v37 = vld [vmem:[#allocation85_spill] sm:$0xff] }
 0x453   :  { %13846 = vst [vmem:[#allocation51_spill] sm:$0xff] %v9986_v22  ;;  %13848 = vst [vmem:[#allocation53_spill] sm:$0xff] %v9990_v47  ;;  %v10002_v59 = vmul.f32 %v9748_v42, %v13853_v56  ;;  %v10006_v60 = vmul.f32 %v9748_v42, %v13855_v37  ;;  %v13857_v22 = vld [vmem:[#allocation88_spill] sm:$0xff]  ;;  %v13859_v47 = vld [vmem:[#allocation89_spill] sm:$0xff] }
 0x454   :  { %13850 = vst [vmem:[#allocation54_spill] sm:$0xff] %v9994_v48  ;;  %13852 = vst [vmem:[#allocation56_spill] sm:$0xff] %v9998_v29  ;;  %v10010_v40 = vmul.f32 %v9748_v42, %v13857_v22  ;;  %v10014_v23 = vmul.f32 %v9748_v42, %v13859_v47  ;;  %v13861_v48 = vld [vmem:[#allocation92_spill] sm:$0xff]  ;;  %v13863_v29 = vld [vmem:[#allocation93_spill] sm:$0xff] }
 0x455   :  { %13854 = vst [vmem:[#allocation57_spill] sm:$0xff] %v10002_v59  ;;  %13856 = vst [vmem:[#allocation59_spill] sm:$0xff] %v10006_v60  ;;  %v10018_v18 = vmul.f32 %v9748_v42, %v13861_v48  ;;  %v10022_v56 = vmul.f32 %v9748_v42, %v13863_v29  ;;  %v13865_v59 = vld [vmem:[#allocation96_spill] sm:$0xff]  ;;  %v13867_v60 = vld [vmem:[#allocation97_spill] sm:$0xff] }
 0x456   :  { %13858 = vst [vmem:[#allocation60_spill] sm:$0xff] %v10010_v40  ;;  %13860 = vst [vmem:[#allocation62_spill] sm:$0xff] %v10014_v23  ;;  %v10026_v37 = vmul.f32 %v9748_v42, %v13865_v59  ;;  %v10030_v22 = vmul.f32 %v9748_v42, %v13867_v60  ;;  %v13869_v40 = vld [vmem:[#allocation100_spill] sm:$0xff]  ;;  %v13871_v23 = vld [vmem:[#allocation101_spill] sm:$0xff] }
 0x457   :  { %13862 = vst [vmem:[#allocation63_spill] sm:$0xff] %v10018_v18  ;;  %13864 = vst [vmem:[#allocation65_spill] sm:$0xff] %v10022_v56  ;;  %v10034_v47 = vmul.f32 %v9748_v42, %v13869_v40  ;;  %v10038_v48 = vmul.f32 %v9748_v42, %v13871_v23  ;;  %v13873_v18 = vld [vmem:[#allocation104_spill] sm:$0xff]  ;;  %v13875_v56 = vld [vmem:[#allocation105_spill] sm:$0xff] }
 0x458   :  { %13866 = vst [vmem:[#allocation66_spill] sm:$0xff] %v10026_v37  ;;  %13868 = vst [vmem:[#allocation68_spill] sm:$0xff] %v10030_v22  ;;  %v10042_v29 = vmul.f32 %v9748_v42, %v13873_v18  ;;  %v10046_v59 = vmul.f32 %v9748_v42, %v13875_v56  ;;  %v13877_v37 = vld [vmem:[#allocation108_spill] sm:$0xff]  ;;  %v13879_v22 = vld [vmem:[#allocation109_spill] sm:$0xff] }
 0x459   :  { %13870 = vst [vmem:[#allocation69_spill] sm:$0xff] %v10034_v47  ;;  %13872 = vst [vmem:[#allocation72_spill] sm:$0xff] %v10038_v48  ;;  %v10050_v60 = vmul.f32 %v9748_v42, %v13877_v37  ;;  %v10054_v40 = vmul.f32 %v9748_v42, %v13879_v22  ;;  %v13881_v47 = vld [vmem:[#allocation112_spill] sm:$0xff]  ;;  %v13883_v48 = vld [vmem:[#allocation113_spill] sm:$0xff] }
 0x45a   :  { %13874 = vst [vmem:[#allocation73_spill] sm:$0xff] %v10042_v29  ;;  %13876 = vst [vmem:[#allocation76_spill] sm:$0xff] %v10046_v59  ;;  %v10058_v23 = vmul.f32 %v9748_v42, %v13881_v47  ;;  %v10062_v18 = vmul.f32 %v9748_v42, %v13883_v48  ;;  %v13885_v29 = vld [vmem:[#allocation116_spill] sm:$0xff]  ;;  %v13887_v59 = vld [vmem:[#allocation117_spill] sm:$0xff] }
 0x45b   :  { %13878 = vst [vmem:[#allocation77_spill] sm:$0xff] %v10050_v60  ;;  %13880 = vst [vmem:[#allocation80_spill] sm:$0xff] %v10054_v40  ;;  %v10066_v56 = vmul.f32 %v9748_v42, %v13885_v29  ;;  %v10070_v37 = vmul.f32 %v9748_v42, %v13887_v59  ;;  %v13889_v60 = vld [vmem:[#allocation120_spill] sm:$0xff]  ;;  %v13891_v40 = vld [vmem:[#allocation121_spill] sm:$0xff] }
 0x45c   :  { %13882 = vst [vmem:[#allocation81_spill] sm:$0xff] %v10058_v23  ;;  %13884 = vst [vmem:[#allocation84_spill] sm:$0xff] %v10062_v18  ;;  %v10074_v22 = vmul.f32 %v9748_v42, %v13889_v60  ;;  %v10078_v47 = vmul.f32 %v9748_v42, %v13891_v40  ;;  %v13893_v23 = vld [vmem:[#allocation124_spill] sm:$0xff]  ;;  %v13895_v18 = vld [vmem:[#allocation125_spill] sm:$0xff] }
 0x45d   :  { %13886 = vst [vmem:[#allocation85_spill] sm:$0xff] %v10066_v56  ;;  %13888 = vst [vmem:[#allocation88_spill] sm:$0xff] %v10070_v37  ;;  %v10082_v48 = vmul.f32 %v9748_v42, %v13893_v23  ;;  %v10086_v29 = vmul.f32 %v9748_v42, %v13895_v18  ;;  %v13897_v56 = vld [vmem:[#allocation128_spill] sm:$0xff]  ;;  %v13899_v37 = vld [vmem:[#allocation129_spill] sm:$0xff] }
 0x45e   :  { %13890 = vst [vmem:[#allocation89_spill] sm:$0xff] %v10074_v22  ;;  %13892 = vst [vmem:[#allocation92_spill] sm:$0xff] %v10078_v47  ;;  %v10090_v59 = vmul.f32 %v9748_v42, %v13897_v56  ;;  %v10094_v60 = vmul.f32 %v9748_v42, %v13899_v37  ;;  %v13901_v22 = vld [vmem:[#allocation132_spill] sm:$0xff]  ;;  %v13903_v47 = vld [vmem:[#allocation133_spill] sm:$0xff] }
 0x45f   :  { %13894 = vst [vmem:[#allocation93_spill] sm:$0xff] %v10082_v48  ;;  %13896 = vst [vmem:[#allocation96_spill] sm:$0xff] %v10086_v29  ;;  %v10098_v40 = vmul.f32 %v9748_v42, %v13901_v22  ;;  %v10102_v23 = vmul.f32 %v9748_v42, %v13903_v47  ;;  %v13905_v48 = vld [vmem:[#allocation136_spill] sm:$0xff]  ;;  %v13907_v29 = vld [vmem:[#allocation137_spill] sm:$0xff] }
 0x460   :  { %13898 = vst [vmem:[#allocation97_spill] sm:$0xff] %v10090_v59  ;;  %13900 = vst [vmem:[#allocation100_spill] sm:$0xff] %v10094_v60  ;;  %v10106_v18 = vmul.f32 %v9748_v42, %v13905_v48  ;;  %v10110_v56 = vmul.f32 %v9748_v42, %v13907_v29  ;;  %v13909_v59 = vld [vmem:[#allocation140_spill] sm:$0xff]  ;;  %v13911_v60 = vld [vmem:[#allocation141_spill] sm:$0xff] }
 0x461   :  { %13902 = vst [vmem:[#allocation101_spill] sm:$0xff] %v10098_v40  ;;  %13904 = vst [vmem:[#allocation104_spill] sm:$0xff] %v10102_v23  ;;  %v10114_v37 = vmul.f32 %v9748_v42, %v13909_v59  ;;  %v10118_v22 = vmul.f32 %v9748_v42, %v13911_v60  ;;  %v13913_v40 = vld [vmem:[#allocation144_spill] sm:$0xff]  ;;  %v13915_v23 = vld [vmem:[#allocation145_spill] sm:$0xff] }
 0x462   :  { %13906 = vst [vmem:[#allocation105_spill] sm:$0xff] %v10106_v18  ;;  %13908 = vst [vmem:[#allocation108_spill] sm:$0xff] %v10110_v56  ;;  %v10122_v47 = vmul.f32 %v9748_v42, %v13913_v40  ;;  %v10126_v48 = vmul.f32 %v9748_v42, %v13915_v23  ;;  %v13917_v18 = vld [vmem:[#allocation148_spill] sm:$0xff]  ;;  %v13919_v56 = vld [vmem:[#allocation149_spill] sm:$0xff] }
 0x463   :  { %13910 = vst [vmem:[#allocation109_spill] sm:$0xff] %v10114_v37  ;;  %13912 = vst [vmem:[#allocation112_spill] sm:$0xff] %v10118_v22  ;;  %v10130_v29 = vmul.f32 %v9748_v42, %v13917_v18  ;;  %v10134_v59 = vmul.f32 %v9748_v42, %v13919_v56  ;;  %v13921_v37 = vld [vmem:[#allocation152_spill] sm:$0xff]  ;;  %v13923_v22 = vld [vmem:[#allocation153_spill] sm:$0xff] }
 0x464   :  { %13914 = vst [vmem:[#allocation113_spill] sm:$0xff] %v10122_v47  ;;  %13916 = vst [vmem:[#allocation116_spill] sm:$0xff] %v10126_v48  ;;  %v10138_v60 = vmul.f32 %v9748_v42, %v13921_v37  ;;  %v10142_v40 = vmul.f32 %v9748_v42, %v13923_v22  ;;  %v13925_v47 = vld [vmem:[#allocation156_spill] sm:$0xff]  ;;  %v13927_v48 = vld [vmem:[#allocation157_spill] sm:$0xff] }
 0x465   :  { %13918 = vst [vmem:[#allocation117_spill] sm:$0xff] %v10130_v29  ;;  %13920 = vst [vmem:[#allocation120_spill] sm:$0xff] %v10134_v59  ;;  %v10146_v23 = vmul.f32 %v9748_v42, %v13925_v47  ;;  %v10150_v18 = vmul.f32 %v9748_v42, %v13927_v48  ;;  %v13929_v29 = vld [vmem:[#allocation160_spill] sm:$0xff]  ;;  %v13931_v59 = vld [vmem:[#allocation161_spill] sm:$0xff] }
 0x466   :  { %13922 = vst [vmem:[#allocation121_spill] sm:$0xff] %v10138_v60  ;;  %13924 = vst [vmem:[#allocation124_spill] sm:$0xff] %v10142_v40  ;;  %v10154_v56 = vmul.f32 %v9748_v42, %v13929_v29  ;;  %v10158_v37 = vmul.f32 %v9748_v42, %v13931_v59  ;;  %v13933_v60 = vld [vmem:[#allocation164_spill] sm:$0xff]  ;;  %v13935_v40 = vld [vmem:[#allocation165_spill] sm:$0xff] }
 0x467   :  { %13926 = vst [vmem:[#allocation125_spill] sm:$0xff] %v10146_v23  ;;  %13928 = vst [vmem:[#allocation128_spill] sm:$0xff] %v10150_v18  ;;  %v10162_v22 = vmul.f32 %v9748_v42, %v13933_v60  ;;  %v10166_v47 = vmul.f32 %v9748_v42, %v13935_v40  ;;  %v13937_v23 = vld [vmem:[#allocation168_spill] sm:$0xff]  ;;  %v13939_v18 = vld [vmem:[#allocation169_spill] sm:$0xff] }
 0x468   :  { %13930 = vst [vmem:[#allocation129_spill] sm:$0xff] %v10154_v56  ;;  %13932 = vst [vmem:[#allocation132_spill] sm:$0xff] %v10158_v37  ;;  %v10170_v48 = vmul.f32 %v9748_v42, %v13937_v23  ;;  %v10174_v29 = vmul.f32 %v9748_v42, %v13939_v18  ;;  %v13941_v56 = vld [vmem:[#allocation172_spill] sm:$0xff]  ;;  %v13943_v37 = vld [vmem:[#allocation173_spill] sm:$0xff] }
 0x469   :  { %13934 = vst [vmem:[#allocation133_spill] sm:$0xff] %v10162_v22  ;;  %13936 = vst [vmem:[#allocation136_spill] sm:$0xff] %v10166_v47  ;;  %v10178_v59 = vmul.f32 %v9748_v42, %v13941_v56  ;;  %v10182_v60 = vmul.f32 %v9748_v42, %v13943_v37  ;;  %v13945_v22 = vld [vmem:[#allocation176_spill] sm:$0xff]  ;;  %v13947_v47 = vld [vmem:[#allocation177_spill] sm:$0xff] }
 0x46a   :  { %13938 = vst [vmem:[#allocation137_spill] sm:$0xff] %v10170_v48  ;;  %13940 = vst [vmem:[#allocation140_spill] sm:$0xff] %v10174_v29  ;;  %v10186_v40 = vmul.f32 %v9748_v42, %v13945_v22  ;;  %v10190_v23 = vmul.f32 %v9748_v42, %v13947_v47  ;;  %v13949_v48 = vld [vmem:[#allocation180_spill] sm:$0xff]  ;;  %v13951_v29 = vld [vmem:[#allocation181_spill] sm:$0xff] }
 0x46b   :  { %13942 = vst [vmem:[#allocation141_spill] sm:$0xff] %v10178_v59  ;;  %13944 = vst [vmem:[#allocation144_spill] sm:$0xff] %v10182_v60  ;;  %v10194_v18 = vmul.f32 %v9748_v42, %v13949_v48  ;;  %v10198_v56 = vmul.f32 %v9748_v42, %v13951_v29  ;;  %v13953_v59 = vld [vmem:[#allocation184_spill] sm:$0xff]  ;;  %v13955_v60 = vld [vmem:[#allocation185_spill] sm:$0xff] }
 0x46c   :  { %13946 = vst [vmem:[#allocation145_spill] sm:$0xff] %v10186_v40  ;;  %13948 = vst [vmem:[#allocation148_spill] sm:$0xff] %v10190_v23  ;;  %v10202_v37 = vmul.f32 %v9748_v42, %v13953_v59  ;;  %v10206_v22 = vmul.f32 %v9748_v42, %v13955_v60  ;;  %v13957_v40 = vld [vmem:[#allocation188_spill] sm:$0xff]  ;;  %v13959_v23 = vld [vmem:[#allocation189_spill] sm:$0xff] }
 0x46d   :  { %13950 = vst [vmem:[#allocation149_spill] sm:$0xff] %v10194_v18  ;;  %13952 = vst [vmem:[#allocation152_spill] sm:$0xff] %v10198_v56  ;;  %v10210_v47 = vmul.f32 %v9748_v42, %v13957_v40  ;;  %v10214_v48 = vmul.f32 %v9748_v42, %v13959_v23  ;;  %v13961_v18 = vld [vmem:[#allocation192_spill] sm:$0xff]  ;;  %v13963_v56 = vld [vmem:[#allocation193_spill] sm:$0xff] }
 0x46e   :  { %13954 = vst [vmem:[#allocation153_spill] sm:$0xff] %v10202_v37  ;;  %13956 = vst [vmem:[#allocation156_spill] sm:$0xff] %v10206_v22  ;;  %v10218_v29 = vmul.f32 %v9748_v42, %v13961_v18  ;;  %v10222_v59 = vmul.f32 %v9748_v42, %v13963_v56  ;;  %v13965_v37 = vld [vmem:[#allocation196_spill] sm:$0xff]  ;;  %v13967_v22 = vld [vmem:[#allocation197_spill] sm:$0xff] }
 0x46f   :  { %13958 = vst [vmem:[#allocation157_spill] sm:$0xff] %v10210_v47  ;;  %13960 = vst [vmem:[#allocation160_spill] sm:$0xff] %v10214_v48  ;;  %v10226_v60 = vmul.f32 %v9748_v42, %v13965_v37  ;;  %v10230_v40 = vmul.f32 %v9748_v42, %v13967_v22  ;;  %v13969_v47 = vld [vmem:[#allocation200_spill] sm:$0xff]  ;;  %v13971_v48 = vld [vmem:[#allocation201_spill] sm:$0xff] }
 0x470   :  { %13962 = vst [vmem:[#allocation161_spill] sm:$0xff] %v10218_v29  ;;  %13964 = vst [vmem:[#allocation164_spill] sm:$0xff] %v10222_v59  ;;  %v10234_v23 = vmul.f32 %v9748_v42, %v13969_v47  ;;  %v10238_v18 = vmul.f32 %v9748_v42, %v13971_v48  ;;  %v13973_v29 = vld [vmem:[#allocation204_spill] sm:$0xff]  ;;  %v13974_v59 = vld [vmem:[#allocation205_spill] sm:$0xff] }
 0x471   :  { %13966 = vst [vmem:[#allocation165_spill] sm:$0xff] %v10226_v60  ;;  %13968 = vst [vmem:[#allocation168_spill] sm:$0xff] %v10230_v40  ;;  %v10242_v56 = vmul.f32 %v9748_v42, %v13973_v29  ;;  %v10246_v37 = vmul.f32 %v9748_v42, %v13974_v59  ;;  %v13976_v60 = vld [vmem:[#allocation208_spill] sm:$0xff]  ;;  %v13978_v40 = vld [vmem:[#allocation209_spill] sm:$0xff]  ;;  %v10266_v59 = vmul.f32 %v9748_v42, %v8268_v0 }
 0x472   :  { %13970 = vst [vmem:[#allocation169_spill] sm:$0xff] %v10234_v23  ;;  %13972 = vst [vmem:[#allocation172_spill] sm:$0xff] %v10238_v18  ;;  %v10250_v22 = vmul.f32 %v9748_v42, %v13976_v60  ;;  %v10254_v47 = vmul.f32 %v9748_v42, %v13978_v40  ;;  %v13979_v23 = vld [vmem:[#allocation212_spill] sm:$0xff]  ;;  %v13980_v18 = vld [vmem:[#allocation213_spill] sm:$0xff] }
 0x473   :  { %13975 = vst [vmem:[#allocation173_spill] sm:$0xff] %v10246_v37  ;;  %v10258_v48 = vmul.f32 %v9748_v42, %v13979_v23  ;;  %v10262_v29 = vmul.f32 %v9748_v42, %v13980_v18  ;;  %13982 = vst [vmem:[#allocation180_spill] sm:$0xff] %v10266_v59  ;;  %v13983_v37 = vld [vmem:[#allocation34_spill] sm:$0xff]  ;;  %v10278_v23 = vmul.f32 %v9748_v42, %v8296_v38  ;;  %v13988_v59 = vld [vmem:[#allocation43_spill] sm:$0xff] }
 0x474   :  { %13977 = vst [vmem:[#allocation176_spill] sm:$0xff] %v10250_v22  ;;  %v10270_v60 = vmul.f32 %v9748_v42, %v13983_v37  ;;  %v13984_v22 = vld [vmem:[#allocation37_spill] sm:$0xff]  ;;  %v10282_v18 = vmul.f32 %v9748_v42, %v8320_v11  ;;  %v10290_v37 = vmul.f32 %v9748_v42, %v13988_v59  ;;  %v10298_v38 = vmul.f32 %v9748_v42, %v8372_v54 }
 0x475   :  { %13981 = vst [vmem:[#allocation177_spill] sm:$0xff] %v10262_v29  ;;  %v10274_v40 = vmul.f32 %v9748_v42, %v13984_v22  ;;  %13985 = vst [vmem:[#allocation181_spill] sm:$0xff] %v10278_v23  ;;  %v13987_v29 = vld [vmem:[#allocation40_spill] sm:$0xff]  ;;  %v10294_v22 = vmul.f32 %v9748_v42, %v8348_v1  ;;  %v13991_v23 = vld [vmem:[#allocation46_spill] sm:$0xff]  ;;  %v10310_v59 = vmul.f32 %v9748_v42, %v8400_v30 }
 0x476   :  { %13986 = vst [vmem:[#allocation184_spill] sm:$0xff] %v10282_v18  ;;  %v10286_v0 = vmul.f32 %v9748_v42, %v13987_v29  ;;  %13990 = vst [vmem:[#allocation188_spill] sm:$0xff] %v10298_v38  ;;  %v10302_v11 = vmul.f32 %v9748_v42, %v13991_v23  ;;  %v13992_v18 = vld [vmem:[#allocation49_spill] sm:$0xff]  ;;  %v10314_v1 = vmul.f32 %v9748_v42, %v8424_v36  ;;  %v13996_v38 = vld [vmem:[#allocation55_spill] sm:$0xff] }
 0x477   :  { %13989 = vst [vmem:[#allocation185_spill] sm:$0xff] %v10294_v22  ;;  %v10306_v29 = vmul.f32 %v9748_v42, %v13992_v18  ;;  %13993 = vst [vmem:[#allocation189_spill] sm:$0xff] %v10310_v59  ;;  %v13995_v22 = vld [vmem:[#allocation52_spill] sm:$0xff]  ;;  %v10322_v23 = vmul.f32 %v9748_v42, %v13996_v38  ;;  %v10326_v18 = vmul.f32 %v9748_v42, %v8452_v58  ;;  %v13999_v59 = vld [vmem:[#allocation58_spill] sm:$0xff] }
 0x478   :  { %13994 = vst [vmem:[#allocation192_spill] sm:$0xff] %v10314_v1  ;;  %v10318_v54 = vmul.f32 %v9748_v42, %v13995_v22  ;;  %v10330_v30 = vmul.f32 %v9748_v42, %v8476_v10  ;;  %v10334_v36 = vmul.f32 %v9748_v42, %v13999_v59  ;;  %v14000_v1 = vld [vmem:[#allocation61_spill] sm:$0xff]  ;;  %v10342_v38 = vmul.f32 %v9748_v42, %v8504_v51 }
 0x479   :  { %13997 = vst [vmem:[#allocation193_spill] sm:$0xff] %v10326_v18  ;;  %v10338_v22 = vmul.f32 %v9748_v42, %v14000_v1  ;;  %v10346_v58 = vmul.f32 %v9748_v42, %v8528_v20  ;;  %v14004_v18 = vld [vmem:[#allocation64_spill] sm:$0xff]  ;;  %v10358_v1 = vmul.f32 %v9748_v42, %v8556_v2 }
 0x47a   :  { %13998 = vst [vmem:[#allocation196_spill] sm:$0xff] %v10330_v30  ;;  %14002 = vst [vmem:[#allocation200_spill] sm:$0xff] %v10342_v38  ;;  %v10350_v10 = vmul.f32 %v9748_v42, %v14004_v18  ;;  %v14006_v30 = vld [vmem:[#allocation67_spill] sm:$0xff] }
 0x47b   :  { %14001 = vst [vmem:[#allocation197_spill] sm:$0xff] %v10338_v22  ;;  %14003 = vst [vmem:[#allocation201_spill] sm:$0xff] %v10346_v58  ;;  %v10354_v59 = vmul.f32 %v9748_v42, %v14006_v30  ;;  %v14009_v22 = vld [vmem:[#allocation70_spill] sm:$0xff]  ;;  %v14011_v38 = vld [vmem:[#allocation71_spill] sm:$0xff] }
 0x47c   :  { %14005 = vst [vmem:[#allocation204_spill] sm:$0xff] %v10350_v10  ;;  %14008 = vst [vmem:[#allocation208_spill] sm:$0xff] %v10358_v1  ;;  %v10362_v51 = vmul.f32 %v9748_v42, %v14009_v22  ;;  %v10366_v20 = vmul.f32 %v9748_v42, %v14011_v38  ;;  %v14013_v58 = vld [vmem:[#allocation74_spill] sm:$0xff]  ;;  %v14015_v10 = vld [vmem:[#allocation75_spill] sm:$0xff] }
 0x47d   :  { %14007 = vst [vmem:[#allocation205_spill] sm:$0xff] %v10354_v59  ;;  %v10370_v18 = vmul.f32 %v9748_v42, %v14013_v58  ;;  %v10374_v30 = vmul.f32 %v9748_v42, %v14015_v10  ;;  %v14017_v59 = vld [vmem:[#allocation78_spill] sm:$0xff]  ;;  %v14019_v1 = vld [vmem:[#allocation79_spill] sm:$0xff] }
 0x47e   :  { %14010 = vst [vmem:[#allocation209_spill] sm:$0xff] %v10362_v51  ;;  %14012 = vst [vmem:[#allocation212_spill] sm:$0xff] %v10366_v20  ;;  %v10378_v2 = vmul.f32 %v9748_v42, %v14017_v59  ;;  %v10382_v22 = vmul.f32 %v9748_v42, %v14019_v1  ;;  %v14021_v51 = vld [vmem:[#allocation82_spill] sm:$0xff]  ;;  %v14023_v20 = vld [vmem:[#allocation83_spill] sm:$0xff] }
 0x47f   :  { %14014 = vst [vmem:[#allocation213_spill] sm:$0xff] %v10370_v18  ;;  %14016 = vst [vmem:[#allocation34_spill] sm:$0xff] %v10374_v30  ;;  %v10386_v38 = vmul.f32 %v9748_v42, %v14021_v51  ;;  %v10390_v58 = vmul.f32 %v9748_v42, %v14023_v20  ;;  %v14025_v18 = vld [vmem:[#allocation86_spill] sm:$0xff]  ;;  %v14027_v30 = vld [vmem:[#allocation87_spill] sm:$0xff] }
 0x480   :  { %14018 = vst [vmem:[#allocation37_spill] sm:$0xff] %v10378_v2  ;;  %14020 = vst [vmem:[#allocation40_spill] sm:$0xff] %v10382_v22  ;;  %v10394_v10 = vmul.f32 %v9748_v42, %v14025_v18  ;;  %v10398_v59 = vmul.f32 %v9748_v42, %v14027_v30  ;;  %v14029_v2 = vld [vmem:[#allocation90_spill] sm:$0xff]  ;;  %v14031_v22 = vld [vmem:[#allocation91_spill] sm:$0xff] }
 0x481   :  { %14022 = vst [vmem:[#allocation43_spill] sm:$0xff] %v10386_v38  ;;  %14024 = vst [vmem:[#allocation46_spill] sm:$0xff] %v10390_v58  ;;  %v10402_v1 = vmul.f32 %v9748_v42, %v14029_v2  ;;  %v10406_v51 = vmul.f32 %v9748_v42, %v14031_v22  ;;  %v14033_v38 = vld [vmem:[#allocation94_spill] sm:$0xff]  ;;  %v14035_v58 = vld [vmem:[#allocation95_spill] sm:$0xff] }
 0x482   :  { %14026 = vst [vmem:[#allocation49_spill] sm:$0xff] %v10394_v10  ;;  %14028 = vst [vmem:[#allocation52_spill] sm:$0xff] %v10398_v59  ;;  %v10410_v20 = vmul.f32 %v9748_v42, %v14033_v38  ;;  %v10414_v18 = vmul.f32 %v9748_v42, %v14035_v58  ;;  %v14037_v10 = vld [vmem:[#allocation98_spill] sm:$0xff]  ;;  %v14039_v59 = vld [vmem:[#allocation99_spill] sm:$0xff] }
 0x483   :  { %14030 = vst [vmem:[#allocation55_spill] sm:$0xff] %v10402_v1  ;;  %14032 = vst [vmem:[#allocation58_spill] sm:$0xff] %v10406_v51  ;;  %v10418_v30 = vmul.f32 %v9748_v42, %v14037_v10  ;;  %v10422_v2 = vmul.f32 %v9748_v42, %v14039_v59  ;;  %v14041_v1 = vld [vmem:[#allocation102_spill] sm:$0xff]  ;;  %v14043_v51 = vld [vmem:[#allocation103_spill] sm:$0xff] }
 0x484   :  { %14034 = vst [vmem:[#allocation61_spill] sm:$0xff] %v10410_v20  ;;  %14036 = vst [vmem:[#allocation64_spill] sm:$0xff] %v10414_v18  ;;  %v10426_v22 = vmul.f32 %v9748_v42, %v14041_v1  ;;  %v10430_v38 = vmul.f32 %v9748_v42, %v14043_v51  ;;  %v14045_v20 = vld [vmem:[#allocation106_spill] sm:$0xff]  ;;  %v14047_v18 = vld [vmem:[#allocation107_spill] sm:$0xff] }
 0x485   :  { %14038 = vst [vmem:[#allocation67_spill] sm:$0xff] %v10418_v30  ;;  %14040 = vst [vmem:[#allocation70_spill] sm:$0xff] %v10422_v2  ;;  %v10434_v58 = vmul.f32 %v9748_v42, %v14045_v20  ;;  %v10438_v10 = vmul.f32 %v9748_v42, %v14047_v18  ;;  %v14049_v30 = vld [vmem:[#allocation110_spill] sm:$0xff]  ;;  %v14051_v2 = vld [vmem:[#allocation111_spill] sm:$0xff] }
 0x486   :  { %14042 = vst [vmem:[#allocation71_spill] sm:$0xff] %v10426_v22  ;;  %14044 = vst [vmem:[#allocation74_spill] sm:$0xff] %v10430_v38  ;;  %v10442_v59 = vmul.f32 %v9748_v42, %v14049_v30  ;;  %v10446_v1 = vmul.f32 %v9748_v42, %v14051_v2  ;;  %v14053_v22 = vld [vmem:[#allocation114_spill] sm:$0xff]  ;;  %v14055_v38 = vld [vmem:[#allocation115_spill] sm:$0xff] }
 0x487   :  { %14046 = vst [vmem:[#allocation75_spill] sm:$0xff] %v10434_v58  ;;  %14048 = vst [vmem:[#allocation78_spill] sm:$0xff] %v10438_v10  ;;  %v10450_v51 = vmul.f32 %v9748_v42, %v14053_v22  ;;  %v10454_v20 = vmul.f32 %v9748_v42, %v14055_v38  ;;  %v14057_v58 = vld [vmem:[#allocation118_spill] sm:$0xff]  ;;  %v14059_v10 = vld [vmem:[#allocation119_spill] sm:$0xff] }
 0x488   :  { %14050 = vst [vmem:[#allocation79_spill] sm:$0xff] %v10442_v59  ;;  %14052 = vst [vmem:[#allocation82_spill] sm:$0xff] %v10446_v1  ;;  %v10458_v18 = vmul.f32 %v9748_v42, %v14057_v58  ;;  %v10462_v30 = vmul.f32 %v9748_v42, %v14059_v10  ;;  %v14061_v59 = vld [vmem:[#allocation122_spill] sm:$0xff]  ;;  %v14063_v1 = vld [vmem:[#allocation123_spill] sm:$0xff] }
 0x489   :  { %14054 = vst [vmem:[#allocation83_spill] sm:$0xff] %v10450_v51  ;;  %14056 = vst [vmem:[#allocation86_spill] sm:$0xff] %v10454_v20  ;;  %v10466_v2 = vmul.f32 %v9748_v42, %v14061_v59  ;;  %v10470_v22 = vmul.f32 %v9748_v42, %v14063_v1  ;;  %v14065_v51 = vld [vmem:[#allocation126_spill] sm:$0xff]  ;;  %v14067_v20 = vld [vmem:[#allocation127_spill] sm:$0xff] }
 0x48a   :  { %14058 = vst [vmem:[#allocation87_spill] sm:$0xff] %v10458_v18  ;;  %14060 = vst [vmem:[#allocation90_spill] sm:$0xff] %v10462_v30  ;;  %v10474_v38 = vmul.f32 %v9748_v42, %v14065_v51  ;;  %v10478_v58 = vmul.f32 %v9748_v42, %v14067_v20  ;;  %v14069_v18 = vld [vmem:[#allocation130_spill] sm:$0xff]  ;;  %v14071_v30 = vld [vmem:[#allocation131_spill] sm:$0xff] }
 0x48b   :  { %14062 = vst [vmem:[#allocation91_spill] sm:$0xff] %v10466_v2  ;;  %14064 = vst [vmem:[#allocation94_spill] sm:$0xff] %v10470_v22  ;;  %v10482_v10 = vmul.f32 %v9748_v42, %v14069_v18  ;;  %v10486_v59 = vmul.f32 %v9748_v42, %v14071_v30  ;;  %v14073_v2 = vld [vmem:[#allocation134_spill] sm:$0xff]  ;;  %v14075_v22 = vld [vmem:[#allocation135_spill] sm:$0xff] }
 0x48c   :  { %14066 = vst [vmem:[#allocation95_spill] sm:$0xff] %v10474_v38  ;;  %14068 = vst [vmem:[#allocation98_spill] sm:$0xff] %v10478_v58  ;;  %v10490_v1 = vmul.f32 %v9748_v42, %v14073_v2  ;;  %v10494_v51 = vmul.f32 %v9748_v42, %v14075_v22  ;;  %v14076_v38 = vld [vmem:[#allocation138_spill] sm:$0xff]  ;;  %v14078_v58 = vld [vmem:[#allocation139_spill] sm:$0xff] }
 0x48d   :  { %14070 = vst [vmem:[#allocation99_spill] sm:$0xff] %v10482_v10  ;;  %14072 = vst [vmem:[#allocation102_spill] sm:$0xff] %v10486_v59  ;;  %v10498_v20 = vmul.f32 %v9748_v42, %v14076_v38  ;;  %v10502_v18 = vmul.f32 %v9748_v42, %v14078_v58  ;;  %v14079_v10 = vld [vmem:[#allocation142_spill] sm:$0xff]  ;;  %v14081_v59 = vld [vmem:[#allocation143_spill] sm:$0xff]  ;;  %v10518_v38 = vmul.f32 %v9748_v42, %v13705_v49 }
 0x48e   :  { %14074 = vst [vmem:[#allocation103_spill] sm:$0xff] %v10490_v1  ;;  %v10506_v30 = vmul.f32 %v9748_v42, %v14079_v10  ;;  %v10510_v2 = vmul.f32 %v9748_v42, %v14081_v59  ;;  %v14083_v1 = vld [vmem:[#allocation146_spill] sm:$0xff]  ;;  %v10526_v10 = vmul.f32 %v9748_v42, %v13707_v50  ;;  %v10546_v50 = vmul.f32 %v9748_v42, %v13712_v16 }
 0x48f   :  { %14077 = vst [vmem:[#allocation106_spill] sm:$0xff] %v10498_v20  ;;  %v10514_v22 = vmul.f32 %v9748_v42, %v14083_v1  ;;  %14085 = vst [vmem:[#allocation114_spill] sm:$0xff] %v10518_v38  ;;  %v14086_v20 = vld [vmem:[#allocation150_spill] sm:$0xff]  ;;  %v14094_v38 = vld [vmem:[#allocation159_spill] sm:$0xff] }
 0x490   :  { %14080 = vst [vmem:[#allocation107_spill] sm:$0xff] %v10506_v30  ;;  %14082 = vst [vmem:[#allocation110_spill] sm:$0xff] %v10510_v2  ;;  %v10522_v58 = vmul.f32 %v9748_v42, %v14086_v20  ;;  %v14088_v30 = vld [vmem:[#allocation154_spill] sm:$0xff]  ;;  %v14090_v2 = vld [vmem:[#allocation155_spill] sm:$0xff]  ;;  %v10542_v20 = vmul.f32 %v9748_v42, %v14094_v38 }
 0x491   :  { %14084 = vst [vmem:[#allocation111_spill] sm:$0xff] %v10514_v22  ;;  %14087 = vst [vmem:[#allocation115_spill] sm:$0xff] %v10526_v10  ;;  %v10530_v59 = vmul.f32 %v9748_v42, %v14088_v30  ;;  %v10534_v1 = vmul.f32 %v9748_v42, %v14090_v2  ;;  %v14092_v22 = vld [vmem:[#allocation158_spill] sm:$0xff]  ;;  %v14097_v10 = vld [vmem:[#allocation163_spill] sm:$0xff] }
 0x492   :  { %v10538_v49 = vmul.f32 %v9748_v42, %v14092_v22  ;;  %14095 = vst [vmem:[#allocation123_spill] sm:$0xff] %v10542_v20  ;;  %14096 = vst [vmem:[#allocation126_spill] sm:$0xff] %v10546_v50  ;;  %v10550_v30 = vmul.f32 %v9748_v42, %v14097_v10  ;;  %v14105_v20 = vld [vmem:[#allocation171_spill] sm:$0xff]  ;;  %v14107_v50 = vld [vmem:[#allocation174_spill] sm:$0xff] }
 0x493   :  { %14089 = vst [vmem:[#allocation118_spill] sm:$0xff] %v10530_v59  ;;  %14091 = vst [vmem:[#allocation119_spill] sm:$0xff] %v10534_v1  ;;  %v14099_v59 = vld [vmem:[#allocation166_spill] sm:$0xff]  ;;  %v14101_v1 = vld [vmem:[#allocation167_spill] sm:$0xff]  ;;  %v10566_v16 = vmul.f32 %v9748_v42, %v14105_v20  ;;  %v10570_v10 = vmul.f32 %v9748_v42, %v14107_v50 }
 0x494   :  { %14093 = vst [vmem:[#allocation122_spill] sm:$0xff] %v10538_v49  ;;  %14098 = vst [vmem:[#allocation127_spill] sm:$0xff] %v10550_v30  ;;  %v10554_v2 = vmul.f32 %v9748_v42, %v14099_v59  ;;  %v10558_v22 = vmul.f32 %v9748_v42, %v14101_v1  ;;  %v14103_v49 = vld [vmem:[#allocation170_spill] sm:$0xff]  ;;  %v14109_v30 = vld [vmem:[#allocation175_spill] sm:$0xff] }
 0x495   :  { %v10562_v38 = vmul.f32 %v9748_v42, %v14103_v49  ;;  %14106 = vst [vmem:[#allocation135_spill] sm:$0xff] %v10566_v16  ;;  %14108 = vst [vmem:[#allocation138_spill] sm:$0xff] %v10570_v10  ;;  %v10574_v59 = vmul.f32 %v9748_v42, %v14109_v30  ;;  %v14117_v16 = vld [vmem:[#allocation183_spill] sm:$0xff]  ;;  %v14119_v10 = vld [vmem:[#allocation186_spill] sm:$0xff] }
 0x496   :  { %14100 = vst [vmem:[#allocation130_spill] sm:$0xff] %v10554_v2  ;;  %14102 = vst [vmem:[#allocation131_spill] sm:$0xff] %v10558_v22  ;;  %v14111_v2 = vld [vmem:[#allocation178_spill] sm:$0xff]  ;;  %v14113_v22 = vld [vmem:[#allocation179_spill] sm:$0xff]  ;;  %v10590_v50 = vmul.f32 %v9748_v42, %v14117_v16  ;;  %v10594_v30 = vmul.f32 %v9748_v42, %v14119_v10 }
 0x497   :  { %14104 = vst [vmem:[#allocation134_spill] sm:$0xff] %v10562_v38  ;;  %14110 = vst [vmem:[#allocation139_spill] sm:$0xff] %v10574_v59  ;;  %v10578_v1 = vmul.f32 %v9748_v42, %v14111_v2  ;;  %v10582_v49 = vmul.f32 %v9748_v42, %v14113_v22  ;;  %v14115_v38 = vld [vmem:[#allocation182_spill] sm:$0xff]  ;;  %v14121_v59 = vld [vmem:[#allocation187_spill] sm:$0xff] }
 0x498   :  { %v10586_v20 = vmul.f32 %v9748_v42, %v14115_v38  ;;  %14118 = vst [vmem:[#allocation150_spill] sm:$0xff] %v10590_v50  ;;  %14120 = vst [vmem:[#allocation154_spill] sm:$0xff] %v10594_v30  ;;  %v10598_v2 = vmul.f32 %v9748_v42, %v14121_v59  ;;  %v14128_v50 = vld [vmem:[#allocation195_spill] sm:$0xff]  ;;  %v14129_v30 = vld [vmem:[#allocation198_spill] sm:$0xff] }
 0x499   :  { %14112 = vst [vmem:[#allocation142_spill] sm:$0xff] %v10578_v1  ;;  %14114 = vst [vmem:[#allocation143_spill] sm:$0xff] %v10582_v49  ;;  %v14123_v1 = vld [vmem:[#allocation190_spill] sm:$0xff]  ;;  %v14125_v49 = vld [vmem:[#allocation191_spill] sm:$0xff]  ;;  %v10614_v10 = vmul.f32 %v9748_v42, %v14128_v50  ;;  %v10618_v59 = vmul.f32 %v9748_v42, %v14129_v30  ;;  %v10634_v50 = vmul.f32 %v9748_v42, %v13733_v21 }
 0x49a   :  { %14116 = vst [vmem:[#allocation146_spill] sm:$0xff] %v10586_v20  ;;  %14122 = vst [vmem:[#allocation155_spill] sm:$0xff] %v10598_v2  ;;  %v10602_v22 = vmul.f32 %v9748_v42, %v14123_v1  ;;  %v10606_v38 = vmul.f32 %v9748_v42, %v14125_v49  ;;  %v14127_v20 = vld [vmem:[#allocation194_spill] sm:$0xff]  ;;  %v14130_v2 = vld [vmem:[#allocation199_spill] sm:$0xff]  ;;  %v10638_v30 = vmul.f32 %v9748_v42, %v13734_v12 }
 0x49b   :  { %v10610_v16 = vmul.f32 %v9748_v42, %v14127_v20  ;;  %v10622_v1 = vmul.f32 %v9748_v42, %v14130_v2  ;;  %v10642_v2 = vmul.f32 %v9748_v42, %v13735_v35  ;;  %v10654_v21 = vmul.f32 %v9748_v42, %v9293_v31 }
 0x49c   :  { %14124 = vst [vmem:[#allocation158_spill] sm:$0xff] %v10602_v22  ;;  %14126 = vst [vmem:[#allocation159_spill] sm:$0xff] %v10606_v38  ;;  %v14131_v22 = vld [vmem:[#allocation202_spill] sm:$0xff]  ;;  %v14132_v38 = vld [vmem:[#allocation203_spill] sm:$0xff]  ;;  %v10658_v12 = vmul.f32 %v9748_v42, %v9304_v52  ;;  %v10662_v35 = vmul.f32 %v9748_v42, %v9309_v26  ;;  %v10674_v31 = vmul.f32 %v9748_v42, %v9336_v24 }
 0x49d   :  { %v10626_v49 = vmul.f32 %v9748_v42, %v14131_v22  ;;  %v10630_v20 = vmul.f32 %v9748_v42, %v14132_v38  ;;  %v10646_v22 = vmul.f32 %v9748_v42, %v13736_v13  ;;  %v10650_v38 = vmul.f32 %v9748_v42, %v9288_v7 }
 0x49e   :  { %v10666_v13 = vmul.f32 %v9748_v42, %v9320_v43  ;;  %v10670_v7 = vmul.f32 %v9748_v42, %v9325_v55  ;;  %v10678_v52 = vmul.f32 %v9748_v42, %v9341_v28  ;;  %v10682_v26 = vmul.f32 %v9748_v42, %v9352_v5 }
 0x49f   :  { %v10686_v43 = vmul.f32 %v9748_v42, %v9357_v4  ;;  %v10690_v55 = vmul.f32 %v9748_v42, %v9368_v53  ;;  %v10694_v24 = vmul.f32 %v9748_v42, %v9373_v17  ;;  %v10698_v28 = vmul.f32 %v9748_v42, %v9384_v33 }
 0x4a0   :  { %v10702_v5 = vmul.f32 %v9748_v42, %v9389_v6  ;;  %v10706_v4 = vmul.f32 %v9748_v42, %v9400_v61  ;;  %v10710_v53 = vmul.f32 %v9748_v42, %v9405_v41  ;;  %v10714_v17 = vmul.f32 %v9748_v42, %v9416_v14 }
 0x4a1   :  { %v10718_v33 = vmul.f32 %v9748_v42, %v9421_v19  ;;  %v10722_v6 = vmul.f32 %v9748_v42, %v9432_v46  ;;  %v10726_v61 = vmul.f32 %v9748_v42, %v9437_v25  ;;  %v10730_v41 = vmul.f32 %v9748_v42, %v9448_v9 }
 0x4a2   :  { %14133 = vst [vmem:[#allocation163_spill] sm:$0xff] %v10714_v17  ;;  %v10734_v14 = vmul.f32 %v9748_v42, %v9453_v45  ;;  %v14139_v17 = vld [vmem:[#allocation214_spill] sm:$0xff] }
 0x4a3   :  { %14134 = vst [vmem:[#allocation166_spill] sm:$0xff] %v10718_v33  ;;  %14135 = vst [vmem:[#allocation167_spill] sm:$0xff] %v10722_v6  ;;  %v10738_v19 = vmul.f32 %v9748_v42, %v14139_v17  ;;  %v14141_v33 = vld [vmem:[#allocation215_spill] sm:$0xff]  ;;  %v14143_v6 = vld [vmem:[#allocation216_spill] sm:$0xff] }
 0x4a4   :  { %14136 = vst [vmem:[#allocation170_spill] sm:$0xff] %v10726_v61  ;;  %14137 = vst [vmem:[#allocation171_spill] sm:$0xff] %v10730_v41  ;;  %v10742_v46 = vmul.f32 %v9748_v42, %v14141_v33  ;;  %v10746_v25 = vmul.f32 %v9748_v42, %v14143_v6  ;;  %v14145_v61 = vld [vmem:[#allocation217_spill] sm:$0xff]  ;;  %v14147_v41 = vld [vmem:[#allocation218_spill] sm:$0xff] }
 0x4a5   :  { %14138 = vst [vmem:[#allocation174_spill] sm:$0xff] %v10734_v14  ;;  %14140 = vst [vmem:[#allocation175_spill] sm:$0xff] %v10738_v19  ;;  %v10750_v9 = vmul.f32 %v9748_v42, %v14145_v61  ;;  %v10754_v45 = vmul.f32 %v9748_v42, %v14147_v41  ;;  %v14149_v14 = vld [vmem:[#allocation219_spill] sm:$0xff]  ;;  %v14151_v19 = vld [vmem:[#allocation220_spill] sm:$0xff] }
 0x4a6   :  { %14142 = vst [vmem:[#allocation178_spill] sm:$0xff] %v10742_v46  ;;  %14144 = vst [vmem:[#allocation179_spill] sm:$0xff] %v10746_v25  ;;  %v10758_v17 = vmul.f32 %v9748_v42, %v14149_v14  ;;  %v10762_v33 = vmul.f32 %v9748_v42, %v14151_v19  ;;  %v14152_v46 = vld [vmem:[#allocation221_spill] sm:$0xff]  ;;  %v14153_v25 = vld [vmem:[#allocation222_spill] sm:$0xff]  ;;  %v14156_v14 = vsub.f32 %v9742_v3, %v9744_v39 }
 0x4a7   :  { %14146 = vst [vmem:[#allocation182_spill] sm:$0xff] %v10750_v9  ;;  %14148 = vst [vmem:[#allocation183_spill] sm:$0xff] %v10754_v45  ;;  %v10766_v6 = vmul.f32 %v9748_v42, %v14152_v46  ;;  %v10770_v61 = vmul.f32 %v9748_v42, %v14153_v25  ;;  %v14154_v9 = vld [vmem:[#allocation223_spill] sm:$0xff]  ;;  %v14155_v45 = vsub.s32 0, %v9733_v34 }
 0x4a8   :  { %14150 = vst [vmem:[#allocation186_spill] sm:$0xff] %v10758_v17  ;;  %v10774_v41 = vmul.f32 %v9748_v42, %v14154_v9  ;;  %v14169_v9 = vld [vmem:[#allocation162_spill] sm:$0xff] }
 0x4a9   :  { %v10781_v17 = vrot.slane %v14156_v14, %v14155_v45  ;;  %v14171_v45 = vld [vmem:[#allocation206_spill] sm:$0xff]  ;;  %v14173_v14 = vld [vmem:[#allocation207_spill] sm:$0xff] }
 0x4ab   :  { %v10785_v19 = vadd.f32 %v10781_v17, %v9754_v15  ;;  %v10789_v46 = vadd.f32 %v10781_v17, %v9758_v32  ;;  %v10793_v25 = vadd.f32 %v10781_v17, %v9762_v57  ;;  %v10797_v34 = vadd.f32 %v10781_v17, %v9766_v63  ;;  %v14165_v32 = vld [vmem:[#allocation147_spill] sm:$0xff] }
 0x4ac   :  { %v10801_v3 = vadd.f32 %v10781_v17, %v9770_v8  ;;  %v10805_v39 = vadd.f32 %v10781_v17, %v9774_v44  ;;  %v10809_v42 = vadd.f32 %v10781_v17, %v9778_v62  ;;  %v10813_v15 = vadd.f32 %v10781_v17, %v9782_v27  ;;  %v14167_v63 = vld [vmem:[#allocation151_spill] sm:$0xff] }
 0x4ad   :  { %14157 = vst [vmem:[#allocation187_spill] sm:$0xff] %v10785_v19  ;;  %14158 = vst [vmem:[#allocation190_spill] sm:$0xff] %v10789_v46  ;;  %v10817_v57 = vadd.f32 %v10781_v17, %v14165_v32  ;;  %v10821_v8 = vadd.f32 %v10781_v17, %v14167_v63  ;;  %v10825_v44 = vadd.f32 %v10781_v17, %v14169_v9 }
 0x4ae   :  { %14159 = vst [vmem:[#allocation191_spill] sm:$0xff] %v10793_v25  ;;  %14160 = vst [vmem:[#allocation194_spill] sm:$0xff] %v10797_v34  ;;  %v10829_v62 = vadd.f32 %v10781_v17, %v14171_v45  ;;  %v10833_v27 = vadd.f32 %v10781_v17, %v14173_v14 }
 0x4af   :  { %14161 = vst [vmem:[#allocation195_spill] sm:$0xff] %v10801_v3  ;;  %14162 = vst [vmem:[#allocation198_spill] sm:$0xff] %v10805_v39 }
 0x4b0   :  { %14163 = vst [vmem:[#allocation199_spill] sm:$0xff] %v10809_v42  ;;  %14164 = vst [vmem:[#allocation202_spill] sm:$0xff] %v10813_v15  ;;  %v14175_v15 = vld [vmem:[#allocation210_spill] sm:$0xff] }
 0x4b1   :  { %14166 = vst [vmem:[#allocation203_spill] sm:$0xff] %v10817_v57  ;;  %14168 = vst [vmem:[#allocation214_spill] sm:$0xff] %v10821_v8  ;;  %v10837_v32 = vadd.f32 %v10781_v17, %v14175_v15  ;;  %v14177_v57 = vld [vmem:[#allocation211_spill] sm:$0xff]  ;;  %v14179_v8 = vld [vmem:[#allocation2_spill] sm:$0xff] }
 0x4b2   :  { %14170 = vst [vmem:[#allocation215_spill] sm:$0xff] %v10825_v44  ;;  %14172 = vst [vmem:[#allocation216_spill] sm:$0xff] %v10829_v62  ;;  %v10841_v63 = vadd.f32 %v10781_v17, %v14177_v57  ;;  %v10845_v9 = vadd.f32 %v10781_v17, %v14179_v8  ;;  %v14181_v44 = vld [vmem:[#allocation3_spill] sm:$0xff]  ;;  %v14183_v62 = vld [vmem:[#allocation4_spill] sm:$0xff] }
 0x4b3   :  { %14174 = vst [vmem:[#allocation217_spill] sm:$0xff] %v10833_v27  ;;  %14176 = vst [vmem:[#allocation218_spill] sm:$0xff] %v10837_v32  ;;  %v10849_v45 = vadd.f32 %v10781_v17, %v14181_v44  ;;  %v10853_v14 = vadd.f32 %v10781_v17, %v14183_v62  ;;  %v14185_v27 = vld [vmem:[#allocation5_spill] sm:$0xff]  ;;  %v14187_v32 = vld [vmem:[#allocation6_spill] sm:$0xff] }
 0x4b4   :  { %14178 = vst [vmem:[#allocation219_spill] sm:$0xff] %v10841_v63  ;;  %14180 = vst [vmem:[#allocation220_spill] sm:$0xff] %v10845_v9  ;;  %v10857_v15 = vadd.f32 %v10781_v17, %v14185_v27  ;;  %v10861_v57 = vadd.f32 %v10781_v17, %v14187_v32  ;;  %v14189_v63 = vld [vmem:[#allocation7_spill] sm:$0xff]  ;;  %v14191_v9 = vld [vmem:[#allocation8_spill] sm:$0xff] }
 0x4b5   :  { %14182 = vst [vmem:[#allocation221_spill] sm:$0xff] %v10849_v45  ;;  %14184 = vst [vmem:[#allocation222_spill] sm:$0xff] %v10853_v14  ;;  %v10865_v8 = vadd.f32 %v10781_v17, %v14189_v63  ;;  %v10869_v44 = vadd.f32 %v10781_v17, %v14191_v9  ;;  %v14193_v45 = vld [vmem:[#allocation9_spill] sm:$0xff]  ;;  %v14195_v14 = vld [vmem:[#allocation10_spill] sm:$0xff] }
 0x4b6   :  { %14186 = vst [vmem:[#allocation223_spill] sm:$0xff] %v10857_v15  ;;  %14188 = vst [vmem:[#allocation147_spill] sm:$0xff] %v10861_v57  ;;  %v10873_v62 = vadd.f32 %v10781_v17, %v14193_v45  ;;  %v10877_v27 = vadd.f32 %v10781_v17, %v14195_v14  ;;  %v14197_v15 = vld [vmem:[#allocation11_spill] sm:$0xff]  ;;  %v14199_v57 = vld [vmem:[#allocation12_spill] sm:$0xff] }
 0x4b7   :  { %14190 = vst [vmem:[#allocation151_spill] sm:$0xff] %v10865_v8  ;;  %14192 = vst [vmem:[#allocation162_spill] sm:$0xff] %v10869_v44  ;;  %v10881_v32 = vadd.f32 %v10781_v17, %v14197_v15  ;;  %v10885_v63 = vadd.f32 %v10781_v17, %v14199_v57  ;;  %v14201_v8 = vld [vmem:[#allocation13_spill] sm:$0xff]  ;;  %v14203_v44 = vld [vmem:[#allocation14_spill] sm:$0xff] }
 0x4b8   :  { %14194 = vst [vmem:[#allocation206_spill] sm:$0xff] %v10873_v62  ;;  %14196 = vst [vmem:[#allocation207_spill] sm:$0xff] %v10877_v27  ;;  %v10889_v9 = vadd.f32 %v10781_v17, %v14201_v8  ;;  %v10893_v45 = vadd.f32 %v10781_v17, %v14203_v44  ;;  %v14205_v62 = vld [vmem:[#allocation15_spill] sm:$0xff]  ;;  %v14207_v27 = vld [vmem:[#allocation16_spill] sm:$0xff] }
 0x4b9   :  { %14198 = vst [vmem:[#allocation210_spill] sm:$0xff] %v10881_v32  ;;  %14200 = vst [vmem:[#allocation211_spill] sm:$0xff] %v10885_v63  ;;  %v10897_v14 = vadd.f32 %v10781_v17, %v14205_v62  ;;  %v10901_v15 = vadd.f32 %v10781_v17, %v14207_v27  ;;  %v14209_v32 = vld [vmem:[#allocation17_spill] sm:$0xff]  ;;  %v14211_v63 = vld [vmem:[#allocation18_spill] sm:$0xff] }
 0x4ba   :  { %14202 = vst [vmem:[#allocation2_spill] sm:$0xff] %v10889_v9  ;;  %14204 = vst [vmem:[#allocation3_spill] sm:$0xff] %v10893_v45  ;;  %v10905_v57 = vadd.f32 %v10781_v17, %v14209_v32  ;;  %v10909_v8 = vadd.f32 %v10781_v17, %v14211_v63  ;;  %v14213_v9 = vld [vmem:[#allocation19_spill] sm:$0xff]  ;;  %v14215_v45 = vld [vmem:[#allocation20_spill] sm:$0xff] }
 0x4bb   :  { %14206 = vst [vmem:[#allocation4_spill] sm:$0xff] %v10897_v14  ;;  %14208 = vst [vmem:[#allocation5_spill] sm:$0xff] %v10901_v15  ;;  %v10913_v44 = vadd.f32 %v10781_v17, %v14213_v9  ;;  %v10917_v62 = vadd.f32 %v10781_v17, %v14215_v45  ;;  %v14217_v14 = vld [vmem:[#allocation21_spill] sm:$0xff]  ;;  %v14219_v15 = vld [vmem:[#allocation22_spill] sm:$0xff] }
 0x4bc   :  { %14210 = vst [vmem:[#allocation6_spill] sm:$0xff] %v10905_v57  ;;  %14212 = vst [vmem:[#allocation7_spill] sm:$0xff] %v10909_v8  ;;  %v10921_v27 = vadd.f32 %v10781_v17, %v14217_v14  ;;  %v10925_v32 = vadd.f32 %v10781_v17, %v14219_v15  ;;  %v14221_v57 = vld [vmem:[#allocation23_spill] sm:$0xff]  ;;  %v14223_v8 = vld [vmem:[#allocation24_spill] sm:$0xff] }
 0x4bd   :  { %14214 = vst [vmem:[#allocation8_spill] sm:$0xff] %v10913_v44  ;;  %14216 = vst [vmem:[#allocation9_spill] sm:$0xff] %v10917_v62  ;;  %v10929_v63 = vadd.f32 %v10781_v17, %v14221_v57  ;;  %v10933_v9 = vadd.f32 %v10781_v17, %v14223_v8  ;;  %v14225_v44 = vld [vmem:[#allocation25_spill] sm:$0xff]  ;;  %v14227_v62 = vld [vmem:[#allocation26_spill] sm:$0xff] }
 0x4be   :  { %14218 = vst [vmem:[#allocation10_spill] sm:$0xff] %v10921_v27  ;;  %14220 = vst [vmem:[#allocation11_spill] sm:$0xff] %v10925_v32  ;;  %v10937_v45 = vadd.f32 %v10781_v17, %v14225_v44  ;;  %v10941_v14 = vadd.f32 %v10781_v17, %v14227_v62  ;;  %v14229_v27 = vld [vmem:[#allocation27_spill] sm:$0xff]  ;;  %v14231_v32 = vld [vmem:[#allocation28_spill] sm:$0xff] }
 0x4bf   :  { %14222 = vst [vmem:[#allocation12_spill] sm:$0xff] %v10929_v63  ;;  %14224 = vst [vmem:[#allocation13_spill] sm:$0xff] %v10933_v9  ;;  %v10945_v15 = vadd.f32 %v10781_v17, %v14229_v27  ;;  %v10949_v57 = vadd.f32 %v10781_v17, %v14231_v32  ;;  %v14233_v63 = vld [vmem:[#allocation29_spill] sm:$0xff]  ;;  %v14235_v9 = vld [vmem:[#allocation30_spill] sm:$0xff] }
 0x4c0   :  { %14226 = vst [vmem:[#allocation14_spill] sm:$0xff] %v10937_v45  ;;  %14228 = vst [vmem:[#allocation15_spill] sm:$0xff] %v10941_v14  ;;  %v10953_v8 = vadd.f32 %v10781_v17, %v14233_v63  ;;  %v10957_v44 = vadd.f32 %v10781_v17, %v14235_v9  ;;  %v14237_v45 = vld [vmem:[#allocation31_spill] sm:$0xff]  ;;  %v14239_v14 = vld [vmem:[#allocation32_spill] sm:$0xff] }
 0x4c1   :  { %14230 = vst [vmem:[#allocation16_spill] sm:$0xff] %v10945_v15  ;;  %14232 = vst [vmem:[#allocation17_spill] sm:$0xff] %v10949_v57  ;;  %v10961_v62 = vadd.f32 %v10781_v17, %v14237_v45  ;;  %v10965_v27 = vadd.f32 %v10781_v17, %v14239_v14  ;;  %v14241_v15 = vld [vmem:[#allocation33_spill] sm:$0xff]  ;;  %v14243_v57 = vld [vmem:[#allocation35_spill] sm:$0xff] }
 0x4c2   :  { %14234 = vst [vmem:[#allocation18_spill] sm:$0xff] %v10953_v8  ;;  %14236 = vst [vmem:[#allocation19_spill] sm:$0xff] %v10957_v44  ;;  %v10969_v32 = vadd.f32 %v10781_v17, %v14241_v15  ;;  %v10973_v63 = vadd.f32 %v10781_v17, %v14243_v57  ;;  %v14245_v8 = vld [vmem:[#allocation36_spill] sm:$0xff]  ;;  %v14247_v44 = vld [vmem:[#allocation38_spill] sm:$0xff] }
 0x4c3   :  { %14238 = vst [vmem:[#allocation20_spill] sm:$0xff] %v10961_v62  ;;  %14240 = vst [vmem:[#allocation21_spill] sm:$0xff] %v10965_v27  ;;  %v10977_v9 = vadd.f32 %v10781_v17, %v14245_v8  ;;  %v10981_v45 = vadd.f32 %v10781_v17, %v14247_v44  ;;  %v14249_v62 = vld [vmem:[#allocation39_spill] sm:$0xff]  ;;  %v14251_v27 = vld [vmem:[#allocation41_spill] sm:$0xff] }
 0x4c4   :  { %14242 = vst [vmem:[#allocation22_spill] sm:$0xff] %v10969_v32  ;;  %14244 = vst [vmem:[#allocation23_spill] sm:$0xff] %v10973_v63  ;;  %v10985_v14 = vadd.f32 %v10781_v17, %v14249_v62  ;;  %v10989_v15 = vadd.f32 %v10781_v17, %v14251_v27  ;;  %v14253_v32 = vld [vmem:[#allocation42_spill] sm:$0xff]  ;;  %v14255_v63 = vld [vmem:[#allocation44_spill] sm:$0xff] }
 0x4c5   :  { %14246 = vst [vmem:[#allocation24_spill] sm:$0xff] %v10977_v9  ;;  %14248 = vst [vmem:[#allocation25_spill] sm:$0xff] %v10981_v45  ;;  %v10993_v57 = vadd.f32 %v10781_v17, %v14253_v32  ;;  %v10997_v8 = vadd.f32 %v10781_v17, %v14255_v63  ;;  %v14257_v9 = vld [vmem:[#allocation45_spill] sm:$0xff]  ;;  %v14259_v45 = vld [vmem:[#allocation47_spill] sm:$0xff] }
 0x4c6   :  { %14250 = vst [vmem:[#allocation26_spill] sm:$0xff] %v10985_v14  ;;  %14252 = vst [vmem:[#allocation27_spill] sm:$0xff] %v10989_v15  ;;  %v11001_v44 = vadd.f32 %v10781_v17, %v14257_v9  ;;  %v11005_v62 = vadd.f32 %v10781_v17, %v14259_v45  ;;  %v14261_v14 = vld [vmem:[#allocation48_spill] sm:$0xff]  ;;  %v14263_v15 = vld [vmem:[#allocation50_spill] sm:$0xff] }
 0x4c7   :  { %14254 = vst [vmem:[#allocation28_spill] sm:$0xff] %v10993_v57  ;;  %14256 = vst [vmem:[#allocation29_spill] sm:$0xff] %v10997_v8  ;;  %v11009_v27 = vadd.f32 %v10781_v17, %v14261_v14  ;;  %v11013_v32 = vadd.f32 %v10781_v17, %v14263_v15  ;;  %v14265_v57 = vld [vmem:[#allocation51_spill] sm:$0xff]  ;;  %v14267_v8 = vld [vmem:[#allocation53_spill] sm:$0xff] }
 0x4c8   :  { %14258 = vst [vmem:[#allocation30_spill] sm:$0xff] %v11001_v44  ;;  %14260 = vst [vmem:[#allocation31_spill] sm:$0xff] %v11005_v62  ;;  %v11017_v63 = vadd.f32 %v10781_v17, %v14265_v57  ;;  %v11021_v9 = vadd.f32 %v10781_v17, %v14267_v8  ;;  %v14269_v44 = vld [vmem:[#allocation54_spill] sm:$0xff]  ;;  %v14271_v62 = vld [vmem:[#allocation56_spill] sm:$0xff] }
 0x4c9   :  { %14262 = vst [vmem:[#allocation32_spill] sm:$0xff] %v11009_v27  ;;  %14264 = vst [vmem:[#allocation33_spill] sm:$0xff] %v11013_v32  ;;  %v11025_v45 = vadd.f32 %v10781_v17, %v14269_v44  ;;  %v11029_v14 = vadd.f32 %v10781_v17, %v14271_v62  ;;  %v14273_v27 = vld [vmem:[#allocation57_spill] sm:$0xff]  ;;  %v14275_v32 = vld [vmem:[#allocation59_spill] sm:$0xff] }
 0x4ca   :  { %14266 = vst [vmem:[#allocation35_spill] sm:$0xff] %v11017_v63  ;;  %14268 = vst [vmem:[#allocation36_spill] sm:$0xff] %v11021_v9  ;;  %v11033_v15 = vadd.f32 %v10781_v17, %v14273_v27  ;;  %v11037_v57 = vadd.f32 %v10781_v17, %v14275_v32  ;;  %v14277_v63 = vld [vmem:[#allocation60_spill] sm:$0xff]  ;;  %v14279_v9 = vld [vmem:[#allocation62_spill] sm:$0xff] }
 0x4cb   :  { %14270 = vst [vmem:[#allocation38_spill] sm:$0xff] %v11025_v45  ;;  %14272 = vst [vmem:[#allocation39_spill] sm:$0xff] %v11029_v14  ;;  %v11041_v8 = vadd.f32 %v10781_v17, %v14277_v63  ;;  %v11045_v44 = vadd.f32 %v10781_v17, %v14279_v9  ;;  %v14281_v45 = vld [vmem:[#allocation63_spill] sm:$0xff]  ;;  %v14283_v14 = vld [vmem:[#allocation65_spill] sm:$0xff] }
 0x4cc   :  { %14274 = vst [vmem:[#allocation41_spill] sm:$0xff] %v11033_v15  ;;  %14276 = vst [vmem:[#allocation42_spill] sm:$0xff] %v11037_v57  ;;  %v11049_v62 = vadd.f32 %v10781_v17, %v14281_v45  ;;  %v11053_v27 = vadd.f32 %v10781_v17, %v14283_v14  ;;  %v14285_v15 = vld [vmem:[#allocation66_spill] sm:$0xff]  ;;  %v14287_v57 = vld [vmem:[#allocation68_spill] sm:$0xff] }
 0x4cd   :  { %14278 = vst [vmem:[#allocation44_spill] sm:$0xff] %v11041_v8  ;;  %14280 = vst [vmem:[#allocation45_spill] sm:$0xff] %v11045_v44  ;;  %v11057_v32 = vadd.f32 %v10781_v17, %v14285_v15  ;;  %v11061_v63 = vadd.f32 %v10781_v17, %v14287_v57  ;;  %v14289_v8 = vld [vmem:[#allocation69_spill] sm:$0xff]  ;;  %v14291_v44 = vld [vmem:[#allocation72_spill] sm:$0xff] }
 0x4ce   :  { %14282 = vst [vmem:[#allocation47_spill] sm:$0xff] %v11049_v62  ;;  %14284 = vst [vmem:[#allocation48_spill] sm:$0xff] %v11053_v27  ;;  %v11065_v9 = vadd.f32 %v10781_v17, %v14289_v8  ;;  %v11069_v45 = vadd.f32 %v10781_v17, %v14291_v44  ;;  %v14293_v62 = vld [vmem:[#allocation73_spill] sm:$0xff]  ;;  %v14295_v27 = vld [vmem:[#allocation76_spill] sm:$0xff] }
 0x4cf   :  { %14286 = vst [vmem:[#allocation50_spill] sm:$0xff] %v11057_v32  ;;  %14288 = vst [vmem:[#allocation51_spill] sm:$0xff] %v11061_v63  ;;  %v11073_v14 = vadd.f32 %v10781_v17, %v14293_v62  ;;  %v11077_v15 = vadd.f32 %v10781_v17, %v14295_v27  ;;  %v14297_v32 = vld [vmem:[#allocation77_spill] sm:$0xff]  ;;  %v14299_v63 = vld [vmem:[#allocation80_spill] sm:$0xff] }
 0x4d0   :  { %14290 = vst [vmem:[#allocation53_spill] sm:$0xff] %v11065_v9  ;;  %14292 = vst [vmem:[#allocation54_spill] sm:$0xff] %v11069_v45  ;;  %v11081_v57 = vadd.f32 %v10781_v17, %v14297_v32  ;;  %v11085_v8 = vadd.f32 %v10781_v17, %v14299_v63  ;;  %v14301_v9 = vld [vmem:[#allocation81_spill] sm:$0xff]  ;;  %v14303_v45 = vld [vmem:[#allocation84_spill] sm:$0xff] }
 0x4d1   :  { %14294 = vst [vmem:[#allocation56_spill] sm:$0xff] %v11073_v14  ;;  %14296 = vst [vmem:[#allocation57_spill] sm:$0xff] %v11077_v15  ;;  %v11089_v44 = vadd.f32 %v10781_v17, %v14301_v9  ;;  %v11093_v62 = vadd.f32 %v10781_v17, %v14303_v45  ;;  %v14305_v14 = vld [vmem:[#allocation85_spill] sm:$0xff]  ;;  %v14307_v15 = vld [vmem:[#allocation88_spill] sm:$0xff] }
 0x4d2   :  { %14298 = vst [vmem:[#allocation59_spill] sm:$0xff] %v11081_v57  ;;  %14300 = vst [vmem:[#allocation60_spill] sm:$0xff] %v11085_v8  ;;  %v11097_v27 = vadd.f32 %v10781_v17, %v14305_v14  ;;  %v11101_v32 = vadd.f32 %v10781_v17, %v14307_v15  ;;  %v14309_v57 = vld [vmem:[#allocation89_spill] sm:$0xff]  ;;  %v14311_v8 = vld [vmem:[#allocation92_spill] sm:$0xff] }
 0x4d3   :  { %14302 = vst [vmem:[#allocation62_spill] sm:$0xff] %v11089_v44  ;;  %14304 = vst [vmem:[#allocation63_spill] sm:$0xff] %v11093_v62  ;;  %v11105_v63 = vadd.f32 %v10781_v17, %v14309_v57  ;;  %v11109_v9 = vadd.f32 %v10781_v17, %v14311_v8  ;;  %v14313_v44 = vld [vmem:[#allocation93_spill] sm:$0xff]  ;;  %v14315_v62 = vld [vmem:[#allocation96_spill] sm:$0xff] }
 0x4d4   :  { %14306 = vst [vmem:[#allocation65_spill] sm:$0xff] %v11097_v27  ;;  %14308 = vst [vmem:[#allocation66_spill] sm:$0xff] %v11101_v32  ;;  %v11113_v45 = vadd.f32 %v10781_v17, %v14313_v44  ;;  %v11117_v14 = vadd.f32 %v10781_v17, %v14315_v62  ;;  %v14317_v27 = vld [vmem:[#allocation97_spill] sm:$0xff]  ;;  %v14319_v32 = vld [vmem:[#allocation100_spill] sm:$0xff] }
 0x4d5   :  { %14310 = vst [vmem:[#allocation68_spill] sm:$0xff] %v11105_v63  ;;  %14312 = vst [vmem:[#allocation69_spill] sm:$0xff] %v11109_v9  ;;  %v11121_v15 = vadd.f32 %v10781_v17, %v14317_v27  ;;  %v11125_v57 = vadd.f32 %v10781_v17, %v14319_v32  ;;  %v14321_v63 = vld [vmem:[#allocation101_spill] sm:$0xff]  ;;  %v14323_v9 = vld [vmem:[#allocation104_spill] sm:$0xff] }
 0x4d6   :  { %14314 = vst [vmem:[#allocation72_spill] sm:$0xff] %v11113_v45  ;;  %14316 = vst [vmem:[#allocation73_spill] sm:$0xff] %v11117_v14  ;;  %v11129_v8 = vadd.f32 %v10781_v17, %v14321_v63  ;;  %v11133_v44 = vadd.f32 %v10781_v17, %v14323_v9  ;;  %v14325_v45 = vld [vmem:[#allocation105_spill] sm:$0xff]  ;;  %v14327_v14 = vld [vmem:[#allocation108_spill] sm:$0xff] }
 0x4d7   :  { %14318 = vst [vmem:[#allocation76_spill] sm:$0xff] %v11121_v15  ;;  %14320 = vst [vmem:[#allocation77_spill] sm:$0xff] %v11125_v57  ;;  %v11137_v62 = vadd.f32 %v10781_v17, %v14325_v45  ;;  %v11141_v27 = vadd.f32 %v10781_v17, %v14327_v14  ;;  %v14329_v15 = vld [vmem:[#allocation109_spill] sm:$0xff]  ;;  %v14331_v57 = vld [vmem:[#allocation112_spill] sm:$0xff] }
 0x4d8   :  { %14322 = vst [vmem:[#allocation80_spill] sm:$0xff] %v11129_v8  ;;  %14324 = vst [vmem:[#allocation81_spill] sm:$0xff] %v11133_v44  ;;  %v11145_v32 = vadd.f32 %v10781_v17, %v14329_v15  ;;  %v11149_v63 = vadd.f32 %v10781_v17, %v14331_v57  ;;  %v14333_v8 = vld [vmem:[#allocation113_spill] sm:$0xff]  ;;  %v14335_v44 = vld [vmem:[#allocation116_spill] sm:$0xff] }
 0x4d9   :  { %14326 = vst [vmem:[#allocation84_spill] sm:$0xff] %v11137_v62  ;;  %14328 = vst [vmem:[#allocation85_spill] sm:$0xff] %v11141_v27  ;;  %v11153_v9 = vadd.f32 %v10781_v17, %v14333_v8  ;;  %v11157_v45 = vadd.f32 %v10781_v17, %v14335_v44  ;;  %v14337_v62 = vld [vmem:[#allocation117_spill] sm:$0xff]  ;;  %v14339_v27 = vld [vmem:[#allocation120_spill] sm:$0xff] }
 0x4da   :  { %14330 = vst [vmem:[#allocation88_spill] sm:$0xff] %v11145_v32  ;;  %14332 = vst [vmem:[#allocation89_spill] sm:$0xff] %v11149_v63  ;;  %v11161_v14 = vadd.f32 %v10781_v17, %v14337_v62  ;;  %v11165_v15 = vadd.f32 %v10781_v17, %v14339_v27  ;;  %v14341_v32 = vld [vmem:[#allocation121_spill] sm:$0xff]  ;;  %v14343_v63 = vld [vmem:[#allocation124_spill] sm:$0xff] }
 0x4db   :  { %14334 = vst [vmem:[#allocation92_spill] sm:$0xff] %v11153_v9  ;;  %14336 = vst [vmem:[#allocation93_spill] sm:$0xff] %v11157_v45  ;;  %v11169_v57 = vadd.f32 %v10781_v17, %v14341_v32  ;;  %v11173_v8 = vadd.f32 %v10781_v17, %v14343_v63  ;;  %v14345_v9 = vld [vmem:[#allocation125_spill] sm:$0xff]  ;;  %v14347_v45 = vld [vmem:[#allocation128_spill] sm:$0xff] }
 0x4dc   :  { %14338 = vst [vmem:[#allocation96_spill] sm:$0xff] %v11161_v14  ;;  %14340 = vst [vmem:[#allocation97_spill] sm:$0xff] %v11165_v15  ;;  %v11177_v44 = vadd.f32 %v10781_v17, %v14345_v9  ;;  %v11181_v62 = vadd.f32 %v10781_v17, %v14347_v45  ;;  %v14349_v14 = vld [vmem:[#allocation129_spill] sm:$0xff]  ;;  %v14351_v15 = vld [vmem:[#allocation132_spill] sm:$0xff] }
 0x4dd   :  { %14342 = vst [vmem:[#allocation100_spill] sm:$0xff] %v11169_v57  ;;  %14344 = vst [vmem:[#allocation101_spill] sm:$0xff] %v11173_v8  ;;  %v11185_v27 = vadd.f32 %v10781_v17, %v14349_v14  ;;  %v11189_v32 = vadd.f32 %v10781_v17, %v14351_v15  ;;  %v14353_v57 = vld [vmem:[#allocation133_spill] sm:$0xff]  ;;  %v14355_v8 = vld [vmem:[#allocation136_spill] sm:$0xff] }
 0x4de   :  { %14346 = vst [vmem:[#allocation104_spill] sm:$0xff] %v11177_v44  ;;  %14348 = vst [vmem:[#allocation105_spill] sm:$0xff] %v11181_v62  ;;  %v11193_v63 = vadd.f32 %v10781_v17, %v14353_v57  ;;  %v11197_v9 = vadd.f32 %v10781_v17, %v14355_v8  ;;  %v14357_v44 = vld [vmem:[#allocation137_spill] sm:$0xff]  ;;  %v14359_v62 = vld [vmem:[#allocation140_spill] sm:$0xff] }
 0x4df   :  { %14350 = vst [vmem:[#allocation108_spill] sm:$0xff] %v11185_v27  ;;  %14352 = vst [vmem:[#allocation109_spill] sm:$0xff] %v11189_v32  ;;  %v11201_v45 = vadd.f32 %v10781_v17, %v14357_v44  ;;  %v11205_v14 = vadd.f32 %v10781_v17, %v14359_v62  ;;  %v14361_v27 = vld [vmem:[#allocation141_spill] sm:$0xff]  ;;  %v14363_v32 = vld [vmem:[#allocation144_spill] sm:$0xff] }
 0x4e0   :  { %14354 = vst [vmem:[#allocation112_spill] sm:$0xff] %v11193_v63  ;;  %14356 = vst [vmem:[#allocation113_spill] sm:$0xff] %v11197_v9  ;;  %v11209_v15 = vadd.f32 %v10781_v17, %v14361_v27  ;;  %v11213_v57 = vadd.f32 %v10781_v17, %v14363_v32  ;;  %v14365_v63 = vld [vmem:[#allocation145_spill] sm:$0xff]  ;;  %v14367_v9 = vld [vmem:[#allocation148_spill] sm:$0xff] }
 0x4e1   :  { %14358 = vst [vmem:[#allocation116_spill] sm:$0xff] %v11201_v45  ;;  %14360 = vst [vmem:[#allocation117_spill] sm:$0xff] %v11205_v14  ;;  %v11217_v8 = vadd.f32 %v10781_v17, %v14365_v63  ;;  %v11221_v44 = vadd.f32 %v10781_v17, %v14367_v9  ;;  %v14369_v45 = vld [vmem:[#allocation149_spill] sm:$0xff]  ;;  %v14371_v14 = vld [vmem:[#allocation152_spill] sm:$0xff] }
 0x4e2   :  { %14362 = vst [vmem:[#allocation120_spill] sm:$0xff] %v11209_v15  ;;  %14364 = vst [vmem:[#allocation121_spill] sm:$0xff] %v11213_v57  ;;  %v11225_v62 = vadd.f32 %v10781_v17, %v14369_v45  ;;  %v11229_v27 = vadd.f32 %v10781_v17, %v14371_v14  ;;  %v14373_v15 = vld [vmem:[#allocation153_spill] sm:$0xff]  ;;  %v14375_v57 = vld [vmem:[#allocation156_spill] sm:$0xff] }
 0x4e3   :  { %14366 = vst [vmem:[#allocation124_spill] sm:$0xff] %v11217_v8  ;;  %14368 = vst [vmem:[#allocation125_spill] sm:$0xff] %v11221_v44  ;;  %v11233_v32 = vadd.f32 %v10781_v17, %v14373_v15  ;;  %v11237_v63 = vadd.f32 %v10781_v17, %v14375_v57  ;;  %v14377_v8 = vld [vmem:[#allocation157_spill] sm:$0xff]  ;;  %v14379_v44 = vld [vmem:[#allocation160_spill] sm:$0xff] }
 0x4e4   :  { %14370 = vst [vmem:[#allocation128_spill] sm:$0xff] %v11225_v62  ;;  %14372 = vst [vmem:[#allocation129_spill] sm:$0xff] %v11229_v27  ;;  %v11241_v9 = vadd.f32 %v10781_v17, %v14377_v8  ;;  %v11245_v45 = vadd.f32 %v10781_v17, %v14379_v44  ;;  %v14381_v62 = vld [vmem:[#allocation161_spill] sm:$0xff]  ;;  %v14382_v27 = vld [vmem:[#allocation164_spill] sm:$0xff] }
 0x4e5   :  { %14374 = vst [vmem:[#allocation132_spill] sm:$0xff] %v11233_v32  ;;  %14376 = vst [vmem:[#allocation133_spill] sm:$0xff] %v11237_v63  ;;  %v11249_v14 = vadd.f32 %v10781_v17, %v14381_v62  ;;  %v11253_v15 = vadd.f32 %v10781_v17, %v14382_v27  ;;  %v14384_v32 = vld [vmem:[#allocation165_spill] sm:$0xff]  ;;  %v14386_v63 = vld [vmem:[#allocation168_spill] sm:$0xff]  ;;  %v11273_v27 = vadd.f32 %v10781_v17, %v10242_v56 }
 0x4e6   :  { %14378 = vst [vmem:[#allocation136_spill] sm:$0xff] %v11241_v9  ;;  %14380 = vst [vmem:[#allocation137_spill] sm:$0xff] %v11245_v45  ;;  %v11257_v57 = vadd.f32 %v10781_v17, %v14384_v32  ;;  %v11261_v8 = vadd.f32 %v10781_v17, %v14386_v63  ;;  %v14388_v9 = vld [vmem:[#allocation169_spill] sm:$0xff]  ;;  %v14389_v45 = vld [vmem:[#allocation172_spill] sm:$0xff] }
 0x4e7   :  { %14383 = vst [vmem:[#allocation140_spill] sm:$0xff] %v11253_v15  ;;  %v11265_v44 = vadd.f32 %v10781_v17, %v14388_v9  ;;  %v11269_v62 = vadd.f32 %v10781_v17, %v14389_v45  ;;  %14391 = vst [vmem:[#allocation148_spill] sm:$0xff] %v11273_v27  ;;  %v14392_v15 = vld [vmem:[#allocation173_spill] sm:$0xff]  ;;  %v11285_v9 = vadd.f32 %v10781_v17, %v10254_v47  ;;  %v14399_v27 = vld [vmem:[#allocation180_spill] sm:$0xff] }
 0x4e8   :  { %14385 = vst [vmem:[#allocation141_spill] sm:$0xff] %v11257_v57  ;;  %14387 = vst [vmem:[#allocation144_spill] sm:$0xff] %v11261_v8  ;;  %v11277_v32 = vadd.f32 %v10781_v17, %v14392_v15  ;;  %v14394_v57 = vld [vmem:[#allocation176_spill] sm:$0xff]  ;;  %v11289_v45 = vadd.f32 %v10781_v17, %v10258_v48  ;;  %v11297_v15 = vadd.f32 %v10781_v17, %v14399_v27  ;;  %v14697_v42 = vld [vmem:[#allocation117_spill] sm:$0xff] }
 0x4e9   :  { %14390 = vst [vmem:[#allocation145_spill] sm:$0xff] %v11269_v62  ;;  %v11281_v63 = vadd.f32 %v10781_v17, %v14394_v57  ;;  %14395 = vst [vmem:[#allocation152_spill] sm:$0xff] %v11285_v9  ;;  %v14397_v62 = vld [vmem:[#allocation177_spill] sm:$0xff]  ;;  %v11301_v57 = vadd.f32 %v10781_v17, %v10270_v60  ;;  %v11305_v47 = vadd.f32 %v10781_v17, %v10274_v40 }
 0x4ea   :  { %14393 = vst [vmem:[#allocation149_spill] sm:$0xff] %v11277_v32  ;;  %14396 = vst [vmem:[#allocation153_spill] sm:$0xff] %v11289_v45  ;;  %v11293_v56 = vadd.f32 %v10781_v17, %v14397_v62  ;;  %v14402_v9 = vld [vmem:[#allocation181_spill] sm:$0xff]  ;;  %v14404_v45 = vld [vmem:[#allocation184_spill] sm:$0xff]  ;;  %v11317_v27 = vadd.f32 %v10781_v17, %v10286_v0  ;;  %v11321_v60 = vadd.f32 %v10781_v17, %v10290_v37 }
 0x4eb   :  { %14400 = vst [vmem:[#allocation157_spill] sm:$0xff] %v11301_v57  ;;  %14401 = vst [vmem:[#allocation160_spill] sm:$0xff] %v11305_v47  ;;  %v11309_v48 = vadd.f32 %v10781_v17, %v14402_v9  ;;  %v11313_v62 = vadd.f32 %v10781_v17, %v14404_v45  ;;  %v14408_v57 = vld [vmem:[#allocation185_spill] sm:$0xff]  ;;  %v14410_v47 = vld [vmem:[#allocation188_spill] sm:$0xff]  ;;  %v11333_v45 = vadd.f32 %v10781_v17, %v10302_v11 }
 0x4ec   :  { %14398 = vst [vmem:[#allocation156_spill] sm:$0xff] %v11293_v56  ;;  %14406 = vst [vmem:[#allocation165_spill] sm:$0xff] %v11317_v27  ;;  %v11325_v40 = vadd.f32 %v10781_v17, %v14408_v57  ;;  %v11329_v9 = vadd.f32 %v10781_v17, %v14410_v47  ;;  %v11337_v0 = vadd.f32 %v10781_v17, %v10306_v29  ;;  %v14414_v27 = vld [vmem:[#allocation189_spill] sm:$0xff]  ;;  %v14704_v25 = vld [vmem:[#allocation132_spill] sm:$0xff] }
 0x4ed   :  { %14403 = vst [vmem:[#allocation161_spill] sm:$0xff] %v11309_v48  ;;  %14405 = vst [vmem:[#allocation164_spill] sm:$0xff] %v11313_v62  ;;  %v11341_v37 = vadd.f32 %v10781_v17, %v14414_v27  ;;  %v11349_v47 = vadd.f32 %v10781_v17, %v10318_v54  ;;  %v11353_v11 = vadd.f32 %v10781_v17, %v10322_v23  ;;  %v14705_v34 = vld [vmem:[#allocation133_spill] sm:$0xff] }
 0x4ee   :  { %14407 = vst [vmem:[#allocation168_spill] sm:$0xff] %v11321_v60  ;;  %14409 = vst [vmem:[#allocation169_spill] sm:$0xff] %v11325_v40  ;;  %v14416_v60 = vld [vmem:[#allocation192_spill] sm:$0xff] }
 0x4ef   :  { %14411 = vst [vmem:[#allocation172_spill] sm:$0xff] %v11329_v9  ;;  %14412 = vst [vmem:[#allocation173_spill] sm:$0xff] %v11333_v45  ;;  %v11345_v57 = vadd.f32 %v10781_v17, %v14416_v60  ;;  %v14420_v45 = vld [vmem:[#allocation193_spill] sm:$0xff]  ;;  %v11365_v60 = vadd.f32 %v10781_v17, %v10334_v36 }
 0x4f0   :  { %14413 = vst [vmem:[#allocation176_spill] sm:$0xff] %v11337_v0  ;;  %14415 = vst [vmem:[#allocation177_spill] sm:$0xff] %v11341_v37  ;;  %v11357_v29 = vadd.f32 %v10781_v17, %v14420_v45  ;;  %v14422_v0 = vld [vmem:[#allocation196_spill] sm:$0xff]  ;;  %v14710_v19 = vld [vmem:[#allocation145_spill] sm:$0xff] }
 0x4f1   :  { %14417 = vst [vmem:[#allocation180_spill] sm:$0xff] %v11345_v57  ;;  %14418 = vst [vmem:[#allocation181_spill] sm:$0xff] %v11349_v47  ;;  %v11361_v27 = vadd.f32 %v10781_v17, %v14422_v0  ;;  %v14425_v57 = vld [vmem:[#allocation197_spill] sm:$0xff]  ;;  %v14427_v47 = vld [vmem:[#allocation200_spill] sm:$0xff] }
 0x4f2   :  { %14419 = vst [vmem:[#allocation184_spill] sm:$0xff] %v11353_v11  ;;  %14421 = vst [vmem:[#allocation185_spill] sm:$0xff] %v11357_v29  ;;  %v11369_v54 = vadd.f32 %v10781_v17, %v14425_v57  ;;  %v11373_v23 = vadd.f32 %v10781_v17, %v14427_v47  ;;  %v14429_v11 = vld [vmem:[#allocation201_spill] sm:$0xff]  ;;  %v14431_v29 = vld [vmem:[#allocation204_spill] sm:$0xff] }
 0x4f3   :  { %14423 = vst [vmem:[#allocation188_spill] sm:$0xff] %v11361_v27  ;;  %14424 = vst [vmem:[#allocation189_spill] sm:$0xff] %v11365_v60  ;;  %v11377_v45 = vadd.f32 %v10781_v17, %v14429_v11  ;;  %v11381_v0 = vadd.f32 %v10781_v17, %v14431_v29  ;;  %v14433_v27 = vld [vmem:[#allocation205_spill] sm:$0xff]  ;;  %v14435_v60 = vld [vmem:[#allocation208_spill] sm:$0xff] }
 0x4f4   :  { %14426 = vst [vmem:[#allocation192_spill] sm:$0xff] %v11369_v54  ;;  %14428 = vst [vmem:[#allocation193_spill] sm:$0xff] %v11373_v23  ;;  %v11385_v36 = vadd.f32 %v10781_v17, %v14433_v27  ;;  %v11389_v57 = vadd.f32 %v10781_v17, %v14435_v60  ;;  %v14437_v54 = vld [vmem:[#allocation209_spill] sm:$0xff]  ;;  %v14439_v23 = vld [vmem:[#allocation212_spill] sm:$0xff] }
 0x4f5   :  { %14430 = vst [vmem:[#allocation196_spill] sm:$0xff] %v11377_v45  ;;  %14432 = vst [vmem:[#allocation197_spill] sm:$0xff] %v11381_v0  ;;  %v11393_v47 = vadd.f32 %v10781_v17, %v14437_v54  ;;  %v11397_v11 = vadd.f32 %v10781_v17, %v14439_v23  ;;  %v14441_v45 = vld [vmem:[#allocation213_spill] sm:$0xff]  ;;  %v14443_v0 = vld [vmem:[#allocation34_spill] sm:$0xff] }
 0x4f6   :  { %14434 = vst [vmem:[#allocation200_spill] sm:$0xff] %v11385_v36  ;;  %14436 = vst [vmem:[#allocation201_spill] sm:$0xff] %v11389_v57  ;;  %v11401_v29 = vadd.f32 %v10781_v17, %v14441_v45  ;;  %v11405_v27 = vadd.f32 %v10781_v17, %v14443_v0  ;;  %v14445_v36 = vld [vmem:[#allocation37_spill] sm:$0xff]  ;;  %v14447_v57 = vld [vmem:[#allocation40_spill] sm:$0xff] }
 0x4f7   :  { %14438 = vst [vmem:[#allocation204_spill] sm:$0xff] %v11393_v47  ;;  %14440 = vst [vmem:[#allocation205_spill] sm:$0xff] %v11397_v11  ;;  %v11409_v60 = vadd.f32 %v10781_v17, %v14445_v36  ;;  %v11413_v54 = vadd.f32 %v10781_v17, %v14447_v57  ;;  %v14449_v47 = vld [vmem:[#allocation43_spill] sm:$0xff]  ;;  %v14451_v11 = vld [vmem:[#allocation46_spill] sm:$0xff] }
 0x4f8   :  { %14442 = vst [vmem:[#allocation208_spill] sm:$0xff] %v11401_v29  ;;  %14444 = vst [vmem:[#allocation209_spill] sm:$0xff] %v11405_v27  ;;  %v11417_v23 = vadd.f32 %v10781_v17, %v14449_v47  ;;  %v11421_v45 = vadd.f32 %v10781_v17, %v14451_v11  ;;  %v14453_v29 = vld [vmem:[#allocation49_spill] sm:$0xff]  ;;  %v14455_v27 = vld [vmem:[#allocation52_spill] sm:$0xff] }
 0x4f9   :  { %14446 = vst [vmem:[#allocation212_spill] sm:$0xff] %v11409_v60  ;;  %14448 = vst [vmem:[#allocation213_spill] sm:$0xff] %v11413_v54  ;;  %v11425_v0 = vadd.f32 %v10781_v17, %v14453_v29  ;;  %v11429_v36 = vadd.f32 %v10781_v17, %v14455_v27  ;;  %v14457_v60 = vld [vmem:[#allocation55_spill] sm:$0xff]  ;;  %v14459_v54 = vld [vmem:[#allocation58_spill] sm:$0xff] }
 0x4fa   :  { %14450 = vst [vmem:[#allocation34_spill] sm:$0xff] %v11417_v23  ;;  %14452 = vst [vmem:[#allocation37_spill] sm:$0xff] %v11421_v45  ;;  %v11433_v57 = vadd.f32 %v10781_v17, %v14457_v60  ;;  %v11437_v47 = vadd.f32 %v10781_v17, %v14459_v54  ;;  %v14461_v23 = vld [vmem:[#allocation61_spill] sm:$0xff]  ;;  %v14463_v45 = vld [vmem:[#allocation64_spill] sm:$0xff] }
 0x4fb   :  { %14454 = vst [vmem:[#allocation40_spill] sm:$0xff] %v11425_v0  ;;  %14456 = vst [vmem:[#allocation43_spill] sm:$0xff] %v11429_v36  ;;  %v11441_v11 = vadd.f32 %v10781_v17, %v14461_v23  ;;  %v11445_v29 = vadd.f32 %v10781_v17, %v14463_v45  ;;  %v14465_v0 = vld [vmem:[#allocation67_spill] sm:$0xff]  ;;  %v14467_v36 = vld [vmem:[#allocation70_spill] sm:$0xff] }
 0x4fc   :  { %14458 = vst [vmem:[#allocation46_spill] sm:$0xff] %v11433_v57  ;;  %14460 = vst [vmem:[#allocation49_spill] sm:$0xff] %v11437_v47  ;;  %v11449_v27 = vadd.f32 %v10781_v17, %v14465_v0  ;;  %v11453_v60 = vadd.f32 %v10781_v17, %v14467_v36  ;;  %v14469_v57 = vld [vmem:[#allocation71_spill] sm:$0xff]  ;;  %v14471_v47 = vld [vmem:[#allocation74_spill] sm:$0xff] }
 0x4fd   :  { %14462 = vst [vmem:[#allocation52_spill] sm:$0xff] %v11441_v11  ;;  %14464 = vst [vmem:[#allocation55_spill] sm:$0xff] %v11445_v29  ;;  %v11457_v54 = vadd.f32 %v10781_v17, %v14469_v57  ;;  %v11461_v23 = vadd.f32 %v10781_v17, %v14471_v47  ;;  %v14473_v11 = vld [vmem:[#allocation75_spill] sm:$0xff]  ;;  %v14475_v29 = vld [vmem:[#allocation78_spill] sm:$0xff] }
 0x4fe   :  { %14466 = vst [vmem:[#allocation58_spill] sm:$0xff] %v11449_v27  ;;  %14468 = vst [vmem:[#allocation61_spill] sm:$0xff] %v11453_v60  ;;  %v11465_v45 = vadd.f32 %v10781_v17, %v14473_v11  ;;  %v11469_v0 = vadd.f32 %v10781_v17, %v14475_v29  ;;  %v14477_v27 = vld [vmem:[#allocation79_spill] sm:$0xff]  ;;  %v14479_v60 = vld [vmem:[#allocation82_spill] sm:$0xff] }
 0x4ff   :  { %14470 = vst [vmem:[#allocation64_spill] sm:$0xff] %v11457_v54  ;;  %14472 = vst [vmem:[#allocation67_spill] sm:$0xff] %v11461_v23  ;;  %v11473_v36 = vadd.f32 %v10781_v17, %v14477_v27  ;;  %v11477_v57 = vadd.f32 %v10781_v17, %v14479_v60  ;;  %v14481_v54 = vld [vmem:[#allocation83_spill] sm:$0xff]  ;;  %v14483_v23 = vld [vmem:[#allocation86_spill] sm:$0xff] }
 0x500   :  { %14474 = vst [vmem:[#allocation70_spill] sm:$0xff] %v11465_v45  ;;  %14476 = vst [vmem:[#allocation71_spill] sm:$0xff] %v11469_v0  ;;  %v11481_v47 = vadd.f32 %v10781_v17, %v14481_v54  ;;  %v11485_v11 = vadd.f32 %v10781_v17, %v14483_v23  ;;  %v14485_v45 = vld [vmem:[#allocation87_spill] sm:$0xff]  ;;  %v14487_v0 = vld [vmem:[#allocation90_spill] sm:$0xff] }
 0x501   :  { %14478 = vst [vmem:[#allocation74_spill] sm:$0xff] %v11473_v36  ;;  %14480 = vst [vmem:[#allocation75_spill] sm:$0xff] %v11477_v57  ;;  %v11489_v29 = vadd.f32 %v10781_v17, %v14485_v45  ;;  %v11493_v27 = vadd.f32 %v10781_v17, %v14487_v0  ;;  %v14489_v36 = vld [vmem:[#allocation91_spill] sm:$0xff]  ;;  %v14491_v57 = vld [vmem:[#allocation94_spill] sm:$0xff] }
 0x502   :  { %14482 = vst [vmem:[#allocation78_spill] sm:$0xff] %v11481_v47  ;;  %14484 = vst [vmem:[#allocation79_spill] sm:$0xff] %v11485_v11  ;;  %v11497_v60 = vadd.f32 %v10781_v17, %v14489_v36  ;;  %v11501_v54 = vadd.f32 %v10781_v17, %v14491_v57  ;;  %v14493_v47 = vld [vmem:[#allocation95_spill] sm:$0xff]  ;;  %v14495_v11 = vld [vmem:[#allocation98_spill] sm:$0xff] }
 0x503   :  { %14486 = vst [vmem:[#allocation82_spill] sm:$0xff] %v11489_v29  ;;  %14488 = vst [vmem:[#allocation83_spill] sm:$0xff] %v11493_v27  ;;  %v11505_v23 = vadd.f32 %v10781_v17, %v14493_v47  ;;  %v11509_v45 = vadd.f32 %v10781_v17, %v14495_v11  ;;  %v14497_v29 = vld [vmem:[#allocation99_spill] sm:$0xff]  ;;  %v14499_v27 = vld [vmem:[#allocation102_spill] sm:$0xff]  ;;  %v11525_v47 = vadd.f32 %v10781_v17, %v10494_v51 }
 0x504   :  { %14490 = vst [vmem:[#allocation86_spill] sm:$0xff] %v11497_v60  ;;  %14492 = vst [vmem:[#allocation87_spill] sm:$0xff] %v11501_v54  ;;  %v11513_v0 = vadd.f32 %v10781_v17, %v14497_v29  ;;  %v11517_v36 = vadd.f32 %v10781_v17, %v14499_v27  ;;  %v14501_v60 = vld [vmem:[#allocation103_spill] sm:$0xff]  ;;  %v11533_v29 = vadd.f32 %v10781_v17, %v10502_v18  ;;  %v14712_v3 = vld [vmem:[#allocation152_spill] sm:$0xff] }
 0x505   :  { %14494 = vst [vmem:[#allocation90_spill] sm:$0xff] %v11505_v23  ;;  %14496 = vst [vmem:[#allocation91_spill] sm:$0xff] %v11509_v45  ;;  %v11521_v57 = vadd.f32 %v10781_v17, %v14501_v60  ;;  %v14504_v23 = vld [vmem:[#allocation106_spill] sm:$0xff]  ;;  %v11553_v18 = vadd.f32 %v10781_v17, %v10522_v58 }
 0x506   :  { %14498 = vst [vmem:[#allocation94_spill] sm:$0xff] %v11513_v0  ;;  %14500 = vst [vmem:[#allocation95_spill] sm:$0xff] %v11517_v36  ;;  %v11529_v11 = vadd.f32 %v10781_v17, %v14504_v23  ;;  %v14507_v0 = vld [vmem:[#allocation107_spill] sm:$0xff]  ;;  %v14509_v36 = vld [vmem:[#allocation110_spill] sm:$0xff] }
 0x507   :  { %14502 = vst [vmem:[#allocation98_spill] sm:$0xff] %v11521_v57  ;;  %14503 = vst [vmem:[#allocation99_spill] sm:$0xff] %v11525_v47  ;;  %v11537_v27 = vadd.f32 %v10781_v17, %v14507_v0  ;;  %v11541_v60 = vadd.f32 %v10781_v17, %v14509_v36  ;;  %v14511_v57 = vld [vmem:[#allocation111_spill] sm:$0xff]  ;;  %v14513_v47 = vld [vmem:[#allocation114_spill] sm:$0xff] }
 0x508   :  { %14505 = vst [vmem:[#allocation102_spill] sm:$0xff] %v11529_v11  ;;  %14506 = vst [vmem:[#allocation103_spill] sm:$0xff] %v11533_v29  ;;  %v11545_v51 = vadd.f32 %v10781_v17, %v14511_v57  ;;  %v11549_v23 = vadd.f32 %v10781_v17, %v14513_v47  ;;  %v14516_v29 = vld [vmem:[#allocation115_spill] sm:$0xff]  ;;  %v14748_v40 = vld [vmem:[#allocation64_spill] sm:$0xff] }
 0x509   :  { %14508 = vst [vmem:[#allocation106_spill] sm:$0xff] %v11537_v27  ;;  %14510 = vst [vmem:[#allocation107_spill] sm:$0xff] %v11541_v60  ;;  %v11557_v0 = vadd.f32 %v10781_v17, %v14516_v29  ;;  %v14518_v27 = vld [vmem:[#allocation118_spill] sm:$0xff]  ;;  %v14520_v60 = vld [vmem:[#allocation119_spill] sm:$0xff] }
 0x50a   :  { %14512 = vst [vmem:[#allocation110_spill] sm:$0xff] %v11545_v51  ;;  %14514 = vst [vmem:[#allocation111_spill] sm:$0xff] %v11549_v23  ;;  %v11561_v36 = vadd.f32 %v10781_v17, %v14518_v27  ;;  %v11565_v57 = vadd.f32 %v10781_v17, %v14520_v60  ;;  %v14522_v51 = vld [vmem:[#allocation122_spill] sm:$0xff]  ;;  %v14524_v23 = vld [vmem:[#allocation123_spill] sm:$0xff] }
 0x50b   :  { %14515 = vst [vmem:[#allocation114_spill] sm:$0xff] %v11553_v18  ;;  %14517 = vst [vmem:[#allocation115_spill] sm:$0xff] %v11557_v0  ;;  %v11569_v47 = vadd.f32 %v10781_v17, %v14522_v51  ;;  %v11573_v58 = vadd.f32 %v10781_v17, %v14524_v23  ;;  %v14526_v18 = vld [vmem:[#allocation126_spill] sm:$0xff]  ;;  %v14528_v0 = vld [vmem:[#allocation127_spill] sm:$0xff] }
 0x50c   :  { %14519 = vst [vmem:[#allocation118_spill] sm:$0xff] %v11561_v36  ;;  %14521 = vst [vmem:[#allocation119_spill] sm:$0xff] %v11565_v57  ;;  %v11577_v29 = vadd.f32 %v10781_v17, %v14526_v18  ;;  %v11581_v27 = vadd.f32 %v10781_v17, %v14528_v0  ;;  %v14530_v36 = vld [vmem:[#allocation130_spill] sm:$0xff]  ;;  %v14532_v57 = vld [vmem:[#allocation131_spill] sm:$0xff] }
 0x50d   :  { %14523 = vst [vmem:[#allocation122_spill] sm:$0xff] %v11569_v47  ;;  %14525 = vst [vmem:[#allocation123_spill] sm:$0xff] %v11573_v58  ;;  %v11585_v60 = vadd.f32 %v10781_v17, %v14530_v36  ;;  %v11589_v51 = vadd.f32 %v10781_v17, %v14532_v57  ;;  %v14534_v47 = vld [vmem:[#allocation134_spill] sm:$0xff]  ;;  %v14536_v58 = vld [vmem:[#allocation135_spill] sm:$0xff] }
 0x50e   :  { %14527 = vst [vmem:[#allocation126_spill] sm:$0xff] %v11577_v29  ;;  %14529 = vst [vmem:[#allocation127_spill] sm:$0xff] %v11581_v27  ;;  %v11593_v23 = vadd.f32 %v10781_v17, %v14534_v47  ;;  %v11597_v18 = vadd.f32 %v10781_v17, %v14536_v58  ;;  %v14538_v29 = vld [vmem:[#allocation138_spill] sm:$0xff]  ;;  %v14540_v27 = vld [vmem:[#allocation139_spill] sm:$0xff] }
 0x50f   :  { %14531 = vst [vmem:[#allocation130_spill] sm:$0xff] %v11585_v60  ;;  %14533 = vst [vmem:[#allocation131_spill] sm:$0xff] %v11589_v51  ;;  %v11601_v0 = vadd.f32 %v10781_v17, %v14538_v29  ;;  %v11605_v36 = vadd.f32 %v10781_v17, %v14540_v27  ;;  %v14542_v60 = vld [vmem:[#allocation142_spill] sm:$0xff]  ;;  %v14544_v51 = vld [vmem:[#allocation143_spill] sm:$0xff] }
 0x510   :  { %14535 = vst [vmem:[#allocation134_spill] sm:$0xff] %v11593_v23  ;;  %14537 = vst [vmem:[#allocation135_spill] sm:$0xff] %v11597_v18  ;;  %v11609_v57 = vadd.f32 %v10781_v17, %v14542_v60  ;;  %v11613_v47 = vadd.f32 %v10781_v17, %v14544_v51  ;;  %v14546_v23 = vld [vmem:[#allocation146_spill] sm:$0xff]  ;;  %v14755_v48 = vld [vmem:[#allocation79_spill] sm:$0xff] }
 0x511   :  { %14539 = vst [vmem:[#allocation138_spill] sm:$0xff] %v11601_v0  ;;  %14541 = vst [vmem:[#allocation139_spill] sm:$0xff] %v11605_v36  ;;  %v11617_v58 = vadd.f32 %v10781_v17, %v14546_v23  ;;  %v14547_v18 = vld [vmem:[#allocation150_spill] sm:$0xff]  ;;  %v14549_v36 = vld [vmem:[#allocation155_spill] sm:$0xff] }
 0x512   :  { %14543 = vst [vmem:[#allocation142_spill] sm:$0xff] %v11609_v57  ;;  %14545 = vst [vmem:[#allocation143_spill] sm:$0xff] %v11613_v47  ;;  %v11621_v29 = vadd.f32 %v10781_v17, %v14547_v18  ;;  %v14548_v0 = vld [vmem:[#allocation154_spill] sm:$0xff]  ;;  %v11629_v60 = vadd.f32 %v10781_v17, %v14549_v36  ;;  %v14551_v47 = vld [vmem:[#allocation159_spill] sm:$0xff]  ;;  %v11641_v18 = vadd.f32 %v10781_v17, %v10610_v16 }
 0x513   :  { %v11625_v27 = vadd.f32 %v10781_v17, %v14548_v0  ;;  %v14550_v57 = vld [vmem:[#allocation158_spill] sm:$0xff]  ;;  %v11637_v23 = vadd.f32 %v10781_v17, %v14551_v47  ;;  %v11645_v0 = vadd.f32 %v10781_v17, %v10614_v10  ;;  %v11649_v36 = vadd.f32 %v10781_v17, %v10618_v59 }
 0x514   :  { %v11633_v51 = vadd.f32 %v10781_v17, %v14550_v57  ;;  %v11653_v57 = vadd.f32 %v10781_v17, %v10622_v1  ;;  %v11657_v47 = vadd.f32 %v10781_v17, %v10626_v49  ;;  %v11661_v16 = vadd.f32 %v10781_v17, %v10630_v20  ;;  %v14750_v39 = vld [vmem:[#allocation70_spill] sm:$0xff]  ;;  %v14774_v11 = vld [vmem:[#allocation123_spill] sm:$0xff] }
 0x515   :  { %v11665_v10 = vadd.f32 %v10781_v17, %v10634_v50  ;;  %v11669_v59 = vadd.f32 %v10781_v17, %v10638_v30  ;;  %v11673_v1 = vadd.f32 %v10781_v17, %v10642_v2  ;;  %v11677_v49 = vadd.f32 %v10781_v17, %v10646_v22  ;;  %v14775_v62 = vld [vmem:[#allocation126_spill] sm:$0xff]  ;;  %v14776_v46 = vld [vmem:[#allocation127_spill] sm:$0xff] }
 0x516   :  { %v11681_v20 = vadd.f32 %v10781_v17, %v10650_v38  ;;  %v11685_v50 = vadd.f32 %v10781_v17, %v10654_v21  ;;  %v11689_v30 = vadd.f32 %v10781_v17, %v10658_v12  ;;  %v11693_v2 = vadd.f32 %v10781_v17, %v10662_v35  ;;  %v14777_v32 = vld [vmem:[#allocation130_spill] sm:$0xff]  ;;  %v14778_v54 = vld [vmem:[#allocation131_spill] sm:$0xff] }
 0x517   :  { %14552 = vst [vmem:[#allocation146_spill] sm:$0xff] %v11669_v59  ;;  %14553 = vst [vmem:[#allocation150_spill] sm:$0xff] %v11673_v1  ;;  %v11697_v22 = vadd.f32 %v10781_v17, %v10666_v13  ;;  %v11701_v38 = vadd.f32 %v10781_v17, %v10670_v7  ;;  %v11705_v21 = vadd.f32 %v10781_v17, %v10674_v31  ;;  %v14779_v9 = vld [vmem:[#allocation134_spill] sm:$0xff]  ;;  %v14780_v45 = vld [vmem:[#allocation135_spill] sm:$0xff] }
 0x518   :  { %14554 = vst [vmem:[#allocation154_spill] sm:$0xff] %v11677_v49  ;;  %14555 = vst [vmem:[#allocation155_spill] sm:$0xff] %v11681_v20  ;;  %v11709_v12 = vadd.f32 %v10781_v17, %v10678_v52  ;;  %v11713_v35 = vadd.f32 %v10781_v17, %v10682_v26  ;;  %v11717_v13 = vadd.f32 %v10781_v17, %v10686_v43  ;;  %v14781_v56 = vld [vmem:[#allocation138_spill] sm:$0xff]  ;;  %v14782_v37 = vld [vmem:[#allocation139_spill] sm:$0xff] }
 0x519   :  { %14556 = vst [vmem:[#allocation158_spill] sm:$0xff] %v11685_v50  ;;  %14557 = vst [vmem:[#allocation159_spill] sm:$0xff] %v11689_v30  ;;  %v11721_v7 = vadd.f32 %v10781_v17, %v10690_v55  ;;  %v11725_v31 = vadd.f32 %v10781_v17, %v10694_v24  ;;  %v11729_v52 = vadd.f32 %v10781_v17, %v10698_v28  ;;  %v14784_v8 = vld [vmem:[#allocation143_spill] sm:$0xff]  ;;  %v14823_v50 = vld [vmem:[#allocation214_spill] sm:$0xff] }
 0x51a   :  { %14558 = vst [vmem:[#allocation224_spill] sm:$0xff] %v11693_v2  ;;  %14559 = vst [vmem:[#allocation225_spill] sm:$0xff] %v11697_v22  ;;  %v11733_v26 = vadd.f32 %v10781_v17, %v10702_v5  ;;  %v11737_v43 = vadd.f32 %v10781_v17, %v10706_v4  ;;  %v11741_v55 = vadd.f32 %v10781_v17, %v10710_v53  ;;  %v14805_v49 = vld [vmem:[#allocation187_spill] sm:$0xff]  ;;  %v14827_v20 = vld [vmem:[#allocation216_spill] sm:$0xff] }
 0x51b   :  { %14560 = vst [vmem:[#allocation226_spill] sm:$0xff] %v11701_v38  ;;  %14561 = vst [vmem:[#allocation227_spill] sm:$0xff] %v11705_v21  ;;  %v14813_v22 = vld [vmem:[#allocation195_spill] sm:$0xff]  ;;  %v14815_v38 = vld [vmem:[#allocation198_spill] sm:$0xff] }
 0x51c   :  { %14562 = vst [vmem:[#allocation228_spill] sm:$0xff] %v11709_v12  ;;  %14563 = vst [vmem:[#allocation229_spill] sm:$0xff] %v11713_v35  ;;  %v14831_v1 = vld [vmem:[#allocation218_spill] sm:$0xff]  ;;  %v14835_v59 = vld [vmem:[#allocation220_spill] sm:$0xff] }
 0x51d   :  { %14564 = vst [vmem:[#allocation230_spill] sm:$0xff] %v11717_v13  ;;  %14565 = vst [vmem:[#allocation231_spill] sm:$0xff] %v11721_v7  ;;  %v14571_v7 = vld [vmem:[#allocation163_spill] sm:$0xff] }
 0x51e   :  { %14566 = vst [vmem:[#allocation232_spill] sm:$0xff] %v11725_v31  ;;  %14567 = vst [vmem:[#allocation233_spill] sm:$0xff] %v11729_v52  ;;  %v11745_v24 = vadd.f32 %v10781_v17, %v14571_v7  ;;  %v14573_v31 = vld [vmem:[#allocation166_spill] sm:$0xff]  ;;  %v14575_v52 = vld [vmem:[#allocation167_spill] sm:$0xff] }
 0x51f   :  { %14568 = vst [vmem:[#allocation234_spill] sm:$0xff] %v11733_v26  ;;  %14569 = vst [vmem:[#allocation235_spill] sm:$0xff] %v11737_v43  ;;  %v11749_v28 = vadd.f32 %v10781_v17, %v14573_v31  ;;  %v11753_v5 = vadd.f32 %v10781_v17, %v14575_v52  ;;  %v14577_v26 = vld [vmem:[#allocation170_spill] sm:$0xff]  ;;  %v14579_v43 = vld [vmem:[#allocation171_spill] sm:$0xff] }
 0x520   :  { %14570 = vst [vmem:[#allocation236_spill] sm:$0xff] %v11741_v55  ;;  %14572 = vst [vmem:[#allocation163_spill] sm:$0xff] %v11745_v24  ;;  %v11757_v4 = vadd.f32 %v10781_v17, %v14577_v26  ;;  %v11761_v53 = vadd.f32 %v10781_v17, %v14579_v43  ;;  %v14581_v55 = vld [vmem:[#allocation174_spill] sm:$0xff]  ;;  %v14583_v24 = vld [vmem:[#allocation175_spill] sm:$0xff] }
 0x521   :  { %14574 = vst [vmem:[#allocation166_spill] sm:$0xff] %v11749_v28  ;;  %14576 = vst [vmem:[#allocation167_spill] sm:$0xff] %v11753_v5  ;;  %v11765_v7 = vadd.f32 %v10781_v17, %v14581_v55  ;;  %v11769_v31 = vadd.f32 %v10781_v17, %v14583_v24  ;;  %v14585_v28 = vld [vmem:[#allocation178_spill] sm:$0xff]  ;;  %v14587_v5 = vld [vmem:[#allocation179_spill] sm:$0xff] }
 0x522   :  { %14578 = vst [vmem:[#allocation170_spill] sm:$0xff] %v11757_v4  ;;  %14580 = vst [vmem:[#allocation171_spill] sm:$0xff] %v11761_v53  ;;  %v11773_v52 = vadd.f32 %v10781_v17, %v14585_v28  ;;  %v11777_v26 = vadd.f32 %v10781_v17, %v14587_v5  ;;  %v14589_v4 = vld [vmem:[#allocation182_spill] sm:$0xff]  ;;  %v14591_v53 = vld [vmem:[#allocation183_spill] sm:$0xff]  ;;  %v11793_v28 = vadd.f32 %v10781_v17, %v10762_v33 }
 0x523   :  { %14582 = vst [vmem:[#allocation174_spill] sm:$0xff] %v11765_v7  ;;  %14584 = vst [vmem:[#allocation175_spill] sm:$0xff] %v11769_v31  ;;  %v11781_v43 = vadd.f32 %v10781_v17, %v14589_v4  ;;  %v11785_v55 = vadd.f32 %v10781_v17, %v14591_v53  ;;  %v14593_v7 = vld [vmem:[#allocation186_spill] sm:$0xff]  ;;  %v11797_v5 = vadd.f32 %v10781_v17, %v10766_v6  ;;  %v14817_v33 = vld [vmem:[#allocation199_spill] sm:$0xff] }
 0x524   :  { %14586 = vst [vmem:[#allocation178_spill] sm:$0xff] %v11773_v52  ;;  %14588 = vst [vmem:[#allocation179_spill] sm:$0xff] %v11777_v26  ;;  %v11789_v24 = vadd.f32 %v10781_v17, %v14593_v7  ;;  %v11801_v4 = vadd.f32 %v10781_v17, %v10770_v61  ;;  %v11805_v53 = vadd.f32 %v10781_v17, %v10774_v41  ;;  %v14700_v17 = vld [vmem:[#allocation124_spill] sm:$0xff]  ;;  %v14807_v31 = vld [vmem:[#allocation190_spill] sm:$0xff]  ;;  %v14814_v7 = vmax.f32 %v14813_v22, 0.0 }
 0x525   :  { %14590 = vst [vmem:[#allocation182_spill] sm:$0xff] %v11781_v43  ;;  %14592 = vst [vmem:[#allocation183_spill] sm:$0xff] %v11785_v55  ;;  %v14708_v61 = vld [vmem:[#allocation140_spill] sm:$0xff]  ;;  %v14783_v43 = vld [vmem:[#allocation142_spill] sm:$0xff]  ;;  %v14818_v12 = vmax.f32 %v14817_v33, 0.0 }
 0x526   :  { %14594 = vst [vmem:[#allocation186_spill] sm:$0xff] %v11789_v24  ;;  %14595 = vst [vmem:[#allocation237_spill] sm:$0xff] %v11793_v28  ;;  %v14809_v26 = vld [vmem:[#allocation191_spill] sm:$0xff]  ;;  %v14811_v41 = vld [vmem:[#allocation194_spill] sm:$0xff]  ;;  %v14816_v24 = vmax.f32 %v14815_v38, 0.0  ;;  %v14832_v38 = vmax.f32 %v14831_v1, 0.0 }
 0x527   :  { %14596 = vst [vmem:[#allocation238_spill] sm:$0xff] %v11797_v5  ;;  %14597 = vst [vmem:[#allocation239_spill] sm:$0xff] %v11801_v4  ;;  %v14806_v5 = vmax.f32 %v14805_v49, 0.0  ;;  %v14808_v4 = vmax.f32 %v14807_v31, 0.0  ;;  %v14810_v30 = vmax.f32 %v14809_v26, 0.0  ;;  %v14812_v2 = vmax.f32 %v14811_v41, 0.0 }
 0x528   :  { %14598 = vst [vmem:[#allocation240_spill] sm:$0xff] %v11805_v53  ;;  %v14701_v53 = vld [vmem:[#allocation125_spill] sm:$0xff]  ;;  %v6390_v21 = vpack.c.bf16 %v14816_v24, %v14814_v7  ;;  %v14819_v28 = vld [vmem:[#allocation202_spill] sm:$0xff]  ;;  %v14821_v13 = vld [vmem:[#allocation203_spill] sm:$0xff]  ;;  %v14824_v31 = vmax.f32 %v14823_v50, 0.0  ;;  %v14828_v41 = vmax.f32 %v14827_v20, 0.0 }
 0x529   :  { %v6380_v52 = vpack.c.bf16 %v14808_v4, %v14806_v5  ;;  %v6385_v55 = vpack.c.bf16 %v14812_v2, %v14810_v30  ;;  %v14820_v35 = vmax.f32 %v14819_v28, 0.0  ;;  %v14822_v49 = vmax.f32 %v14821_v13, 0.0  ;;  %v14825_v4 = vld [vmem:[#allocation215_spill] sm:$0xff]  ;;  %v14829_v2 = vld [vmem:[#allocation217_spill] sm:$0xff] }
 0x52a   :  { %v14826_v26 = vmax.f32 %v14825_v4, 0.0  ;;  %v14830_v22 = vmax.f32 %v14829_v2, 0.0  ;;  %v14833_v7 = vld [vmem:[#allocation219_spill] sm:$0xff]  ;;  %v14836_v28 = vmax.f32 %v14835_v59, 0.0  ;;  %7018 = vst [vmem:[%s12963_s4 + $0x10] sm:$0xff] %v6390_v21   ;;  %v14837_v1 = vld [vmem:[#allocation221_spill] sm:$0xff] }
 0x52b   :  { %v6395_v6 = vpack.c.bf16 %v14820_v35, %v14818_v12  ;;  %v6400_v5 = vpack.c.bf16 %v14824_v31, %v14822_v49  ;;  %v14834_v33 = vmax.f32 %v14833_v7, 0.0  ;;  %6381 = vst [vmem:[%s12963_s4] sm:$0xff] %v6380_v52   ;;  %7017 = vst [vmem:[%s12963_s4 + $0x8] sm:$0xff] %v6385_v55   ;;  %v14838_v20 = vmax.f32 %v14837_v1, 0.0  ;;  %v14839_v59 = vld [vmem:[#allocation222_spill] sm:$0xff]  ;;  %v14841_v13 = vld [vmem:[#allocation223_spill] sm:$0xff] }
 0x52c   :  { %v6405_v30 = vpack.c.bf16 %v14828_v41, %v14826_v26  ;;  %v6410_v24 = vpack.c.bf16 %v14832_v38, %v14830_v22  ;;  %v14840_v50 = vmax.f32 %v14839_v59, 0.0  ;;  %v14842_v49 = vmax.f32 %v14841_v13, 0.0  ;;  %v14843_v52 = vld [vmem:[#allocation147_spill] sm:$0xff]  ;;  %v14847_v41 = vld [vmem:[#allocation162_spill] sm:$0xff] }
 0x52d   :  { %v6415_v12 = vpack.c.bf16 %v14836_v28, %v14834_v33  ;;  %7019 = vst [vmem:[%s12963_s4 + $0x18] sm:$0xff] %v6395_v6   ;;  %v14844_v31 = vmax.f32 %v14843_v52, 0.0  ;;  %v14845_v26 = vld [vmem:[#allocation151_spill] sm:$0xff]  ;;  %v14848_v2 = vmax.f32 %v14847_v41, 0.0  ;;  %v14849_v21 = vld [vmem:[#allocation206_spill] sm:$0xff]  ;;  %7020 = vst [vmem:[%s12963_s4 + $0x20] sm:$0xff] %v6400_v5  }
 0x52e   :  { %v6420_v35 = vpack.c.bf16 %v14840_v50, %v14838_v20  ;;  %v14846_v55 = vmax.f32 %v14845_v26, 0.0  ;;  %v14850_v38 = vmax.f32 %v14849_v21, 0.0  ;;  %v14851_v7 = vld [vmem:[#allocation207_spill] sm:$0xff]  ;;  %7021 = vst [vmem:[%s12963_s4 + $0x28] sm:$0xff] %v6405_v30   ;;  %7022 = vst [vmem:[%s12963_s4 + $0x30] sm:$0xff] %v6410_v24   ;;  %v14853_v28 = vld [vmem:[#allocation210_spill] sm:$0xff] }
 0x52f   :  { %v6425_v4 = vpack.c.bf16 %v14844_v31, %v14842_v49  ;;  %v14852_v33 = vmax.f32 %v14851_v7, 0.0  ;;  %7023 = vst [vmem:[%s12963_s4 + $0x38] sm:$0xff] %v6415_v12   ;;  %v14854_v1 = vmax.f32 %v14853_v28, 0.0  ;;  %v14855_v20 = vld [vmem:[#allocation211_spill] sm:$0xff]  ;;  %v14857_v13 = vld [vmem:[#allocation2_spill] sm:$0xff]  ;;  %v14861_v26 = vld [vmem:[#allocation4_spill] sm:$0xff] }
 0x530   :  { %v6430_v22 = vpack.c.bf16 %v14848_v2, %v14846_v55  ;;  %v14856_v59 = vmax.f32 %v14855_v20, 0.0  ;;  %v14858_v49 = vmax.f32 %v14857_v13, 0.0  ;;  %v14859_v5 = vld [vmem:[#allocation3_spill] sm:$0xff]  ;;  %v14862_v30 = vmax.f32 %v14861_v26, 0.0  ;;  %v14863_v55 = vld [vmem:[#allocation5_spill] sm:$0xff]  ;;  %v14865_v24 = vld [vmem:[#allocation6_spill] sm:$0xff] }
 0x531   :  { %v6435_v6 = vpack.c.bf16 %v14852_v33, %v14850_v38  ;;  %v14860_v52 = vmax.f32 %v14859_v5, 0.0  ;;  %v14864_v41 = vmax.f32 %v14863_v55, 0.0  ;;  %v14866_v21 = vmax.f32 %v14865_v24, 0.0  ;;  %v14867_v38 = vld [vmem:[#allocation7_spill] sm:$0xff]  ;;  %7024 = vst [vmem:[%s12963_s4 + $0x40] sm:$0xff] %v6420_v35   ;;  %7025 = vst [vmem:[%s12963_s4 + $0x48] sm:$0xff] %v6425_v4  }
 0x532   :  { %v6440_v50 = vpack.c.bf16 %v14856_v59, %v14854_v1  ;;  %v14868_v7 = vmax.f32 %v14867_v38, 0.0  ;;  %7026 = vst [vmem:[%s12963_s4 + $0x50] sm:$0xff] %v6430_v22   ;;  %v14869_v33 = vld [vmem:[#allocation8_spill] sm:$0xff]  ;;  %v14871_v1 = vld [vmem:[#allocation9_spill] sm:$0xff]  ;;  %v14873_v13 = vld [vmem:[#allocation10_spill] sm:$0xff] }
 0x533   :  { %v6445_v31 = vpack.c.bf16 %v14860_v52, %v14858_v49  ;;  %v6450_v2 = vpack.c.bf16 %v14864_v41, %v14862_v30  ;;  %7027 = vst [vmem:[%s12963_s4 + $0x58] sm:$0xff] %v6435_v6   ;;  %v14870_v28 = vmax.f32 %v14869_v33, 0.0  ;;  %v14872_v20 = vmax.f32 %v14871_v1, 0.0  ;;  %v14875_v35 = vld [vmem:[#allocation11_spill] sm:$0xff]  ;;  %v14877_v26 = vld [vmem:[#allocation12_spill] sm:$0xff]  ;;  %v14879_v30 = vld [vmem:[#allocation13_spill] sm:$0xff] }
 0x534   :  { %v6455_v12 = vpack.c.bf16 %v14868_v7, %v14866_v21  ;;  %v14874_v49 = vmax.f32 %v14873_v13, 0.0  ;;  %v14876_v5 = vmax.f32 %v14875_v35, 0.0  ;;  %v14878_v4 = vmax.f32 %v14877_v26, 0.0  ;;  %v14881_v22 = vld [vmem:[#allocation14_spill] sm:$0xff]  ;;  %v14883_v21 = vld [vmem:[#allocation15_spill] sm:$0xff]  ;;  %7028 = vst [vmem:[%s12963_s4 + $0x60] sm:$0xff] %v6440_v50  }
 0x535   :  { %v6460_v59 = vpack.c.bf16 %v14872_v20, %v14870_v28  ;;  %v14880_v55 = vmax.f32 %v14879_v30, 0.0  ;;  %v14882_v24 = vmax.f32 %v14881_v22, 0.0  ;;  %v14884_v38 = vmax.f32 %v14883_v21, 0.0  ;;  %7029 = vst [vmem:[%s12963_s4 + $0x68] sm:$0xff] %v6445_v31   ;;  %7030 = vst [vmem:[%s12963_s4 + $0x70] sm:$0xff] %v6450_v2   ;;  %v14885_v7 = vld [vmem:[#allocation16_spill] sm:$0xff] }
 0x536   :  { %v6465_v52 = vpack.c.bf16 %v14876_v5, %v14874_v49  ;;  %7031 = vst [vmem:[%s12963_s4 + $0x78] sm:$0xff] %v6455_v12   ;;  %v14886_v33 = vmax.f32 %v14885_v7, 0.0  ;;  %v14887_v28 = vld [vmem:[#allocation17_spill] sm:$0xff]  ;;  %v14889_v13 = vld [vmem:[#allocation18_spill] sm:$0xff]  ;;  %v14891_v50 = vld [vmem:[#allocation19_spill] sm:$0xff] }
 0x537   :  { %v6470_v41 = vpack.c.bf16 %v14880_v55, %v14878_v4  ;;  %v6475_v6 = vpack.c.bf16 %v14884_v38, %v14882_v24  ;;  %v14888_v1 = vmax.f32 %v14887_v28, 0.0  ;;  %v14890_v49 = vmax.f32 %v14889_v13, 0.0  ;;  %v14893_v26 = vld [vmem:[#allocation20_spill] sm:$0xff]  ;;  %v14895_v4 = vld [vmem:[#allocation21_spill] sm:$0xff]  ;;  %v14897_v2 = vld [vmem:[#allocation22_spill] sm:$0xff]  ;;  %7032 = vst [vmem:[%s12963_s4 + $0x80] sm:$0xff] %v6460_v59  }
 0x538   :  { %v14892_v35 = vmax.f32 %v14891_v50, 0.0  ;;  %v14894_v31 = vmax.f32 %v14893_v26, 0.0  ;;  %v14896_v30 = vmax.f32 %v14895_v4, 0.0  ;;  %v14898_v22 = vmax.f32 %v14897_v2, 0.0  ;;  %v14899_v24 = vld [vmem:[#allocation23_spill] sm:$0xff]  ;;  %7033 = vst [vmem:[%s12963_s4 + $0x88] sm:$0xff] %v6465_v52  }
 0x539   :  { %v6480_v20 = vpack.c.bf16 %v14888_v1, %v14886_v33  ;;  %v14900_v21 = vmax.f32 %v14899_v24, 0.0  ;;  %7034 = vst [vmem:[%s12963_s4 + $0x90] sm:$0xff] %v6470_v41   ;;  %7035 = vst [vmem:[%s12963_s4 + $0x98] sm:$0xff] %v6475_v6   ;;  %v14901_v38 = vld [vmem:[#allocation24_spill] sm:$0xff]  ;;  %v14903_v33 = vld [vmem:[#allocation25_spill] sm:$0xff] }
 0x53a   :  { %v6485_v5 = vpack.c.bf16 %v14892_v35, %v14890_v49  ;;  %v6490_v55 = vpack.c.bf16 %v14896_v30, %v14894_v31  ;;  %v14902_v7 = vmax.f32 %v14901_v38, 0.0  ;;  %v14904_v28 = vmax.f32 %v14903_v33, 0.0  ;;  %v14905_v13 = vld [vmem:[#allocation26_spill] sm:$0xff]  ;;  %v14907_v59 = vld [vmem:[#allocation27_spill] sm:$0xff]  ;;  %v14909_v26 = vld [vmem:[#allocation28_spill] sm:$0xff] }
 0x53b   :  { %v6495_v12 = vpack.c.bf16 %v14900_v21, %v14898_v22  ;;  %v14906_v49 = vmax.f32 %v14905_v13, 0.0  ;;  %v14908_v50 = vmax.f32 %v14907_v59, 0.0  ;;  %v14910_v52 = vmax.f32 %v14909_v26, 0.0  ;;  %v14911_v31 = vld [vmem:[#allocation29_spill] sm:$0xff]  ;;  %v14913_v41 = vld [vmem:[#allocation30_spill] sm:$0xff]  ;;  %v14915_v22 = vld [vmem:[#allocation31_spill] sm:$0xff] }
 0x53c   :  { %v6500_v1 = vpack.c.bf16 %v14904_v28, %v14902_v7  ;;  %v14912_v4 = vmax.f32 %v14911_v31, 0.0  ;;  %v14914_v2 = vmax.f32 %v14913_v41, 0.0  ;;  %v14916_v24 = vmax.f32 %v14915_v22, 0.0  ;;  %7036 = vst [vmem:[%s12963_s4 + $0xa0] sm:$0xff] %v6480_v20   ;;  %7037 = vst [vmem:[%s12963_s4 + $0xa8] sm:$0xff] %v6485_v5   ;;  %v14917_v21 = vld [vmem:[#allocation32_spill] sm:$0xff] }
 0x53d   :  { %v6505_v35 = vpack.c.bf16 %v14908_v50, %v14906_v49  ;;  %7038 = vst [vmem:[%s12963_s4 + $0xb0] sm:$0xff] %v6490_v55   ;;  %7039 = vst [vmem:[%s12963_s4 + $0xb8] sm:$0xff] %v6495_v12   ;;  %v14918_v38 = vmax.f32 %v14917_v21, 0.0  ;;  %v14919_v7 = vld [vmem:[#allocation33_spill] sm:$0xff]  ;;  %v14921_v13 = vld [vmem:[#allocation35_spill] sm:$0xff] }
 0x53e   :  { %v6510_v30 = vpack.c.bf16 %v14912_v4, %v14910_v52  ;;  %v6515_v6 = vpack.c.bf16 %v14916_v24, %v14914_v2  ;;  %v14920_v33 = vmax.f32 %v14919_v7, 0.0  ;;  %v14922_v49 = vmax.f32 %v14921_v13, 0.0  ;;  %v14923_v20 = vld [vmem:[#allocation36_spill] sm:$0xff]  ;;  %v14925_v26 = vld [vmem:[#allocation38_spill] sm:$0xff]  ;;  %v14927_v52 = vld [vmem:[#allocation39_spill] sm:$0xff]  ;;  %7040 = vst [vmem:[%s12963_s4 + $0xc0] sm:$0xff] %v6500_v1  }
 0x53f   :  { %v14924_v59 = vmax.f32 %v14923_v20, 0.0  ;;  %v14926_v5 = vmax.f32 %v14925_v26, 0.0  ;;  %v14928_v31 = vmax.f32 %v14927_v52, 0.0  ;;  %v14929_v55 = vld [vmem:[#allocation41_spill] sm:$0xff]  ;;  %v14931_v2 = vld [vmem:[#allocation42_spill] sm:$0xff]  ;;  %7041 = vst [vmem:[%s12963_s4 + $0xc8] sm:$0xff] %v6505_v35  }
 0x540   :  { %v6520_v28 = vpack.c.bf16 %v14920_v33, %v14918_v38  ;;  %v14930_v41 = vmax.f32 %v14929_v55, 0.0  ;;  %v14932_v22 = vmax.f32 %v14931_v2, 0.0  ;;  %7042 = vst [vmem:[%s12963_s4 + $0xd0] sm:$0xff] %v6510_v30   ;;  %7043 = vst [vmem:[%s12963_s4 + $0xd8] sm:$0xff] %v6515_v6   ;;  %v14933_v24 = vld [vmem:[#allocation44_spill] sm:$0xff]  ;;  %v14935_v38 = vld [vmem:[#allocation45_spill] sm:$0xff] }
 0x541   :  { %v6525_v50 = vpack.c.bf16 %v14924_v59, %v14922_v49  ;;  %v6530_v4 = vpack.c.bf16 %v14928_v31, %v14926_v5  ;;  %v14934_v21 = vmax.f32 %v14933_v24, 0.0  ;;  %v14936_v7 = vmax.f32 %v14935_v38, 0.0  ;;  %v14937_v13 = vld [vmem:[#allocation47_spill] sm:$0xff]  ;;  %v14939_v1 = vld [vmem:[#allocation48_spill] sm:$0xff]  ;;  %v14941_v26 = vld [vmem:[#allocation50_spill] sm:$0xff] }
 0x542   :  { %v6535_v12 = vpack.c.bf16 %v14932_v22, %v14930_v41  ;;  %v14938_v49 = vmax.f32 %v14937_v13, 0.0  ;;  %v14940_v20 = vmax.f32 %v14939_v1, 0.0  ;;  %v14942_v35 = vmax.f32 %v14941_v26, 0.0  ;;  %v14943_v5 = vld [vmem:[#allocation51_spill] sm:$0xff]  ;;  %v14945_v30 = vld [vmem:[#allocation53_spill] sm:$0xff]  ;;  %v14947_v41 = vld [vmem:[#allocation54_spill] sm:$0xff] }
 0x543   :  { %v6540_v33 = vpack.c.bf16 %v14936_v7, %v14934_v21  ;;  %v14944_v52 = vmax.f32 %v14943_v5, 0.0  ;;  %v14946_v55 = vmax.f32 %v14945_v30, 0.0  ;;  %v14948_v2 = vmax.f32 %v14947_v41, 0.0  ;;  %7044 = vst [vmem:[%s12963_s4 + $0xe0] sm:$0xff] %v6520_v28   ;;  %7045 = vst [vmem:[%s12963_s4 + $0xe8] sm:$0xff] %v6525_v50   ;;  %v14949_v22 = vld [vmem:[#allocation56_spill] sm:$0xff] }
 0x544   :  { %v6545_v59 = vpack.c.bf16 %v14940_v20, %v14938_v49  ;;  %7046 = vst [vmem:[%s12963_s4 + $0xf0] sm:$0xff] %v6530_v4   ;;  %7047 = vst [vmem:[%s12963_s4 + $0xf8] sm:$0xff] %v6535_v12   ;;  %v14950_v24 = vmax.f32 %v14949_v22, 0.0  ;;  %v14951_v21 = vld [vmem:[#allocation57_spill] sm:$0xff]  ;;  %v14953_v13 = vld [vmem:[#allocation59_spill] sm:$0xff] }
 0x545   :  { %v6550_v31 = vpack.c.bf16 %v14944_v52, %v14942_v35  ;;  %v6555_v6 = vpack.c.bf16 %v14948_v2, %v14946_v55  ;;  %v14952_v38 = vmax.f32 %v14951_v21, 0.0  ;;  %v14954_v49 = vmax.f32 %v14953_v13, 0.0  ;;  %v14955_v28 = vld [vmem:[#allocation60_spill] sm:$0xff]  ;;  %v14957_v26 = vld [vmem:[#allocation62_spill] sm:$0xff]  ;;  %v14959_v35 = vld [vmem:[#allocation63_spill] sm:$0xff]  ;;  %7048 = vst [vmem:[%s12963_s4 + $0x100] sm:$0xff] %v6540_v33  }
 0x546   :  { %v14956_v1 = vmax.f32 %v14955_v28, 0.0  ;;  %v14958_v50 = vmax.f32 %v14957_v26, 0.0  ;;  %v14960_v5 = vmax.f32 %v14959_v35, 0.0  ;;  %v14961_v4 = vld [vmem:[#allocation65_spill] sm:$0xff]  ;;  %v14963_v55 = vld [vmem:[#allocation66_spill] sm:$0xff]  ;;  %7049 = vst [vmem:[%s12963_s4 + $0x108] sm:$0xff] %v6545_v59  }
 0x547   :  { %v6560_v7 = vpack.c.bf16 %v14952_v38, %v14950_v24  ;;  %v14962_v30 = vmax.f32 %v14961_v4, 0.0  ;;  %v14964_v41 = vmax.f32 %v14963_v55, 0.0  ;;  %7050 = vst [vmem:[%s12963_s4 + $0x110] sm:$0xff] %v6550_v31   ;;  %7051 = vst [vmem:[%s12963_s4 + $0x118] sm:$0xff] %v6555_v6   ;;  %v14965_v2 = vld [vmem:[#allocation68_spill] sm:$0xff]  ;;  %v14967_v24 = vld [vmem:[#allocation69_spill] sm:$0xff] }
 0x548   :  { %v6565_v20 = vpack.c.bf16 %v14956_v1, %v14954_v49  ;;  %v6570_v52 = vpack.c.bf16 %v14960_v5, %v14958_v50  ;;  %v14966_v22 = vmax.f32 %v14965_v2, 0.0  ;;  %v14968_v21 = vmax.f32 %v14967_v24, 0.0  ;;  %v14969_v13 = vld [vmem:[#allocation72_spill] sm:$0xff]  ;;  %v14971_v33 = vld [vmem:[#allocation73_spill] sm:$0xff] }
 0x549   :  { %v6575_v12 = vpack.c.bf16 %v14964_v41, %v14962_v30  ;;  %v14970_v49 = vmax.f32 %v14969_v13, 0.0  ;;  %v14972_v28 = vmax.f32 %v14971_v33, 0.0  ;;  %v14973_v26 = vld [vmem:[#allocation76_spill] sm:$0xff]  ;;  %v14975_v50 = vld [vmem:[#allocation77_spill] sm:$0xff]  ;;  %7052 = vst [vmem:[%s12963_s4 + $0x120] sm:$0xff] %v6560_v7  }
 0x54a   :  { %v6580_v38 = vpack.c.bf16 %v14968_v21, %v14966_v22  ;;  %v14974_v59 = vmax.f32 %v14973_v26, 0.0  ;;  %v14976_v35 = vmax.f32 %v14975_v50, 0.0  ;;  %v14977_v31 = vld [vmem:[#allocation80_spill] sm:$0xff]  ;;  %v14979_v30 = vld [vmem:[#allocation81_spill] sm:$0xff]  ;;  %7053 = vst [vmem:[%s12963_s4 + $0x128] sm:$0xff] %v6565_v20   ;;  %7054 = vst [vmem:[%s12963_s4 + $0x130] sm:$0xff] %v6570_v52  }
 0x54b   :  { %v6585_v1 = vpack.c.bf16 %v14972_v28, %v14970_v49  ;;  %v14978_v4 = vmax.f32 %v14977_v31, 0.0  ;;  %v14980_v55 = vmax.f32 %v14979_v30, 0.0  ;;  %7055 = vst [vmem:[%s12963_s4 + $0x138] sm:$0xff] %v6575_v12   ;;  %v14981_v41 = vld [vmem:[#allocation84_spill] sm:$0xff]  ;;  %v14983_v22 = vld [vmem:[#allocation85_spill] sm:$0xff] }
 0x54c   :  { %v6590_v5 = vpack.c.bf16 %v14976_v35, %v14974_v59  ;;  %v14982_v2 = vmax.f32 %v14981_v41, 0.0  ;;  %v14984_v24 = vmax.f32 %v14983_v22, 0.0  ;;  %v14985_v13 = vld [vmem:[#allocation88_spill] sm:$0xff]  ;;  %v14987_v7 = vld [vmem:[#allocation89_spill] sm:$0xff]  ;;  %7056 = vst [vmem:[%s12963_s4 + $0x140] sm:$0xff] %v6580_v38  }
 0x54d   :  { %v6595_v6 = vpack.c.bf16 %v14980_v55, %v14978_v4  ;;  %v14986_v49 = vmax.f32 %v14985_v13, 0.0  ;;  %v14988_v33 = vmax.f32 %v14987_v7, 0.0  ;;  %v14989_v26 = vld [vmem:[#allocation92_spill] sm:$0xff]  ;;  %v14991_v59 = vld [vmem:[#allocation93_spill] sm:$0xff]  ;;  %7057 = vst [vmem:[%s12963_s4 + $0x148] sm:$0xff] %v6585_v1  }
 0x54e   :  { %v6600_v21 = vpack.c.bf16 %v14984_v24, %v14982_v2  ;;  %v14990_v20 = vmax.f32 %v14989_v26, 0.0  ;;  %v14992_v50 = vmax.f32 %v14991_v59, 0.0  ;;  %v14993_v52 = vld [vmem:[#allocation96_spill] sm:$0xff]  ;;  %v14995_v4 = vld [vmem:[#allocation97_spill] sm:$0xff]  ;;  %7058 = vst [vmem:[%s12963_s4 + $0x150] sm:$0xff] %v6590_v5  }
 0x54f   :  { %v6605_v28 = vpack.c.bf16 %v14988_v33, %v14986_v49  ;;  %v14994_v31 = vmax.f32 %v14993_v52, 0.0  ;;  %v14996_v30 = vmax.f32 %v14995_v4, 0.0  ;;  %7059 = vst [vmem:[%s12963_s4 + $0x158] sm:$0xff] %v6595_v6   ;;  %v14997_v55 = vld [vmem:[#allocation100_spill] sm:$0xff]  ;;  %v14999_v2 = vld [vmem:[#allocation101_spill] sm:$0xff] }
 0x550   :  { %v6610_v35 = vpack.c.bf16 %v14992_v50, %v14990_v20  ;;  %v14998_v41 = vmax.f32 %v14997_v55, 0.0  ;;  %v15000_v22 = vmax.f32 %v14999_v2, 0.0  ;;  %v15001_v13 = vld [vmem:[#allocation104_spill] sm:$0xff]  ;;  %v15003_v38 = vld [vmem:[#allocation105_spill] sm:$0xff]  ;;  %7060 = vst [vmem:[%s12963_s4 + $0x160] sm:$0xff] %v6600_v21  }
 0x551   :  { %v6615_v12 = vpack.c.bf16 %v14996_v30, %v14994_v31  ;;  %v15002_v49 = vmax.f32 %v15001_v13, 0.0  ;;  %v15004_v7 = vmax.f32 %v15003_v38, 0.0  ;;  %v15005_v26 = vld [vmem:[#allocation108_spill] sm:$0xff]  ;;  %v15007_v20 = vld [vmem:[#allocation109_spill] sm:$0xff]  ;;  %7061 = vst [vmem:[%s12963_s4 + $0x168] sm:$0xff] %v6605_v28   ;;  %v15020_v28 = vmax.f32 %v14700_v17, 0.0 }
 0x552   :  { %v6620_v24 = vpack.c.bf16 %v15000_v22, %v14998_v41  ;;  %v15006_v1 = vmax.f32 %v15005_v26, 0.0  ;;  %v15008_v59 = vmax.f32 %v15007_v20, 0.0  ;;  %v15009_v5 = vld [vmem:[#allocation112_spill] sm:$0xff]  ;;  %v15011_v31 = vld [vmem:[#allocation113_spill] sm:$0xff]  ;;  %7062 = vst [vmem:[%s12963_s4 + $0x170] sm:$0xff] %v6610_v35   ;;  %v15015_v41 = vmax.f32 %v14697_v42, 0.0 }
 0x553   :  { %v6625_v33 = vpack.c.bf16 %v15004_v7, %v15002_v49  ;;  %v15010_v52 = vmax.f32 %v15009_v5, 0.0  ;;  %v15012_v4 = vmax.f32 %v15011_v31, 0.0  ;;  %7063 = vst [vmem:[%s12963_s4 + $0x178] sm:$0xff] %v6615_v12   ;;  %v15013_v30 = vld [vmem:[#allocation116_spill] sm:$0xff]  ;;  %v15018_v21 = vld [vmem:[#allocation121_spill] sm:$0xff]  ;;  %v15021_v7 = vmax.f32 %v14701_v53, 0.0 }
 0x554   :  { %v6630_v50 = vpack.c.bf16 %v15008_v59, %v15006_v1  ;;  %v15014_v55 = vmax.f32 %v15013_v30, 0.0  ;;  %v15016_v22 = vld [vmem:[#allocation120_spill] sm:$0xff]  ;;  %v15019_v49 = vmax.f32 %v15018_v21, 0.0  ;;  %v15024_v20 = vld [vmem:[#allocation129_spill] sm:$0xff]  ;;  %7064 = vst [vmem:[%s12963_s4 + $0x180] sm:$0xff] %v6620_v24   ;;  %v15026_v42 = vmax.f32 %v14704_v25, 0.0 }
 0x555   :  { %v6635_v6 = vpack.c.bf16 %v15012_v4, %v15010_v52  ;;  %v15017_v13 = vmax.f32 %v15016_v22, 0.0  ;;  %v6650_v26 = vpack.c.bf16 %v15021_v7, %v15020_v28  ;;  %v15022_v35 = vld [vmem:[#allocation128_spill] sm:$0xff]  ;;  %v15025_v59 = vmax.f32 %v15024_v20, 0.0  ;;  %7065 = vst [vmem:[%s12963_s4 + $0x188] sm:$0xff] %v6625_v33   ;;  %v15030_v24 = vld [vmem:[#allocation137_spill] sm:$0xff] }
 0x556   :  { %v6640_v2 = vpack.c.bf16 %v15015_v41, %v15014_v55  ;;  %v15023_v1 = vmax.f32 %v15022_v35, 0.0  ;;  %7066 = vst [vmem:[%s12963_s4 + $0x190] sm:$0xff] %v6630_v50   ;;  %v15027_v53 = vmax.f32 %v14705_v34, 0.0  ;;  %v15028_v5 = vld [vmem:[#allocation136_spill] sm:$0xff]  ;;  %v15031_v31 = vmax.f32 %v15030_v24, 0.0  ;;  %v15034_v50 = vld [vmem:[#allocation141_spill] sm:$0xff] }
 0x557   :  { %v6645_v38 = vpack.c.bf16 %v15019_v49, %v15017_v13  ;;  %7067 = vst [vmem:[%s12963_s4 + $0x198] sm:$0xff] %v6635_v6   ;;  %v15029_v52 = vmax.f32 %v15028_v5, 0.0  ;;  %v15032_v33 = vmax.f32 %v11249_v14, 0.0  ;;  %v15033_v30 = vmax.f32 %v14708_v61, 0.0  ;;  %v15036_v22 = vld [vmem:[#allocation144_spill] sm:$0xff]  ;;  %7070 = vst [vmem:[%s12963_s4 + $0x1b0] sm:$0xff] %v6650_v26  }
 0x558   :  { %v6655_v12 = vpack.c.bf16 %v15025_v59, %v15023_v1  ;;  %v6660_v17 = vpack.c.bf16 %v15027_v53, %v15026_v42  ;;  %v15035_v41 = vmax.f32 %v15034_v50, 0.0  ;;  %v15037_v13 = vmax.f32 %v15036_v22, 0.0  ;;  %7068 = vst [vmem:[%s12963_s4 + $0x1a0] sm:$0xff] %v6640_v2   ;;  %v15040_v61 = vld [vmem:[#allocation148_spill] sm:$0xff]  ;;  %v15042_v2 = vld [vmem:[#allocation149_spill] sm:$0xff] }
 0x559   :  { %v6665_v4 = vpack.c.bf16 %v15031_v31, %v15029_v52  ;;  %v6670_v55 = vpack.c.bf16 %v15033_v30, %v15032_v33  ;;  %7069 = vst [vmem:[%s12963_s4 + $0x1a8] sm:$0xff] %v6645_v38   ;;  %v15038_v25 = vmax.f32 %v11265_v44, 0.0  ;;  %v15039_v34 = vmax.f32 %v14710_v19, 0.0  ;;  %v15046_v26 = vld [vmem:[#allocation153_spill] sm:$0xff]  ;;  %v15048_v20 = vld [vmem:[#allocation156_spill] sm:$0xff] }
 0x55a   :  { %v6675_v6 = vpack.c.bf16 %v15037_v13, %v15035_v41  ;;  %7071 = vst [vmem:[%s12963_s4 + $0x1b8] sm:$0xff] %v6655_v12   ;;  %v15041_v21 = vmax.f32 %v15040_v61, 0.0  ;;  %v15043_v49 = vmax.f32 %v15042_v2, 0.0  ;;  %v15044_v38 = vmax.f32 %v11281_v63, 0.0  ;;  %7072 = vst [vmem:[%s12963_s4 + $0x1c0] sm:$0xff] %v6660_v17   ;;  %v15053_v42 = vld [vmem:[#allocation160_spill] sm:$0xff] }
 0x55b   :  { %v6680_v14 = vpack.c.bf16 %v15039_v34, %v15038_v25  ;;  %v15045_v7 = vmax.f32 %v14712_v3, 0.0  ;;  %v15047_v1 = vmax.f32 %v15046_v26, 0.0  ;;  %v15049_v59 = vmax.f32 %v15048_v20, 0.0  ;;  %7073 = vst [vmem:[%s12963_s4 + $0x1c8] sm:$0xff] %v6665_v4   ;;  %7074 = vst [vmem:[%s12963_s4 + $0x1d0] sm:$0xff] %v6670_v55   ;;  %v15051_v3 = vld [vmem:[#allocation157_spill] sm:$0xff] }
 0x55c   :  { %v6685_v28 = vpack.c.bf16 %v15043_v49, %v15041_v21  ;;  %7075 = vst [vmem:[%s12963_s4 + $0x1d8] sm:$0xff] %v6675_v6   ;;  %v15050_v19 = vmax.f32 %v11297_v15, 0.0  ;;  %v15052_v44 = vmax.f32 %v15051_v3, 0.0  ;;  %v15054_v53 = vmax.f32 %v15053_v42, 0.0  ;;  %v15055_v17 = vld [vmem:[#allocation161_spill] sm:$0xff]  ;;  %v15057_v24 = vld [vmem:[#allocation164_spill] sm:$0xff] }
 0x55d   :  { %v6690_v35 = vpack.c.bf16 %v15045_v7, %v15044_v38  ;;  %v6695_v12 = vpack.c.bf16 %v15049_v59, %v15047_v1  ;;  %v15056_v5 = vmax.f32 %v15055_v17, 0.0  ;;  %v15058_v31 = vmax.f32 %v15057_v24, 0.0  ;;  %v15059_v4 = vld [vmem:[#allocation165_spill] sm:$0xff]  ;;  %v15061_v55 = vld [vmem:[#allocation168_spill] sm:$0xff]  ;;  %7076 = vst [vmem:[%s12963_s4 + $0x1e0] sm:$0xff] %v6680_v14  }
 0x55e   :  { %v6700_v63 = vpack.c.bf16 %v15052_v44, %v15050_v19  ;;  %v15060_v33 = vmax.f32 %v15059_v4, 0.0  ;;  %v15062_v50 = vmax.f32 %v15061_v55, 0.0  ;;  %v15063_v41 = vld [vmem:[#allocation169_spill] sm:$0xff]  ;;  %7077 = vst [vmem:[%s12963_s4 + $0x1e8] sm:$0xff] %v6685_v28   ;;  %v15065_v15 = vld [vmem:[#allocation172_spill] sm:$0xff] }
 0x55f   :  { %v6705_v52 = vpack.c.bf16 %v15056_v5, %v15054_v53  ;;  %v15064_v22 = vmax.f32 %v15063_v41, 0.0  ;;  %7078 = vst [vmem:[%s12963_s4 + $0x1f0] sm:$0xff] %v6690_v35   ;;  %7079 = vst [vmem:[%s12963_s4 + $0x1f8] sm:$0xff] %v6695_v12   ;;  %v15066_v6 = vmax.f32 %v15065_v15, 0.0  ;;  %v15067_v25 = vld [vmem:[#allocation173_spill] sm:$0xff]  ;;  %v15069_v21 = vld [vmem:[#allocation176_spill] sm:$0xff] }
 0x560   :  { %v6710_v30 = vpack.c.bf16 %v15060_v33, %v15058_v31  ;;  %v15068_v34 = vmax.f32 %v15067_v25, 0.0  ;;  %v15070_v2 = vmax.f32 %v15069_v21, 0.0  ;;  %v15071_v14 = vld [vmem:[#allocation177_spill] sm:$0xff]  ;;  %v15073_v7 = vld [vmem:[#allocation180_spill] sm:$0xff]  ;;  %7080 = vst [vmem:[%s12963_s4 + $0x200] sm:$0xff] %v6700_v63  }
 0x561   :  { %v6715_v13 = vpack.c.bf16 %v15064_v22, %v15062_v50  ;;  %v15072_v49 = vmax.f32 %v15071_v14, 0.0  ;;  %v15074_v28 = vmax.f32 %v15073_v7, 0.0  ;;  %v15075_v26 = vld [vmem:[#allocation181_spill] sm:$0xff]  ;;  %v15077_v35 = vld [vmem:[#allocation184_spill] sm:$0xff]  ;;  %7081 = vst [vmem:[%s12963_s4 + $0x208] sm:$0xff] %v6705_v52  }
 0x562   :  { %v6720_v61 = vpack.c.bf16 %v15068_v34, %v15066_v6  ;;  %v15076_v1 = vmax.f32 %v15075_v26, 0.0  ;;  %v15078_v59 = vmax.f32 %v15077_v35, 0.0  ;;  %v15079_v19 = vld [vmem:[#allocation185_spill] sm:$0xff]  ;;  %7082 = vst [vmem:[%s12963_s4 + $0x210] sm:$0xff] %v6710_v30   ;;  %v15081_v44 = vld [vmem:[#allocation188_spill] sm:$0xff] }
 0x563   :  { %v6725_v38 = vpack.c.bf16 %v15072_v49, %v15070_v2  ;;  %v15080_v3 = vmax.f32 %v15079_v19, 0.0  ;;  %7083 = vst [vmem:[%s12963_s4 + $0x218] sm:$0xff] %v6715_v13   ;;  %v15082_v42 = vmax.f32 %v15081_v44, 0.0  ;;  %v15083_v53 = vld [vmem:[#allocation189_spill] sm:$0xff]  ;;  %v15085_v24 = vld [vmem:[#allocation192_spill] sm:$0xff] }
 0x564   :  { %v6730_v20 = vpack.c.bf16 %v15076_v1, %v15074_v28  ;;  %v15084_v17 = vmax.f32 %v15083_v53, 0.0  ;;  %v15086_v31 = vmax.f32 %v15085_v24, 0.0  ;;  %v15087_v63 = vld [vmem:[#allocation193_spill] sm:$0xff]  ;;  %v15089_v55 = vld [vmem:[#allocation196_spill] sm:$0xff]  ;;  %7084 = vst [vmem:[%s12963_s4 + $0x220] sm:$0xff] %v6720_v61  }
 0x565   :  { %v6735_v12 = vpack.c.bf16 %v15080_v3, %v15078_v59  ;;  %v15088_v4 = vmax.f32 %v15087_v63, 0.0  ;;  %v15090_v52 = vmax.f32 %v15089_v55, 0.0  ;;  %v15091_v50 = vld [vmem:[#allocation197_spill] sm:$0xff]  ;;  %v15093_v30 = vld [vmem:[#allocation200_spill] sm:$0xff]  ;;  %7085 = vst [vmem:[%s12963_s4 + $0x228] sm:$0xff] %v6725_v38   ;;  %v15117_v55 = vld [vmem:[#allocation46_spill] sm:$0xff] }
 0x566   :  { %v6740_v5 = vpack.c.bf16 %v15084_v17, %v15082_v42  ;;  %v15092_v41 = vmax.f32 %v15091_v50, 0.0  ;;  %v15094_v15 = vmax.f32 %v15093_v30, 0.0  ;;  %v15095_v6 = vld [vmem:[#allocation201_spill] sm:$0xff]  ;;  %7086 = vst [vmem:[%s12963_s4 + $0x230] sm:$0xff] %v6730_v20   ;;  %v15097_v34 = vld [vmem:[#allocation204_spill] sm:$0xff]  ;;  %v15109_v20 = vld [vmem:[#allocation34_spill] sm:$0xff] }
 0x567   :  { %v6745_v33 = vpack.c.bf16 %v15088_v4, %v15086_v31  ;;  %v15096_v25 = vmax.f32 %v15095_v6, 0.0  ;;  %7087 = vst [vmem:[%s12963_s4 + $0x238] sm:$0xff] %v6735_v12   ;;  %v15098_v21 = vmax.f32 %v15097_v34, 0.0  ;;  %v15099_v2 = vld [vmem:[#allocation205_spill] sm:$0xff]  ;;  %v15101_v7 = vld [vmem:[#allocation208_spill] sm:$0xff]  ;;  %v15110_v44 = vmax.f32 %v15109_v20, 0.0 }
 0x568   :  { %v6750_v22 = vpack.c.bf16 %v15092_v41, %v15090_v52  ;;  %v15100_v14 = vmax.f32 %v15099_v2, 0.0  ;;  %v15102_v28 = vmax.f32 %v15101_v7, 0.0  ;;  %v15103_v61 = vld [vmem:[#allocation209_spill] sm:$0xff]  ;;  %v15105_v35 = vld [vmem:[#allocation212_spill] sm:$0xff]  ;;  %7088 = vst [vmem:[%s12963_s4 + $0x240] sm:$0xff] %v6740_v5   ;;  %v15115_v31 = vld [vmem:[#allocation43_spill] sm:$0xff] }
 0x569   :  { %v6755_v13 = vpack.c.bf16 %v15096_v25, %v15094_v15  ;;  %v15104_v26 = vmax.f32 %v15103_v61, 0.0  ;;  %v15106_v38 = vmax.f32 %v15105_v35, 0.0  ;;  %v15107_v59 = vld [vmem:[#allocation213_spill] sm:$0xff]  ;;  %7089 = vst [vmem:[%s12963_s4 + $0x248] sm:$0xff] %v6745_v33   ;;  %v15113_v17 = vld [vmem:[#allocation40_spill] sm:$0xff]  ;;  %v15116_v63 = vmax.f32 %v15115_v31, 0.0 }
 0x56a   :  { %v6760_v49 = vpack.c.bf16 %v15100_v14, %v15098_v21  ;;  %v15108_v19 = vmax.f32 %v15107_v59, 0.0  ;;  %v15111_v42 = vld [vmem:[#allocation37_spill] sm:$0xff]  ;;  %7090 = vst [vmem:[%s12963_s4 + $0x250] sm:$0xff] %v6750_v22   ;;  %v15114_v24 = vmax.f32 %v15113_v17, 0.0  ;;  %v15118_v52 = vmax.f32 %v15117_v55, 0.0  ;;  %v15121_v30 = vld [vmem:[#allocation52_spill] sm:$0xff] }
 0x56b   :  { %v6765_v1 = vpack.c.bf16 %v15104_v26, %v15102_v28  ;;  %v15112_v53 = vmax.f32 %v15111_v42, 0.0  ;;  %7091 = vst [vmem:[%s12963_s4 + $0x258] sm:$0xff] %v6755_v13   ;;  %v15119_v5 = vld [vmem:[#allocation49_spill] sm:$0xff]  ;;  %v15122_v33 = vmax.f32 %v15121_v30, 0.0  ;;  %v15123_v15 = vld [vmem:[#allocation55_spill] sm:$0xff]  ;;  %v15125_v22 = vld [vmem:[#allocation58_spill] sm:$0xff] }
 0x56c   :  { %v6770_v3 = vpack.c.bf16 %v15108_v19, %v15106_v38  ;;  %v6780_v4 = vpack.c.bf16 %v15116_v63, %v15114_v24  ;;  %v15120_v50 = vmax.f32 %v15119_v5, 0.0  ;;  %v15124_v6 = vmax.f32 %v15123_v15, 0.0  ;;  %v15127_v21 = vld [vmem:[#allocation61_spill] sm:$0xff]  ;;  %7092 = vst [vmem:[%s12963_s4 + $0x260] sm:$0xff] %v6760_v49   ;;  %v15130_v7 = vld [vmem:[#allocation67_spill] sm:$0xff]  ;;  %v15135_v59 = vld [vmem:[#allocation74_spill] sm:$0xff] }
 0x56d   :  { %v6775_v12 = vpack.c.bf16 %v15112_v53, %v15110_v44  ;;  %v15126_v34 = vmax.f32 %v15125_v22, 0.0  ;;  %v15128_v2 = vmax.f32 %v15127_v21, 0.0  ;;  %7093 = vst [vmem:[%s12963_s4 + $0x268] sm:$0xff] %v6765_v1   ;;  %v15129_v14 = vmax.f32 %v14748_v40, 0.0  ;;  %v15133_v49 = vld [vmem:[#allocation71_spill] sm:$0xff]  ;;  %v15146_v31 = vld [vmem:[#allocation86_spill] sm:$0xff] }
 0x56e   :  { %v6785_v41 = vpack.c.bf16 %v15120_v50, %v15118_v52  ;;  %v6790_v25 = vpack.c.bf16 %v15124_v6, %v15122_v33  ;;  %7094 = vst [vmem:[%s12963_s4 + $0x270] sm:$0xff] %v6770_v3   ;;  %v15131_v28 = vmax.f32 %v15130_v7, 0.0  ;;  %v15132_v26 = vmax.f32 %v14750_v39, 0.0  ;;  %v15137_v19 = vld [vmem:[#allocation75_spill] sm:$0xff]  ;;  %v15139_v3 = vld [vmem:[#allocation78_spill] sm:$0xff]  ;;  %7096 = vst [vmem:[%s12963_s4 + $0x280] sm:$0xff] %v6780_v4  }
 0x56f   :  { %v6795_v13 = vpack.c.bf16 %v15128_v2, %v15126_v34  ;;  %7095 = vst [vmem:[%s12963_s4 + $0x278] sm:$0xff] %v6775_v12   ;;  %v15134_v35 = vmax.f32 %v15133_v49, 0.0  ;;  %v15136_v1 = vmax.f32 %v15135_v59, 0.0  ;;  %v15138_v20 = vmax.f32 %v15137_v19, 0.0  ;;  %v15142_v39 = vld [vmem:[#allocation82_spill] sm:$0xff]  ;;  %v15148_v4 = vld [vmem:[#allocation87_spill] sm:$0xff] }
 0x570   :  { %v6800_v61 = vpack.c.bf16 %v15131_v28, %v15129_v14  ;;  %v15140_v42 = vmax.f32 %v15139_v3, 0.0  ;;  %v15141_v53 = vmax.f32 %v14755_v48, 0.0  ;;  %7097 = vst [vmem:[%s12963_s4 + $0x288] sm:$0xff] %v6785_v41   ;;  %7098 = vst [vmem:[%s12963_s4 + $0x290] sm:$0xff] %v6790_v25   ;;  %v15143_v40 = vmax.f32 %v15142_v39, 0.0  ;;  %v15144_v48 = vld [vmem:[#allocation83_spill] sm:$0xff] }
 0x571   :  { %v6805_v38 = vpack.c.bf16 %v15134_v35, %v15132_v26  ;;  %v6810_v44 = vpack.c.bf16 %v15138_v20, %v15136_v1  ;;  %7099 = vst [vmem:[%s12963_s4 + $0x298] sm:$0xff] %v6795_v13   ;;  %v15145_v17 = vmax.f32 %v15144_v48, 0.0  ;;  %v15147_v63 = vmax.f32 %v15146_v31, 0.0  ;;  %v15150_v5 = vld [vmem:[#allocation90_spill] sm:$0xff]  ;;  %v15152_v41 = vld [vmem:[#allocation91_spill] sm:$0xff] }
 0x572   :  { %v6815_v12 = vpack.c.bf16 %v15141_v53, %v15140_v42  ;;  %v15149_v55 = vmax.f32 %v15148_v4, 0.0  ;;  %v15151_v50 = vmax.f32 %v15150_v5, 0.0  ;;  %v15153_v30 = vmax.f32 %v15152_v41, 0.0  ;;  %v15154_v15 = vld [vmem:[#allocation94_spill] sm:$0xff]  ;;  %v15156_v25 = vld [vmem:[#allocation95_spill] sm:$0xff]  ;;  %7100 = vst [vmem:[%s12963_s4 + $0x2a0] sm:$0xff] %v6800_v61  }
 0x573   :  { %v6820_v24 = vpack.c.bf16 %v15145_v17, %v15143_v40  ;;  %v15155_v6 = vmax.f32 %v15154_v15, 0.0  ;;  %v15157_v22 = vmax.f32 %v15156_v25, 0.0  ;;  %7101 = vst [vmem:[%s12963_s4 + $0x2a8] sm:$0xff] %v6805_v38   ;;  %7102 = vst [vmem:[%s12963_s4 + $0x2b0] sm:$0xff] %v6810_v44   ;;  %v15158_v21 = vld [vmem:[#allocation98_spill] sm:$0xff]  ;;  %v15160_v13 = vld [vmem:[#allocation99_spill] sm:$0xff] }
 0x574   :  { %v6825_v52 = vpack.c.bf16 %v15149_v55, %v15147_v63  ;;  %v6830_v33 = vpack.c.bf16 %v15153_v30, %v15151_v50  ;;  %7103 = vst [vmem:[%s12963_s4 + $0x2b8] sm:$0xff] %v6815_v12   ;;  %v15159_v2 = vmax.f32 %v15158_v21, 0.0  ;;  %v15161_v14 = vmax.f32 %v15160_v13, 0.0  ;;  %v15162_v28 = vld [vmem:[#allocation102_spill] sm:$0xff]  ;;  %v15164_v61 = vld [vmem:[#allocation103_spill] sm:$0xff] }
 0x575   :  { %v6835_v34 = vpack.c.bf16 %v15157_v22, %v15155_v6  ;;  %v15163_v26 = vmax.f32 %v15162_v28, 0.0  ;;  %v15165_v49 = vmax.f32 %v15164_v61, 0.0  ;;  %v15166_v59 = vld [vmem:[#allocation106_spill] sm:$0xff]  ;;  %v15168_v1 = vld [vmem:[#allocation107_spill] sm:$0xff]  ;;  %7104 = vst [vmem:[%s12963_s4 + $0x2c0] sm:$0xff] %v6820_v24   ;;  %v15184_v41 = vmax.f32 %v14774_v11, 0.0 }
 0x576   :  { %v6840_v7 = vpack.c.bf16 %v15161_v14, %v15159_v2  ;;  %v15167_v38 = vmax.f32 %v15166_v59, 0.0  ;;  %v15169_v19 = vmax.f32 %v15168_v1, 0.0  ;;  %v15170_v44 = vld [vmem:[#allocation110_spill] sm:$0xff]  ;;  %v15172_v42 = vld [vmem:[#allocation111_spill] sm:$0xff]  ;;  %7105 = vst [vmem:[%s12963_s4 + $0x2c8] sm:$0xff] %v6825_v52   ;;  %7106 = vst [vmem:[%s12963_s4 + $0x2d0] sm:$0xff] %v6830_v33  }
 0x577   :  { %v6845_v35 = vpack.c.bf16 %v15165_v49, %v15163_v26  ;;  %v15171_v3 = vmax.f32 %v15170_v44, 0.0  ;;  %v15173_v53 = vmax.f32 %v15172_v42, 0.0  ;;  %7107 = vst [vmem:[%s12963_s4 + $0x2d8] sm:$0xff] %v6835_v34   ;;  %v15174_v39 = vld [vmem:[#allocation114_spill] sm:$0xff]  ;;  %v15176_v48 = vld [vmem:[#allocation115_spill] sm:$0xff]  ;;  %v15185_v33 = vmax.f32 %v14775_v62, 0.0 }
 0x578   :  { %v6850_v20 = vpack.c.bf16 %v15169_v19, %v15167_v38  ;;  %v15175_v40 = vmax.f32 %v15174_v39, 0.0  ;;  %v15177_v17 = vmax.f32 %v15176_v48, 0.0  ;;  %v15178_v63 = vld [vmem:[#allocation118_spill] sm:$0xff]  ;;  %v15180_v24 = vld [vmem:[#allocation119_spill] sm:$0xff]  ;;  %v15186_v15 = vmax.f32 %v14776_v46, 0.0  ;;  %7108 = vst [vmem:[%s12963_s4 + $0x2e0] sm:$0xff] %v6840_v7  }
 0x579   :  { %v6855_v12 = vpack.c.bf16 %v15173_v53, %v15171_v3  ;;  %v15179_v4 = vmax.f32 %v15178_v63, 0.0  ;;  %v15181_v55 = vmax.f32 %v15180_v24, 0.0  ;;  %v15182_v50 = vld [vmem:[#allocation122_spill] sm:$0xff]  ;;  %7109 = vst [vmem:[%s12963_s4 + $0x2e8] sm:$0xff] %v6845_v35   ;;  %v15187_v62 = vmax.f32 %v14777_v32, 0.0  ;;  %v15218_v42 = vld [vmem:[#allocation159_spill] sm:$0xff] }
 0x57a   :  { %v6860_v31 = vpack.c.bf16 %v15177_v17, %v15175_v40  ;;  %v15183_v52 = vmax.f32 %v15182_v50, 0.0  ;;  %v6875_v6 = vpack.c.bf16 %v15186_v15, %v15185_v33  ;;  %7110 = vst [vmem:[%s12963_s4 + $0x2f0] sm:$0xff] %v6850_v20   ;;  %v15188_v46 = vmax.f32 %v14778_v54, 0.0  ;;  %v15210_v1 = vld [vmem:[#allocation150_spill] sm:$0xff]  ;;  %v15222_v48 = vld [vmem:[#allocation225_spill] sm:$0xff]  ;;  %v15226_v24 = vld [vmem:[#allocation227_spill] sm:$0xff] }
 0x57b   :  { %v6865_v5 = vpack.c.bf16 %v15181_v55, %v15179_v4  ;;  %7111 = vst [vmem:[%s12963_s4 + $0x2f8] sm:$0xff] %v6855_v12   ;;  %v15189_v25 = vmax.f32 %v14779_v9, 0.0  ;;  %v15190_v22 = vmax.f32 %v14780_v45, 0.0  ;;  %v15191_v21 = vmax.f32 %v14781_v56, 0.0  ;;  %v15212_v20 = vld [vmem:[#allocation154_spill] sm:$0xff]  ;;  %v15220_v12 = vld [vmem:[#allocation224_spill] sm:$0xff] }
 0x57c   :  { %v6870_v30 = vpack.c.bf16 %v15184_v41, %v15183_v52  ;;  %v6880_v11 = vpack.c.bf16 %v15188_v46, %v15187_v62  ;;  %v15192_v2 = vmax.f32 %v14782_v37, 0.0  ;;  %v15193_v14 = vmax.f32 %v14783_v43, 0.0  ;;  %7112 = vst [vmem:[%s12963_s4 + $0x300] sm:$0xff] %v6860_v31   ;;  %7115 = vst [vmem:[%s12963_s4 + $0x318] sm:$0xff] %v6875_v6   ;;  %v15224_v31 = vld [vmem:[#allocation226_spill] sm:$0xff]  ;;  %v15230_v41 = vld [vmem:[#allocation229_spill] sm:$0xff] }
 0x57d   :  { %v6885_v34 = vpack.c.bf16 %v15190_v22, %v15189_v25  ;;  %v15194_v7 = vmax.f32 %v14784_v8, 0.0  ;;  %7113 = vst [vmem:[%s12963_s4 + $0x308] sm:$0xff] %v6865_v5   ;;  %v15195_v32 = vmax.f32 %v11617_v58, 0.0  ;;  %v15196_v8 = vmax.f32 %v11621_v29, 0.0  ;;  %v15228_v5 = vld [vmem:[#allocation228_spill] sm:$0xff]  ;;  %v15232_v33 = vld [vmem:[#allocation230_spill] sm:$0xff] }
 0x57e   :  { %v6890_v13 = vpack.c.bf16 %v15192_v2, %v15191_v21  ;;  %7114 = vst [vmem:[%s12963_s4 + $0x310] sm:$0xff] %v6870_v30   ;;  %v15197_v9 = vmax.f32 %v11625_v27, 0.0  ;;  %v15198_v37 = vmax.f32 %v11629_v60, 0.0  ;;  %v15199_v45 = vmax.f32 %v11633_v51, 0.0  ;;  %7116 = vst [vmem:[%s12963_s4 + $0x320] sm:$0xff] %v6880_v11   ;;  %v15234_v62 = vld [vmem:[#allocation231_spill] sm:$0xff] }
 0x57f   :  { %v6895_v28 = vpack.c.bf16 %v15194_v7, %v15193_v14  ;;  %v6900_v56 = vpack.c.bf16 %v15196_v8, %v15195_v32  ;;  %v15200_v43 = vmax.f32 %v11637_v23, 0.0  ;;  %v15201_v61 = vmax.f32 %v11641_v18, 0.0  ;;  %7117 = vst [vmem:[%s12963_s4 + $0x328] sm:$0xff] %v6885_v34   ;;  %v15236_v11 = vld [vmem:[#allocation232_spill] sm:$0xff]  ;;  %v15238_v34 = vld [vmem:[#allocation233_spill] sm:$0xff]  ;;  %v15240_v2 = vld [vmem:[#allocation234_spill] sm:$0xff] }
 0x580   :  { %v6905_v54 = vpack.c.bf16 %v15198_v37, %v15197_v9  ;;  %v15202_v49 = vmax.f32 %v11645_v0, 0.0  ;;  %7118 = vst [vmem:[%s12963_s4 + $0x330] sm:$0xff] %v6890_v13   ;;  %v15203_v58 = vmax.f32 %v11649_v36, 0.0  ;;  %v15204_v29 = vmax.f32 %v11653_v57, 0.0  ;;  %v15208_v0 = vld [vmem:[#allocation146_spill] sm:$0xff]  ;;  %v15214_v36 = vld [vmem:[#allocation155_spill] sm:$0xff] }
 0x581   :  { %v6910_v26 = vpack.c.bf16 %v15200_v43, %v15199_v45  ;;  %7119 = vst [vmem:[%s12963_s4 + $0x338] sm:$0xff] %v6895_v28   ;;  %v15205_v60 = vmax.f32 %v11657_v47, 0.0  ;;  %v15206_v51 = vmax.f32 %v11661_v16, 0.0  ;;  %v15207_v18 = vmax.f32 %v11665_v10, 0.0  ;;  %7120 = vst [vmem:[%s12963_s4 + $0x340] sm:$0xff] %v6900_v56   ;;  %v15216_v47 = vld [vmem:[#allocation158_spill] sm:$0xff] }
 0x582   :  { %v6915_v35 = vpack.c.bf16 %v15202_v49, %v15201_v61  ;;  %v6920_v27 = vpack.c.bf16 %v15204_v29, %v15203_v58  ;;  %v15209_v59 = vmax.f32 %v15208_v0, 0.0  ;;  %v15211_v19 = vmax.f32 %v15210_v1, 0.0  ;;  %7121 = vst [vmem:[%s12963_s4 + $0x348] sm:$0xff] %v6905_v54   ;;  %v15242_v7 = vld [vmem:[#allocation235_spill] sm:$0xff]  ;;  %v15244_v32 = vld [vmem:[#allocation236_spill] sm:$0xff]  ;;  %v15248_v54 = vld [vmem:[#allocation166_spill] sm:$0xff] }
 0x583   :  { %v6925_v23 = vpack.c.bf16 %v15206_v51, %v15205_v60  ;;  %v15213_v44 = vmax.f32 %v15212_v20, 0.0  ;;  %7122 = vst [vmem:[%s12963_s4 + $0x350] sm:$0xff] %v6910_v26   ;;  %v15215_v57 = vmax.f32 %v15214_v36, 0.0  ;;  %v15217_v16 = vmax.f32 %v15216_v47, 0.0  ;;  %v15246_v9 = vld [vmem:[#allocation163_spill] sm:$0xff]  ;;  %v15252_v49 = vld [vmem:[#allocation170_spill] sm:$0xff] }
 0x584   :  { %v6930_v38 = vpack.c.bf16 %v15209_v59, %v15207_v18  ;;  %7123 = vst [vmem:[%s12963_s4 + $0x358] sm:$0xff] %v6915_v35   ;;  %v15219_v53 = vmax.f32 %v15218_v42, 0.0  ;;  %v15221_v39 = vmax.f32 %v15220_v12, 0.0  ;;  %v15223_v17 = vmax.f32 %v15222_v48, 0.0  ;;  %7124 = vst [vmem:[%s12963_s4 + $0x360] sm:$0xff] %v6920_v27   ;;  %v15250_v26 = vld [vmem:[#allocation167_spill] sm:$0xff] }
 0x585   :  { %v6935_v3 = vpack.c.bf16 %v15213_v44, %v15211_v19  ;;  %v6940_v10 = vpack.c.bf16 %v15217_v16, %v15215_v57  ;;  %v15225_v63 = vmax.f32 %v15224_v31, 0.0  ;;  %v15227_v55 = vmax.f32 %v15226_v24, 0.0  ;;  %7125 = vst [vmem:[%s12963_s4 + $0x368] sm:$0xff] %v6925_v23   ;;  %v15254_v29 = vld [vmem:[#allocation171_spill] sm:$0xff]  ;;  %v15256_v60 = vld [vmem:[#allocation174_spill] sm:$0xff] }
 0x586   :  { %v6945_v40 = vpack.c.bf16 %v15221_v39, %v15219_v53  ;;  %v15229_v50 = vmax.f32 %v15228_v5, 0.0  ;;  %7126 = vst [vmem:[%s12963_s4 + $0x370] sm:$0xff] %v6930_v38   ;;  %v15231_v30 = vmax.f32 %v15230_v41, 0.0  ;;  %v15233_v15 = vmax.f32 %v15232_v33, 0.0  ;;  %v15258_v18 = vld [vmem:[#allocation175_spill] sm:$0xff]  ;;  %v15260_v59 = vld [vmem:[#allocation178_spill] sm:$0xff] }
 0x587   :  { %v6950_v4 = vpack.c.bf16 %v15225_v63, %v15223_v17  ;;  %7127 = vst [vmem:[%s12963_s4 + $0x378] sm:$0xff] %v6935_v3   ;;  %v15235_v46 = vmax.f32 %v15234_v62, 0.0  ;;  %v15237_v25 = vmax.f32 %v15236_v11, 0.0  ;;  %v15239_v21 = vmax.f32 %v15238_v34, 0.0  ;;  %7128 = vst [vmem:[%s12963_s4 + $0x380] sm:$0xff] %v6940_v10   ;;  %v15262_v19 = vld [vmem:[#allocation179_spill] sm:$0xff] }
 0x588   :  { %v6955_v52 = vpack.c.bf16 %v15229_v50, %v15227_v55  ;;  %v6960_v6 = vpack.c.bf16 %v15233_v15, %v15231_v30  ;;  %v15241_v13 = vmax.f32 %v15240_v2, 0.0  ;;  %v15243_v28 = vmax.f32 %v15242_v7, 0.0  ;;  %7129 = vst [vmem:[%s12963_s4 + $0x388] sm:$0xff] %v6945_v40   ;;  %v15264_v44 = vld [vmem:[#allocation182_spill] sm:$0xff]  ;;  %v15266_v57 = vld [vmem:[#allocation183_spill] sm:$0xff]  ;;  %v15270_v53 = vld [vmem:[#allocation237_spill] sm:$0xff] }
 0x589   :  { %v6965_v22 = vpack.c.bf16 %v15237_v25, %v15235_v46  ;;  %v15245_v8 = vmax.f32 %v15244_v32, 0.0  ;;  %7130 = vst [vmem:[%s12963_s4 + $0x390] sm:$0xff] %v6950_v4   ;;  %v15247_v37 = vmax.f32 %v15246_v9, 0.0  ;;  %v15249_v45 = vmax.f32 %v15248_v54, 0.0  ;;  %v15268_v16 = vld [vmem:[#allocation186_spill] sm:$0xff]  ;;  %v15274_v17 = vld [vmem:[#allocation239_spill] sm:$0xff] }
 0x58a   :  { %v6970_v14 = vpack.c.bf16 %v15241_v13, %v15239_v21  ;;  %7131 = vst [vmem:[%s12963_s4 + $0x398] sm:$0xff] %v6955_v52   ;;  %v15251_v61 = vmax.f32 %v15250_v26, 0.0  ;;  %v15253_v35 = vmax.f32 %v15252_v49, 0.0  ;;  %v15255_v27 = vmax.f32 %v15254_v29, 0.0  ;;  %7132 = vst [vmem:[%s12963_s4 + $0x3a0] sm:$0xff] %v6960_v6   ;;  %v15272_v39 = vld [vmem:[#allocation238_spill] sm:$0xff] }
 0x58b   :  { %v6975_v56 = vpack.c.bf16 %v15245_v8, %v15243_v28  ;;  %v6980_v43 = vpack.c.bf16 %v15249_v45, %v15247_v37  ;;  %v15257_v51 = vmax.f32 %v15256_v60, 0.0  ;;  %v15259_v0 = vmax.f32 %v15258_v18, 0.0  ;;  %7133 = vst [vmem:[%s12963_s4 + $0x3a8] sm:$0xff] %v6965_v22   ;;  %v15276_v63 = vld [vmem:[#allocation240_spill] sm:$0xff] }
 0x58c   :  { %v6985_v58 = vpack.c.bf16 %v15253_v35, %v15251_v61  ;;  %v15261_v38 = vmax.f32 %v15260_v59, 0.0  ;;  %7134 = vst [vmem:[%s12963_s4 + $0x3b0] sm:$0xff] %v6970_v14   ;;  %v15263_v20 = vmax.f32 %v15262_v19, 0.0  ;;  %v15265_v3 = vmax.f32 %v15264_v44, 0.0 }
 0x58d   :  { %v6990_v23 = vpack.c.bf16 %v15257_v51, %v15255_v27  ;;  %7135 = vst [vmem:[%s12963_s4 + $0x3b8] sm:$0xff] %v6975_v56   ;;  %v15267_v47 = vmax.f32 %v15266_v57, 0.0  ;;  %v15269_v10 = vmax.f32 %v15268_v16, 0.0  ;;  %v15271_v12 = vmax.f32 %v15270_v53, 0.0  ;;  %7136 = vst [vmem:[%s12963_s4 + $0x3c0] sm:$0xff] %v6980_v43  }
 0x58e   :  { %v6995_v1 = vpack.c.bf16 %v15261_v38, %v15259_v0  ;;  %v7000_v36 = vpack.c.bf16 %v15265_v3, %v15263_v20  ;;  %v15273_v40 = vmax.f32 %v15272_v39, 0.0  ;;  %v15275_v31 = vmax.f32 %v15274_v17, 0.0  ;;  %7137 = vst [vmem:[%s12963_s4 + $0x3c8] sm:$0xff] %v6985_v58  }
 0x58f   :  { %v7005_v42 = vpack.c.bf16 %v15269_v10, %v15267_v47  ;;  %v15277_v4 = vmax.f32 %v15276_v63, 0.0  ;;  %7138 = vst [vmem:[%s12963_s4 + $0x3d0] sm:$0xff] %v6990_v23  }
 0x590   :  { %v7010_v48 = vpack.c.bf16 %v15273_v40, %v15271_v12  ;;  %7139 = vst [vmem:[%s12963_s4 + $0x3d8] sm:$0xff] %v6995_v1   ;;  %7140 = vst [vmem:[%s12963_s4 + $0x3e0] sm:$0xff] %v7000_v36  }
 0x591   :  { %v7015_v24 = vpack.c.bf16 %v15277_v4, %v15275_v31  ;;  %7141 = vst [vmem:[%s12963_s4 + $0x3e8] sm:$0xff] %v7005_v42  }
 0x592   :  { %7142 = vst [vmem:[%s12963_s4 + $0x3f0] sm:$0xff] %v7010_v48  }
 0x593   :  { %7143 = vst [vmem:[%s12963_s4 + $0x3f8] sm:$0xff] %v7015_v24  }

// kernel: generator_forward.9
= control target key start
LH: loop header
LB: loop body
LE: loop exit
PB: predicated region body
PF: predicated region fallthrough
CT: control target
= control target key end

     0   :  { %s2255_s9 = smov 0   ;;  %s2496_s0 = inlined_call_operand.vmem [shape: bf16[8192,128], index: 0, kind: input, shape index: {}]   ;;  %s2497_s1 = inlined_call_operand.vmem [shape: bf16[128,128], index: 1, kind: input, shape index: {}]   ;;  %s2498_s2 = inlined_call_operand.vmem [shape: f32[8192,128], index: 2, kind: output, shape index: {}]  }
   0x1 LB: > { %s1581_s10 = sadd.s32 4294967295, %s2238_s9   ;;  %p1585_p0 = scmp.ge.s32.totalorder %s2238_s9, 1  ;;  %s2238_s9 = sphi %s2255_s9, %s12_s9  }
   0x2   : > { %p113_p1 = scmp.lt.s32.totalorder %s2238_s9, 9 }
   0x4   : > { %p114_p2 = pnand %p1585_p0, %p113_p1 }
   0x5   : > { %v1904_v0 = vld [vmem:[%s2497_s1] sm:$0xff] (!%p114_p2)   ;;  %s1586_s13 = sshll.u32 (!%p114_p2), %s1581_s10, 7  ;;  %v1905_v1 = vld [vmem:[%s2497_s1 + $0x8] sm:$0xff] (!%p114_p2)   ;;  %v1906_v2 = vld [vmem:[%s2497_s1 + $0x10] sm:$0xff] (!%p114_p2)  }
   0x6   : > { %117 = sbr.rel (%p114_p2) target bundleno = 392 (0x188), region = 28  ;;  %p136_p3 = scmp.lt.s32.totalorder (!%p114_p2), %s1586_s13, 1023  ;;  %1736 = vmatprep.subr.bf16.mxu0 (!%p114_p2), %v1904_v0  ;;  %1880 = vmatprep.subr.bf16.mxu1 (!%p114_p2), %v1904_v0  ;;  %v1907_v3 = vld [vmem:[%s2497_s1 + $0x18] sm:$0xff] (!%p114_p2)   ;;  %v1908_v6 = vld [vmem:[%s2497_s1 + $0x20] sm:$0xff] (!%p114_p2)   ;;  %v1909_v7 = vld [vmem:[%s2497_s1 + $0x28] sm:$0xff] (!%p114_p2)  }
   0x7   : > { %1737 = vmatpush3.bf16.msra.mxu0 (!%p114_p2), %v1904_v0  ;;  %1888 = vmatpush3.bf16.msra.mxu1 (!%p114_p2), %v1904_v0  ;;  %v1910_v8 = vld [vmem:[%s2497_s1 + $0x30] sm:$0xff] (!%p114_p2)   ;;  %v1911_v9 = vld [vmem:[%s2497_s1 + $0x38] sm:$0xff] (!%p114_p2)  }
   0x8   : > { %1738 = vmatprep.subr.bf16.mxu0 (!%p114_p2), %v1905_v1  ;;  %1881 = vmatprep.subr.bf16.mxu1 (!%p114_p2), %v1905_v1 }
   0xb   : > { %1739 = vmatpush3.bf16.msra.mxu0 (!%p114_p2), %v1905_v1  ;;  %1889 = vmatpush3.bf16.msra.mxu1 (!%p114_p2), %v1905_v1 }
   0xc   : > { %1740 = vmatprep.subr.bf16.mxu0 (!%p114_p2), %v1906_v2  ;;  %1882 = vmatprep.subr.bf16.mxu1 (!%p114_p2), %v1906_v2 }
   0xd   : > { %s2500_s13 = smov (!%p136_p3, %s1586_s13), 1023 }
   0xe   : > { %s1587_s18 = sshll.u32 %s2500_s13, 2  ;;  %s1589_s4 = sshll.u32 %s2500_s13, 3 }
   0xf   : > { %s2278_s21 = scalar_lea.vmem %s2496_s0, %s1587_s18  ;;  %1741 = vmatpush3.bf16.msra.mxu0 %v1906_v2  ;;  %1890 = vmatpush3.bf16.msra.mxu1 %v1906_v2  ;;  %s2363_s7 = scalar_lea.vmem %s2498_s2, %s1589_s4 }
  0x10   : > { %v1912_v4 = vld [vmem:[%s2278_s21] sm:$0xff]   ;;  %1742 = vmatprep.subr.bf16.mxu0 %v1907_v3  ;;  %1883 = vmatprep.subr.bf16.mxu1 %v1907_v3  ;;  %v1914_v10 = vld [vmem:[%s2278_s21 + $0x8] sm:$0xff]   ;;  %v1916_v12 = vld [vmem:[%s2278_s21 + $0x10] sm:$0xff]  }
  0x11   : > { %v1913_v5 = vld [vmem:[%s2278_s21 + $0x100] sm:$0xff]   ;;  %1752 = vmatprep.mubr.bf16.mxu0 %v1912_v4  ;;  %v1915_v11 = vld [vmem:[%s2278_s21 + $0x108] sm:$0xff]   ;;  %v1917_v13 = vld [vmem:[%s2278_s21 + $0x110] sm:$0xff]  }
  0x12   : > { %1816 = vmatprep.mubr.bf16.mxu1 %v1913_v5  ;;  %v1918_v14 = vld [vmem:[%s2278_s21 + $0x18] sm:$0xff]   ;;  %v1920_v16 = vld [vmem:[%s2278_s21 + $0x20] sm:$0xff]   ;;  %v1922_v18 = vld [vmem:[%s2278_s21 + $0x28] sm:$0xff]  }
  0x13   : > { %1743 = vmatpush3.bf16.msra.mxu0 %v1907_v3  ;;  %1891 = vmatpush3.bf16.msra.mxu1 %v1907_v3  ;;  %v1919_v15 = vld [vmem:[%s2278_s21 + $0x118] sm:$0xff]   ;;  %v1921_v17 = vld [vmem:[%s2278_s21 + $0x120] sm:$0xff]   ;;  %v1923_v19 = vld [vmem:[%s2278_s21 + $0x128] sm:$0xff]  }
  0x14   : > { %1744 = vmatprep.subr.bf16.mxu0 %v1908_v6  ;;  %1884 = vmatprep.subr.bf16.mxu1 %v1908_v6  ;;  %v1924_v20 = vld [vmem:[%s2278_s21 + $0x30] sm:$0xff]   ;;  %v1926_v22 = vld [vmem:[%s2278_s21 + $0x38] sm:$0xff]   ;;  %v1928_v24 = vld [vmem:[%s2278_s21 + $0x40] sm:$0xff]  }
  0x15   : > { %v1925_v21 = vld [vmem:[%s2278_s21 + $0x130] sm:$0xff]   ;;  %v1927_v23 = vld [vmem:[%s2278_s21 + $0x138] sm:$0xff]   ;;  %v1929_v25 = vld [vmem:[%s2278_s21 + $0x140] sm:$0xff]  }
  0x16   : > { %v1930_v26 = vld [vmem:[%s2278_s21 + $0x48] sm:$0xff]   ;;  %v1932_v28 = vld [vmem:[%s2278_s21 + $0x50] sm:$0xff]   ;;  %v1934_v30 = vld [vmem:[%s2278_s21 + $0x58] sm:$0xff]  }
  0x17   : > { %1745 = vmatpush3.bf16.msra.mxu0 %v1908_v6  ;;  %1892 = vmatpush3.bf16.msra.mxu1 %v1908_v6  ;;  %v1931_v27 = vld [vmem:[%s2278_s21 + $0x148] sm:$0xff]   ;;  %v1933_v29 = vld [vmem:[%s2278_s21 + $0x150] sm:$0xff]   ;;  %v1935_v31 = vld [vmem:[%s2278_s21 + $0x158] sm:$0xff]  }
  0x18   : > { %1746 = vmatprep.subr.bf16.mxu0 %v1909_v7  ;;  %1885 = vmatprep.subr.bf16.mxu1 %v1909_v7  ;;  %v1936_v32 = vld [vmem:[%s2278_s21 + $0x60] sm:$0xff]   ;;  %v1938_v34 = vld [vmem:[%s2278_s21 + $0x68] sm:$0xff]   ;;  %v1940_v36 = vld [vmem:[%s2278_s21 + $0x70] sm:$0xff]  }
  0x19   : > { %v1937_v33 = vld [vmem:[%s2278_s21 + $0x160] sm:$0xff]   ;;  %v1939_v35 = vld [vmem:[%s2278_s21 + $0x168] sm:$0xff]   ;;  %v1941_v37 = vld [vmem:[%s2278_s21 + $0x170] sm:$0xff]  }
  0x1a   : > { %v1942_v38 = vld [vmem:[%s2278_s21 + $0x78] sm:$0xff]   ;;  %v1944_v40 = vld [vmem:[%s2278_s21 + $0x80] sm:$0xff]   ;;  %v1946_v42 = vld [vmem:[%s2278_s21 + $0x88] sm:$0xff]  }
  0x1b   : > { %1747 = vmatpush3.bf16.msra.mxu0 %v1909_v7  ;;  %1893 = vmatpush3.bf16.msra.mxu1 %v1909_v7  ;;  %v1943_v39 = vld [vmem:[%s2278_s21 + $0x178] sm:$0xff]   ;;  %v1945_v41 = vld [vmem:[%s2278_s21 + $0x180] sm:$0xff]   ;;  %v1947_v43 = vld [vmem:[%s2278_s21 + $0x188] sm:$0xff]  }
  0x1c   : > { %1748 = vmatprep.subr.bf16.mxu0 %v1910_v8  ;;  %1886 = vmatprep.subr.bf16.mxu1 %v1910_v8  ;;  %v1948_v44 = vld [vmem:[%s2278_s21 + $0x90] sm:$0xff]   ;;  %v1950_v46 = vld [vmem:[%s2278_s21 + $0x98] sm:$0xff]   ;;  %v1952_v48 = vld [vmem:[%s2278_s21 + $0xa0] sm:$0xff]  }
  0x1d   : > { %v1949_v45 = vld [vmem:[%s2278_s21 + $0x190] sm:$0xff]   ;;  %v1951_v47 = vld [vmem:[%s2278_s21 + $0x198] sm:$0xff]   ;;  %v1953_v49 = vld [vmem:[%s2278_s21 + $0x1a0] sm:$0xff]  }
  0x1e   : > { %v1954_v50 = vld [vmem:[%s2278_s21 + $0xa8] sm:$0xff]   ;;  %v1956_v52 = vld [vmem:[%s2278_s21 + $0xb0] sm:$0xff]   ;;  %v1958_v54 = vld [vmem:[%s2278_s21 + $0xb8] sm:$0xff]  }
  0x1f   : > { %1749 = vmatpush3.bf16.msra.mxu0 %v1910_v8  ;;  %1894 = vmatpush3.bf16.msra.mxu1 %v1910_v8  ;;  %v1955_v51 = vld [vmem:[%s2278_s21 + $0x1a8] sm:$0xff]   ;;  %v1957_v53 = vld [vmem:[%s2278_s21 + $0x1b0] sm:$0xff]   ;;  %v1959_v55 = vld [vmem:[%s2278_s21 + $0x1b8] sm:$0xff]  }
  0x20   : > { %1750 = vmatprep.subr.bf16.mxu0 %v1911_v9  ;;  %1887 = vmatprep.subr.bf16.mxu1 %v1911_v9  ;;  %v1960_v56 = vld [vmem:[%s2278_s21 + $0xc0] sm:$0xff]   ;;  %v1962_v58 = vld [vmem:[%s2278_s21 + $0xc8] sm:$0xff]   ;;  %v1964_v60 = vld [vmem:[%s2278_s21 + $0xd0] sm:$0xff]  }
  0x21   : > { %v1961_v57 = vld [vmem:[%s2278_s21 + $0x1c0] sm:$0xff]   ;;  %v1963_v59 = vld [vmem:[%s2278_s21 + $0x1c8] sm:$0xff]   ;;  %v1965_v61 = vld [vmem:[%s2278_s21 + $0x1d0] sm:$0xff]  }
  0x22   : > { %v1966_v62 = vld [vmem:[%s2278_s21 + $0xd8] sm:$0xff]   ;;  %v1968_v0 = vld [vmem:[%s2278_s21 + $0xe0] sm:$0xff]   ;;  %v1970_v2 = vld [vmem:[%s2278_s21 + $0xe8] sm:$0xff]  }
  0x23   : > { %1751 = vmatpush3.bf16.msra.mxu0 %v1911_v9  ;;  %1895 = vmatpush3.bf16.msra.mxu1 %v1911_v9  ;;  %v1967_v63 = vld [vmem:[%s2278_s21 + $0x1d8] sm:$0xff]   ;;  %v1969_v1 = vld [vmem:[%s2278_s21 + $0x1e0] sm:$0xff]   ;;  %v1971_v3 = vld [vmem:[%s2278_s21 + $0x1e8] sm:$0xff]  }
  0x24   : > { %v1972_v4 = vld [vmem:[%s2278_s21 + $0xf0] sm:$0xff]   ;;  %v1974_v6 = vld [vmem:[%s2278_s21 + $0xf8] sm:$0xff]  }
  0x25   : > { %v1973_v5 = vld [vmem:[%s2278_s21 + $0x1f0] sm:$0xff]   ;;  %v1975_v7 = vld [vmem:[%s2278_s21 + $0x1f8] sm:$0xff]  }
  0x26   : > { %1753 = vmatmul.mubr.bf16.vlgmr.msra.gmra.mrb[0].mxu0 %v1914_v10  ;;  %1817 = vmatmul.mubr.bf16.vlgmr.msra.gmra.mrb[0].mxu1 %v1915_v11 }
  0x27   : > { %1756 = vmatprep.mubr.bf16.mxu0 %v1916_v12  ;;  %1820 = vmatprep.mubr.bf16.mxu1 %v1917_v13 }
  0x2e   : > { %1757 = vmatmul.mubr.bf16.gmra.mrb[4].mxu0 %v1918_v14  ;;  %1821 = vmatmul.mubr.bf16.gmra.mrb[4].mxu1 %v1919_v15 }
  0x2f   : > { %1760 = vmatprep.mubr.bf16.mxu0 %v1920_v16  ;;  %1824 = vmatprep.mubr.bf16.mxu1 %v1921_v17 }
  0x36   : > { %1761 = vmatmul.mubr.bf16.gmra.mrb[8].mxu0 %v1922_v18  ;;  %1825 = vmatmul.mubr.bf16.gmra.mrb[8].mxu1 %v1923_v19 }
  0x37   : > { %1764 = vmatprep.mubr.bf16.mxu0 %v1924_v20  ;;  %1828 = vmatprep.mubr.bf16.mxu1 %v1925_v21 }
  0x3e   : > { %1765 = vmatmul.mubr.bf16.gmra.mrb[12].mxu0 %v1926_v22  ;;  %1829 = vmatmul.mubr.bf16.gmra.mrb[12].mxu1 %v1927_v23 }
  0x3f   : > { %1768 = vmatprep.mubr.bf16.mxu0 %v1928_v24  ;;  %1832 = vmatprep.mubr.bf16.mxu1 %v1929_v25 }
  0x46   : > { %1769 = vmatmul.mubr.bf16.gmra.mrb[16].mxu0 %v1930_v26  ;;  %1833 = vmatmul.mubr.bf16.gmra.mrb[16].mxu1 %v1931_v27 }
  0x47   : > { %1772 = vmatprep.mubr.bf16.mxu0 %v1932_v28  ;;  %1836 = vmatprep.mubr.bf16.mxu1 %v1933_v29 }
  0x4e   : > { %1773 = vmatmul.mubr.bf16.gmra.mrb[20].mxu0 %v1934_v30  ;;  %1837 = vmatmul.mubr.bf16.gmra.mrb[20].mxu1 %v1935_v31 }
  0x4f   : > { %1776 = vmatprep.mubr.bf16.mxu0 %v1936_v32  ;;  %1840 = vmatprep.mubr.bf16.mxu1 %v1937_v33 }
  0x56   : > { %1777 = vmatmul.mubr.bf16.gmra.mrb[24].mxu0 %v1938_v34  ;;  %1841 = vmatmul.mubr.bf16.gmra.mrb[24].mxu1 %v1939_v35 }
  0x57   : > { %1780 = vmatprep.mubr.bf16.mxu0 %v1940_v36  ;;  %1844 = vmatprep.mubr.bf16.mxu1 %v1941_v37 }
  0x5e   : > { %1781 = vmatmul.mubr.bf16.gmra.mrb[28].mxu0 %v1942_v38  ;;  %1845 = vmatmul.mubr.bf16.gmra.mrb[28].mxu1 %v1943_v39 }
  0x5f   : > { %1784 = vmatprep.mubr.bf16.mxu0 %v1944_v40  ;;  %1848 = vmatprep.mubr.bf16.mxu1 %v1945_v41 }
  0x66   : > { %1785 = vmatmul.mubr.bf16.gmra.mrb[32].mxu0 %v1946_v42  ;;  %1849 = vmatmul.mubr.bf16.gmra.mrb[32].mxu1 %v1947_v43 }
  0x67   : > { %1788 = vmatprep.mubr.bf16.mxu0 %v1948_v44  ;;  %1852 = vmatprep.mubr.bf16.mxu1 %v1949_v45 }
  0x6e   : > { %1789 = vmatmul.mubr.bf16.gmra.mrb[36].mxu0 %v1950_v46  ;;  %1853 = vmatmul.mubr.bf16.gmra.mrb[36].mxu1 %v1951_v47 }
  0x6f   : > { %1792 = vmatprep.mubr.bf16.mxu0 %v1952_v48  ;;  %1856 = vmatprep.mubr.bf16.mxu1 %v1953_v49 }
  0x76   : > { %1793 = vmatmul.mubr.bf16.gmra.mrb[40].mxu0 %v1954_v50  ;;  %1857 = vmatmul.mubr.bf16.gmra.mrb[40].mxu1 %v1955_v51 }
  0x77   : > { %1796 = vmatprep.mubr.bf16.mxu0 %v1956_v52  ;;  %1860 = vmatprep.mubr.bf16.mxu1 %v1957_v53 }
  0x7e   : > { %1797 = vmatmul.mubr.bf16.gmra.mrb[44].mxu0 %v1958_v54  ;;  %1861 = vmatmul.mubr.bf16.gmra.mrb[44].mxu1 %v1959_v55 }
  0x7f   : > { %1800 = vmatprep.mubr.bf16.mxu0 %v1960_v56  ;;  %1864 = vmatprep.mubr.bf16.mxu1 %v1961_v57 }
  0x86   : > { %1801 = vmatmul.mubr.bf16.gmra.mrb[48].mxu0 %v1962_v58  ;;  %1865 = vmatmul.mubr.bf16.gmra.mrb[48].mxu1 %v1963_v59 }
  0x87   : > { %1804 = vmatprep.mubr.bf16.mxu0 %v1964_v60  ;;  %1868 = vmatprep.mubr.bf16.mxu1 %v1965_v61 }
  0x8e   : > { %1805 = vmatmul.mubr.bf16.gmra.mrb[52].mxu0 %v1966_v62  ;;  %1869 = vmatmul.mubr.bf16.gmra.mrb[52].mxu1 %v1967_v63 }
  0x8f   : > { %1808 = vmatprep.mubr.bf16.mxu0 %v1968_v0  ;;  %1872 = vmatprep.mubr.bf16.mxu1 %v1969_v1 }
  0x96   : > { %1809 = vmatmul.mubr.bf16.gmra.mrb[56].mxu0 %v1970_v2  ;;  %1873 = vmatmul.mubr.bf16.gmra.mrb[56].mxu1 %v1971_v3 }
  0x97   : > { %1812 = vmatprep.mubr.bf16.mxu0 %v1972_v4  ;;  %1876 = vmatprep.mubr.bf16.mxu1 %v1973_v5 }
  0x9e   : > { %1813 = vmatmul.mubr.bf16.gmra.mrb[60].mxu0 %v1974_v6  ;;  %1877 = vmatmul.mubr.bf16.gmra.mrb[60].mxu1 %v1975_v7 }
  0xf9   : > { %v1754_v8 = vpop.f32.mrb[0].mxu0  ;;  %v1818_v9 = vpop.f32.mrb[0].mxu1 }
  0xfa   : > { %1976 = vtanh.f32 %v1754_v8  ;;  %v758_v10 = vpop.f32.mrb[1].mxu0  ;;  %v1014_v11 = vpop.f32.mrb[1].mxu1 }
  0xfb   : > { %1978 = vtanh.f32 %v1818_v9  ;;  %v1755_v12 = vpop.f32.mrb[2].mxu0  ;;  %v1819_v13 = vpop.f32.mrb[2].mxu1 }
  0xfc   : > { %1980 = vtanh.f32 %v758_v10  ;;  %v761_v14 = vpop.f32.mrb[3].mxu0  ;;  %v1017_v15 = vpop.f32.mrb[3].mxu1 }
  0xfd   : > { %1982 = vtanh.f32 %v1014_v11 }
  0xfe   : > { %1984 = vtanh.f32 %v1755_v12 }
  0xff   : > { %1986 = vtanh.f32 %v1819_v13 }
 0x100   : > { %1988 = vtanh.f32 %v761_v14 }
 0x101   : > { %1990 = vtanh.f32 %v1017_v15  ;;  %v1758_v16 = vpop.f32.mrb[4].mxu0  ;;  %v1822_v17 = vpop.f32.mrb[4].mxu1 }
 0x102   : > { %1992 = vtanh.f32 %v1758_v16  ;;  %v774_v18 = vpop.f32.mrb[5].mxu0  ;;  %v1030_v19 = vpop.f32.mrb[5].mxu1 }
 0x103   : > { %1994 = vtanh.f32 %v1822_v17  ;;  %v1759_v20 = vpop.f32.mrb[6].mxu0  ;;  %v1823_v21 = vpop.f32.mrb[6].mxu1 }
 0x104   : > { %v1977_v22 = vpop.eup %1976  ;;  %1996 = vtanh.f32 %v774_v18  ;;  %v777_v23 = vpop.f32.mrb[7].mxu0 }
 0x105   : > { %v1033_v24 = vpop.f32.mrb[7].mxu1  ;;  %v1979_v25 = vpop.eup %1978  ;;  %1399 = vst [vmem:[%s2363_s7 + $0x10] sm:$0xff] %v1977_v22  ;;  %1998 = vtanh.f32 %v1030_v19 }
 0x106   : > { %v1981_v26 = vpop.eup %1980  ;;  %1463 = vst [vmem:[%s2363_s7 + $0x210] sm:$0xff] %v1979_v25  ;;  %2000 = vtanh.f32 %v1759_v20 }
 0x107   : > { %v1983_v27 = vpop.eup %1982  ;;  %1397 = vst [vmem:[%s2363_s7] sm:$0xff] %v1981_v26  ;;  %2002 = vtanh.f32 %v1823_v21 }
 0x108   : > { %v1985_v28 = vpop.eup %1984  ;;  %1461 = vst [vmem:[%s2363_s7 + $0x200] sm:$0xff] %v1983_v27  ;;  %2004 = vtanh.f32 %v777_v23 }
 0x109   : > { %v1987_v29 = vpop.eup %1986  ;;  %1400 = vst [vmem:[%s2363_s7 + $0x18] sm:$0xff] %v1985_v28  ;;  %2006 = vtanh.f32 %v1033_v24  ;;  %v1762_v30 = vpop.f32.mrb[8].mxu0 }
 0x10a   : > { %v1826_v31 = vpop.f32.mrb[8].mxu1  ;;  %v1989_v32 = vpop.eup %1988  ;;  %1464 = vst [vmem:[%s2363_s7 + $0x218] sm:$0xff] %v1987_v29  ;;  %2008 = vtanh.f32 %v1762_v30 }
 0x10b   : > { %v790_v33 = vpop.f32.mrb[9].mxu0  ;;  %v1046_v34 = vpop.f32.mrb[9].mxu1  ;;  %1398 = vst [vmem:[%s2363_s7 + $0x8] sm:$0xff] %v1989_v32  ;;  %2010 = vtanh.f32 %v1826_v31 }
 0x10c   : > { %v1991_v35 = vpop.eup %1990  ;;  %v1763_v36 = vpop.f32.mrb[10].mxu0  ;;  %2012 = vtanh.f32 %v790_v33 }
 0x10d   : > { %v1827_v37 = vpop.f32.mrb[10].mxu1  ;;  %v1993_v38 = vpop.eup %1992  ;;  %1462 = vst [vmem:[%s2363_s7 + $0x208] sm:$0xff] %v1991_v35  ;;  %2014 = vtanh.f32 %v1046_v34 }
 0x10e   : > { %v793_v39 = vpop.f32.mrb[11].mxu0  ;;  %v1049_v40 = vpop.f32.mrb[11].mxu1  ;;  %1403 = vst [vmem:[%s2363_s7 + $0x30] sm:$0xff] %v1993_v38  ;;  %2016 = vtanh.f32 %v1763_v36 }
 0x10f   : > { %v1995_v41 = vpop.eup %1994  ;;  %2018 = vtanh.f32 %v1827_v37 }
 0x110   : > { %v1997_v42 = vpop.eup %1996  ;;  %1467 = vst [vmem:[%s2363_s7 + $0x230] sm:$0xff] %v1995_v41  ;;  %2020 = vtanh.f32 %v793_v39 }
 0x111   : > { %v1999_v43 = vpop.eup %1998  ;;  %1401 = vst [vmem:[%s2363_s7 + $0x20] sm:$0xff] %v1997_v42  ;;  %2022 = vtanh.f32 %v1049_v40  ;;  %v1766_v46 = vpop.f32.mrb[12].mxu0 }
 0x112   : > { %v2001_v44 = vpop.eup %2000  ;;  %1465 = vst [vmem:[%s2363_s7 + $0x220] sm:$0xff] %v1999_v43  ;;  %v1830_v47 = vpop.f32.mrb[12].mxu1  ;;  %2024 = vtanh.f32 %v1766_v46 }
 0x113   : > { %v2003_v45 = vpop.eup %2002  ;;  %1404 = vst [vmem:[%s2363_s7 + $0x38] sm:$0xff] %v2001_v44  ;;  %v806_v49 = vpop.f32.mrb[13].mxu0  ;;  %2026 = vtanh.f32 %v1830_v47 }
 0x114   : > { %v2005_v48 = vpop.eup %2004  ;;  %1468 = vst [vmem:[%s2363_s7 + $0x238] sm:$0xff] %v2003_v45  ;;  %v1062_v50 = vpop.f32.mrb[13].mxu1  ;;  %2028 = vtanh.f32 %v806_v49 }
 0x115   : > { %v2007_v51 = vpop.eup %2006  ;;  %1402 = vst [vmem:[%s2363_s7 + $0x28] sm:$0xff] %v2005_v48  ;;  %v1767_v52 = vpop.f32.mrb[14].mxu0  ;;  %2030 = vtanh.f32 %v1062_v50 }
 0x116   : > { %v1831_v53 = vpop.f32.mrb[14].mxu1  ;;  %v2009_v54 = vpop.eup %2008  ;;  %1466 = vst [vmem:[%s2363_s7 + $0x228] sm:$0xff] %v2007_v51  ;;  %2032 = vtanh.f32 %v1767_v52 }
 0x117   : > { %v809_v55 = vpop.f32.mrb[15].mxu0  ;;  %v1065_v56 = vpop.f32.mrb[15].mxu1  ;;  %1407 = vst [vmem:[%s2363_s7 + $0x50] sm:$0xff] %v2009_v54  ;;  %2034 = vtanh.f32 %v1831_v53 }
 0x118   : > { %v2011_v57 = vpop.eup %2010  ;;  %2036 = vtanh.f32 %v809_v55 }
 0x119   : > { %v2013_v58 = vpop.eup %2012  ;;  %1471 = vst [vmem:[%s2363_s7 + $0x250] sm:$0xff] %v2011_v57  ;;  %2038 = vtanh.f32 %v1065_v56  ;;  %v1770_v62 = vpop.f32.mrb[16].mxu0 }
 0x11a   : > { %v2015_v59 = vpop.eup %2014  ;;  %1405 = vst [vmem:[%s2363_s7 + $0x40] sm:$0xff] %v2013_v58  ;;  %v1834_v63 = vpop.f32.mrb[16].mxu1  ;;  %2040 = vtanh.f32 %v1770_v62 }
 0x11b   : > { %v2017_v60 = vpop.eup %2016  ;;  %1469 = vst [vmem:[%s2363_s7 + $0x240] sm:$0xff] %v2015_v59  ;;  %v822_v1 = vpop.f32.mrb[17].mxu0  ;;  %2042 = vtanh.f32 %v1834_v63 }
 0x11c   : > { %v2019_v61 = vpop.eup %2018  ;;  %1408 = vst [vmem:[%s2363_s7 + $0x58] sm:$0xff] %v2017_v60  ;;  %v1078_v2 = vpop.f32.mrb[17].mxu1  ;;  %2044 = vtanh.f32 %v822_v1 }
 0x11d   : > { %v2021_v0 = vpop.eup %2020  ;;  %1472 = vst [vmem:[%s2363_s7 + $0x258] sm:$0xff] %v2019_v61  ;;  %v1771_v4 = vpop.f32.mrb[18].mxu0  ;;  %2046 = vtanh.f32 %v1078_v2 }
 0x11e   : > { %v2023_v3 = vpop.eup %2022  ;;  %1406 = vst [vmem:[%s2363_s7 + $0x48] sm:$0xff] %v2021_v0  ;;  %v1835_v5 = vpop.f32.mrb[18].mxu1  ;;  %2048 = vtanh.f32 %v1771_v4 }
 0x11f   : > { %v2025_v6 = vpop.eup %2024  ;;  %1470 = vst [vmem:[%s2363_s7 + $0x248] sm:$0xff] %v2023_v3  ;;  %v825_v7 = vpop.f32.mrb[19].mxu0  ;;  %2050 = vtanh.f32 %v1835_v5 }
 0x120   : > { %v1081_v8 = vpop.f32.mrb[19].mxu1  ;;  %v2027_v9 = vpop.eup %2026  ;;  %1411 = vst [vmem:[%s2363_s7 + $0x70] sm:$0xff] %v2025_v6  ;;  %2052 = vtanh.f32 %v825_v7 }
 0x121   : > { %v2029_v10 = vpop.eup %2028  ;;  %1475 = vst [vmem:[%s2363_s7 + $0x270] sm:$0xff] %v2027_v9  ;;  %2054 = vtanh.f32 %v1081_v8  ;;  %v1774_v14 = vpop.f32.mrb[20].mxu0 }
 0x122   : > { %v2031_v11 = vpop.eup %2030  ;;  %1409 = vst [vmem:[%s2363_s7 + $0x60] sm:$0xff] %v2029_v10  ;;  %v1838_v15 = vpop.f32.mrb[20].mxu1  ;;  %2056 = vtanh.f32 %v1774_v14 }
 0x123   : > { %v2033_v12 = vpop.eup %2032  ;;  %1473 = vst [vmem:[%s2363_s7 + $0x260] sm:$0xff] %v2031_v11  ;;  %v838_v17 = vpop.f32.mrb[21].mxu0  ;;  %2058 = vtanh.f32 %v1838_v15 }
 0x124   : > { %v2035_v13 = vpop.eup %2034  ;;  %1412 = vst [vmem:[%s2363_s7 + $0x78] sm:$0xff] %v2033_v12  ;;  %v1094_v18 = vpop.f32.mrb[21].mxu1  ;;  %2060 = vtanh.f32 %v838_v17 }
 0x125   : > { %v2037_v16 = vpop.eup %2036  ;;  %1476 = vst [vmem:[%s2363_s7 + $0x278] sm:$0xff] %v2035_v13  ;;  %v1775_v20 = vpop.f32.mrb[22].mxu0  ;;  %2062 = vtanh.f32 %v1094_v18 }
 0x126   : > { %v2039_v19 = vpop.eup %2038  ;;  %1410 = vst [vmem:[%s2363_s7 + $0x68] sm:$0xff] %v2037_v16  ;;  %v1839_v21 = vpop.f32.mrb[22].mxu1  ;;  %2064 = vtanh.f32 %v1775_v20 }
 0x127   : > { %v2041_v22 = vpop.eup %2040  ;;  %1474 = vst [vmem:[%s2363_s7 + $0x268] sm:$0xff] %v2039_v19  ;;  %v841_v23 = vpop.f32.mrb[23].mxu0  ;;  %2066 = vtanh.f32 %v1839_v21 }
 0x128   : > { %v1097_v24 = vpop.f32.mrb[23].mxu1  ;;  %v2043_v25 = vpop.eup %2042  ;;  %1415 = vst [vmem:[%s2363_s7 + $0x90] sm:$0xff] %v2041_v22  ;;  %2068 = vtanh.f32 %v841_v23 }
 0x129   : > { %v2045_v26 = vpop.eup %2044  ;;  %1479 = vst [vmem:[%s2363_s7 + $0x290] sm:$0xff] %v2043_v25  ;;  %2070 = vtanh.f32 %v1097_v24  ;;  %v1778_v30 = vpop.f32.mrb[24].mxu0 }
 0x12a   : > { %v2047_v27 = vpop.eup %2046  ;;  %1413 = vst [vmem:[%s2363_s7 + $0x80] sm:$0xff] %v2045_v26  ;;  %v1842_v31 = vpop.f32.mrb[24].mxu1  ;;  %2072 = vtanh.f32 %v1778_v30 }
 0x12b   : > { %v2049_v28 = vpop.eup %2048  ;;  %1477 = vst [vmem:[%s2363_s7 + $0x280] sm:$0xff] %v2047_v27  ;;  %v854_v33 = vpop.f32.mrb[25].mxu0  ;;  %2074 = vtanh.f32 %v1842_v31 }
 0x12c   : > { %v2051_v29 = vpop.eup %2050  ;;  %1416 = vst [vmem:[%s2363_s7 + $0x98] sm:$0xff] %v2049_v28  ;;  %v1110_v34 = vpop.f32.mrb[25].mxu1  ;;  %2076 = vtanh.f32 %v854_v33 }
 0x12d   : > { %v2053_v32 = vpop.eup %2052  ;;  %1480 = vst [vmem:[%s2363_s7 + $0x298] sm:$0xff] %v2051_v29  ;;  %v1779_v36 = vpop.f32.mrb[26].mxu0  ;;  %2078 = vtanh.f32 %v1110_v34 }
 0x12e   : > { %v2055_v35 = vpop.eup %2054  ;;  %1414 = vst [vmem:[%s2363_s7 + $0x88] sm:$0xff] %v2053_v32  ;;  %v1843_v37 = vpop.f32.mrb[26].mxu1  ;;  %2080 = vtanh.f32 %v1779_v36 }
 0x12f   : > { %v2057_v38 = vpop.eup %2056  ;;  %1478 = vst [vmem:[%s2363_s7 + $0x288] sm:$0xff] %v2055_v35  ;;  %v857_v39 = vpop.f32.mrb[27].mxu0  ;;  %2082 = vtanh.f32 %v1843_v37 }
 0x130   : > { %v1113_v40 = vpop.f32.mrb[27].mxu1  ;;  %v2059_v41 = vpop.eup %2058  ;;  %1419 = vst [vmem:[%s2363_s7 + $0xb0] sm:$0xff] %v2057_v38  ;;  %2084 = vtanh.f32 %v857_v39 }
 0x131   : > { %v2061_v42 = vpop.eup %2060  ;;  %1483 = vst [vmem:[%s2363_s7 + $0x2b0] sm:$0xff] %v2059_v41  ;;  %2086 = vtanh.f32 %v1113_v40  ;;  %v1782_v46 = vpop.f32.mrb[28].mxu0 }
 0x132   : > { %v2063_v43 = vpop.eup %2062  ;;  %1417 = vst [vmem:[%s2363_s7 + $0xa0] sm:$0xff] %v2061_v42  ;;  %v1846_v47 = vpop.f32.mrb[28].mxu1  ;;  %2088 = vtanh.f32 %v1782_v46 }
 0x133   : > { %v2065_v44 = vpop.eup %2064  ;;  %1481 = vst [vmem:[%s2363_s7 + $0x2a0] sm:$0xff] %v2063_v43  ;;  %v870_v49 = vpop.f32.mrb[29].mxu0  ;;  %2090 = vtanh.f32 %v1846_v47 }
 0x134   : > { %v2067_v45 = vpop.eup %2066  ;;  %1420 = vst [vmem:[%s2363_s7 + $0xb8] sm:$0xff] %v2065_v44  ;;  %v1126_v50 = vpop.f32.mrb[29].mxu1  ;;  %2092 = vtanh.f32 %v870_v49 }
 0x135   : > { %v2069_v48 = vpop.eup %2068  ;;  %1484 = vst [vmem:[%s2363_s7 + $0x2b8] sm:$0xff] %v2067_v45  ;;  %v1783_v52 = vpop.f32.mrb[30].mxu0  ;;  %2094 = vtanh.f32 %v1126_v50 }
 0x136   : > { %v2071_v51 = vpop.eup %2070  ;;  %1418 = vst [vmem:[%s2363_s7 + $0xa8] sm:$0xff] %v2069_v48  ;;  %v1847_v53 = vpop.f32.mrb[30].mxu1  ;;  %2096 = vtanh.f32 %v1783_v52 }
 0x137   : > { %v2073_v54 = vpop.eup %2072  ;;  %1482 = vst [vmem:[%s2363_s7 + $0x2a8] sm:$0xff] %v2071_v51  ;;  %v873_v55 = vpop.f32.mrb[31].mxu0  ;;  %2098 = vtanh.f32 %v1847_v53 }
 0x138   : > { %v1129_v56 = vpop.f32.mrb[31].mxu1  ;;  %v2075_v57 = vpop.eup %2074  ;;  %1423 = vst [vmem:[%s2363_s7 + $0xd0] sm:$0xff] %v2073_v54  ;;  %2100 = vtanh.f32 %v873_v55 }
 0x139   : > { %v2077_v58 = vpop.eup %2076  ;;  %1487 = vst [vmem:[%s2363_s7 + $0x2d0] sm:$0xff] %v2075_v57  ;;  %2102 = vtanh.f32 %v1129_v56  ;;  %v1786_v62 = vpop.f32.mrb[32].mxu0 }
 0x13a   : > { %v2079_v59 = vpop.eup %2078  ;;  %1421 = vst [vmem:[%s2363_s7 + $0xc0] sm:$0xff] %v2077_v58  ;;  %v1850_v63 = vpop.f32.mrb[32].mxu1  ;;  %2104 = vtanh.f32 %v1786_v62 }
 0x13b   : > { %v2081_v60 = vpop.eup %2080  ;;  %1485 = vst [vmem:[%s2363_s7 + $0x2c0] sm:$0xff] %v2079_v59  ;;  %v886_v1 = vpop.f32.mrb[33].mxu0  ;;  %2106 = vtanh.f32 %v1850_v63 }
 0x13c   : > { %v2083_v61 = vpop.eup %2082  ;;  %1424 = vst [vmem:[%s2363_s7 + $0xd8] sm:$0xff] %v2081_v60  ;;  %v1142_v2 = vpop.f32.mrb[33].mxu1  ;;  %2108 = vtanh.f32 %v886_v1 }
 0x13d   : > { %v2085_v0 = vpop.eup %2084  ;;  %1488 = vst [vmem:[%s2363_s7 + $0x2d8] sm:$0xff] %v2083_v61  ;;  %v1787_v4 = vpop.f32.mrb[34].mxu0  ;;  %2110 = vtanh.f32 %v1142_v2 }
 0x13e   : > { %v2087_v3 = vpop.eup %2086  ;;  %1422 = vst [vmem:[%s2363_s7 + $0xc8] sm:$0xff] %v2085_v0  ;;  %v1851_v5 = vpop.f32.mrb[34].mxu1  ;;  %2112 = vtanh.f32 %v1787_v4 }
 0x13f   : > { %v2089_v6 = vpop.eup %2088  ;;  %1486 = vst [vmem:[%s2363_s7 + $0x2c8] sm:$0xff] %v2087_v3  ;;  %v889_v7 = vpop.f32.mrb[35].mxu0  ;;  %2114 = vtanh.f32 %v1851_v5 }
 0x140   : > { %v1145_v8 = vpop.f32.mrb[35].mxu1  ;;  %v2091_v9 = vpop.eup %2090  ;;  %1427 = vst [vmem:[%s2363_s7 + $0xf0] sm:$0xff] %v2089_v6  ;;  %2116 = vtanh.f32 %v889_v7 }
 0x141   : > { %v2093_v10 = vpop.eup %2092  ;;  %1491 = vst [vmem:[%s2363_s7 + $0x2f0] sm:$0xff] %v2091_v9  ;;  %2118 = vtanh.f32 %v1145_v8  ;;  %v1790_v14 = vpop.f32.mrb[36].mxu0 }
 0x142   : > { %v2095_v11 = vpop.eup %2094  ;;  %1425 = vst [vmem:[%s2363_s7 + $0xe0] sm:$0xff] %v2093_v10  ;;  %v1854_v15 = vpop.f32.mrb[36].mxu1  ;;  %2120 = vtanh.f32 %v1790_v14 }
 0x143   : > { %v2097_v12 = vpop.eup %2096  ;;  %1489 = vst [vmem:[%s2363_s7 + $0x2e0] sm:$0xff] %v2095_v11  ;;  %v902_v17 = vpop.f32.mrb[37].mxu0  ;;  %2122 = vtanh.f32 %v1854_v15 }
 0x144   : > { %v2099_v13 = vpop.eup %2098  ;;  %1428 = vst [vmem:[%s2363_s7 + $0xf8] sm:$0xff] %v2097_v12  ;;  %v1158_v18 = vpop.f32.mrb[37].mxu1  ;;  %2124 = vtanh.f32 %v902_v17 }
 0x145   : > { %v2101_v16 = vpop.eup %2100  ;;  %1492 = vst [vmem:[%s2363_s7 + $0x2f8] sm:$0xff] %v2099_v13  ;;  %v1791_v20 = vpop.f32.mrb[38].mxu0  ;;  %2126 = vtanh.f32 %v1158_v18 }
 0x146   : > { %v2103_v19 = vpop.eup %2102  ;;  %1426 = vst [vmem:[%s2363_s7 + $0xe8] sm:$0xff] %v2101_v16  ;;  %v1855_v21 = vpop.f32.mrb[38].mxu1  ;;  %2128 = vtanh.f32 %v1791_v20 }
 0x147   : > { %v2105_v22 = vpop.eup %2104  ;;  %1490 = vst [vmem:[%s2363_s7 + $0x2e8] sm:$0xff] %v2103_v19  ;;  %v905_v23 = vpop.f32.mrb[39].mxu0  ;;  %2130 = vtanh.f32 %v1855_v21 }
 0x148   : > { %v1161_v24 = vpop.f32.mrb[39].mxu1  ;;  %v2107_v25 = vpop.eup %2106  ;;  %1431 = vst [vmem:[%s2363_s7 + $0x110] sm:$0xff] %v2105_v22  ;;  %2132 = vtanh.f32 %v905_v23 }
 0x149   : > { %v2109_v26 = vpop.eup %2108  ;;  %1495 = vst [vmem:[%s2363_s7 + $0x310] sm:$0xff] %v2107_v25  ;;  %2134 = vtanh.f32 %v1161_v24  ;;  %v1794_v30 = vpop.f32.mrb[40].mxu0 }
 0x14a   : > { %v2111_v27 = vpop.eup %2110  ;;  %1429 = vst [vmem:[%s2363_s7 + $0x100] sm:$0xff] %v2109_v26  ;;  %v1858_v31 = vpop.f32.mrb[40].mxu1  ;;  %2136 = vtanh.f32 %v1794_v30 }
 0x14b   : > { %v2113_v28 = vpop.eup %2112  ;;  %1493 = vst [vmem:[%s2363_s7 + $0x300] sm:$0xff] %v2111_v27  ;;  %v918_v33 = vpop.f32.mrb[41].mxu0  ;;  %2138 = vtanh.f32 %v1858_v31 }
 0x14c   : > { %v2115_v29 = vpop.eup %2114  ;;  %1432 = vst [vmem:[%s2363_s7 + $0x118] sm:$0xff] %v2113_v28  ;;  %v1174_v34 = vpop.f32.mrb[41].mxu1  ;;  %2140 = vtanh.f32 %v918_v33 }
 0x14d   : > { %v2117_v32 = vpop.eup %2116  ;;  %1496 = vst [vmem:[%s2363_s7 + $0x318] sm:$0xff] %v2115_v29  ;;  %v1795_v36 = vpop.f32.mrb[42].mxu0  ;;  %2142 = vtanh.f32 %v1174_v34 }
 0x14e   : > { %v2119_v35 = vpop.eup %2118  ;;  %1430 = vst [vmem:[%s2363_s7 + $0x108] sm:$0xff] %v2117_v32  ;;  %v1859_v37 = vpop.f32.mrb[42].mxu1  ;;  %2144 = vtanh.f32 %v1795_v36 }
 0x14f   : > { %v2121_v38 = vpop.eup %2120  ;;  %1494 = vst [vmem:[%s2363_s7 + $0x308] sm:$0xff] %v2119_v35  ;;  %v921_v39 = vpop.f32.mrb[43].mxu0  ;;  %2146 = vtanh.f32 %v1859_v37 }
 0x150   : > { %v1177_v40 = vpop.f32.mrb[43].mxu1  ;;  %v2123_v41 = vpop.eup %2122  ;;  %1435 = vst [vmem:[%s2363_s7 + $0x130] sm:$0xff] %v2121_v38  ;;  %2148 = vtanh.f32 %v921_v39 }
 0x151   : > { %v2125_v42 = vpop.eup %2124  ;;  %1499 = vst [vmem:[%s2363_s7 + $0x330] sm:$0xff] %v2123_v41  ;;  %2150 = vtanh.f32 %v1177_v40  ;;  %v1798_v46 = vpop.f32.mrb[44].mxu0 }
 0x152   : > { %v2127_v43 = vpop.eup %2126  ;;  %1433 = vst [vmem:[%s2363_s7 + $0x120] sm:$0xff] %v2125_v42  ;;  %v1862_v47 = vpop.f32.mrb[44].mxu1  ;;  %2152 = vtanh.f32 %v1798_v46 }
 0x153   : > { %v2129_v44 = vpop.eup %2128  ;;  %1497 = vst [vmem:[%s2363_s7 + $0x320] sm:$0xff] %v2127_v43  ;;  %v934_v49 = vpop.f32.mrb[45].mxu0  ;;  %2154 = vtanh.f32 %v1862_v47 }
 0x154   : > { %v2131_v45 = vpop.eup %2130  ;;  %1436 = vst [vmem:[%s2363_s7 + $0x138] sm:$0xff] %v2129_v44  ;;  %v1190_v50 = vpop.f32.mrb[45].mxu1  ;;  %2156 = vtanh.f32 %v934_v49 }
 0x155   : > { %v2133_v48 = vpop.eup %2132  ;;  %1500 = vst [vmem:[%s2363_s7 + $0x338] sm:$0xff] %v2131_v45  ;;  %v1799_v52 = vpop.f32.mrb[46].mxu0  ;;  %2158 = vtanh.f32 %v1190_v50 }
 0x156   : > { %v2135_v51 = vpop.eup %2134  ;;  %1434 = vst [vmem:[%s2363_s7 + $0x128] sm:$0xff] %v2133_v48  ;;  %v1863_v53 = vpop.f32.mrb[46].mxu1  ;;  %2160 = vtanh.f32 %v1799_v52 }
 0x157   : > { %v2137_v54 = vpop.eup %2136  ;;  %1498 = vst [vmem:[%s2363_s7 + $0x328] sm:$0xff] %v2135_v51  ;;  %v937_v55 = vpop.f32.mrb[47].mxu0  ;;  %2162 = vtanh.f32 %v1863_v53 }
 0x158   : > { %v1193_v56 = vpop.f32.mrb[47].mxu1  ;;  %v2139_v57 = vpop.eup %2138  ;;  %1439 = vst [vmem:[%s2363_s7 + $0x150] sm:$0xff] %v2137_v54  ;;  %2164 = vtanh.f32 %v937_v55 }
 0x159   : > { %v2141_v58 = vpop.eup %2140  ;;  %1503 = vst [vmem:[%s2363_s7 + $0x350] sm:$0xff] %v2139_v57  ;;  %2166 = vtanh.f32 %v1193_v56  ;;  %v1802_v62 = vpop.f32.mrb[48].mxu0 }
 0x15a   : > { %v2143_v59 = vpop.eup %2142  ;;  %1437 = vst [vmem:[%s2363_s7 + $0x140] sm:$0xff] %v2141_v58  ;;  %v1866_v63 = vpop.f32.mrb[48].mxu1  ;;  %2168 = vtanh.f32 %v1802_v62 }
 0x15b   : > { %v2145_v60 = vpop.eup %2144  ;;  %1501 = vst [vmem:[%s2363_s7 + $0x340] sm:$0xff] %v2143_v59  ;;  %v950_v1 = vpop.f32.mrb[49].mxu0  ;;  %2170 = vtanh.f32 %v1866_v63 }
 0x15c   : > { %v2147_v61 = vpop.eup %2146  ;;  %1440 = vst [vmem:[%s2363_s7 + $0x158] sm:$0xff] %v2145_v60  ;;  %v1206_v2 = vpop.f32.mrb[49].mxu1  ;;  %2172 = vtanh.f32 %v950_v1 }
 0x15d   : > { %v2149_v0 = vpop.eup %2148  ;;  %1504 = vst [vmem:[%s2363_s7 + $0x358] sm:$0xff] %v2147_v61  ;;  %v1803_v4 = vpop.f32.mrb[50].mxu0  ;;  %2174 = vtanh.f32 %v1206_v2 }
 0x15e   : > { %v2151_v3 = vpop.eup %2150  ;;  %1438 = vst [vmem:[%s2363_s7 + $0x148] sm:$0xff] %v2149_v0  ;;  %v1867_v5 = vpop.f32.mrb[50].mxu1  ;;  %2176 = vtanh.f32 %v1803_v4 }
 0x15f   : > { %v2153_v6 = vpop.eup %2152  ;;  %1502 = vst [vmem:[%s2363_s7 + $0x348] sm:$0xff] %v2151_v3  ;;  %v953_v7 = vpop.f32.mrb[51].mxu0  ;;  %2178 = vtanh.f32 %v1867_v5 }
 0x160   : > { %v1209_v8 = vpop.f32.mrb[51].mxu1  ;;  %v2155_v9 = vpop.eup %2154  ;;  %1443 = vst [vmem:[%s2363_s7 + $0x170] sm:$0xff] %v2153_v6  ;;  %2180 = vtanh.f32 %v953_v7 }
 0x161   : > { %v2157_v10 = vpop.eup %2156  ;;  %1507 = vst [vmem:[%s2363_s7 + $0x370] sm:$0xff] %v2155_v9  ;;  %2182 = vtanh.f32 %v1209_v8  ;;  %v1806_v14 = vpop.f32.mrb[52].mxu0 }
 0x162   : > { %v2159_v11 = vpop.eup %2158  ;;  %1441 = vst [vmem:[%s2363_s7 + $0x160] sm:$0xff] %v2157_v10  ;;  %v1870_v15 = vpop.f32.mrb[52].mxu1  ;;  %2184 = vtanh.f32 %v1806_v14 }
 0x163   : > { %v2161_v12 = vpop.eup %2160  ;;  %1505 = vst [vmem:[%s2363_s7 + $0x360] sm:$0xff] %v2159_v11  ;;  %v966_v17 = vpop.f32.mrb[53].mxu0  ;;  %2186 = vtanh.f32 %v1870_v15 }
 0x164   : > { %v2163_v13 = vpop.eup %2162  ;;  %1444 = vst [vmem:[%s2363_s7 + $0x178] sm:$0xff] %v2161_v12  ;;  %v1222_v18 = vpop.f32.mrb[53].mxu1  ;;  %2188 = vtanh.f32 %v966_v17 }
 0x165   : > { %v2165_v16 = vpop.eup %2164  ;;  %1508 = vst [vmem:[%s2363_s7 + $0x378] sm:$0xff] %v2163_v13  ;;  %v1807_v20 = vpop.f32.mrb[54].mxu0  ;;  %2190 = vtanh.f32 %v1222_v18 }
 0x166   : > { %v2167_v19 = vpop.eup %2166  ;;  %1442 = vst [vmem:[%s2363_s7 + $0x168] sm:$0xff] %v2165_v16  ;;  %v1871_v21 = vpop.f32.mrb[54].mxu1  ;;  %2192 = vtanh.f32 %v1807_v20 }
 0x167   : > { %v2169_v22 = vpop.eup %2168  ;;  %1506 = vst [vmem:[%s2363_s7 + $0x368] sm:$0xff] %v2167_v19  ;;  %v969_v23 = vpop.f32.mrb[55].mxu0  ;;  %2194 = vtanh.f32 %v1871_v21 }
 0x168   : > { %v1225_v24 = vpop.f32.mrb[55].mxu1  ;;  %v2171_v25 = vpop.eup %2170  ;;  %1447 = vst [vmem:[%s2363_s7 + $0x190] sm:$0xff] %v2169_v22  ;;  %2196 = vtanh.f32 %v969_v23 }
 0x169   : > { %v2173_v26 = vpop.eup %2172  ;;  %1511 = vst [vmem:[%s2363_s7 + $0x390] sm:$0xff] %v2171_v25  ;;  %2198 = vtanh.f32 %v1225_v24  ;;  %v1810_v30 = vpop.f32.mrb[56].mxu0 }
 0x16a   : > { %v2175_v27 = vpop.eup %2174  ;;  %1445 = vst [vmem:[%s2363_s7 + $0x180] sm:$0xff] %v2173_v26  ;;  %v1874_v31 = vpop.f32.mrb[56].mxu1  ;;  %2200 = vtanh.f32 %v1810_v30 }
 0x16b   : > { %v2177_v28 = vpop.eup %2176  ;;  %1509 = vst [vmem:[%s2363_s7 + $0x380] sm:$0xff] %v2175_v27  ;;  %v982_v33 = vpop.f32.mrb[57].mxu0  ;;  %2202 = vtanh.f32 %v1874_v31 }
 0x16c   : > { %v2179_v29 = vpop.eup %2178  ;;  %1448 = vst [vmem:[%s2363_s7 + $0x198] sm:$0xff] %v2177_v28  ;;  %v1238_v34 = vpop.f32.mrb[57].mxu1  ;;  %2204 = vtanh.f32 %v982_v33 }
 0x16d   : > { %v2181_v32 = vpop.eup %2180  ;;  %1512 = vst [vmem:[%s2363_s7 + $0x398] sm:$0xff] %v2179_v29  ;;  %v1811_v36 = vpop.f32.mrb[58].mxu0  ;;  %2206 = vtanh.f32 %v1238_v34 }
 0x16e   : > { %v2183_v35 = vpop.eup %2182  ;;  %1446 = vst [vmem:[%s2363_s7 + $0x188] sm:$0xff] %v2181_v32  ;;  %v1875_v37 = vpop.f32.mrb[58].mxu1  ;;  %2208 = vtanh.f32 %v1811_v36 }
 0x16f   : > { %v2185_v38 = vpop.eup %2184  ;;  %1510 = vst [vmem:[%s2363_s7 + $0x388] sm:$0xff] %v2183_v35  ;;  %v985_v39 = vpop.f32.mrb[59].mxu0  ;;  %2210 = vtanh.f32 %v1875_v37 }
 0x170   : > { %v1241_v40 = vpop.f32.mrb[59].mxu1  ;;  %v2187_v41 = vpop.eup %2186  ;;  %1451 = vst [vmem:[%s2363_s7 + $0x1b0] sm:$0xff] %v2185_v38  ;;  %2212 = vtanh.f32 %v985_v39 }
 0x171   : > { %v2189_v42 = vpop.eup %2188  ;;  %1515 = vst [vmem:[%s2363_s7 + $0x3b0] sm:$0xff] %v2187_v41  ;;  %2214 = vtanh.f32 %v1241_v40  ;;  %v1814_v46 = vpop.f32.mrb[60].mxu0 }
 0x172   : > { %v2191_v43 = vpop.eup %2190  ;;  %1449 = vst [vmem:[%s2363_s7 + $0x1a0] sm:$0xff] %v2189_v42  ;;  %v1878_v47 = vpop.f32.mrb[60].mxu1  ;;  %2216 = vtanh.f32 %v1814_v46 }
 0x173   : > { %v2193_v44 = vpop.eup %2192  ;;  %1513 = vst [vmem:[%s2363_s7 + $0x3a0] sm:$0xff] %v2191_v43  ;;  %v998_v49 = vpop.f32.mrb[61].mxu0  ;;  %2218 = vtanh.f32 %v1878_v47 }
 0x174   : > { %v2195_v45 = vpop.eup %2194  ;;  %1452 = vst [vmem:[%s2363_s7 + $0x1b8] sm:$0xff] %v2193_v44  ;;  %v1254_v50 = vpop.f32.mrb[61].mxu1  ;;  %2220 = vtanh.f32 %v998_v49 }
 0x175   : > { %v2197_v48 = vpop.eup %2196  ;;  %1516 = vst [vmem:[%s2363_s7 + $0x3b8] sm:$0xff] %v2195_v45  ;;  %v1815_v52 = vpop.f32.mrb[62].mxu0  ;;  %2222 = vtanh.f32 %v1254_v50 }
 0x176   : > { %v2199_v51 = vpop.eup %2198  ;;  %1450 = vst [vmem:[%s2363_s7 + $0x1a8] sm:$0xff] %v2197_v48  ;;  %v1879_v53 = vpop.f32.mrb[62].mxu1  ;;  %2224 = vtanh.f32 %v1815_v52 }
 0x177   : > { %v2201_v54 = vpop.eup %2200  ;;  %1514 = vst [vmem:[%s2363_s7 + $0x3a8] sm:$0xff] %v2199_v51  ;;  %v1001_v55 = vpop.f32.mrb[63].mxu0  ;;  %2226 = vtanh.f32 %v1879_v53 }
 0x178   : > { %v1257_v56 = vpop.f32.mrb[63].mxu1  ;;  %v2203_v57 = vpop.eup %2202  ;;  %1455 = vst [vmem:[%s2363_s7 + $0x1d0] sm:$0xff] %v2201_v54  ;;  %2228 = vtanh.f32 %v1001_v55 }
 0x179   : > { %v2205_v58 = vpop.eup %2204  ;;  %1519 = vst [vmem:[%s2363_s7 + $0x3d0] sm:$0xff] %v2203_v57  ;;  %2230 = vtanh.f32 %v1257_v56 }
 0x17a   : > { %v2207_v59 = vpop.eup %2206  ;;  %1453 = vst [vmem:[%s2363_s7 + $0x1c0] sm:$0xff] %v2205_v58 }
 0x17b   : > { %v2209_v60 = vpop.eup %2208  ;;  %1517 = vst [vmem:[%s2363_s7 + $0x3c0] sm:$0xff] %v2207_v59 }
 0x17c   : > { %v2211_v61 = vpop.eup %2210  ;;  %1456 = vst [vmem:[%s2363_s7 + $0x1d8] sm:$0xff] %v2209_v60 }
 0x17d   : > { %v2213_v62 = vpop.eup %2212  ;;  %1520 = vst [vmem:[%s2363_s7 + $0x3d8] sm:$0xff] %v2211_v61 }
 0x17e   : > { %v2215_v63 = vpop.eup %2214  ;;  %1454 = vst [vmem:[%s2363_s7 + $0x1c8] sm:$0xff] %v2213_v62 }
 0x17f   : > { %v2217_v0 = vpop.eup %2216  ;;  %1518 = vst [vmem:[%s2363_s7 + $0x3c8] sm:$0xff] %v2215_v63 }
 0x180   : > { %v2219_v1 = vpop.eup %2218  ;;  %1459 = vst [vmem:[%s2363_s7 + $0x1f0] sm:$0xff] %v2217_v0 }
 0x181   : > { %v2221_v2 = vpop.eup %2220  ;;  %1523 = vst [vmem:[%s2363_s7 + $0x3f0] sm:$0xff] %v2219_v1 }
 0x182   : > { %v2223_v3 = vpop.eup %2222  ;;  %1457 = vst [vmem:[%s2363_s7 + $0x1e0] sm:$0xff] %v2221_v2 }
 0x183   : > { %v2225_v4 = vpop.eup %2224  ;;  %1521 = vst [vmem:[%s2363_s7 + $0x3e0] sm:$0xff] %v2223_v3 }
 0x184   : > { %v2227_v5 = vpop.eup %2226  ;;  %1460 = vst [vmem:[%s2363_s7 + $0x1f8] sm:$0xff] %v2225_v4 }
 0x185   : > { %v2229_v6 = vpop.eup %2228  ;;  %1524 = vst [vmem:[%s2363_s7 + $0x3f8] sm:$0xff] %v2227_v5 }
 0x186   : > { %v2231_v7 = vpop.eup %2230  ;;  %1458 = vst [vmem:[%s2363_s7 + $0x1e8] sm:$0xff] %v2229_v6 }
 0x187   : > { %1522 = vst [vmem:[%s2363_s7 + $0x3e8] sm:$0xff] %v2231_v7 }
 0x188 PF: > { %s12_s9 = sadd.s32 1, %s2238_s9  }
 0x189   : > { %p9_p4 = scmp.ge.s32.totalorder %s12_s9, 10  }
 0x18b   :  { %11 = sbr.rel (!%p9_p4) target bundleno = 1 (0x1), region = 58 }

</bundles_post_ra>
